<compile_context>
chip_gen: v7x
topology: tpu7x:2x2x1
jax: 0.10.0
libtpu: 0.0.40
codegen_flags: <defaults>
</compile_context>

<pallas_src>
import functools
import math

import jax
import jax.numpy as jnp
from jax.experimental import pallas as pl
from jax.experimental.pallas import tpu as pltpu


# ------------------------------ fused kernel ------------------------------

def _fused_transformer_kernel(src_ref, tgt_ref, slab_ref, out_ref, *,
                              offs, B, Ls, Lt, C, KC, D, Dh, H, NE, ND):
    """Entire Transformer forward in one program; params come from one slab."""
    f32 = jnp.float32
    scale = 1.0 / math.sqrt(Dh)

    def P(name, rows=None):
        r0, r, c = offs[name]                 # static python ints
        rr = r if rows is None else rows
        return slab_ref[r0:r0 + rr, :c]       # static slice of the VMEM slab

    def layer_norm(x2, g, b):
        mu = jnp.mean(x2, axis=-1, keepdims=True)
        xc = x2 - mu
        var = jnp.mean(xc * xc, axis=-1, keepdims=True)
        return xc * jax.lax.rsqrt(var + 1e-5) * g + b

    def mha(q2, kv2, Lq, Lk, p):
        # Per-head weights were pre-split host-side: no lane sub-slices, no
        # lane concat; the out-projection is accumulated across heads.
        acc = None
        for h in range(H):                    # tiny H -> fully unrolled
            qh = (jnp.dot(q2, P(f"{p}_wq{h}"), preferred_element_type=f32)
                  + P(f"{p}_bq{h}")).reshape(B, Lq, Dh)
            kh = (jnp.dot(kv2, P(f"{p}_wk{h}"), preferred_element_type=f32)
                  + P(f"{p}_bk{h}")).reshape(B, Lk, Dh)
            vh = (jnp.dot(kv2, P(f"{p}_wv{h}"), preferred_element_type=f32)
                  + P(f"{p}_bv{h}")).reshape(B, Lk, Dh)
            s = jnp.einsum("bqd,bkd->bqk", qh, kh,
                           preferred_element_type=f32) * scale
            s = s - jnp.max(s, axis=-1, keepdims=True)
            e = jnp.exp(s)
            w = e * pl.reciprocal(jnp.sum(e, axis=-1, keepdims=True), approx=True)
            oh = jnp.einsum("bqk,bkd->bqd", w, vh, preferred_element_type=f32)
            proj = jnp.dot(oh.reshape(B * Lq, Dh), P(f"{p}_wo{h}"),
                           preferred_element_type=f32)
            acc = proj if acc is None else acc + proj
        return acc + P(f"{p}_bo")

    def ffn(x2, p):
        h1 = jnp.maximum(
            jnp.dot(x2, P(f"{p}_lin1"), preferred_element_type=f32) + P(f"{p}_b1"),
            0.0)
        return jnp.dot(h1, P(f"{p}_lin2"), preferred_element_type=f32) + P(f"{p}_b2")

    # ---- source embedding: Conv1d as ONE unfolded matmul + bias + pos-enc ----
    x = jnp.dot(src_ref[...].reshape(B * Ls, KC), P("conv_w"),
                preferred_element_type=f32) + P("conv_b")
    x = (x.reshape(B, Ls, D) + P("pe_enc", Ls)[None]).reshape(B * Ls, D)

    # ---- target embedding: Linear + pos-enc ----
    y = jnp.dot(tgt_ref[...].reshape(B * Lt, C), P("tgt_w"),
                preferred_element_type=f32) + P("tgt_b")
    y = (y.reshape(B, Lt, D) + P("pe_dec", Lt)[None]).reshape(B * Lt, D)

    # ---- encoder stack (post-LN, dropout = identity) ----
    for i in range(NE):
        p = f"enc{i}"
        x = layer_norm(x + mha(x, x, Ls, Ls, p), P(f"{p}_n1g"), P(f"{p}_n1b"))
        x = layer_norm(x + ffn(x, p), P(f"{p}_n2g"), P(f"{p}_n2b"))
    memory = layer_norm(x, P("enc_norm_g"), P("enc_norm_b"))

    # ---- decoder stack (post-LN, no masks in eval mode) ----
    for i in range(ND):
        p = f"dec{i}"
        y = layer_norm(y + mha(y, y, Lt, Lt, f"{p}_sa"), P(f"{p}_n1g"), P(f"{p}_n1b"))
        y = layer_norm(y + mha(y, memory, Lt, Ls, f"{p}_ca"), P(f"{p}_n2g"), P(f"{p}_n2b"))
        y = layer_norm(y + ffn(y, p), P(f"{p}_n3g"), P(f"{p}_n3b"))
    y = layer_norm(y, P("dec_norm_g"), P("dec_norm_b"))

    # ---- output mapping Linear(D -> 1), written lane-dense as [B, Lt] ----
    z = jnp.sum(y.reshape(B, Lt, D) * P("map_w")[None], axis=-1) + P("map_b")
    out_ref[...] = z


# ------------------------------ host-side glue ------------------------------

def _full_spec(a):
    nd = a.ndim
    return pl.BlockSpec(a.shape, lambda i, nd=nd: (0,) * nd)


def transformer_forward(kparams, src, tgt, *, meta, nhead, d_model, k_size, pad,
                        stride, e_layers, d_layers):
    """src [B, feature_size, src_len] (NCL), tgt [B, feature_size, tgt_len] -> [B, tgt_len, 1]."""
    B, C, Ls_in = src.shape
    Lt = tgt.shape[2]
    L_out = (Ls_in + 2 * pad - k_size) // stride + 1
    # The PyTorch module hard-codes max_len=34 for the encoder pos-enc.
    assert L_out <= meta["enc_pe_len"], "encoder positional encoding too short"
    assert Lt <= meta["dec_pe_len"], "decoder positional encoding (dec_lenth) too short"

    # Layout glue stays host-side: NCL -> NLC, conv zero-padding, im2col unfold.
    src_nlc = jnp.pad(jnp.swapaxes(src, 1, 2), ((0, 0), (pad, pad), (0, 0)))
    taps = [src_nlc[:, t:t + (L_out - 1) * stride + 1:stride, :]
            for t in range(k_size)]
    src_unf = jnp.concatenate(taps, axis=-1)            # [B, L_out, k*C]
    tgt_nlc = jnp.swapaxes(tgt, 1, 2)                   # [B, Lt, C]

    D, H = d_model, nhead
    kernel = functools.partial(
        _fused_transformer_kernel, offs=meta["offs"],
        B=B, Ls=L_out, Lt=Lt, C=C, KC=k_size * C, D=D, Dh=D // H, H=H,
        NE=e_layers, ND=d_layers)

    flat = [src_unf, tgt_nlc, kparams["slab"]]
    out = pl.pallas_call(
        kernel,
        out_shape=jax.ShapeDtypeStruct((B, Lt), jnp.float32),
        grid=(1,),
        in_specs=[_full_spec(a) for a in flat],
        out_specs=pl.BlockSpec((B, Lt), lambda i: (0, 0)),
        compiler_params=pltpu.CompilerParams(
            dimension_semantics=("arbitrary",),
            vmem_limit_bytes=32 * 1024 * 1024),
    )(*flat)
    return out.reshape(B, Lt, 1)


# ------------------------------ parameter prep ------------------------------

def positional_encoding(d_model, max_len):
    position = jnp.arange(max_len, dtype=jnp.float32)[:, None]
    div_term = jnp.exp(jnp.arange(0, d_model, 2, dtype=jnp.float32)
                       * (-math.log(10000.0) / d_model))
    pe = jnp.zeros((max_len, d_model), jnp.float32)
    pe = pe.at[:, 0::2].set(jnp.sin(position * div_term))
    pe = pe.at[:, 1::2].set(jnp.cos(position * div_term))
    return pe


class _SlabBuilder:
    """Packs 2-D parameter blocks into one [rows, 128] f32 slab.
    Every block starts at an 8-row-aligned offset and lane offset 0, so every
    in-kernel slice is a cheap, tile-aligned VMEM load."""

    def __init__(self, width=128):
        self.width = width
        self.blocks = []
        self.offs = {}
        self.rows = 0

    def add(self, name, arr):
        arr = jnp.asarray(arr, jnp.float32)
        if arr.ndim == 1:
            arr = arr[None, :]
        r, c = arr.shape
        assert c <= self.width and name not in self.offs
        rp = ((r + 7) // 8) * 8
        blk = jnp.zeros((rp, self.width), jnp.float32).at[:r, :c].set(arr)
        self.offs[name] = (self.rows, r, c)
        self.blocks.append(blk)
        self.rows += rp

    def finalize(self):
        return jnp.concatenate(self.blocks, axis=0), self.offs


def init_torch_layout_params(key, feature_size, d_model, dim_ff, e_layers, d_layers, k_size):
    """Random parameters in PyTorch state_dict layout (Linear = [out, in], Conv1d = [O, C, k])."""
    keys = iter(jax.random.split(key, 512))

    def rnd(shape, scale=0.1):
        return jax.random.normal(next(keys), shape, jnp.float32) * scale

    def attn_params():
        return dict(in_proj_w=rnd((3 * d_model, d_model)), in_proj_b=rnd((3 * d_model,)),
                    out_proj_w=rnd((d_model, d_model)), out_proj_b=rnd((d_model,)))

    def enc_layer():
        return dict(self_attn=attn_params(),
                    lin1_w=rnd((dim_ff, d_model)), lin1_b=rnd((dim_ff,)),
                    lin2_w=rnd((d_model, dim_ff)), lin2_b=rnd((d_model,)),
                    norm1_g=jnp.ones((d_model,), jnp.float32),
                    norm1_b=jnp.zeros((d_model,), jnp.float32),
                    norm2_g=jnp.ones((d_model,), jnp.float32),
                    norm2_b=jnp.zeros((d_model,), jnp.float32))

    def dec_layer():
        d = enc_layer()
        d["cross_attn"] = attn_params()
        d["norm3_g"] = jnp.ones((d_model,), jnp.float32)
        d["norm3_b"] = jnp.zeros((d_model,), jnp.float32)
        return d

    return dict(
        conv_w=rnd((d_model, feature_size, k_size)), conv_b=rnd((d_model,)),
        tgt_w=rnd((d_model, feature_size)), tgt_b=rnd((d_model,)),
        enc_layers=[enc_layer() for _ in range(e_layers)],
        dec_layers=[dec_layer() for _ in range(d_layers)],
        enc_norm_g=jnp.ones((d_model,), jnp.float32),
        enc_norm_b=jnp.zeros((d_model,), jnp.float32),
        dec_norm_g=jnp.ones((d_model,), jnp.float32),
        dec_norm_b=jnp.zeros((d_model,), jnp.float32),
        map_w=rnd((1, d_model)), map_b=rnd((1,)),
    )


def prep_params(tp, *, d_model, nhead, k_size, dec_lenth, enc_pe_len=34):
    """One-time packing of all parameters into a single kernel-friendly slab."""
    D, H = d_model, nhead
    Dh = D // H
    sb = _SlabBuilder()

    sb.add("pe_enc", positional_encoding(D, enc_pe_len))   # module hard-codes max_len=34
    sb.add("pe_dec", positional_encoding(D, dec_lenth))

    conv_w = tp["conv_w"]                                   # [D, C, k]
    sb.add("conv_w", jnp.concatenate([conv_w[:, :, t].T for t in range(k_size)], axis=0))
    sb.add("conv_b", tp["conv_b"])
    sb.add("tgt_w", tp["tgt_w"].T)
    sb.add("tgt_b", tp["tgt_b"])

    def add_attn(p, a):
        wq, wk, wv = (a["in_proj_w"][i * D:(i + 1) * D] for i in range(3))   # [D,D] (out,in)
        bq, bk, bv = (a["in_proj_b"][i * D:(i + 1) * D] for i in range(3))
        wo = a["out_proj_w"]                                                 # [D,D] (out,in)
        for h in range(H):
            sl = slice(h * Dh, (h + 1) * Dh)
            sb.add(f"{p}_wq{h}", wq[sl].T)       # [D, Dh]
            sb.add(f"{p}_wk{h}", wk[sl].T)
            sb.add(f"{p}_wv{h}", wv[sl].T)
            sb.add(f"{p}_wo{h}", wo[:, sl].T)    # [Dh, D]
            sb.add(f"{p}_bq{h}", bq[sl])
            sb.add(f"{p}_bk{h}", bk[sl])
            sb.add(f"{p}_bv{h}", bv[sl])
        sb.add(f"{p}_bo", a["out_proj_b"])

    def add_common(p, lp):
        sb.add(f"{p}_lin1", lp["lin1_w"].T)      # [D, F]
        sb.add(f"{p}_b1", lp["lin1_b"])
        sb.add(f"{p}_lin2", lp["lin2_w"].T)      # [F, D]
        sb.add(f"{p}_b2", lp["lin2_b"])
        sb.add(f"{p}_n1g", lp["norm1_g"]); sb.add(f"{p}_n1b", lp["norm1_b"])
        sb.add(f"{p}_n2g", lp["norm2_g"]); sb.add(f"{p}_n2b", lp["norm2_b"])

    for i, lp in enumerate(tp["enc_layers"]):
        add_attn(f"enc{i}", lp["self_attn"])
        add_common(f"enc{i}", lp)
    sb.add("enc_norm_g", tp["enc_norm_g"]); sb.add("enc_norm_b", tp["enc_norm_b"])

    for i, lp in enumerate(tp["dec_layers"]):
        add_attn(f"dec{i}_sa", lp["self_attn"])
        add_attn(f"dec{i}_ca", lp["cross_attn"])
        add_common(f"dec{i}", lp)
        sb.add(f"dec{i}_n3g", lp["norm3_g"]); sb.add(f"dec{i}_n3b", lp["norm3_b"])
    sb.add("dec_norm_g", tp["dec_norm_g"]); sb.add("dec_norm_b", tp["dec_norm_b"])

    sb.add("map_w", tp["map_w"][0])              # [D] row form (lane-reduce epilogue)
    sb.add("map_b", tp["map_b"])                 # [1]

    slab, offs = sb.finalize()
    arrays = dict(slab=slab)
    meta = dict(offs=offs, enc_pe_len=enc_pe_len, dec_pe_len=dec_lenth)
    return arrays, meta


# ----------------------------------- main -----------------------------------

if __name__ == "__main__":
    # hyperparameters (small, consistent with the module's __init__)
    feature_size = 4
    e_layers, d_layers = 2, 2
    nhead = 4
    d_model = 32
    dim_feedforward = 64
    dec_lenth = 16
    e_kernel_size, e_padding, e_stride = 3, 1, 1

    key = jax.random.PRNGKey(0)
    kp, ks, kt = jax.random.split(key, 3)
    torch_params = init_torch_layout_params(kp, feature_size, d_model, dim_feedforward,
                                            e_layers, d_layers, e_kernel_size)
    kparams, kmeta = prep_params(torch_params, d_model=d_model, nhead=nhead,
                                 k_size=e_kernel_size, dec_lenth=dec_lenth)

    # src: [batch, feature_size, src_len] (Conv1d NCL), tgt: [batch, feature_size, tgt_len]
    src = jax.random.normal(ks, (2, feature_size, 16), jnp.float32)
    tgt = jax.random.normal(kt, (2, feature_size, 8), jnp.float32)

    fwd = jax.jit(functools.partial(
        transformer_forward, meta=kmeta, nhead=nhead, d_model=d_model,
        k_size=e_kernel_size, pad=e_padding, stride=e_stride,
        e_layers=e_layers, d_layers=d_layers))

    # TODO(synk): dropout layers and the training-mode causal masks are stochastic /
    # training-only in PyTorch; implemented as identity / None (eval-mode semantics).
    out = fwd(kparams, src, tgt)
    jax.block_until_ready(out)
    assert out.shape == (2, 8, 1)
    print("KERNEL_OK")
</pallas_src>

<mosaic_0001>
module attributes {stable_mosaic.version = 11 : i64} {
  func.func @_fused_transformer_kernel(%arg0: i32, %arg1: memref<2x16x12xf32, #tpu.memory_space<vmem>>, %arg2: memref<2x8x4xf32, #tpu.memory_space<vmem>>, %arg3: memref<3872x128xf32, #tpu.memory_space<vmem>>, %arg4: memref<2x8xf32, #tpu.memory_space<vmem>>) attributes {dimension_semantics = [#tpu.dimension_semantics<arbitrary>], iteration_bounds = array<i64: 1>, scalar_prefetch = 0 : i64, scratch_operands = 0 : i64, tpu.core_type = #tpu.core_type<tc>, window_params = [{pipeline_mode = #tpu.pipeline_mode<synchronous>, transform_indices = @transform_0, window_bounds = array<i64: 2, 16, 12>}, {pipeline_mode = #tpu.pipeline_mode<synchronous>, transform_indices = @transform_1, window_bounds = array<i64: 2, 8, 4>}, {pipeline_mode = #tpu.pipeline_mode<synchronous>, transform_indices = @transform_2, window_bounds = array<i64: 3872, 128>}, {pipeline_mode = #tpu.pipeline_mode<synchronous>, transform_indices = @transform_3, window_bounds = array<i64: 2, 8>}]} {
    %c0 = arith.constant 0 : index
    %c0_0 = arith.constant 0 : index
    %c0_1 = arith.constant 0 : index
    %0 = vector.load %arg1[%c0, %c0_0, %c0_1] : memref<2x16x12xf32, #tpu.memory_space<vmem>>, vector<2x16x12xf32>
    %1 = vector.shape_cast %0 : vector<2x16x12xf32> to vector<32x12xf32>
    %c56 = arith.constant 56 : index
    %c0_2 = arith.constant 0 : index
    %2 = vector.load %arg3[%c56, %c0_2] : memref<3872x128xf32, #tpu.memory_space<vmem>>, vector<12x32xf32>
    %cst = arith.constant dense<0.000000e+00> : vector<32x32xf32>
    %3 = tpu.matmul %1, %2, %cst {dimension_numbers = #tpu.dot_dimension_numbers<[1], [0], [0], [1], [0, 0, 1, 1], [], []>} : vector<32x12xf32>, vector<12x32xf32>, vector<32x32xf32> -> vector<32x32xf32>
    %c72 = arith.constant 72 : index
    %c0_3 = arith.constant 0 : index
    %4 = vector.load %arg3[%c72, %c0_3] : memref<3872x128xf32, #tpu.memory_space<vmem>>, vector<1x32xf32>
    %5 = vector.broadcast %4 : vector<1x32xf32> to vector<32x32xf32>
    %6 = arith.addf %3, %5 : vector<32x32xf32>
    %7 = vector.shape_cast %6 : vector<32x32xf32> to vector<2x16x32xf32>
    %c0_4 = arith.constant 0 : index
    %c0_5 = arith.constant 0 : index
    %8 = vector.load %arg3[%c0_4, %c0_5] : memref<3872x128xf32, #tpu.memory_space<vmem>>, vector<16x32xf32>
    %9 = vector.shape_cast %8 : vector<16x32xf32> to vector<1x16x32xf32>
    %10 = vector.broadcast %9 : vector<1x16x32xf32> to vector<2x16x32xf32>
    %11 = arith.addf %7, %10 : vector<2x16x32xf32>
    %12 = vector.shape_cast %11 : vector<2x16x32xf32> to vector<32x32xf32>
    %c0_6 = arith.constant 0 : index
    %c0_7 = arith.constant 0 : index
    %c0_8 = arith.constant 0 : index
    %13 = vector.load %arg2[%c0_6, %c0_7, %c0_8] : memref<2x8x4xf32, #tpu.memory_space<vmem>>, vector<2x8x4xf32>
    %14 = vector.shape_cast %13 : vector<2x8x4xf32> to vector<16x4xf32>
    %c80 = arith.constant 80 : index
    %c0_9 = arith.constant 0 : index
    %15 = vector.load %arg3[%c80, %c0_9] : memref<3872x128xf32, #tpu.memory_space<vmem>>, vector<4x32xf32>
    %cst_10 = arith.constant dense<0.000000e+00> : vector<16x32xf32>
    %16 = tpu.matmul %14, %15, %cst_10 {dimension_numbers = #tpu.dot_dimension_numbers<[1], [0], [0], [1], [0, 0, 1, 1], [], []>} : vector<16x4xf32>, vector<4x32xf32>, vector<16x32xf32> -> vector<16x32xf32>
    %c88 = arith.constant 88 : index
    %c0_11 = arith.constant 0 : index
    %17 = vector.load %arg3[%c88, %c0_11] : memref<3872x128xf32, #tpu.memory_space<vmem>>, vector<1x32xf32>
    %18 = vector.broadcast %17 : vector<1x32xf32> to vector<16x32xf32>
    %19 = arith.addf %16, %18 : vector<16x32xf32>
    %20 = vector.shape_cast %19 : vector<16x32xf32> to vector<2x8x32xf32>
    %c40 = arith.constant 40 : index
    %c0_12 = arith.constant 0 : index
    %21 = vector.load %arg3[%c40, %c0_12] : memref<3872x128xf32, #tpu.memory_space<vmem>>, vector<8x32xf32>
    %22 = vector.shape_cast %21 : vector<8x32xf32> to vector<1x8x32xf32>
    %23 = vector.broadcast %22 : vector<1x8x32xf32> to vector<2x8x32xf32>
    %24 = arith.addf %20, %23 : vector<2x8x32xf32>
    %25 = vector.shape_cast %24 : vector<2x8x32xf32> to vector<16x32xf32>
    %c96 = arith.constant 96 : index
    %c0_13 = arith.constant 0 : index
    %26 = vector.load %arg3[%c96, %c0_13] : memref<3872x128xf32, #tpu.memory_space<vmem>>, vector<32x8xf32>
    %cst_14 = arith.constant dense<0.000000e+00> : vector<32x8xf32>
    %27 = tpu.matmul %12, %26, %cst_14 {dimension_numbers = #tpu.dot_dimension_numbers<[1], [0], [0], [1], [0, 0, 1, 1], [], []>} : vector<32x32xf32>, vector<32x8xf32>, vector<32x8xf32> -> vector<32x8xf32>
    %c200 = arith.constant 200 : index
    %c0_15 = arith.constant 0 : index
    %28 = vector.load %arg3[%c200, %c0_15] : memref<3872x128xf32, #tpu.memory_space<vmem>>, vector<1x8xf32>
    %29 = vector.broadcast %28 : vector<1x8xf32> to vector<32x8xf32>
    %30 = arith.addf %27, %29 : vector<32x8xf32>
    %31 = vector.shape_cast %30 : vector<32x8xf32> to vector<2x16x8xf32>
    %c128 = arith.constant 128 : index
    %c0_16 = arith.constant 0 : index
    %32 = vector.load %arg3[%c128, %c0_16] : memref<3872x128xf32, #tpu.memory_space<vmem>>, vector<32x8xf32>
    %cst_17 = arith.constant dense<0.000000e+00> : vector<32x8xf32>
    %33 = tpu.matmul %12, %32, %cst_17 {dimension_numbers = #tpu.dot_dimension_numbers<[1], [0], [0], [1], [0, 0, 1, 1], [], []>} : vector<32x32xf32>, vector<32x8xf32>, vector<32x8xf32> -> vector<32x8xf32>
    %c208 = arith.constant 208 : index
    %c0_18 = arith.constant 0 : index
    %34 = vector.load %arg3[%c208, %c0_18] : memref<3872x128xf32, #tpu.memory_space<vmem>>, vector<1x8xf32>
    %35 = vector.broadcast %34 : vector<1x8xf32> to vector<32x8xf32>
    %36 = arith.addf %33, %35 : vector<32x8xf32>
    %37 = vector.shape_cast %36 : vector<32x8xf32> to vector<2x16x8xf32>
    %c160 = arith.constant 160 : index
    %c0_19 = arith.constant 0 : index
    %38 = vector.load %arg3[%c160, %c0_19] : memref<3872x128xf32, #tpu.memory_space<vmem>>, vector<32x8xf32>
    %cst_20 = arith.constant dense<0.000000e+00> : vector<32x8xf32>
    %39 = tpu.matmul %12, %38, %cst_20 {dimension_numbers = #tpu.dot_dimension_numbers<[1], [0], [0], [1], [0, 0, 1, 1], [], []>} : vector<32x32xf32>, vector<32x8xf32>, vector<32x8xf32> -> vector<32x8xf32>
    %c216 = arith.constant 216 : index
    %c0_21 = arith.constant 0 : index
    %40 = vector.load %arg3[%c216, %c0_21] : memref<3872x128xf32, #tpu.memory_space<vmem>>, vector<1x8xf32>
    %41 = vector.broadcast %40 : vector<1x8xf32> to vector<32x8xf32>
    %42 = arith.addf %39, %41 : vector<32x8xf32>
    %43 = vector.shape_cast %42 : vector<32x8xf32> to vector<2x16x8xf32>
    "tpu.trace_start"() <{level = 10 : i32, message = "bqd,bkd->bqk"}> : () -> ()
    %cst_22 = arith.constant dense<0.000000e+00> : vector<2x16x16xf32>
    %44 = tpu.matmul %31, %37, %cst_22 {dimension_numbers = #tpu.dot_dimension_numbers<[2], [2], [1], [1], [0, 0, 0, 1, 1, 1], [0], [0]>} : vector<2x16x8xf32>, vector<2x16x8xf32>, vector<2x16x16xf32> -> vector<2x16x16xf32>
    "tpu.trace_stop"() : () -> ()
    %cst_23 = arith.constant 0.353553385 : f32
    %45 = vector.broadcast %cst_23 : f32 to vector<2x16x16xf32>
    %46 = arith.mulf %44, %45 : vector<2x16x16xf32>
    %cst_24 = arith.constant dense<0xFF800000> : vector<2x16xf32>
    %47 = vector.multi_reduction <maximumf>, %46, %cst_24 [2] : vector<2x16x16xf32> to vector<2x16xf32>
    %48 = vector.shape_cast %47 : vector<2x16xf32> to vector<2x16x1xf32>
    %49 = vector.broadcast %48 : vector<2x16x1xf32> to vector<2x16x16xf32>
    %50 = arith.subf %46, %49 : vector<2x16x16xf32>
    %51 = math.exp %50 : vector<2x16x16xf32>
    %cst_25 = arith.constant dense<0.000000e+00> : vector<2x16xf32>
    %52 = vector.multi_reduction <add>, %51, %cst_25 [2] : vector<2x16x16xf32> to vector<2x16xf32>
    %53 = vector.shape_cast %52 : vector<2x16xf32> to vector<2x16x1xf32>
    %54 = tpu.reciprocal %53 {approx = true} : vector<2x16x1xf32> -> vector<2x16x1xf32>
    %55 = vector.broadcast %54 : vector<2x16x1xf32> to vector<2x16x16xf32>
    %56 = arith.mulf %51, %55 : vector<2x16x16xf32>
    "tpu.trace_start"() <{level = 10 : i32, message = "bqk,bkd->bqd"}> : () -> ()
    %cst_26 = arith.constant dense<0.000000e+00> : vector<2x16x8xf32>
    %57 = tpu.matmul %56, %43, %cst_26 {dimension_numbers = #tpu.dot_dimension_numbers<[2], [1], [1], [2], [0, 0, 0, 1, 1, 2], [0], [0]>} : vector<2x16x16xf32>, vector<2x16x8xf32>, vector<2x16x8xf32> -> vector<2x16x8xf32>
    "tpu.trace_stop"() : () -> ()
    %58 = vector.shape_cast %57 : vector<2x16x8xf32> to vector<32x8xf32>
    %c192 = arith.constant 192 : index
    %c0_27 = arith.constant 0 : index
    %59 = vector.load %arg3[%c192, %c0_27] : memref<3872x128xf32, #tpu.memory_space<vmem>>, vector<8x32xf32>
    %cst_28 = arith.constant dense<0.000000e+00> : vector<32x32xf32>
    %60 = tpu.matmul %58, %59, %cst_28 {dimension_numbers = #tpu.dot_dimension_numbers<[1], [0], [0], [1], [0, 0, 1, 1], [], []>} : vector<32x8xf32>, vector<8x32xf32>, vector<32x32xf32> -> vector<32x32xf32>
    %c224 = arith.constant 224 : index
    %c0_29 = arith.constant 0 : index
    %61 = vector.load %arg3[%c224, %c0_29] : memref<3872x128xf32, #tpu.memory_space<vmem>>, vector<32x8xf32>
    %cst_30 = arith.constant dense<0.000000e+00> : vector<32x8xf32>
    %62 = tpu.matmul %12, %61, %cst_30 {dimension_numbers = #tpu.dot_dimension_numbers<[1], [0], [0], [1], [0, 0, 1, 1], [], []>} : vector<32x32xf32>, vector<32x8xf32>, vector<32x8xf32> -> vector<32x8xf32>
    %c328 = arith.constant 328 : index
    %c0_31 = arith.constant 0 : index
    %63 = vector.load %arg3[%c328, %c0_31] : memref<3872x128xf32, #tpu.memory_space<vmem>>, vector<1x8xf32>
    %64 = vector.broadcast %63 : vector<1x8xf32> to vector<32x8xf32>
    %65 = arith.addf %62, %64 : vector<32x8xf32>
    %66 = vector.shape_cast %65 : vector<32x8xf32> to vector<2x16x8xf32>
    %c256 = arith.constant 256 : index
    %c0_32 = arith.constant 0 : index
    %67 = vector.load %arg3[%c256, %c0_32] : memref<3872x128xf32, #tpu.memory_space<vmem>>, vector<32x8xf32>
    %cst_33 = arith.constant dense<0.000000e+00> : vector<32x8xf32>
    %68 = tpu.matmul %12, %67, %cst_33 {dimension_numbers = #tpu.dot_dimension_numbers<[1], [0], [0], [1], [0, 0, 1, 1], [], []>} : vector<32x32xf32>, vector<32x8xf32>, vector<32x8xf32> -> vector<32x8xf32>
    %c336 = arith.constant 336 : index
    %c0_34 = arith.constant 0 : index
    %69 = vector.load %arg3[%c336, %c0_34] : memref<3872x128xf32, #tpu.memory_space<vmem>>, vector<1x8xf32>
    %70 = vector.broadcast %69 : vector<1x8xf32> to vector<32x8xf32>
    %71 = arith.addf %68, %70 : vector<32x8xf32>
    %72 = vector.shape_cast %71 : vector<32x8xf32> to vector<2x16x8xf32>
    %c288 = arith.constant 288 : index
    %c0_35 = arith.constant 0 : index
    %73 = vector.load %arg3[%c288, %c0_35] : memref<3872x128xf32, #tpu.memory_space<vmem>>, vector<32x8xf32>
    %cst_36 = arith.constant dense<0.000000e+00> : vector<32x8xf32>
    %74 = tpu.matmul %12, %73, %cst_36 {dimension_numbers = #tpu.dot_dimension_numbers<[1], [0], [0], [1], [0, 0, 1, 1], [], []>} : vector<32x32xf32>, vector<32x8xf32>, vector<32x8xf32> -> vector<32x8xf32>
    %c344 = arith.constant 344 : index
    %c0_37 = arith.constant 0 : index
    %75 = vector.load %arg3[%c344, %c0_37] : memref<3872x128xf32, #tpu.memory_space<vmem>>, vector<1x8xf32>
    %76 = vector.broadcast %75 : vector<1x8xf32> to vector<32x8xf32>
    %77 = arith.addf %74, %76 : vector<32x8xf32>
    %78 = vector.shape_cast %77 : vector<32x8xf32> to vector<2x16x8xf32>
    "tpu.trace_start"() <{level = 10 : i32, message = "bqd,bkd->bqk"}> : () -> ()
    %cst_38 = arith.constant dense<0.000000e+00> : vector<2x16x16xf32>
    %79 = tpu.matmul %66, %72, %cst_38 {dimension_numbers = #tpu.dot_dimension_numbers<[2], [2], [1], [1], [0, 0, 0, 1, 1, 1], [0], [0]>} : vector<2x16x8xf32>, vector<2x16x8xf32>, vector<2x16x16xf32> -> vector<2x16x16xf32>
    "tpu.trace_stop"() : () -> ()
    %cst_39 = arith.constant 0.353553385 : f32
    %80 = vector.broadcast %cst_39 : f32 to vector<2x16x16xf32>
    %81 = arith.mulf %79, %80 : vector<2x16x16xf32>
    %cst_40 = arith.constant dense<0xFF800000> : vector<2x16xf32>
    %82 = vector.multi_reduction <maximumf>, %81, %cst_40 [2] : vector<2x16x16xf32> to vector<2x16xf32>
    %83 = vector.shape_cast %82 : vector<2x16xf32> to vector<2x16x1xf32>
    %84 = vector.broadcast %83 : vector<2x16x1xf32> to vector<2x16x16xf32>
    %85 = arith.subf %81, %84 : vector<2x16x16xf32>
    %86 = math.exp %85 : vector<2x16x16xf32>
    %cst_41 = arith.constant dense<0.000000e+00> : vector<2x16xf32>
    %87 = vector.multi_reduction <add>, %86, %cst_41 [2] : vector<2x16x16xf32> to vector<2x16xf32>
    %88 = vector.shape_cast %87 : vector<2x16xf32> to vector<2x16x1xf32>
    %89 = tpu.reciprocal %88 {approx = true} : vector<2x16x1xf32> -> vector<2x16x1xf32>
    %90 = vector.broadcast %89 : vector<2x16x1xf32> to vector<2x16x16xf32>
    %91 = arith.mulf %86, %90 : vector<2x16x16xf32>
    "tpu.trace_start"() <{level = 10 : i32, message = "bqk,bkd->bqd"}> : () -> ()
    %cst_42 = arith.constant dense<0.000000e+00> : vector<2x16x8xf32>
    %92 = tpu.matmul %91, %78, %cst_42 {dimension_numbers = #tpu.dot_dimension_numbers<[2], [1], [1], [2], [0, 0, 0, 1, 1, 2], [0], [0]>} : vector<2x16x16xf32>, vector<2x16x8xf32>, vector<2x16x8xf32> -> vector<2x16x8xf32>
    "tpu.trace_stop"() : () -> ()
    %93 = vector.shape_cast %92 : vector<2x16x8xf32> to vector<32x8xf32>
    %c320 = arith.constant 320 : index
    %c0_43 = arith.constant 0 : index
    %94 = vector.load %arg3[%c320, %c0_43] : memref<3872x128xf32, #tpu.memory_space<vmem>>, vector<8x32xf32>
    %cst_44 = arith.constant dense<0.000000e+00> : vector<32x32xf32>
    %95 = tpu.matmul %93, %94, %cst_44 {dimension_numbers = #tpu.dot_dimension_numbers<[1], [0], [0], [1], [0, 0, 1, 1], [], []>} : vector<32x8xf32>, vector<8x32xf32>, vector<32x32xf32> -> vector<32x32xf32>
    %96 = arith.addf %60, %95 : vector<32x32xf32>
    %c352 = arith.constant 352 : index
    %c0_45 = arith.constant 0 : index
    %97 = vector.load %arg3[%c352, %c0_45] : memref<3872x128xf32, #tpu.memory_space<vmem>>, vector<32x8xf32>
    %cst_46 = arith.constant dense<0.000000e+00> : vector<32x8xf32>
    %98 = tpu.matmul %12, %97, %cst_46 {dimension_numbers = #tpu.dot_dimension_numbers<[1], [0], [0], [1], [0, 0, 1, 1], [], []>} : vector<32x32xf32>, vector<32x8xf32>, vector<32x8xf32> -> vector<32x8xf32>
    %c456 = arith.constant 456 : index
    %c0_47 = arith.constant 0 : index
    %99 = vector.load %arg3[%c456, %c0_47] : memref<3872x128xf32, #tpu.memory_space<vmem>>, vector<1x8xf32>
    %100 = vector.broadcast %99 : vector<1x8xf32> to vector<32x8xf32>
    %101 = arith.addf %98, %100 : vector<32x8xf32>
    %102 = vector.shape_cast %101 : vector<32x8xf32> to vector<2x16x8xf32>
    %c384 = arith.constant 384 : index
    %c0_48 = arith.constant 0 : index
    %103 = vector.load %arg3[%c384, %c0_48] : memref<3872x128xf32, #tpu.memory_space<vmem>>, vector<32x8xf32>
    %cst_49 = arith.constant dense<0.000000e+00> : vector<32x8xf32>
    %104 = tpu.matmul %12, %103, %cst_49 {dimension_numbers = #tpu.dot_dimension_numbers<[1], [0], [0], [1], [0, 0, 1, 1], [], []>} : vector<32x32xf32>, vector<32x8xf32>, vector<32x8xf32> -> vector<32x8xf32>
    %c464 = arith.constant 464 : index
    %c0_50 = arith.constant 0 : index
    %105 = vector.load %arg3[%c464, %c0_50] : memref<3872x128xf32, #tpu.memory_space<vmem>>, vector<1x8xf32>
    %106 = vector.broadcast %105 : vector<1x8xf32> to vector<32x8xf32>
    %107 = arith.addf %104, %106 : vector<32x8xf32>
    %108 = vector.shape_cast %107 : vector<32x8xf32> to vector<2x16x8xf32>
    %c416 = arith.constant 416 : index
    %c0_51 = arith.constant 0 : index
    %109 = vector.load %arg3[%c416, %c0_51] : memref<3872x128xf32, #tpu.memory_space<vmem>>, vector<32x8xf32>
    %cst_52 = arith.constant dense<0.000000e+00> : vector<32x8xf32>
    %110 = tpu.matmul %12, %109, %cst_52 {dimension_numbers = #tpu.dot_dimension_numbers<[1], [0], [0], [1], [0, 0, 1, 1], [], []>} : vector<32x32xf32>, vector<32x8xf32>, vector<32x8xf32> -> vector<32x8xf32>
    %c472 = arith.constant 472 : index
    %c0_53 = arith.constant 0 : index
    %111 = vector.load %arg3[%c472, %c0_53] : memref<3872x128xf32, #tpu.memory_space<vmem>>, vector<1x8xf32>
    %112 = vector.broadcast %111 : vector<1x8xf32> to vector<32x8xf32>
    %113 = arith.addf %110, %112 : vector<32x8xf32>
    %114 = vector.shape_cast %113 : vector<32x8xf32> to vector<2x16x8xf32>
    "tpu.trace_start"() <{level = 10 : i32, message = "bqd,bkd->bqk"}> : () -> ()
    %cst_54 = arith.constant dense<0.000000e+00> : vector<2x16x16xf32>
    %115 = tpu.matmul %102, %108, %cst_54 {dimension_numbers = #tpu.dot_dimension_numbers<[2], [2], [1], [1], [0, 0, 0, 1, 1, 1], [0], [0]>} : vector<2x16x8xf32>, vector<2x16x8xf32>, vector<2x16x16xf32> -> vector<2x16x16xf32>
    "tpu.trace_stop"() : () -> ()
    %cst_55 = arith.constant 0.353553385 : f32
    %116 = vector.broadcast %cst_55 : f32 to vector<2x16x16xf32>
    %117 = arith.mulf %115, %116 : vector<2x16x16xf32>
    %cst_56 = arith.constant dense<0xFF800000> : vector<2x16xf32>
    %118 = vector.multi_reduction <maximumf>, %117, %cst_56 [2] : vector<2x16x16xf32> to vector<2x16xf32>
    %119 = vector.shape_cast %118 : vector<2x16xf32> to vector<2x16x1xf32>
    %120 = vector.broadcast %119 : vector<2x16x1xf32> to vector<2x16x16xf32>
    %121 = arith.subf %117, %120 : vector<2x16x16xf32>
    %122 = math.exp %121 : vector<2x16x16xf32>
    %cst_57 = arith.constant dense<0.000000e+00> : vector<2x16xf32>
    %123 = vector.multi_reduction <add>, %122, %cst_57 [2] : vector<2x16x16xf32> to vector<2x16xf32>
    %124 = vector.shape_cast %123 : vector<2x16xf32> to vector<2x16x1xf32>
    %125 = tpu.reciprocal %124 {approx = true} : vector<2x16x1xf32> -> vector<2x16x1xf32>
    %126 = vector.broadcast %125 : vector<2x16x1xf32> to vector<2x16x16xf32>
    %127 = arith.mulf %122, %126 : vector<2x16x16xf32>
    "tpu.trace_start"() <{level = 10 : i32, message = "bqk,bkd->bqd"}> : () -> ()
    %cst_58 = arith.constant dense<0.000000e+00> : vector<2x16x8xf32>
    %128 = tpu.matmul %127, %114, %cst_58 {dimension_numbers = #tpu.dot_dimension_numbers<[2], [1], [1], [2], [0, 0, 0, 1, 1, 2], [0], [0]>} : vector<2x16x16xf32>, vector<2x16x8xf32>, vector<2x16x8xf32> -> vector<2x16x8xf32>
    "tpu.trace_stop"() : () -> ()
    %129 = vector.shape_cast %128 : vector<2x16x8xf32> to vector<32x8xf32>
    %c448 = arith.constant 448 : index
    %c0_59 = arith.constant 0 : index
    %130 = vector.load %arg3[%c448, %c0_59] : memref<3872x128xf32, #tpu.memory_space<vmem>>, vector<8x32xf32>
    %cst_60 = arith.constant dense<0.000000e+00> : vector<32x32xf32>
    %131 = tpu.matmul %129, %130, %cst_60 {dimension_numbers = #tpu.dot_dimension_numbers<[1], [0], [0], [1], [0, 0, 1, 1], [], []>} : vector<32x8xf32>, vector<8x32xf32>, vector<32x32xf32> -> vector<32x32xf32>
    %132 = arith.addf %96, %131 : vector<32x32xf32>
    %c480 = arith.constant 480 : index
    %c0_61 = arith.constant 0 : index
    %133 = vector.load %arg3[%c480, %c0_61] : memref<3872x128xf32, #tpu.memory_space<vmem>>, vector<32x8xf32>
    %cst_62 = arith.constant dense<0.000000e+00> : vector<32x8xf32>
    %134 = tpu.matmul %12, %133, %cst_62 {dimension_numbers = #tpu.dot_dimension_numbers<[1], [0], [0], [1], [0, 0, 1, 1], [], []>} : vector<32x32xf32>, vector<32x8xf32>, vector<32x8xf32> -> vector<32x8xf32>
    %c584 = arith.constant 584 : index
    %c0_63 = arith.constant 0 : index
    %135 = vector.load %arg3[%c584, %c0_63] : memref<3872x128xf32, #tpu.memory_space<vmem>>, vector<1x8xf32>
    %136 = vector.broadcast %135 : vector<1x8xf32> to vector<32x8xf32>
    %137 = arith.addf %134, %136 : vector<32x8xf32>
    %138 = vector.shape_cast %137 : vector<32x8xf32> to vector<2x16x8xf32>
    %c512 = arith.constant 512 : index
    %c0_64 = arith.constant 0 : index
    %139 = vector.load %arg3[%c512, %c0_64] : memref<3872x128xf32, #tpu.memory_space<vmem>>, vector<32x8xf32>
    %cst_65 = arith.constant dense<0.000000e+00> : vector<32x8xf32>
    %140 = tpu.matmul %12, %139, %cst_65 {dimension_numbers = #tpu.dot_dimension_numbers<[1], [0], [0], [1], [0, 0, 1, 1], [], []>} : vector<32x32xf32>, vector<32x8xf32>, vector<32x8xf32> -> vector<32x8xf32>
    %c592 = arith.constant 592 : index
    %c0_66 = arith.constant 0 : index
    %141 = vector.load %arg3[%c592, %c0_66] : memref<3872x128xf32, #tpu.memory_space<vmem>>, vector<1x8xf32>
    %142 = vector.broadcast %141 : vector<1x8xf32> to vector<32x8xf32>
    %143 = arith.addf %140, %142 : vector<32x8xf32>
    %144 = vector.shape_cast %143 : vector<32x8xf32> to vector<2x16x8xf32>
    %c544 = arith.constant 544 : index
    %c0_67 = arith.constant 0 : index
    %145 = vector.load %arg3[%c544, %c0_67] : memref<3872x128xf32, #tpu.memory_space<vmem>>, vector<32x8xf32>
    %cst_68 = arith.constant dense<0.000000e+00> : vector<32x8xf32>
    %146 = tpu.matmul %12, %145, %cst_68 {dimension_numbers = #tpu.dot_dimension_numbers<[1], [0], [0], [1], [0, 0, 1, 1], [], []>} : vector<32x32xf32>, vector<32x8xf32>, vector<32x8xf32> -> vector<32x8xf32>
    %c600 = arith.constant 600 : index
    %c0_69 = arith.constant 0 : index
    %147 = vector.load %arg3[%c600, %c0_69] : memref<3872x128xf32, #tpu.memory_space<vmem>>, vector<1x8xf32>
    %148 = vector.broadcast %147 : vector<1x8xf32> to vector<32x8xf32>
    %149 = arith.addf %146, %148 : vector<32x8xf32>
    %150 = vector.shape_cast %149 : vector<32x8xf32> to vector<2x16x8xf32>
    "tpu.trace_start"() <{level = 10 : i32, message = "bqd,bkd->bqk"}> : () -> ()
    %cst_70 = arith.constant dense<0.000000e+00> : vector<2x16x16xf32>
    %151 = tpu.matmul %138, %144, %cst_70 {dimension_numbers = #tpu.dot_dimension_numbers<[2], [2], [1], [1], [0, 0, 0, 1, 1, 1], [0], [0]>} : vector<2x16x8xf32>, vector<2x16x8xf32>, vector<2x16x16xf32> -> vector<2x16x16xf32>
    "tpu.trace_stop"() : () -> ()
    %cst_71 = arith.constant 0.353553385 : f32
    %152 = vector.broadcast %cst_71 : f32 to vector<2x16x16xf32>
    %153 = arith.mulf %151, %152 : vector<2x16x16xf32>
    %cst_72 = arith.constant dense<0xFF800000> : vector<2x16xf32>
    %154 = vector.multi_reduction <maximumf>, %153, %cst_72 [2] : vector<2x16x16xf32> to vector<2x16xf32>
    %155 = vector.shape_cast %154 : vector<2x16xf32> to vector<2x16x1xf32>
    %156 = vector.broadcast %155 : vector<2x16x1xf32> to vector<2x16x16xf32>
    %157 = arith.subf %153, %156 : vector<2x16x16xf32>
    %158 = math.exp %157 : vector<2x16x16xf32>
    %cst_73 = arith.constant dense<0.000000e+00> : vector<2x16xf32>
    %159 = vector.multi_reduction <add>, %158, %cst_73 [2] : vector<2x16x16xf32> to vector<2x16xf32>
    %160 = vector.shape_cast %159 : vector<2x16xf32> to vector<2x16x1xf32>
    %161 = tpu.reciprocal %160 {approx = true} : vector<2x16x1xf32> -> vector<2x16x1xf32>
    %162 = vector.broadcast %161 : vector<2x16x1xf32> to vector<2x16x16xf32>
    %163 = arith.mulf %158, %162 : vector<2x16x16xf32>
    "tpu.trace_start"() <{level = 10 : i32, message = "bqk,bkd->bqd"}> : () -> ()
    %cst_74 = arith.constant dense<0.000000e+00> : vector<2x16x8xf32>
    %164 = tpu.matmul %163, %150, %cst_74 {dimension_numbers = #tpu.dot_dimension_numbers<[2], [1], [1], [2], [0, 0, 0, 1, 1, 2], [0], [0]>} : vector<2x16x16xf32>, vector<2x16x8xf32>, vector<2x16x8xf32> -> vector<2x16x8xf32>
    "tpu.trace_stop"() : () -> ()
    %165 = vector.shape_cast %164 : vector<2x16x8xf32> to vector<32x8xf32>
    %c576 = arith.constant 576 : index
    %c0_75 = arith.constant 0 : index
    %166 = vector.load %arg3[%c576, %c0_75] : memref<3872x128xf32, #tpu.memory_space<vmem>>, vector<8x32xf32>
    %cst_76 = arith.constant dense<0.000000e+00> : vector<32x32xf32>
    %167 = tpu.matmul %165, %166, %cst_76 {dimension_numbers = #tpu.dot_dimension_numbers<[1], [0], [0], [1], [0, 0, 1, 1], [], []>} : vector<32x8xf32>, vector<8x32xf32>, vector<32x32xf32> -> vector<32x32xf32>
    %168 = arith.addf %132, %167 : vector<32x32xf32>
    %c608 = arith.constant 608 : index
    %c0_77 = arith.constant 0 : index
    %169 = vector.load %arg3[%c608, %c0_77] : memref<3872x128xf32, #tpu.memory_space<vmem>>, vector<1x32xf32>
    %170 = vector.broadcast %169 : vector<1x32xf32> to vector<32x32xf32>
    %171 = arith.addf %168, %170 : vector<32x32xf32>
    %172 = arith.addf %12, %171 : vector<32x32xf32>
    %c728 = arith.constant 728 : index
    %c0_78 = arith.constant 0 : index
    %173 = vector.load %arg3[%c728, %c0_78] : memref<3872x128xf32, #tpu.memory_space<vmem>>, vector<1x32xf32>
    %c736 = arith.constant 736 : index
    %c0_79 = arith.constant 0 : index
    %174 = vector.load %arg3[%c736, %c0_79] : memref<3872x128xf32, #tpu.memory_space<vmem>>, vector<1x32xf32>
    %cst_80 = arith.constant dense<0.000000e+00> : vector<32xf32>
    %175 = vector.multi_reduction <add>, %172, %cst_80 [1] : vector<32x32xf32> to vector<32xf32>
    %176 = vector.shape_cast %175 : vector<32xf32> to vector<32x1xf32>
    %cst_81 = arith.constant 3.200000e+01 : f32
    %177 = vector.broadcast %cst_81 : f32 to vector<32x1xf32>
    %178 = arith.divf %176, %177 : vector<32x1xf32>
    %179 = vector.broadcast %178 : vector<32x1xf32> to vector<32x32xf32>
    %180 = arith.subf %172, %179 : vector<32x32xf32>
    %181 = arith.mulf %180, %180 : vector<32x32xf32>
    %cst_82 = arith.constant dense<0.000000e+00> : vector<32xf32>
    %182 = vector.multi_reduction <add>, %181, %cst_82 [1] : vector<32x32xf32> to vector<32xf32>
    %183 = vector.shape_cast %182 : vector<32xf32> to vector<32x1xf32>
    %cst_83 = arith.constant 3.200000e+01 : f32
    %184 = vector.broadcast %cst_83 : f32 to vector<32x1xf32>
    %185 = arith.divf %183, %184 : vector<32x1xf32>
    %cst_84 = arith.constant 9.99999974E-6 : f32
    %186 = vector.broadcast %cst_84 : f32 to vector<32x1xf32>
    %187 = arith.addf %185, %186 : vector<32x1xf32>
    %188 = math.rsqrt %187 : vector<32x1xf32>
    %189 = vector.broadcast %188 : vector<32x1xf32> to vector<32x32xf32>
    %190 = arith.mulf %180, %189 : vector<32x32xf32>
    %191 = vector.broadcast %173 : vector<1x32xf32> to vector<32x32xf32>
    %192 = arith.mulf %190, %191 : vector<32x32xf32>
    %193 = vector.broadcast %174 : vector<1x32xf32> to vector<32x32xf32>
    %194 = arith.addf %192, %193 : vector<32x32xf32>
    %c616 = arith.constant 616 : index
    %c0_85 = arith.constant 0 : index
    %195 = vector.load %arg3[%c616, %c0_85] : memref<3872x128xf32, #tpu.memory_space<vmem>>, vector<32x64xf32>
    %cst_86 = arith.constant dense<0.000000e+00> : vector<32x64xf32>
    %196 = tpu.matmul %194, %195, %cst_86 {dimension_numbers = #tpu.dot_dimension_numbers<[1], [0], [0], [1], [0, 0, 1, 1], [], []>} : vector<32x32xf32>, vector<32x64xf32>, vector<32x64xf32> -> vector<32x64xf32>
    %c648 = arith.constant 648 : index
    %c0_87 = arith.constant 0 : index
    %197 = vector.load %arg3[%c648, %c0_87] : memref<3872x128xf32, #tpu.memory_space<vmem>>, vector<1x64xf32>
    %198 = vector.broadcast %197 : vector<1x64xf32> to vector<32x64xf32>
    %199 = arith.addf %196, %198 : vector<32x64xf32>
    %cst_88 = arith.constant 0.000000e+00 : f32
    %200 = vector.broadcast %cst_88 : f32 to vector<32x64xf32>
    %201 = arith.maximumf %199, %200 : vector<32x64xf32>
    %c656 = arith.constant 656 : index
    %c0_89 = arith.constant 0 : index
    %202 = vector.load %arg3[%c656, %c0_89] : memref<3872x128xf32, #tpu.memory_space<vmem>>, vector<64x32xf32>
    %cst_90 = arith.constant dense<0.000000e+00> : vector<32x32xf32>
    %203 = tpu.matmul %201, %202, %cst_90 {dimension_numbers = #tpu.dot_dimension_numbers<[1], [0], [0], [1], [0, 0, 1, 1], [], []>} : vector<32x64xf32>, vector<64x32xf32>, vector<32x32xf32> -> vector<32x32xf32>
    %c720 = arith.constant 720 : index
    %c0_91 = arith.constant 0 : index
    %204 = vector.load %arg3[%c720, %c0_91] : memref<3872x128xf32, #tpu.memory_space<vmem>>, vector<1x32xf32>
    %205 = vector.broadcast %204 : vector<1x32xf32> to vector<32x32xf32>
    %206 = arith.addf %203, %205 : vector<32x32xf32>
    %207 = arith.addf %194, %206 : vector<32x32xf32>
    %c744 = arith.constant 744 : index
    %c0_92 = arith.constant 0 : index
    %208 = vector.load %arg3[%c744, %c0_92] : memref<3872x128xf32, #tpu.memory_space<vmem>>, vector<1x32xf32>
    %c752 = arith.constant 752 : index
    %c0_93 = arith.constant 0 : index
    %209 = vector.load %arg3[%c752, %c0_93] : memref<3872x128xf32, #tpu.memory_space<vmem>>, vector<1x32xf32>
    %cst_94 = arith.constant dense<0.000000e+00> : vector<32xf32>
    %210 = vector.multi_reduction <add>, %207, %cst_94 [1] : vector<32x32xf32> to vector<32xf32>
    %211 = vector.shape_cast %210 : vector<32xf32> to vector<32x1xf32>
    %cst_95 = arith.constant 3.200000e+01 : f32
    %212 = vector.broadcast %cst_95 : f32 to vector<32x1xf32>
    %213 = arith.divf %211, %212 : vector<32x1xf32>
    %214 = vector.broadcast %213 : vector<32x1xf32> to vector<32x32xf32>
    %215 = arith.subf %207, %214 : vector<32x32xf32>
    %216 = arith.mulf %215, %215 : vector<32x32xf32>
    %cst_96 = arith.constant dense<0.000000e+00> : vector<32xf32>
    %217 = vector.multi_reduction <add>, %216, %cst_96 [1] : vector<32x32xf32> to vector<32xf32>
    %218 = vector.shape_cast %217 : vector<32xf32> to vector<32x1xf32>
    %cst_97 = arith.constant 3.200000e+01 : f32
    %219 = vector.broadcast %cst_97 : f32 to vector<32x1xf32>
    %220 = arith.divf %218, %219 : vector<32x1xf32>
    %cst_98 = arith.constant 9.99999974E-6 : f32
    %221 = vector.broadcast %cst_98 : f32 to vector<32x1xf32>
    %222 = arith.addf %220, %221 : vector<32x1xf32>
    %223 = math.rsqrt %222 : vector<32x1xf32>
    %224 = vector.broadcast %223 : vector<32x1xf32> to vector<32x32xf32>
    %225 = arith.mulf %215, %224 : vector<32x32xf32>
    %226 = vector.broadcast %208 : vector<1x32xf32> to vector<32x32xf32>
    %227 = arith.mulf %225, %226 : vector<32x32xf32>
    %228 = vector.broadcast %209 : vector<1x32xf32> to vector<32x32xf32>
    %229 = arith.addf %227, %228 : vector<32x32xf32>
    %c760 = arith.constant 760 : index
    %c0_99 = arith.constant 0 : index
    %230 = vector.load %arg3[%c760, %c0_99] : memref<3872x128xf32, #tpu.memory_space<vmem>>, vector<32x8xf32>
    %cst_100 = arith.constant dense<0.000000e+00> : vector<32x8xf32>
    %231 = tpu.matmul %229, %230, %cst_100 {dimension_numbers = #tpu.dot_dimension_numbers<[1], [0], [0], [1], [0, 0, 1, 1], [], []>} : vector<32x32xf32>, vector<32x8xf32>, vector<32x8xf32> -> vector<32x8xf32>
    %c864 = arith.constant 864 : index
    %c0_101 = arith.constant 0 : index
    %232 = vector.load %arg3[%c864, %c0_101] : memref<3872x128xf32, #tpu.memory_space<vmem>>, vector<1x8xf32>
    %233 = vector.broadcast %232 : vector<1x8xf32> to vector<32x8xf32>
    %234 = arith.addf %231, %233 : vector<32x8xf32>
    %235 = vector.shape_cast %234 : vector<32x8xf32> to vector<2x16x8xf32>
    %c792 = arith.constant 792 : index
    %c0_102 = arith.constant 0 : index
    %236 = vector.load %arg3[%c792, %c0_102] : memref<3872x128xf32, #tpu.memory_space<vmem>>, vector<32x8xf32>
    %cst_103 = arith.constant dense<0.000000e+00> : vector<32x8xf32>
    %237 = tpu.matmul %229, %236, %cst_103 {dimension_numbers = #tpu.dot_dimension_numbers<[1], [0], [0], [1], [0, 0, 1, 1], [], []>} : vector<32x32xf32>, vector<32x8xf32>, vector<32x8xf32> -> vector<32x8xf32>
    %c872 = arith.constant 872 : index
    %c0_104 = arith.constant 0 : index
    %238 = vector.load %arg3[%c872, %c0_104] : memref<3872x128xf32, #tpu.memory_space<vmem>>, vector<1x8xf32>
    %239 = vector.broadcast %238 : vector<1x8xf32> to vector<32x8xf32>
    %240 = arith.addf %237, %239 : vector<32x8xf32>
    %241 = vector.shape_cast %240 : vector<32x8xf32> to vector<2x16x8xf32>
    %c824 = arith.constant 824 : index
    %c0_105 = arith.constant 0 : index
    %242 = vector.load %arg3[%c824, %c0_105] : memref<3872x128xf32, #tpu.memory_space<vmem>>, vector<32x8xf32>
    %cst_106 = arith.constant dense<0.000000e+00> : vector<32x8xf32>
    %243 = tpu.matmul %229, %242, %cst_106 {dimension_numbers = #tpu.dot_dimension_numbers<[1], [0], [0], [1], [0, 0, 1, 1], [], []>} : vector<32x32xf32>, vector<32x8xf32>, vector<32x8xf32> -> vector<32x8xf32>
    %c880 = arith.constant 880 : index
    %c0_107 = arith.constant 0 : index
    %244 = vector.load %arg3[%c880, %c0_107] : memref<3872x128xf32, #tpu.memory_space<vmem>>, vector<1x8xf32>
    %245 = vector.broadcast %244 : vector<1x8xf32> to vector<32x8xf32>
    %246 = arith.addf %243, %245 : vector<32x8xf32>
    %247 = vector.shape_cast %246 : vector<32x8xf32> to vector<2x16x8xf32>
    "tpu.trace_start"() <{level = 10 : i32, message = "bqd,bkd->bqk"}> : () -> ()
    %cst_108 = arith.constant dense<0.000000e+00> : vector<2x16x16xf32>
    %248 = tpu.matmul %235, %241, %cst_108 {dimension_numbers = #tpu.dot_dimension_numbers<[2], [2], [1], [1], [0, 0, 0, 1, 1, 1], [0], [0]>} : vector<2x16x8xf32>, vector<2x16x8xf32>, vector<2x16x16xf32> -> vector<2x16x16xf32>
    "tpu.trace_stop"() : () -> ()
    %cst_109 = arith.constant 0.353553385 : f32
    %249 = vector.broadcast %cst_109 : f32 to vector<2x16x16xf32>
    %250 = arith.mulf %248, %249 : vector<2x16x16xf32>
    %cst_110 = arith.constant dense<0xFF800000> : vector<2x16xf32>
    %251 = vector.multi_reduction <maximumf>, %250, %cst_110 [2] : vector<2x16x16xf32> to vector<2x16xf32>
    %252 = vector.shape_cast %251 : vector<2x16xf32> to vector<2x16x1xf32>
    %253 = vector.broadcast %252 : vector<2x16x1xf32> to vector<2x16x16xf32>
    %254 = arith.subf %250, %253 : vector<2x16x16xf32>
    %255 = math.exp %254 : vector<2x16x16xf32>
    %cst_111 = arith.constant dense<0.000000e+00> : vector<2x16xf32>
    %256 = vector.multi_reduction <add>, %255, %cst_111 [2] : vector<2x16x16xf32> to vector<2x16xf32>
    %257 = vector.shape_cast %256 : vector<2x16xf32> to vector<2x16x1xf32>
    %258 = tpu.reciprocal %257 {approx = true} : vector<2x16x1xf32> -> vector<2x16x1xf32>
    %259 = vector.broadcast %258 : vector<2x16x1xf32> to vector<2x16x16xf32>
    %260 = arith.mulf %255, %259 : vector<2x16x16xf32>
    "tpu.trace_start"() <{level = 10 : i32, message = "bqk,bkd->bqd"}> : () -> ()
    %cst_112 = arith.constant dense<0.000000e+00> : vector<2x16x8xf32>
    %261 = tpu.matmul %260, %247, %cst_112 {dimension_numbers = #tpu.dot_dimension_numbers<[2], [1], [1], [2], [0, 0, 0, 1, 1, 2], [0], [0]>} : vector<2x16x16xf32>, vector<2x16x8xf32>, vector<2x16x8xf32> -> vector<2x16x8xf32>
    "tpu.trace_stop"() : () -> ()
    %262 = vector.shape_cast %261 : vector<2x16x8xf32> to vector<32x8xf32>
    %c856 = arith.constant 856 : index
    %c0_113 = arith.constant 0 : index
    %263 = vector.load %arg3[%c856, %c0_113] : memref<3872x128xf32, #tpu.memory_space<vmem>>, vector<8x32xf32>
    %cst_114 = arith.constant dense<0.000000e+00> : vector<32x32xf32>
    %264 = tpu.matmul %262, %263, %cst_114 {dimension_numbers = #tpu.dot_dimension_numbers<[1], [0], [0], [1], [0, 0, 1, 1], [], []>} : vector<32x8xf32>, vector<8x32xf32>, vector<32x32xf32> -> vector<32x32xf32>
    %c888 = arith.constant 888 : index
    %c0_115 = arith.constant 0 : index
    %265 = vector.load %arg3[%c888, %c0_115] : memref<3872x128xf32, #tpu.memory_space<vmem>>, vector<32x8xf32>
    %cst_116 = arith.constant dense<0.000000e+00> : vector<32x8xf32>
    %266 = tpu.matmul %229, %265, %cst_116 {dimension_numbers = #tpu.dot_dimension_numbers<[1], [0], [0], [1], [0, 0, 1, 1], [], []>} : vector<32x32xf32>, vector<32x8xf32>, vector<32x8xf32> -> vector<32x8xf32>
    %c992 = arith.constant 992 : index
    %c0_117 = arith.constant 0 : index
    %267 = vector.load %arg3[%c992, %c0_117] : memref<3872x128xf32, #tpu.memory_space<vmem>>, vector<1x8xf32>
    %268 = vector.broadcast %267 : vector<1x8xf32> to vector<32x8xf32>
    %269 = arith.addf %266, %268 : vector<32x8xf32>
    %270 = vector.shape_cast %269 : vector<32x8xf32> to vector<2x16x8xf32>
    %c920 = arith.constant 920 : index
    %c0_118 = arith.constant 0 : index
    %271 = vector.load %arg3[%c920, %c0_118] : memref<3872x128xf32, #tpu.memory_space<vmem>>, vector<32x8xf32>
    %cst_119 = arith.constant dense<0.000000e+00> : vector<32x8xf32>
    %272 = tpu.matmul %229, %271, %cst_119 {dimension_numbers = #tpu.dot_dimension_numbers<[1], [0], [0], [1], [0, 0, 1, 1], [], []>} : vector<32x32xf32>, vector<32x8xf32>, vector<32x8xf32> -> vector<32x8xf32>
    %c1000 = arith.constant 1000 : index
    %c0_120 = arith.constant 0 : index
    %273 = vector.load %arg3[%c1000, %c0_120] : memref<3872x128xf32, #tpu.memory_space<vmem>>, vector<1x8xf32>
    %274 = vector.broadcast %273 : vector<1x8xf32> to vector<32x8xf32>
    %275 = arith.addf %272, %274 : vector<32x8xf32>
    %276 = vector.shape_cast %275 : vector<32x8xf32> to vector<2x16x8xf32>
    %c952 = arith.constant 952 : index
    %c0_121 = arith.constant 0 : index
    %277 = vector.load %arg3[%c952, %c0_121] : memref<3872x128xf32, #tpu.memory_space<vmem>>, vector<32x8xf32>
    %cst_122 = arith.constant dense<0.000000e+00> : vector<32x8xf32>
    %278 = tpu.matmul %229, %277, %cst_122 {dimension_numbers = #tpu.dot_dimension_numbers<[1], [0], [0], [1], [0, 0, 1, 1], [], []>} : vector<32x32xf32>, vector<32x8xf32>, vector<32x8xf32> -> vector<32x8xf32>
    %c1008 = arith.constant 1008 : index
    %c0_123 = arith.constant 0 : index
    %279 = vector.load %arg3[%c1008, %c0_123] : memref<3872x128xf32, #tpu.memory_space<vmem>>, vector<1x8xf32>
    %280 = vector.broadcast %279 : vector<1x8xf32> to vector<32x8xf32>
    %281 = arith.addf %278, %280 : vector<32x8xf32>
    %282 = vector.shape_cast %281 : vector<32x8xf32> to vector<2x16x8xf32>
    "tpu.trace_start"() <{level = 10 : i32, message = "bqd,bkd->bqk"}> : () -> ()
    %cst_124 = arith.constant dense<0.000000e+00> : vector<2x16x16xf32>
    %283 = tpu.matmul %270, %276, %cst_124 {dimension_numbers = #tpu.dot_dimension_numbers<[2], [2], [1], [1], [0, 0, 0, 1, 1, 1], [0], [0]>} : vector<2x16x8xf32>, vector<2x16x8xf32>, vector<2x16x16xf32> -> vector<2x16x16xf32>
    "tpu.trace_stop"() : () -> ()
    %cst_125 = arith.constant 0.353553385 : f32
    %284 = vector.broadcast %cst_125 : f32 to vector<2x16x16xf32>
    %285 = arith.mulf %283, %284 : vector<2x16x16xf32>
    %cst_126 = arith.constant dense<0xFF800000> : vector<2x16xf32>
    %286 = vector.multi_reduction <maximumf>, %285, %cst_126 [2] : vector<2x16x16xf32> to vector<2x16xf32>
    %287 = vector.shape_cast %286 : vector<2x16xf32> to vector<2x16x1xf32>
    %288 = vector.broadcast %287 : vector<2x16x1xf32> to vector<2x16x16xf32>
    %289 = arith.subf %285, %288 : vector<2x16x16xf32>
    %290 = math.exp %289 : vector<2x16x16xf32>
    %cst_127 = arith.constant dense<0.000000e+00> : vector<2x16xf32>
    %291 = vector.multi_reduction <add>, %290, %cst_127 [2] : vector<2x16x16xf32> to vector<2x16xf32>
    %292 = vector.shape_cast %291 : vector<2x16xf32> to vector<2x16x1xf32>
    %293 = tpu.reciprocal %292 {approx = true} : vector<2x16x1xf32> -> vector<2x16x1xf32>
    %294 = vector.broadcast %293 : vector<2x16x1xf32> to vector<2x16x16xf32>
    %295 = arith.mulf %290, %294 : vector<2x16x16xf32>
    "tpu.trace_start"() <{level = 10 : i32, message = "bqk,bkd->bqd"}> : () -> ()
    %cst_128 = arith.constant dense<0.000000e+00> : vector<2x16x8xf32>
    %296 = tpu.matmul %295, %282, %cst_128 {dimension_numbers = #tpu.dot_dimension_numbers<[2], [1], [1], [2], [0, 0, 0, 1, 1, 2], [0], [0]>} : vector<2x16x16xf32>, vector<2x16x8xf32>, vector<2x16x8xf32> -> vector<2x16x8xf32>
    "tpu.trace_stop"() : () -> ()
    %297 = vector.shape_cast %296 : vector<2x16x8xf32> to vector<32x8xf32>
    %c984 = arith.constant 984 : index
    %c0_129 = arith.constant 0 : index
    %298 = vector.load %arg3[%c984, %c0_129] : memref<3872x128xf32, #tpu.memory_space<vmem>>, vector<8x32xf32>
    %cst_130 = arith.constant dense<0.000000e+00> : vector<32x32xf32>
    %299 = tpu.matmul %297, %298, %cst_130 {dimension_numbers = #tpu.dot_dimension_numbers<[1], [0], [0], [1], [0, 0, 1, 1], [], []>} : vector<32x8xf32>, vector<8x32xf32>, vector<32x32xf32> -> vector<32x32xf32>
    %300 = arith.addf %264, %299 : vector<32x32xf32>
    %c1016 = arith.constant 1016 : index
    %c0_131 = arith.constant 0 : index
    %301 = vector.load %arg3[%c1016, %c0_131] : memref<3872x128xf32, #tpu.memory_space<vmem>>, vector<32x8xf32>
    %cst_132 = arith.constant dense<0.000000e+00> : vector<32x8xf32>
    %302 = tpu.matmul %229, %301, %cst_132 {dimension_numbers = #tpu.dot_dimension_numbers<[1], [0], [0], [1], [0, 0, 1, 1], [], []>} : vector<32x32xf32>, vector<32x8xf32>, vector<32x8xf32> -> vector<32x8xf32>
    %c1120 = arith.constant 1120 : index
    %c0_133 = arith.constant 0 : index
    %303 = vector.load %arg3[%c1120, %c0_133] : memref<3872x128xf32, #tpu.memory_space<vmem>>, vector<1x8xf32>
    %304 = vector.broadcast %303 : vector<1x8xf32> to vector<32x8xf32>
    %305 = arith.addf %302, %304 : vector<32x8xf32>
    %306 = vector.shape_cast %305 : vector<32x8xf32> to vector<2x16x8xf32>
    %c1048 = arith.constant 1048 : index
    %c0_134 = arith.constant 0 : index
    %307 = vector.load %arg3[%c1048, %c0_134] : memref<3872x128xf32, #tpu.memory_space<vmem>>, vector<32x8xf32>
    %cst_135 = arith.constant dense<0.000000e+00> : vector<32x8xf32>
    %308 = tpu.matmul %229, %307, %cst_135 {dimension_numbers = #tpu.dot_dimension_numbers<[1], [0], [0], [1], [0, 0, 1, 1], [], []>} : vector<32x32xf32>, vector<32x8xf32>, vector<32x8xf32> -> vector<32x8xf32>
    %c1128 = arith.constant 1128 : index
    %c0_136 = arith.constant 0 : index
    %309 = vector.load %arg3[%c1128, %c0_136] : memref<3872x128xf32, #tpu.memory_space<vmem>>, vector<1x8xf32>
    %310 = vector.broadcast %309 : vector<1x8xf32> to vector<32x8xf32>
    %311 = arith.addf %308, %310 : vector<32x8xf32>
    %312 = vector.shape_cast %311 : vector<32x8xf32> to vector<2x16x8xf32>
    %c1080 = arith.constant 1080 : index
    %c0_137 = arith.constant 0 : index
    %313 = vector.load %arg3[%c1080, %c0_137] : memref<3872x128xf32, #tpu.memory_space<vmem>>, vector<32x8xf32>
    %cst_138 = arith.constant dense<0.000000e+00> : vector<32x8xf32>
    %314 = tpu.matmul %229, %313, %cst_138 {dimension_numbers = #tpu.dot_dimension_numbers<[1], [0], [0], [1], [0, 0, 1, 1], [], []>} : vector<32x32xf32>, vector<32x8xf32>, vector<32x8xf32> -> vector<32x8xf32>
    %c1136 = arith.constant 1136 : index
    %c0_139 = arith.constant 0 : index
    %315 = vector.load %arg3[%c1136, %c0_139] : memref<3872x128xf32, #tpu.memory_space<vmem>>, vector<1x8xf32>
    %316 = vector.broadcast %315 : vector<1x8xf32> to vector<32x8xf32>
    %317 = arith.addf %314, %316 : vector<32x8xf32>
    %318 = vector.shape_cast %317 : vector<32x8xf32> to vector<2x16x8xf32>
    "tpu.trace_start"() <{level = 10 : i32, message = "bqd,bkd->bqk"}> : () -> ()
    %cst_140 = arith.constant dense<0.000000e+00> : vector<2x16x16xf32>
    %319 = tpu.matmul %306, %312, %cst_140 {dimension_numbers = #tpu.dot_dimension_numbers<[2], [2], [1], [1], [0, 0, 0, 1, 1, 1], [0], [0]>} : vector<2x16x8xf32>, vector<2x16x8xf32>, vector<2x16x16xf32> -> vector<2x16x16xf32>
    "tpu.trace_stop"() : () -> ()
    %cst_141 = arith.constant 0.353553385 : f32
    %320 = vector.broadcast %cst_141 : f32 to vector<2x16x16xf32>
    %321 = arith.mulf %319, %320 : vector<2x16x16xf32>
    %cst_142 = arith.constant dense<0xFF800000> : vector<2x16xf32>
    %322 = vector.multi_reduction <maximumf>, %321, %cst_142 [2] : vector<2x16x16xf32> to vector<2x16xf32>
    %323 = vector.shape_cast %322 : vector<2x16xf32> to vector<2x16x1xf32>
    %324 = vector.broadcast %323 : vector<2x16x1xf32> to vector<2x16x16xf32>
    %325 = arith.subf %321, %324 : vector<2x16x16xf32>
    %326 = math.exp %325 : vector<2x16x16xf32>
    %cst_143 = arith.constant dense<0.000000e+00> : vector<2x16xf32>
    %327 = vector.multi_reduction <add>, %326, %cst_143 [2] : vector<2x16x16xf32> to vector<2x16xf32>
    %328 = vector.shape_cast %327 : vector<2x16xf32> to vector<2x16x1xf32>
    %329 = tpu.reciprocal %328 {approx = true} : vector<2x16x1xf32> -> vector<2x16x1xf32>
    %330 = vector.broadcast %329 : vector<2x16x1xf32> to vector<2x16x16xf32>
    %331 = arith.mulf %326, %330 : vector<2x16x16xf32>
    "tpu.trace_start"() <{level = 10 : i32, message = "bqk,bkd->bqd"}> : () -> ()
    %cst_144 = arith.constant dense<0.000000e+00> : vector<2x16x8xf32>
    %332 = tpu.matmul %331, %318, %cst_144 {dimension_numbers = #tpu.dot_dimension_numbers<[2], [1], [1], [2], [0, 0, 0, 1, 1, 2], [0], [0]>} : vector<2x16x16xf32>, vector<2x16x8xf32>, vector<2x16x8xf32> -> vector<2x16x8xf32>
    "tpu.trace_stop"() : () -> ()
    %333 = vector.shape_cast %332 : vector<2x16x8xf32> to vector<32x8xf32>
    %c1112 = arith.constant 1112 : index
    %c0_145 = arith.constant 0 : index
    %334 = vector.load %arg3[%c1112, %c0_145] : memref<3872x128xf32, #tpu.memory_space<vmem>>, vector<8x32xf32>
    %cst_146 = arith.constant dense<0.000000e+00> : vector<32x32xf32>
    %335 = tpu.matmul %333, %334, %cst_146 {dimension_numbers = #tpu.dot_dimension_numbers<[1], [0], [0], [1], [0, 0, 1, 1], [], []>} : vector<32x8xf32>, vector<8x32xf32>, vector<32x32xf32> -> vector<32x32xf32>
    %336 = arith.addf %300, %335 : vector<32x32xf32>
    %c1144 = arith.constant 1144 : index
    %c0_147 = arith.constant 0 : index
    %337 = vector.load %arg3[%c1144, %c0_147] : memref<3872x128xf32, #tpu.memory_space<vmem>>, vector<32x8xf32>
    %cst_148 = arith.constant dense<0.000000e+00> : vector<32x8xf32>
    %338 = tpu.matmul %229, %337, %cst_148 {dimension_numbers = #tpu.dot_dimension_numbers<[1], [0], [0], [1], [0, 0, 1, 1], [], []>} : vector<32x32xf32>, vector<32x8xf32>, vector<32x8xf32> -> vector<32x8xf32>
    %c1248 = arith.constant 1248 : index
    %c0_149 = arith.constant 0 : index
    %339 = vector.load %arg3[%c1248, %c0_149] : memref<3872x128xf32, #tpu.memory_space<vmem>>, vector<1x8xf32>
    %340 = vector.broadcast %339 : vector<1x8xf32> to vector<32x8xf32>
    %341 = arith.addf %338, %340 : vector<32x8xf32>
    %342 = vector.shape_cast %341 : vector<32x8xf32> to vector<2x16x8xf32>
    %c1176 = arith.constant 1176 : index
    %c0_150 = arith.constant 0 : index
    %343 = vector.load %arg3[%c1176, %c0_150] : memref<3872x128xf32, #tpu.memory_space<vmem>>, vector<32x8xf32>
    %cst_151 = arith.constant dense<0.000000e+00> : vector<32x8xf32>
    %344 = tpu.matmul %229, %343, %cst_151 {dimension_numbers = #tpu.dot_dimension_numbers<[1], [0], [0], [1], [0, 0, 1, 1], [], []>} : vector<32x32xf32>, vector<32x8xf32>, vector<32x8xf32> -> vector<32x8xf32>
    %c1256 = arith.constant 1256 : index
    %c0_152 = arith.constant 0 : index
    %345 = vector.load %arg3[%c1256, %c0_152] : memref<3872x128xf32, #tpu.memory_space<vmem>>, vector<1x8xf32>
    %346 = vector.broadcast %345 : vector<1x8xf32> to vector<32x8xf32>
    %347 = arith.addf %344, %346 : vector<32x8xf32>
    %348 = vector.shape_cast %347 : vector<32x8xf32> to vector<2x16x8xf32>
    %c1208 = arith.constant 1208 : index
    %c0_153 = arith.constant 0 : index
    %349 = vector.load %arg3[%c1208, %c0_153] : memref<3872x128xf32, #tpu.memory_space<vmem>>, vector<32x8xf32>
    %cst_154 = arith.constant dense<0.000000e+00> : vector<32x8xf32>
    %350 = tpu.matmul %229, %349, %cst_154 {dimension_numbers = #tpu.dot_dimension_numbers<[1], [0], [0], [1], [0, 0, 1, 1], [], []>} : vector<32x32xf32>, vector<32x8xf32>, vector<32x8xf32> -> vector<32x8xf32>
    %c1264 = arith.constant 1264 : index
    %c0_155 = arith.constant 0 : index
    %351 = vector.load %arg3[%c1264, %c0_155] : memref<3872x128xf32, #tpu.memory_space<vmem>>, vector<1x8xf32>
    %352 = vector.broadcast %351 : vector<1x8xf32> to vector<32x8xf32>
    %353 = arith.addf %350, %352 : vector<32x8xf32>
    %354 = vector.shape_cast %353 : vector<32x8xf32> to vector<2x16x8xf32>
    "tpu.trace_start"() <{level = 10 : i32, message = "bqd,bkd->bqk"}> : () -> ()
    %cst_156 = arith.constant dense<0.000000e+00> : vector<2x16x16xf32>
    %355 = tpu.matmul %342, %348, %cst_156 {dimension_numbers = #tpu.dot_dimension_numbers<[2], [2], [1], [1], [0, 0, 0, 1, 1, 1], [0], [0]>} : vector<2x16x8xf32>, vector<2x16x8xf32>, vector<2x16x16xf32> -> vector<2x16x16xf32>
    "tpu.trace_stop"() : () -> ()
    %cst_157 = arith.constant 0.353553385 : f32
    %356 = vector.broadcast %cst_157 : f32 to vector<2x16x16xf32>
    %357 = arith.mulf %355, %356 : vector<2x16x16xf32>
    %cst_158 = arith.constant dense<0xFF800000> : vector<2x16xf32>
    %358 = vector.multi_reduction <maximumf>, %357, %cst_158 [2] : vector<2x16x16xf32> to vector<2x16xf32>
    %359 = vector.shape_cast %358 : vector<2x16xf32> to vector<2x16x1xf32>
    %360 = vector.broadcast %359 : vector<2x16x1xf32> to vector<2x16x16xf32>
    %361 = arith.subf %357, %360 : vector<2x16x16xf32>
    %362 = math.exp %361 : vector<2x16x16xf32>
    %cst_159 = arith.constant dense<0.000000e+00> : vector<2x16xf32>
    %363 = vector.multi_reduction <add>, %362, %cst_159 [2] : vector<2x16x16xf32> to vector<2x16xf32>
    %364 = vector.shape_cast %363 : vector<2x16xf32> to vector<2x16x1xf32>
    %365 = tpu.reciprocal %364 {approx = true} : vector<2x16x1xf32> -> vector<2x16x1xf32>
    %366 = vector.broadcast %365 : vector<2x16x1xf32> to vector<2x16x16xf32>
    %367 = arith.mulf %362, %366 : vector<2x16x16xf32>
    "tpu.trace_start"() <{level = 10 : i32, message = "bqk,bkd->bqd"}> : () -> ()
    %cst_160 = arith.constant dense<0.000000e+00> : vector<2x16x8xf32>
    %368 = tpu.matmul %367, %354, %cst_160 {dimension_numbers = #tpu.dot_dimension_numbers<[2], [1], [1], [2], [0, 0, 0, 1, 1, 2], [0], [0]>} : vector<2x16x16xf32>, vector<2x16x8xf32>, vector<2x16x8xf32> -> vector<2x16x8xf32>
    "tpu.trace_stop"() : () -> ()
    %369 = vector.shape_cast %368 : vector<2x16x8xf32> to vector<32x8xf32>
    %c1240 = arith.constant 1240 : index
    %c0_161 = arith.constant 0 : index
    %370 = vector.load %arg3[%c1240, %c0_161] : memref<3872x128xf32, #tpu.memory_space<vmem>>, vector<8x32xf32>
    %cst_162 = arith.constant dense<0.000000e+00> : vector<32x32xf32>
    %371 = tpu.matmul %369, %370, %cst_162 {dimension_numbers = #tpu.dot_dimension_numbers<[1], [0], [0], [1], [0, 0, 1, 1], [], []>} : vector<32x8xf32>, vector<8x32xf32>, vector<32x32xf32> -> vector<32x32xf32>
    %372 = arith.addf %336, %371 : vector<32x32xf32>
    %c1272 = arith.constant 1272 : index
    %c0_163 = arith.constant 0 : index
    %373 = vector.load %arg3[%c1272, %c0_163] : memref<3872x128xf32, #tpu.memory_space<vmem>>, vector<1x32xf32>
    %374 = vector.broadcast %373 : vector<1x32xf32> to vector<32x32xf32>
    %375 = arith.addf %372, %374 : vector<32x32xf32>
    %376 = arith.addf %229, %375 : vector<32x32xf32>
    %c1392 = arith.constant 1392 : index
    %c0_164 = arith.constant 0 : index
    %377 = vector.load %arg3[%c1392, %c0_164] : memref<3872x128xf32, #tpu.memory_space<vmem>>, vector<1x32xf32>
    %c1400 = arith.constant 1400 : index
    %c0_165 = arith.constant 0 : index
    %378 = vector.load %arg3[%c1400, %c0_165] : memref<3872x128xf32, #tpu.memory_space<vmem>>, vector<1x32xf32>
    %cst_166 = arith.constant dense<0.000000e+00> : vector<32xf32>
    %379 = vector.multi_reduction <add>, %376, %cst_166 [1] : vector<32x32xf32> to vector<32xf32>
    %380 = vector.shape_cast %379 : vector<32xf32> to vector<32x1xf32>
    %cst_167 = arith.constant 3.200000e+01 : f32
    %381 = vector.broadcast %cst_167 : f32 to vector<32x1xf32>
    %382 = arith.divf %380, %381 : vector<32x1xf32>
    %383 = vector.broadcast %382 : vector<32x1xf32> to vector<32x32xf32>
    %384 = arith.subf %376, %383 : vector<32x32xf32>
    %385 = arith.mulf %384, %384 : vector<32x32xf32>
    %cst_168 = arith.constant dense<0.000000e+00> : vector<32xf32>
    %386 = vector.multi_reduction <add>, %385, %cst_168 [1] : vector<32x32xf32> to vector<32xf32>
    %387 = vector.shape_cast %386 : vector<32xf32> to vector<32x1xf32>
    %cst_169 = arith.constant 3.200000e+01 : f32
    %388 = vector.broadcast %cst_169 : f32 to vector<32x1xf32>
    %389 = arith.divf %387, %388 : vector<32x1xf32>
    %cst_170 = arith.constant 9.99999974E-6 : f32
    %390 = vector.broadcast %cst_170 : f32 to vector<32x1xf32>
    %391 = arith.addf %389, %390 : vector<32x1xf32>
    %392 = math.rsqrt %391 : vector<32x1xf32>
    %393 = vector.broadcast %392 : vector<32x1xf32> to vector<32x32xf32>
    %394 = arith.mulf %384, %393 : vector<32x32xf32>
    %395 = vector.broadcast %377 : vector<1x32xf32> to vector<32x32xf32>
    %396 = arith.mulf %394, %395 : vector<32x32xf32>
    %397 = vector.broadcast %378 : vector<1x32xf32> to vector<32x32xf32>
    %398 = arith.addf %396, %397 : vector<32x32xf32>
    %c1280 = arith.constant 1280 : index
    %c0_171 = arith.constant 0 : index
    %399 = vector.load %arg3[%c1280, %c0_171] : memref<3872x128xf32, #tpu.memory_space<vmem>>, vector<32x64xf32>
    %cst_172 = arith.constant dense<0.000000e+00> : vector<32x64xf32>
    %400 = tpu.matmul %398, %399, %cst_172 {dimension_numbers = #tpu.dot_dimension_numbers<[1], [0], [0], [1], [0, 0, 1, 1], [], []>} : vector<32x32xf32>, vector<32x64xf32>, vector<32x64xf32> -> vector<32x64xf32>
    %c1312 = arith.constant 1312 : index
    %c0_173 = arith.constant 0 : index
    %401 = vector.load %arg3[%c1312, %c0_173] : memref<3872x128xf32, #tpu.memory_space<vmem>>, vector<1x64xf32>
    %402 = vector.broadcast %401 : vector<1x64xf32> to vector<32x64xf32>
    %403 = arith.addf %400, %402 : vector<32x64xf32>
    %cst_174 = arith.constant 0.000000e+00 : f32
    %404 = vector.broadcast %cst_174 : f32 to vector<32x64xf32>
    %405 = arith.maximumf %403, %404 : vector<32x64xf32>
    %c1320 = arith.constant 1320 : index
    %c0_175 = arith.constant 0 : index
    %406 = vector.load %arg3[%c1320, %c0_175] : memref<3872x128xf32, #tpu.memory_space<vmem>>, vector<64x32xf32>
    %cst_176 = arith.constant dense<0.000000e+00> : vector<32x32xf32>
    %407 = tpu.matmul %405, %406, %cst_176 {dimension_numbers = #tpu.dot_dimension_numbers<[1], [0], [0], [1], [0, 0, 1, 1], [], []>} : vector<32x64xf32>, vector<64x32xf32>, vector<32x32xf32> -> vector<32x32xf32>
    %c1384 = arith.constant 1384 : index
    %c0_177 = arith.constant 0 : index
    %408 = vector.load %arg3[%c1384, %c0_177] : memref<3872x128xf32, #tpu.memory_space<vmem>>, vector<1x32xf32>
    %409 = vector.broadcast %408 : vector<1x32xf32> to vector<32x32xf32>
    %410 = arith.addf %407, %409 : vector<32x32xf32>
    %411 = arith.addf %398, %410 : vector<32x32xf32>
    %c1408 = arith.constant 1408 : index
    %c0_178 = arith.constant 0 : index
    %412 = vector.load %arg3[%c1408, %c0_178] : memref<3872x128xf32, #tpu.memory_space<vmem>>, vector<1x32xf32>
    %c1416 = arith.constant 1416 : index
    %c0_179 = arith.constant 0 : index
    %413 = vector.load %arg3[%c1416, %c0_179] : memref<3872x128xf32, #tpu.memory_space<vmem>>, vector<1x32xf32>
    %cst_180 = arith.constant dense<0.000000e+00> : vector<32xf32>
    %414 = vector.multi_reduction <add>, %411, %cst_180 [1] : vector<32x32xf32> to vector<32xf32>
    %415 = vector.shape_cast %414 : vector<32xf32> to vector<32x1xf32>
    %cst_181 = arith.constant 3.200000e+01 : f32
    %416 = vector.broadcast %cst_181 : f32 to vector<32x1xf32>
    %417 = arith.divf %415, %416 : vector<32x1xf32>
    %418 = vector.broadcast %417 : vector<32x1xf32> to vector<32x32xf32>
    %419 = arith.subf %411, %418 : vector<32x32xf32>
    %420 = arith.mulf %419, %419 : vector<32x32xf32>
    %cst_182 = arith.constant dense<0.000000e+00> : vector<32xf32>
    %421 = vector.multi_reduction <add>, %420, %cst_182 [1] : vector<32x32xf32> to vector<32xf32>
    %422 = vector.shape_cast %421 : vector<32xf32> to vector<32x1xf32>
    %cst_183 = arith.constant 3.200000e+01 : f32
    %423 = vector.broadcast %cst_183 : f32 to vector<32x1xf32>
    %424 = arith.divf %422, %423 : vector<32x1xf32>
    %cst_184 = arith.constant 9.99999974E-6 : f32
    %425 = vector.broadcast %cst_184 : f32 to vector<32x1xf32>
    %426 = arith.addf %424, %425 : vector<32x1xf32>
    %427 = math.rsqrt %426 : vector<32x1xf32>
    %428 = vector.broadcast %427 : vector<32x1xf32> to vector<32x32xf32>
    %429 = arith.mulf %419, %428 : vector<32x32xf32>
    %430 = vector.broadcast %412 : vector<1x32xf32> to vector<32x32xf32>
    %431 = arith.mulf %429, %430 : vector<32x32xf32>
    %432 = vector.broadcast %413 : vector<1x32xf32> to vector<32x32xf32>
    %433 = arith.addf %431, %432 : vector<32x32xf32>
    %c1424 = arith.constant 1424 : index
    %c0_185 = arith.constant 0 : index
    %434 = vector.load %arg3[%c1424, %c0_185] : memref<3872x128xf32, #tpu.memory_space<vmem>>, vector<1x32xf32>
    %c1432 = arith.constant 1432 : index
    %c0_186 = arith.constant 0 : index
    %435 = vector.load %arg3[%c1432, %c0_186] : memref<3872x128xf32, #tpu.memory_space<vmem>>, vector<1x32xf32>
    %cst_187 = arith.constant dense<0.000000e+00> : vector<32xf32>
    %436 = vector.multi_reduction <add>, %433, %cst_187 [1] : vector<32x32xf32> to vector<32xf32>
    %437 = vector.shape_cast %436 : vector<32xf32> to vector<32x1xf32>
    %cst_188 = arith.constant 3.200000e+01 : f32
    %438 = vector.broadcast %cst_188 : f32 to vector<32x1xf32>
    %439 = arith.divf %437, %438 : vector<32x1xf32>
    %440 = vector.broadcast %439 : vector<32x1xf32> to vector<32x32xf32>
    %441 = arith.subf %433, %440 : vector<32x32xf32>
    %442 = arith.mulf %441, %441 : vector<32x32xf32>
    %cst_189 = arith.constant dense<0.000000e+00> : vector<32xf32>
    %443 = vector.multi_reduction <add>, %442, %cst_189 [1] : vector<32x32xf32> to vector<32xf32>
    %444 = vector.shape_cast %443 : vector<32xf32> to vector<32x1xf32>
    %cst_190 = arith.constant 3.200000e+01 : f32
    %445 = vector.broadcast %cst_190 : f32 to vector<32x1xf32>
    %446 = arith.divf %444, %445 : vector<32x1xf32>
    %cst_191 = arith.constant 9.99999974E-6 : f32
    %447 = vector.broadcast %cst_191 : f32 to vector<32x1xf32>
    %448 = arith.addf %446, %447 : vector<32x1xf32>
    %449 = math.rsqrt %448 : vector<32x1xf32>
    %450 = vector.broadcast %449 : vector<32x1xf32> to vector<32x32xf32>
    %451 = arith.mulf %441, %450 : vector<32x32xf32>
    %452 = vector.broadcast %434 : vector<1x32xf32> to vector<32x32xf32>
    %453 = arith.mulf %451, %452 : vector<32x32xf32>
    %454 = vector.broadcast %435 : vector<1x32xf32> to vector<32x32xf32>
    %455 = arith.addf %453, %454 : vector<32x32xf32>
    %c1440 = arith.constant 1440 : index
    %c0_192 = arith.constant 0 : index
    %456 = vector.load %arg3[%c1440, %c0_192] : memref<3872x128xf32, #tpu.memory_space<vmem>>, vector<32x8xf32>
    %cst_193 = arith.constant dense<0.000000e+00> : vector<16x8xf32>
    %457 = tpu.matmul %25, %456, %cst_193 {dimension_numbers = #tpu.dot_dimension_numbers<[1], [0], [0], [1], [0, 0, 1, 1], [], []>} : vector<16x32xf32>, vector<32x8xf32>, vector<16x8xf32> -> vector<16x8xf32>
    %c1544 = arith.constant 1544 : index
    %c0_194 = arith.constant 0 : index
    %458 = vector.load %arg3[%c1544, %c0_194] : memref<3872x128xf32, #tpu.memory_space<vmem>>, vector<1x8xf32>
    %459 = vector.broadcast %458 : vector<1x8xf32> to vector<16x8xf32>
    %460 = arith.addf %457, %459 : vector<16x8xf32>
    %461 = vector.shape_cast %460 : vector<16x8xf32> to vector<2x8x8xf32>
    %c1472 = arith.constant 1472 : index
    %c0_195 = arith.constant 0 : index
    %462 = vector.load %arg3[%c1472, %c0_195] : memref<3872x128xf32, #tpu.memory_space<vmem>>, vector<32x8xf32>
    %cst_196 = arith.constant dense<0.000000e+00> : vector<16x8xf32>
    %463 = tpu.matmul %25, %462, %cst_196 {dimension_numbers = #tpu.dot_dimension_numbers<[1], [0], [0], [1], [0, 0, 1, 1], [], []>} : vector<16x32xf32>, vector<32x8xf32>, vector<16x8xf32> -> vector<16x8xf32>
    %c1552 = arith.constant 1552 : index
    %c0_197 = arith.constant 0 : index
    %464 = vector.load %arg3[%c1552, %c0_197] : memref<3872x128xf32, #tpu.memory_space<vmem>>, vector<1x8xf32>
    %465 = vector.broadcast %464 : vector<1x8xf32> to vector<16x8xf32>
    %466 = arith.addf %463, %465 : vector<16x8xf32>
    %467 = vector.shape_cast %466 : vector<16x8xf32> to vector<2x8x8xf32>
    %c1504 = arith.constant 1504 : index
    %c0_198 = arith.constant 0 : index
    %468 = vector.load %arg3[%c1504, %c0_198] : memref<3872x128xf32, #tpu.memory_space<vmem>>, vector<32x8xf32>
    %cst_199 = arith.constant dense<0.000000e+00> : vector<16x8xf32>
    %469 = tpu.matmul %25, %468, %cst_199 {dimension_numbers = #tpu.dot_dimension_numbers<[1], [0], [0], [1], [0, 0, 1, 1], [], []>} : vector<16x32xf32>, vector<32x8xf32>, vector<16x8xf32> -> vector<16x8xf32>
    %c1560 = arith.constant 1560 : index
    %c0_200 = arith.constant 0 : index
    %470 = vector.load %arg3[%c1560, %c0_200] : memref<3872x128xf32, #tpu.memory_space<vmem>>, vector<1x8xf32>
    %471 = vector.broadcast %470 : vector<1x8xf32> to vector<16x8xf32>
    %472 = arith.addf %469, %471 : vector<16x8xf32>
    %473 = vector.shape_cast %472 : vector<16x8xf32> to vector<2x8x8xf32>
    "tpu.trace_start"() <{level = 10 : i32, message = "bqd,bkd->bqk"}> : () -> ()
    %cst_201 = arith.constant dense<0.000000e+00> : vector<2x8x8xf32>
    %474 = tpu.matmul %461, %467, %cst_201 {dimension_numbers = #tpu.dot_dimension_numbers<[2], [2], [1], [1], [0, 0, 0, 1, 1, 1], [0], [0]>} : vector<2x8x8xf32>, vector<2x8x8xf32>, vector<2x8x8xf32> -> vector<2x8x8xf32>
    "tpu.trace_stop"() : () -> ()
    %cst_202 = arith.constant 0.353553385 : f32
    %475 = vector.broadcast %cst_202 : f32 to vector<2x8x8xf32>
    %476 = arith.mulf %474, %475 : vector<2x8x8xf32>
    %cst_203 = arith.constant dense<0xFF800000> : vector<2x8xf32>
    %477 = vector.multi_reduction <maximumf>, %476, %cst_203 [2] : vector<2x8x8xf32> to vector<2x8xf32>
    %478 = vector.shape_cast %477 : vector<2x8xf32> to vector<2x8x1xf32>
    %479 = vector.broadcast %478 : vector<2x8x1xf32> to vector<2x8x8xf32>
    %480 = arith.subf %476, %479 : vector<2x8x8xf32>
    %481 = math.exp %480 : vector<2x8x8xf32>
    %cst_204 = arith.constant dense<0.000000e+00> : vector<2x8xf32>
    %482 = vector.multi_reduction <add>, %481, %cst_204 [2] : vector<2x8x8xf32> to vector<2x8xf32>
    %483 = vector.shape_cast %482 : vector<2x8xf32> to vector<2x8x1xf32>
    %484 = tpu.reciprocal %483 {approx = true} : vector<2x8x1xf32> -> vector<2x8x1xf32>
    %485 = vector.broadcast %484 : vector<2x8x1xf32> to vector<2x8x8xf32>
    %486 = arith.mulf %481, %485 : vector<2x8x8xf32>
    "tpu.trace_start"() <{level = 10 : i32, message = "bqk,bkd->bqd"}> : () -> ()
    %cst_205 = arith.constant dense<0.000000e+00> : vector<2x8x8xf32>
    %487 = tpu.matmul %486, %473, %cst_205 {dimension_numbers = #tpu.dot_dimension_numbers<[2], [1], [1], [2], [0, 0, 0, 1, 1, 2], [0], [0]>} : vector<2x8x8xf32>, vector<2x8x8xf32>, vector<2x8x8xf32> -> vector<2x8x8xf32>
    "tpu.trace_stop"() : () -> ()
    %488 = vector.shape_cast %487 : vector<2x8x8xf32> to vector<16x8xf32>
    %c1536 = arith.constant 1536 : index
    %c0_206 = arith.constant 0 : index
    %489 = vector.load %arg3[%c1536, %c0_206] : memref<3872x128xf32, #tpu.memory_space<vmem>>, vector<8x32xf32>
    %cst_207 = arith.constant dense<0.000000e+00> : vector<16x32xf32>
    %490 = tpu.matmul %488, %489, %cst_207 {dimension_numbers = #tpu.dot_dimension_numbers<[1], [0], [0], [1], [0, 0, 1, 1], [], []>} : vector<16x8xf32>, vector<8x32xf32>, vector<16x32xf32> -> vector<16x32xf32>
    %c1568 = arith.constant 1568 : index
    %c0_208 = arith.constant 0 : index
    %491 = vector.load %arg3[%c1568, %c0_208] : memref<3872x128xf32, #tpu.memory_space<vmem>>, vector<32x8xf32>
    %cst_209 = arith.constant dense<0.000000e+00> : vector<16x8xf32>
    %492 = tpu.matmul %25, %491, %cst_209 {dimension_numbers = #tpu.dot_dimension_numbers<[1], [0], [0], [1], [0, 0, 1, 1], [], []>} : vector<16x32xf32>, vector<32x8xf32>, vector<16x8xf32> -> vector<16x8xf32>
    %c1672 = arith.constant 1672 : index
    %c0_210 = arith.constant 0 : index
    %493 = vector.load %arg3[%c1672, %c0_210] : memref<3872x128xf32, #tpu.memory_space<vmem>>, vector<1x8xf32>
    %494 = vector.broadcast %493 : vector<1x8xf32> to vector<16x8xf32>
    %495 = arith.addf %492, %494 : vector<16x8xf32>
    %496 = vector.shape_cast %495 : vector<16x8xf32> to vector<2x8x8xf32>
    %c1600 = arith.constant 1600 : index
    %c0_211 = arith.constant 0 : index
    %497 = vector.load %arg3[%c1600, %c0_211] : memref<3872x128xf32, #tpu.memory_space<vmem>>, vector<32x8xf32>
    %cst_212 = arith.constant dense<0.000000e+00> : vector<16x8xf32>
    %498 = tpu.matmul %25, %497, %cst_212 {dimension_numbers = #tpu.dot_dimension_numbers<[1], [0], [0], [1], [0, 0, 1, 1], [], []>} : vector<16x32xf32>, vector<32x8xf32>, vector<16x8xf32> -> vector<16x8xf32>
    %c1680 = arith.constant 1680 : index
    %c0_213 = arith.constant 0 : index
    %499 = vector.load %arg3[%c1680, %c0_213] : memref<3872x128xf32, #tpu.memory_space<vmem>>, vector<1x8xf32>
    %500 = vector.broadcast %499 : vector<1x8xf32> to vector<16x8xf32>
    %501 = arith.addf %498, %500 : vector<16x8xf32>
    %502 = vector.shape_cast %501 : vector<16x8xf32> to vector<2x8x8xf32>
    %c1632 = arith.constant 1632 : index
    %c0_214 = arith.constant 0 : index
    %503 = vector.load %arg3[%c1632, %c0_214] : memref<3872x128xf32, #tpu.memory_space<vmem>>, vector<32x8xf32>
    %cst_215 = arith.constant dense<0.000000e+00> : vector<16x8xf32>
    %504 = tpu.matmul %25, %503, %cst_215 {dimension_numbers = #tpu.dot_dimension_numbers<[1], [0], [0], [1], [0, 0, 1, 1], [], []>} : vector<16x32xf32>, vector<32x8xf32>, vector<16x8xf32> -> vector<16x8xf32>
    %c1688 = arith.constant 1688 : index
    %c0_216 = arith.constant 0 : index
    %505 = vector.load %arg3[%c1688, %c0_216] : memref<3872x128xf32, #tpu.memory_space<vmem>>, vector<1x8xf32>
    %506 = vector.broadcast %505 : vector<1x8xf32> to vector<16x8xf32>
    %507 = arith.addf %504, %506 : vector<16x8xf32>
    %508 = vector.shape_cast %507 : vector<16x8xf32> to vector<2x8x8xf32>
    "tpu.trace_start"() <{level = 10 : i32, message = "bqd,bkd->bqk"}> : () -> ()
    %cst_217 = arith.constant dense<0.000000e+00> : vector<2x8x8xf32>
    %509 = tpu.matmul %496, %502, %cst_217 {dimension_numbers = #tpu.dot_dimension_numbers<[2], [2], [1], [1], [0, 0, 0, 1, 1, 1], [0], [0]>} : vector<2x8x8xf32>, vector<2x8x8xf32>, vector<2x8x8xf32> -> vector<2x8x8xf32>
    "tpu.trace_stop"() : () -> ()
    %cst_218 = arith.constant 0.353553385 : f32
    %510 = vector.broadcast %cst_218 : f32 to vector<2x8x8xf32>
    %511 = arith.mulf %509, %510 : vector<2x8x8xf32>
    %cst_219 = arith.constant dense<0xFF800000> : vector<2x8xf32>
    %512 = vector.multi_reduction <maximumf>, %511, %cst_219 [2] : vector<2x8x8xf32> to vector<2x8xf32>
    %513 = vector.shape_cast %512 : vector<2x8xf32> to vector<2x8x1xf32>
    %514 = vector.broadcast %513 : vector<2x8x1xf32> to vector<2x8x8xf32>
    %515 = arith.subf %511, %514 : vector<2x8x8xf32>
    %516 = math.exp %515 : vector<2x8x8xf32>
    %cst_220 = arith.constant dense<0.000000e+00> : vector<2x8xf32>
    %517 = vector.multi_reduction <add>, %516, %cst_220 [2] : vector<2x8x8xf32> to vector<2x8xf32>
    %518 = vector.shape_cast %517 : vector<2x8xf32> to vector<2x8x1xf32>
    %519 = tpu.reciprocal %518 {approx = true} : vector<2x8x1xf32> -> vector<2x8x1xf32>
    %520 = vector.broadcast %519 : vector<2x8x1xf32> to vector<2x8x8xf32>
    %521 = arith.mulf %516, %520 : vector<2x8x8xf32>
    "tpu.trace_start"() <{level = 10 : i32, message = "bqk,bkd->bqd"}> : () -> ()
    %cst_221 = arith.constant dense<0.000000e+00> : vector<2x8x8xf32>
    %522 = tpu.matmul %521, %508, %cst_221 {dimension_numbers = #tpu.dot_dimension_numbers<[2], [1], [1], [2], [0, 0, 0, 1, 1, 2], [0], [0]>} : vector<2x8x8xf32>, vector<2x8x8xf32>, vector<2x8x8xf32> -> vector<2x8x8xf32>
    "tpu.trace_stop"() : () -> ()
    %523 = vector.shape_cast %522 : vector<2x8x8xf32> to vector<16x8xf32>
    %c1664 = arith.constant 1664 : index
    %c0_222 = arith.constant 0 : index
    %524 = vector.load %arg3[%c1664, %c0_222] : memref<3872x128xf32, #tpu.memory_space<vmem>>, vector<8x32xf32>
    %cst_223 = arith.constant dense<0.000000e+00> : vector<16x32xf32>
    %525 = tpu.matmul %523, %524, %cst_223 {dimension_numbers = #tpu.dot_dimension_numbers<[1], [0], [0], [1], [0, 0, 1, 1], [], []>} : vector<16x8xf32>, vector<8x32xf32>, vector<16x32xf32> -> vector<16x32xf32>
    %526 = arith.addf %490, %525 : vector<16x32xf32>
    %c1696 = arith.constant 1696 : index
    %c0_224 = arith.constant 0 : index
    %527 = vector.load %arg3[%c1696, %c0_224] : memref<3872x128xf32, #tpu.memory_space<vmem>>, vector<32x8xf32>
    %cst_225 = arith.constant dense<0.000000e+00> : vector<16x8xf32>
    %528 = tpu.matmul %25, %527, %cst_225 {dimension_numbers = #tpu.dot_dimension_numbers<[1], [0], [0], [1], [0, 0, 1, 1], [], []>} : vector<16x32xf32>, vector<32x8xf32>, vector<16x8xf32> -> vector<16x8xf32>
    %c1800 = arith.constant 1800 : index
    %c0_226 = arith.constant 0 : index
    %529 = vector.load %arg3[%c1800, %c0_226] : memref<3872x128xf32, #tpu.memory_space<vmem>>, vector<1x8xf32>
    %530 = vector.broadcast %529 : vector<1x8xf32> to vector<16x8xf32>
    %531 = arith.addf %528, %530 : vector<16x8xf32>
    %532 = vector.shape_cast %531 : vector<16x8xf32> to vector<2x8x8xf32>
    %c1728 = arith.constant 1728 : index
    %c0_227 = arith.constant 0 : index
    %533 = vector.load %arg3[%c1728, %c0_227] : memref<3872x128xf32, #tpu.memory_space<vmem>>, vector<32x8xf32>
    %cst_228 = arith.constant dense<0.000000e+00> : vector<16x8xf32>
    %534 = tpu.matmul %25, %533, %cst_228 {dimension_numbers = #tpu.dot_dimension_numbers<[1], [0], [0], [1], [0, 0, 1, 1], [], []>} : vector<16x32xf32>, vector<32x8xf32>, vector<16x8xf32> -> vector<16x8xf32>
    %c1808 = arith.constant 1808 : index
    %c0_229 = arith.constant 0 : index
    %535 = vector.load %arg3[%c1808, %c0_229] : memref<3872x128xf32, #tpu.memory_space<vmem>>, vector<1x8xf32>
    %536 = vector.broadcast %535 : vector<1x8xf32> to vector<16x8xf32>
    %537 = arith.addf %534, %536 : vector<16x8xf32>
    %538 = vector.shape_cast %537 : vector<16x8xf32> to vector<2x8x8xf32>
    %c1760 = arith.constant 1760 : index
    %c0_230 = arith.constant 0 : index
    %539 = vector.load %arg3[%c1760, %c0_230] : memref<3872x128xf32, #tpu.memory_space<vmem>>, vector<32x8xf32>
    %cst_231 = arith.constant dense<0.000000e+00> : vector<16x8xf32>
    %540 = tpu.matmul %25, %539, %cst_231 {dimension_numbers = #tpu.dot_dimension_numbers<[1], [0], [0], [1], [0, 0, 1, 1], [], []>} : vector<16x32xf32>, vector<32x8xf32>, vector<16x8xf32> -> vector<16x8xf32>
    %c1816 = arith.constant 1816 : index
    %c0_232 = arith.constant 0 : index
    %541 = vector.load %arg3[%c1816, %c0_232] : memref<3872x128xf32, #tpu.memory_space<vmem>>, vector<1x8xf32>
    %542 = vector.broadcast %541 : vector<1x8xf32> to vector<16x8xf32>
    %543 = arith.addf %540, %542 : vector<16x8xf32>
    %544 = vector.shape_cast %543 : vector<16x8xf32> to vector<2x8x8xf32>
    "tpu.trace_start"() <{level = 10 : i32, message = "bqd,bkd->bqk"}> : () -> ()
    %cst_233 = arith.constant dense<0.000000e+00> : vector<2x8x8xf32>
    %545 = tpu.matmul %532, %538, %cst_233 {dimension_numbers = #tpu.dot_dimension_numbers<[2], [2], [1], [1], [0, 0, 0, 1, 1, 1], [0], [0]>} : vector<2x8x8xf32>, vector<2x8x8xf32>, vector<2x8x8xf32> -> vector<2x8x8xf32>
    "tpu.trace_stop"() : () -> ()
    %cst_234 = arith.constant 0.353553385 : f32
    %546 = vector.broadcast %cst_234 : f32 to vector<2x8x8xf32>
    %547 = arith.mulf %545, %546 : vector<2x8x8xf32>
    %cst_235 = arith.constant dense<0xFF800000> : vector<2x8xf32>
    %548 = vector.multi_reduction <maximumf>, %547, %cst_235 [2] : vector<2x8x8xf32> to vector<2x8xf32>
    %549 = vector.shape_cast %548 : vector<2x8xf32> to vector<2x8x1xf32>
    %550 = vector.broadcast %549 : vector<2x8x1xf32> to vector<2x8x8xf32>
    %551 = arith.subf %547, %550 : vector<2x8x8xf32>
    %552 = math.exp %551 : vector<2x8x8xf32>
    %cst_236 = arith.constant dense<0.000000e+00> : vector<2x8xf32>
    %553 = vector.multi_reduction <add>, %552, %cst_236 [2] : vector<2x8x8xf32> to vector<2x8xf32>
    %554 = vector.shape_cast %553 : vector<2x8xf32> to vector<2x8x1xf32>
    %555 = tpu.reciprocal %554 {approx = true} : vector<2x8x1xf32> -> vector<2x8x1xf32>
    %556 = vector.broadcast %555 : vector<2x8x1xf32> to vector<2x8x8xf32>
    %557 = arith.mulf %552, %556 : vector<2x8x8xf32>
    "tpu.trace_start"() <{level = 10 : i32, message = "bqk,bkd->bqd"}> : () -> ()
    %cst_237 = arith.constant dense<0.000000e+00> : vector<2x8x8xf32>
    %558 = tpu.matmul %557, %544, %cst_237 {dimension_numbers = #tpu.dot_dimension_numbers<[2], [1], [1], [2], [0, 0, 0, 1, 1, 2], [0], [0]>} : vector<2x8x8xf32>, vector<2x8x8xf32>, vector<2x8x8xf32> -> vector<2x8x8xf32>
    "tpu.trace_stop"() : () -> ()
    %559 = vector.shape_cast %558 : vector<2x8x8xf32> to vector<16x8xf32>
    %c1792 = arith.constant 1792 : index
    %c0_238 = arith.constant 0 : index
    %560 = vector.load %arg3[%c1792, %c0_238] : memref<3872x128xf32, #tpu.memory_space<vmem>>, vector<8x32xf32>
    %cst_239 = arith.constant dense<0.000000e+00> : vector<16x32xf32>
    %561 = tpu.matmul %559, %560, %cst_239 {dimension_numbers = #tpu.dot_dimension_numbers<[1], [0], [0], [1], [0, 0, 1, 1], [], []>} : vector<16x8xf32>, vector<8x32xf32>, vector<16x32xf32> -> vector<16x32xf32>
    %562 = arith.addf %526, %561 : vector<16x32xf32>
    %c1824 = arith.constant 1824 : index
    %c0_240 = arith.constant 0 : index
    %563 = vector.load %arg3[%c1824, %c0_240] : memref<3872x128xf32, #tpu.memory_space<vmem>>, vector<32x8xf32>
    %cst_241 = arith.constant dense<0.000000e+00> : vector<16x8xf32>
    %564 = tpu.matmul %25, %563, %cst_241 {dimension_numbers = #tpu.dot_dimension_numbers<[1], [0], [0], [1], [0, 0, 1, 1], [], []>} : vector<16x32xf32>, vector<32x8xf32>, vector<16x8xf32> -> vector<16x8xf32>
    %c1928 = arith.constant 1928 : index
    %c0_242 = arith.constant 0 : index
    %565 = vector.load %arg3[%c1928, %c0_242] : memref<3872x128xf32, #tpu.memory_space<vmem>>, vector<1x8xf32>
    %566 = vector.broadcast %565 : vector<1x8xf32> to vector<16x8xf32>
    %567 = arith.addf %564, %566 : vector<16x8xf32>
    %568 = vector.shape_cast %567 : vector<16x8xf32> to vector<2x8x8xf32>
    %c1856 = arith.constant 1856 : index
    %c0_243 = arith.constant 0 : index
    %569 = vector.load %arg3[%c1856, %c0_243] : memref<3872x128xf32, #tpu.memory_space<vmem>>, vector<32x8xf32>
    %cst_244 = arith.constant dense<0.000000e+00> : vector<16x8xf32>
    %570 = tpu.matmul %25, %569, %cst_244 {dimension_numbers = #tpu.dot_dimension_numbers<[1], [0], [0], [1], [0, 0, 1, 1], [], []>} : vector<16x32xf32>, vector<32x8xf32>, vector<16x8xf32> -> vector<16x8xf32>
    %c1936 = arith.constant 1936 : index
    %c0_245 = arith.constant 0 : index
    %571 = vector.load %arg3[%c1936, %c0_245] : memref<3872x128xf32, #tpu.memory_space<vmem>>, vector<1x8xf32>
    %572 = vector.broadcast %571 : vector<1x8xf32> to vector<16x8xf32>
    %573 = arith.addf %570, %572 : vector<16x8xf32>
    %574 = vector.shape_cast %573 : vector<16x8xf32> to vector<2x8x8xf32>
    %c1888 = arith.constant 1888 : index
    %c0_246 = arith.constant 0 : index
    %575 = vector.load %arg3[%c1888, %c0_246] : memref<3872x128xf32, #tpu.memory_space<vmem>>, vector<32x8xf32>
    %cst_247 = arith.constant dense<0.000000e+00> : vector<16x8xf32>
    %576 = tpu.matmul %25, %575, %cst_247 {dimension_numbers = #tpu.dot_dimension_numbers<[1], [0], [0], [1], [0, 0, 1, 1], [], []>} : vector<16x32xf32>, vector<32x8xf32>, vector<16x8xf32> -> vector<16x8xf32>
    %c1944 = arith.constant 1944 : index
    %c0_248 = arith.constant 0 : index
    %577 = vector.load %arg3[%c1944, %c0_248] : memref<3872x128xf32, #tpu.memory_space<vmem>>, vector<1x8xf32>
    %578 = vector.broadcast %577 : vector<1x8xf32> to vector<16x8xf32>
    %579 = arith.addf %576, %578 : vector<16x8xf32>
    %580 = vector.shape_cast %579 : vector<16x8xf32> to vector<2x8x8xf32>
    "tpu.trace_start"() <{level = 10 : i32, message = "bqd,bkd->bqk"}> : () -> ()
    %cst_249 = arith.constant dense<0.000000e+00> : vector<2x8x8xf32>
    %581 = tpu.matmul %568, %574, %cst_249 {dimension_numbers = #tpu.dot_dimension_numbers<[2], [2], [1], [1], [0, 0, 0, 1, 1, 1], [0], [0]>} : vector<2x8x8xf32>, vector<2x8x8xf32>, vector<2x8x8xf32> -> vector<2x8x8xf32>
    "tpu.trace_stop"() : () -> ()
    %cst_250 = arith.constant 0.353553385 : f32
    %582 = vector.broadcast %cst_250 : f32 to vector<2x8x8xf32>
    %583 = arith.mulf %581, %582 : vector<2x8x8xf32>
    %cst_251 = arith.constant dense<0xFF800000> : vector<2x8xf32>
    %584 = vector.multi_reduction <maximumf>, %583, %cst_251 [2] : vector<2x8x8xf32> to vector<2x8xf32>
    %585 = vector.shape_cast %584 : vector<2x8xf32> to vector<2x8x1xf32>
    %586 = vector.broadcast %585 : vector<2x8x1xf32> to vector<2x8x8xf32>
    %587 = arith.subf %583, %586 : vector<2x8x8xf32>
    %588 = math.exp %587 : vector<2x8x8xf32>
    %cst_252 = arith.constant dense<0.000000e+00> : vector<2x8xf32>
    %589 = vector.multi_reduction <add>, %588, %cst_252 [2] : vector<2x8x8xf32> to vector<2x8xf32>
    %590 = vector.shape_cast %589 : vector<2x8xf32> to vector<2x8x1xf32>
    %591 = tpu.reciprocal %590 {approx = true} : vector<2x8x1xf32> -> vector<2x8x1xf32>
    %592 = vector.broadcast %591 : vector<2x8x1xf32> to vector<2x8x8xf32>
    %593 = arith.mulf %588, %592 : vector<2x8x8xf32>
    "tpu.trace_start"() <{level = 10 : i32, message = "bqk,bkd->bqd"}> : () -> ()
    %cst_253 = arith.constant dense<0.000000e+00> : vector<2x8x8xf32>
    %594 = tpu.matmul %593, %580, %cst_253 {dimension_numbers = #tpu.dot_dimension_numbers<[2], [1], [1], [2], [0, 0, 0, 1, 1, 2], [0], [0]>} : vector<2x8x8xf32>, vector<2x8x8xf32>, vector<2x8x8xf32> -> vector<2x8x8xf32>
    "tpu.trace_stop"() : () -> ()
    %595 = vector.shape_cast %594 : vector<2x8x8xf32> to vector<16x8xf32>
    %c1920 = arith.constant 1920 : index
    %c0_254 = arith.constant 0 : index
    %596 = vector.load %arg3[%c1920, %c0_254] : memref<3872x128xf32, #tpu.memory_space<vmem>>, vector<8x32xf32>
    %cst_255 = arith.constant dense<0.000000e+00> : vector<16x32xf32>
    %597 = tpu.matmul %595, %596, %cst_255 {dimension_numbers = #tpu.dot_dimension_numbers<[1], [0], [0], [1], [0, 0, 1, 1], [], []>} : vector<16x8xf32>, vector<8x32xf32>, vector<16x32xf32> -> vector<16x32xf32>
    %598 = arith.addf %562, %597 : vector<16x32xf32>
    %c1952 = arith.constant 1952 : index
    %c0_256 = arith.constant 0 : index
    %599 = vector.load %arg3[%c1952, %c0_256] : memref<3872x128xf32, #tpu.memory_space<vmem>>, vector<1x32xf32>
    %600 = vector.broadcast %599 : vector<1x32xf32> to vector<16x32xf32>
    %601 = arith.addf %598, %600 : vector<16x32xf32>
    %602 = arith.addf %25, %601 : vector<16x32xf32>
    %c2592 = arith.constant 2592 : index
    %c0_257 = arith.constant 0 : index
    %603 = vector.load %arg3[%c2592, %c0_257] : memref<3872x128xf32, #tpu.memory_space<vmem>>, vector<1x32xf32>
    %c2600 = arith.constant 2600 : index
    %c0_258 = arith.constant 0 : index
    %604 = vector.load %arg3[%c2600, %c0_258] : memref<3872x128xf32, #tpu.memory_space<vmem>>, vector<1x32xf32>
    %cst_259 = arith.constant dense<0.000000e+00> : vector<16xf32>
    %605 = vector.multi_reduction <add>, %602, %cst_259 [1] : vector<16x32xf32> to vector<16xf32>
    %606 = vector.shape_cast %605 : vector<16xf32> to vector<16x1xf32>
    %cst_260 = arith.constant 3.200000e+01 : f32
    %607 = vector.broadcast %cst_260 : f32 to vector<16x1xf32>
    %608 = arith.divf %606, %607 : vector<16x1xf32>
    %609 = vector.broadcast %608 : vector<16x1xf32> to vector<16x32xf32>
    %610 = arith.subf %602, %609 : vector<16x32xf32>
    %611 = arith.mulf %610, %610 : vector<16x32xf32>
    %cst_261 = arith.constant dense<0.000000e+00> : vector<16xf32>
    %612 = vector.multi_reduction <add>, %611, %cst_261 [1] : vector<16x32xf32> to vector<16xf32>
    %613 = vector.shape_cast %612 : vector<16xf32> to vector<16x1xf32>
    %cst_262 = arith.constant 3.200000e+01 : f32
    %614 = vector.broadcast %cst_262 : f32 to vector<16x1xf32>
    %615 = arith.divf %613, %614 : vector<16x1xf32>
    %cst_263 = arith.constant 9.99999974E-6 : f32
    %616 = vector.broadcast %cst_263 : f32 to vector<16x1xf32>
    %617 = arith.addf %615, %616 : vector<16x1xf32>
    %618 = math.rsqrt %617 : vector<16x1xf32>
    %619 = vector.broadcast %618 : vector<16x1xf32> to vector<16x32xf32>
    %620 = arith.mulf %610, %619 : vector<16x32xf32>
    %621 = vector.broadcast %603 : vector<1x32xf32> to vector<16x32xf32>
    %622 = arith.mulf %620, %621 : vector<16x32xf32>
    %623 = vector.broadcast %604 : vector<1x32xf32> to vector<16x32xf32>
    %624 = arith.addf %622, %623 : vector<16x32xf32>
    %c1960 = arith.constant 1960 : index
    %c0_264 = arith.constant 0 : index
    %625 = vector.load %arg3[%c1960, %c0_264] : memref<3872x128xf32, #tpu.memory_space<vmem>>, vector<32x8xf32>
    %cst_265 = arith.constant dense<0.000000e+00> : vector<16x8xf32>
    %626 = tpu.matmul %624, %625, %cst_265 {dimension_numbers = #tpu.dot_dimension_numbers<[1], [0], [0], [1], [0, 0, 1, 1], [], []>} : vector<16x32xf32>, vector<32x8xf32>, vector<16x8xf32> -> vector<16x8xf32>
    %c2064 = arith.constant 2064 : index
    %c0_266 = arith.constant 0 : index
    %627 = vector.load %arg3[%c2064, %c0_266] : memref<3872x128xf32, #tpu.memory_space<vmem>>, vector<1x8xf32>
    %628 = vector.broadcast %627 : vector<1x8xf32> to vector<16x8xf32>
    %629 = arith.addf %626, %628 : vector<16x8xf32>
    %630 = vector.shape_cast %629 : vector<16x8xf32> to vector<2x8x8xf32>
    %c1992 = arith.constant 1992 : index
    %c0_267 = arith.constant 0 : index
    %631 = vector.load %arg3[%c1992, %c0_267] : memref<3872x128xf32, #tpu.memory_space<vmem>>, vector<32x8xf32>
    %cst_268 = arith.constant dense<0.000000e+00> : vector<32x8xf32>
    %632 = tpu.matmul %455, %631, %cst_268 {dimension_numbers = #tpu.dot_dimension_numbers<[1], [0], [0], [1], [0, 0, 1, 1], [], []>} : vector<32x32xf32>, vector<32x8xf32>, vector<32x8xf32> -> vector<32x8xf32>
    %c2072 = arith.constant 2072 : index
    %c0_269 = arith.constant 0 : index
    %633 = vector.load %arg3[%c2072, %c0_269] : memref<3872x128xf32, #tpu.memory_space<vmem>>, vector<1x8xf32>
    %634 = vector.broadcast %633 : vector<1x8xf32> to vector<32x8xf32>
    %635 = arith.addf %632, %634 : vector<32x8xf32>
    %636 = vector.shape_cast %635 : vector<32x8xf32> to vector<2x16x8xf32>
    %c2024 = arith.constant 2024 : index
    %c0_270 = arith.constant 0 : index
    %637 = vector.load %arg3[%c2024, %c0_270] : memref<3872x128xf32, #tpu.memory_space<vmem>>, vector<32x8xf32>
    %cst_271 = arith.constant dense<0.000000e+00> : vector<32x8xf32>
    %638 = tpu.matmul %455, %637, %cst_271 {dimension_numbers = #tpu.dot_dimension_numbers<[1], [0], [0], [1], [0, 0, 1, 1], [], []>} : vector<32x32xf32>, vector<32x8xf32>, vector<32x8xf32> -> vector<32x8xf32>
    %c2080 = arith.constant 2080 : index
    %c0_272 = arith.constant 0 : index
    %639 = vector.load %arg3[%c2080, %c0_272] : memref<3872x128xf32, #tpu.memory_space<vmem>>, vector<1x8xf32>
    %640 = vector.broadcast %639 : vector<1x8xf32> to vector<32x8xf32>
    %641 = arith.addf %638, %640 : vector<32x8xf32>
    %642 = vector.shape_cast %641 : vector<32x8xf32> to vector<2x16x8xf32>
    "tpu.trace_start"() <{level = 10 : i32, message = "bqd,bkd->bqk"}> : () -> ()
    %cst_273 = arith.constant dense<0.000000e+00> : vector<2x8x16xf32>
    %643 = tpu.matmul %630, %636, %cst_273 {dimension_numbers = #tpu.dot_dimension_numbers<[2], [2], [1], [1], [0, 0, 0, 1, 1, 1], [0], [0]>} : vector<2x8x8xf32>, vector<2x16x8xf32>, vector<2x8x16xf32> -> vector<2x8x16xf32>
    "tpu.trace_stop"() : () -> ()
    %cst_274 = arith.constant 0.353553385 : f32
    %644 = vector.broadcast %cst_274 : f32 to vector<2x8x16xf32>
    %645 = arith.mulf %643, %644 : vector<2x8x16xf32>
    %cst_275 = arith.constant dense<0xFF800000> : vector<2x8xf32>
    %646 = vector.multi_reduction <maximumf>, %645, %cst_275 [2] : vector<2x8x16xf32> to vector<2x8xf32>
    %647 = vector.shape_cast %646 : vector<2x8xf32> to vector<2x8x1xf32>
    %648 = vector.broadcast %647 : vector<2x8x1xf32> to vector<2x8x16xf32>
    %649 = arith.subf %645, %648 : vector<2x8x16xf32>
    %650 = math.exp %649 : vector<2x8x16xf32>
    %cst_276 = arith.constant dense<0.000000e+00> : vector<2x8xf32>
    %651 = vector.multi_reduction <add>, %650, %cst_276 [2] : vector<2x8x16xf32> to vector<2x8xf32>
    %652 = vector.shape_cast %651 : vector<2x8xf32> to vector<2x8x1xf32>
    %653 = tpu.reciprocal %652 {approx = true} : vector<2x8x1xf32> -> vector<2x8x1xf32>
    %654 = vector.broadcast %653 : vector<2x8x1xf32> to vector<2x8x16xf32>
    %655 = arith.mulf %650, %654 : vector<2x8x16xf32>
    "tpu.trace_start"() <{level = 10 : i32, message = "bqk,bkd->bqd"}> : () -> ()
    %cst_277 = arith.constant dense<0.000000e+00> : vector<2x8x8xf32>
    %656 = tpu.matmul %655, %642, %cst_277 {dimension_numbers = #tpu.dot_dimension_numbers<[2], [1], [1], [2], [0, 0, 0, 1, 1, 2], [0], [0]>} : vector<2x8x16xf32>, vector<2x16x8xf32>, vector<2x8x8xf32> -> vector<2x8x8xf32>
    "tpu.trace_stop"() : () -> ()
    %657 = vector.shape_cast %656 : vector<2x8x8xf32> to vector<16x8xf32>
    %c2056 = arith.constant 2056 : index
    %c0_278 = arith.constant 0 : index
    %658 = vector.load %arg3[%c2056, %c0_278] : memref<3872x128xf32, #tpu.memory_space<vmem>>, vector<8x32xf32>
    %cst_279 = arith.constant dense<0.000000e+00> : vector<16x32xf32>
    %659 = tpu.matmul %657, %658, %cst_279 {dimension_numbers = #tpu.dot_dimension_numbers<[1], [0], [0], [1], [0, 0, 1, 1], [], []>} : vector<16x8xf32>, vector<8x32xf32>, vector<16x32xf32> -> vector<16x32xf32>
    %c2088 = arith.constant 2088 : index
    %c0_280 = arith.constant 0 : index
    %660 = vector.load %arg3[%c2088, %c0_280] : memref<3872x128xf32, #tpu.memory_space<vmem>>, vector<32x8xf32>
    %cst_281 = arith.constant dense<0.000000e+00> : vector<16x8xf32>
    %661 = tpu.matmul %624, %660, %cst_281 {dimension_numbers = #tpu.dot_dimension_numbers<[1], [0], [0], [1], [0, 0, 1, 1], [], []>} : vector<16x32xf32>, vector<32x8xf32>, vector<16x8xf32> -> vector<16x8xf32>
    %c2192 = arith.constant 2192 : index
    %c0_282 = arith.constant 0 : index
    %662 = vector.load %arg3[%c2192, %c0_282] : memref<3872x128xf32, #tpu.memory_space<vmem>>, vector<1x8xf32>
    %663 = vector.broadcast %662 : vector<1x8xf32> to vector<16x8xf32>
    %664 = arith.addf %661, %663 : vector<16x8xf32>
    %665 = vector.shape_cast %664 : vector<16x8xf32> to vector<2x8x8xf32>
    %c2120 = arith.constant 2120 : index
    %c0_283 = arith.constant 0 : index
    %666 = vector.load %arg3[%c2120, %c0_283] : memref<3872x128xf32, #tpu.memory_space<vmem>>, vector<32x8xf32>
    %cst_284 = arith.constant dense<0.000000e+00> : vector<32x8xf32>
    %667 = tpu.matmul %455, %666, %cst_284 {dimension_numbers = #tpu.dot_dimension_numbers<[1], [0], [0], [1], [0, 0, 1, 1], [], []>} : vector<32x32xf32>, vector<32x8xf32>, vector<32x8xf32> -> vector<32x8xf32>
    %c2200 = arith.constant 2200 : index
    %c0_285 = arith.constant 0 : index
    %668 = vector.load %arg3[%c2200, %c0_285] : memref<3872x128xf32, #tpu.memory_space<vmem>>, vector<1x8xf32>
    %669 = vector.broadcast %668 : vector<1x8xf32> to vector<32x8xf32>
    %670 = arith.addf %667, %669 : vector<32x8xf32>
    %671 = vector.shape_cast %670 : vector<32x8xf32> to vector<2x16x8xf32>
    %c2152 = arith.constant 2152 : index
    %c0_286 = arith.constant 0 : index
    %672 = vector.load %arg3[%c2152, %c0_286] : memref<3872x128xf32, #tpu.memory_space<vmem>>, vector<32x8xf32>
    %cst_287 = arith.constant dense<0.000000e+00> : vector<32x8xf32>
    %673 = tpu.matmul %455, %672, %cst_287 {dimension_numbers = #tpu.dot_dimension_numbers<[1], [0], [0], [1], [0, 0, 1, 1], [], []>} : vector<32x32xf32>, vector<32x8xf32>, vector<32x8xf32> -> vector<32x8xf32>
    %c2208 = arith.constant 2208 : index
    %c0_288 = arith.constant 0 : index
    %674 = vector.load %arg3[%c2208, %c0_288] : memref<3872x128xf32, #tpu.memory_space<vmem>>, vector<1x8xf32>
    %675 = vector.broadcast %674 : vector<1x8xf32> to vector<32x8xf32>
    %676 = arith.addf %673, %675 : vector<32x8xf32>
    %677 = vector.shape_cast %676 : vector<32x8xf32> to vector<2x16x8xf32>
    "tpu.trace_start"() <{level = 10 : i32, message = "bqd,bkd->bqk"}> : () -> ()
    %cst_289 = arith.constant dense<0.000000e+00> : vector<2x8x16xf32>
    %678 = tpu.matmul %665, %671, %cst_289 {dimension_numbers = #tpu.dot_dimension_numbers<[2], [2], [1], [1], [0, 0, 0, 1, 1, 1], [0], [0]>} : vector<2x8x8xf32>, vector<2x16x8xf32>, vector<2x8x16xf32> -> vector<2x8x16xf32>
    "tpu.trace_stop"() : () -> ()
    %cst_290 = arith.constant 0.353553385 : f32
    %679 = vector.broadcast %cst_290 : f32 to vector<2x8x16xf32>
    %680 = arith.mulf %678, %679 : vector<2x8x16xf32>
    %cst_291 = arith.constant dense<0xFF800000> : vector<2x8xf32>
    %681 = vector.multi_reduction <maximumf>, %680, %cst_291 [2] : vector<2x8x16xf32> to vector<2x8xf32>
    %682 = vector.shape_cast %681 : vector<2x8xf32> to vector<2x8x1xf32>
    %683 = vector.broadcast %682 : vector<2x8x1xf32> to vector<2x8x16xf32>
    %684 = arith.subf %680, %683 : vector<2x8x16xf32>
    %685 = math.exp %684 : vector<2x8x16xf32>
    %cst_292 = arith.constant dense<0.000000e+00> : vector<2x8xf32>
    %686 = vector.multi_reduction <add>, %685, %cst_292 [2] : vector<2x8x16xf32> to vector<2x8xf32>
    %687 = vector.shape_cast %686 : vector<2x8xf32> to vector<2x8x1xf32>
    %688 = tpu.reciprocal %687 {approx = true} : vector<2x8x1xf32> -> vector<2x8x1xf32>
    %689 = vector.broadcast %688 : vector<2x8x1xf32> to vector<2x8x16xf32>
    %690 = arith.mulf %685, %689 : vector<2x8x16xf32>
    "tpu.trace_start"() <{level = 10 : i32, message = "bqk,bkd->bqd"}> : () -> ()
    %cst_293 = arith.constant dense<0.000000e+00> : vector<2x8x8xf32>
    %691 = tpu.matmul %690, %677, %cst_293 {dimension_numbers = #tpu.dot_dimension_numbers<[2], [1], [1], [2], [0, 0, 0, 1, 1, 2], [0], [0]>} : vector<2x8x16xf32>, vector<2x16x8xf32>, vector<2x8x8xf32> -> vector<2x8x8xf32>
    "tpu.trace_stop"() : () -> ()
    %692 = vector.shape_cast %691 : vector<2x8x8xf32> to vector<16x8xf32>
    %c2184 = arith.constant 2184 : index
    %c0_294 = arith.constant 0 : index
    %693 = vector.load %arg3[%c2184, %c0_294] : memref<3872x128xf32, #tpu.memory_space<vmem>>, vector<8x32xf32>
    %cst_295 = arith.constant dense<0.000000e+00> : vector<16x32xf32>
    %694 = tpu.matmul %692, %693, %cst_295 {dimension_numbers = #tpu.dot_dimension_numbers<[1], [0], [0], [1], [0, 0, 1, 1], [], []>} : vector<16x8xf32>, vector<8x32xf32>, vector<16x32xf32> -> vector<16x32xf32>
    %695 = arith.addf %659, %694 : vector<16x32xf32>
    %c2216 = arith.constant 2216 : index
    %c0_296 = arith.constant 0 : index
    %696 = vector.load %arg3[%c2216, %c0_296] : memref<3872x128xf32, #tpu.memory_space<vmem>>, vector<32x8xf32>
    %cst_297 = arith.constant dense<0.000000e+00> : vector<16x8xf32>
    %697 = tpu.matmul %624, %696, %cst_297 {dimension_numbers = #tpu.dot_dimension_numbers<[1], [0], [0], [1], [0, 0, 1, 1], [], []>} : vector<16x32xf32>, vector<32x8xf32>, vector<16x8xf32> -> vector<16x8xf32>
    %c2320 = arith.constant 2320 : index
    %c0_298 = arith.constant 0 : index
    %698 = vector.load %arg3[%c2320, %c0_298] : memref<3872x128xf32, #tpu.memory_space<vmem>>, vector<1x8xf32>
    %699 = vector.broadcast %698 : vector<1x8xf32> to vector<16x8xf32>
    %700 = arith.addf %697, %699 : vector<16x8xf32>
    %701 = vector.shape_cast %700 : vector<16x8xf32> to vector<2x8x8xf32>
    %c2248 = arith.constant 2248 : index
    %c0_299 = arith.constant 0 : index
    %702 = vector.load %arg3[%c2248, %c0_299] : memref<3872x128xf32, #tpu.memory_space<vmem>>, vector<32x8xf32>
    %cst_300 = arith.constant dense<0.000000e+00> : vector<32x8xf32>
    %703 = tpu.matmul %455, %702, %cst_300 {dimension_numbers = #tpu.dot_dimension_numbers<[1], [0], [0], [1], [0, 0, 1, 1], [], []>} : vector<32x32xf32>, vector<32x8xf32>, vector<32x8xf32> -> vector<32x8xf32>
    %c2328 = arith.constant 2328 : index
    %c0_301 = arith.constant 0 : index
    %704 = vector.load %arg3[%c2328, %c0_301] : memref<3872x128xf32, #tpu.memory_space<vmem>>, vector<1x8xf32>
    %705 = vector.broadcast %704 : vector<1x8xf32> to vector<32x8xf32>
    %706 = arith.addf %703, %705 : vector<32x8xf32>
    %707 = vector.shape_cast %706 : vector<32x8xf32> to vector<2x16x8xf32>
    %c2280 = arith.constant 2280 : index
    %c0_302 = arith.constant 0 : index
    %708 = vector.load %arg3[%c2280, %c0_302] : memref<3872x128xf32, #tpu.memory_space<vmem>>, vector<32x8xf32>
    %cst_303 = arith.constant dense<0.000000e+00> : vector<32x8xf32>
    %709 = tpu.matmul %455, %708, %cst_303 {dimension_numbers = #tpu.dot_dimension_numbers<[1], [0], [0], [1], [0, 0, 1, 1], [], []>} : vector<32x32xf32>, vector<32x8xf32>, vector<32x8xf32> -> vector<32x8xf32>
    %c2336 = arith.constant 2336 : index
    %c0_304 = arith.constant 0 : index
    %710 = vector.load %arg3[%c2336, %c0_304] : memref<3872x128xf32, #tpu.memory_space<vmem>>, vector<1x8xf32>
    %711 = vector.broadcast %710 : vector<1x8xf32> to vector<32x8xf32>
    %712 = arith.addf %709, %711 : vector<32x8xf32>
    %713 = vector.shape_cast %712 : vector<32x8xf32> to vector<2x16x8xf32>
    "tpu.trace_start"() <{level = 10 : i32, message = "bqd,bkd->bqk"}> : () -> ()
    %cst_305 = arith.constant dense<0.000000e+00> : vector<2x8x16xf32>
    %714 = tpu.matmul %701, %707, %cst_305 {dimension_numbers = #tpu.dot_dimension_numbers<[2], [2], [1], [1], [0, 0, 0, 1, 1, 1], [0], [0]>} : vector<2x8x8xf32>, vector<2x16x8xf32>, vector<2x8x16xf32> -> vector<2x8x16xf32>
    "tpu.trace_stop"() : () -> ()
    %cst_306 = arith.constant 0.353553385 : f32
    %715 = vector.broadcast %cst_306 : f32 to vector<2x8x16xf32>
    %716 = arith.mulf %714, %715 : vector<2x8x16xf32>
    %cst_307 = arith.constant dense<0xFF800000> : vector<2x8xf32>
    %717 = vector.multi_reduction <maximumf>, %716, %cst_307 [2] : vector<2x8x16xf32> to vector<2x8xf32>
    %718 = vector.shape_cast %717 : vector<2x8xf32> to vector<2x8x1xf32>
    %719 = vector.broadcast %718 : vector<2x8x1xf32> to vector<2x8x16xf32>
    %720 = arith.subf %716, %719 : vector<2x8x16xf32>
    %721 = math.exp %720 : vector<2x8x16xf32>
    %cst_308 = arith.constant dense<0.000000e+00> : vector<2x8xf32>
    %722 = vector.multi_reduction <add>, %721, %cst_308 [2] : vector<2x8x16xf32> to vector<2x8xf32>
    %723 = vector.shape_cast %722 : vector<2x8xf32> to vector<2x8x1xf32>
    %724 = tpu.reciprocal %723 {approx = true} : vector<2x8x1xf32> -> vector<2x8x1xf32>
    %725 = vector.broadcast %724 : vector<2x8x1xf32> to vector<2x8x16xf32>
    %726 = arith.mulf %721, %725 : vector<2x8x16xf32>
    "tpu.trace_start"() <{level = 10 : i32, message = "bqk,bkd->bqd"}> : () -> ()
    %cst_309 = arith.constant dense<0.000000e+00> : vector<2x8x8xf32>
    %727 = tpu.matmul %726, %713, %cst_309 {dimension_numbers = #tpu.dot_dimension_numbers<[2], [1], [1], [2], [0, 0, 0, 1, 1, 2], [0], [0]>} : vector<2x8x16xf32>, vector<2x16x8xf32>, vector<2x8x8xf32> -> vector<2x8x8xf32>
    "tpu.trace_stop"() : () -> ()
    %728 = vector.shape_cast %727 : vector<2x8x8xf32> to vector<16x8xf32>
    %c2312 = arith.constant 2312 : index
    %c0_310 = arith.constant 0 : index
    %729 = vector.load %arg3[%c2312, %c0_310] : memref<3872x128xf32, #tpu.memory_space<vmem>>, vector<8x32xf32>
    %cst_311 = arith.constant dense<0.000000e+00> : vector<16x32xf32>
    %730 = tpu.matmul %728, %729, %cst_311 {dimension_numbers = #tpu.dot_dimension_numbers<[1], [0], [0], [1], [0, 0, 1, 1], [], []>} : vector<16x8xf32>, vector<8x32xf32>, vector<16x32xf32> -> vector<16x32xf32>
    %731 = arith.addf %695, %730 : vector<16x32xf32>
    %c2344 = arith.constant 2344 : index
    %c0_312 = arith.constant 0 : index
    %732 = vector.load %arg3[%c2344, %c0_312] : memref<3872x128xf32, #tpu.memory_space<vmem>>, vector<32x8xf32>
    %cst_313 = arith.constant dense<0.000000e+00> : vector<16x8xf32>
    %733 = tpu.matmul %624, %732, %cst_313 {dimension_numbers = #tpu.dot_dimension_numbers<[1], [0], [0], [1], [0, 0, 1, 1], [], []>} : vector<16x32xf32>, vector<32x8xf32>, vector<16x8xf32> -> vector<16x8xf32>
    %c2448 = arith.constant 2448 : index
    %c0_314 = arith.constant 0 : index
    %734 = vector.load %arg3[%c2448, %c0_314] : memref<3872x128xf32, #tpu.memory_space<vmem>>, vector<1x8xf32>
    %735 = vector.broadcast %734 : vector<1x8xf32> to vector<16x8xf32>
    %736 = arith.addf %733, %735 : vector<16x8xf32>
    %737 = vector.shape_cast %736 : vector<16x8xf32> to vector<2x8x8xf32>
    %c2376 = arith.constant 2376 : index
    %c0_315 = arith.constant 0 : index
    %738 = vector.load %arg3[%c2376, %c0_315] : memref<3872x128xf32, #tpu.memory_space<vmem>>, vector<32x8xf32>
    %cst_316 = arith.constant dense<0.000000e+00> : vector<32x8xf32>
    %739 = tpu.matmul %455, %738, %cst_316 {dimension_numbers = #tpu.dot_dimension_numbers<[1], [0], [0], [1], [0, 0, 1, 1], [], []>} : vector<32x32xf32>, vector<32x8xf32>, vector<32x8xf32> -> vector<32x8xf32>
    %c2456 = arith.constant 2456 : index
    %c0_317 = arith.constant 0 : index
    %740 = vector.load %arg3[%c2456, %c0_317] : memref<3872x128xf32, #tpu.memory_space<vmem>>, vector<1x8xf32>
    %741 = vector.broadcast %740 : vector<1x8xf32> to vector<32x8xf32>
    %742 = arith.addf %739, %741 : vector<32x8xf32>
    %743 = vector.shape_cast %742 : vector<32x8xf32> to vector<2x16x8xf32>
    %c2408 = arith.constant 2408 : index
    %c0_318 = arith.constant 0 : index
    %744 = vector.load %arg3[%c2408, %c0_318] : memref<3872x128xf32, #tpu.memory_space<vmem>>, vector<32x8xf32>
    %cst_319 = arith.constant dense<0.000000e+00> : vector<32x8xf32>
    %745 = tpu.matmul %455, %744, %cst_319 {dimension_numbers = #tpu.dot_dimension_numbers<[1], [0], [0], [1], [0, 0, 1, 1], [], []>} : vector<32x32xf32>, vector<32x8xf32>, vector<32x8xf32> -> vector<32x8xf32>
    %c2464 = arith.constant 2464 : index
    %c0_320 = arith.constant 0 : index
    %746 = vector.load %arg3[%c2464, %c0_320] : memref<3872x128xf32, #tpu.memory_space<vmem>>, vector<1x8xf32>
    %747 = vector.broadcast %746 : vector<1x8xf32> to vector<32x8xf32>
    %748 = arith.addf %745, %747 : vector<32x8xf32>
    %749 = vector.shape_cast %748 : vector<32x8xf32> to vector<2x16x8xf32>
    "tpu.trace_start"() <{level = 10 : i32, message = "bqd,bkd->bqk"}> : () -> ()
    %cst_321 = arith.constant dense<0.000000e+00> : vector<2x8x16xf32>
    %750 = tpu.matmul %737, %743, %cst_321 {dimension_numbers = #tpu.dot_dimension_numbers<[2], [2], [1], [1], [0, 0, 0, 1, 1, 1], [0], [0]>} : vector<2x8x8xf32>, vector<2x16x8xf32>, vector<2x8x16xf32> -> vector<2x8x16xf32>
    "tpu.trace_stop"() : () -> ()
    %cst_322 = arith.constant 0.353553385 : f32
    %751 = vector.broadcast %cst_322 : f32 to vector<2x8x16xf32>
    %752 = arith.mulf %750, %751 : vector<2x8x16xf32>
    %cst_323 = arith.constant dense<0xFF800000> : vector<2x8xf32>
    %753 = vector.multi_reduction <maximumf>, %752, %cst_323 [2] : vector<2x8x16xf32> to vector<2x8xf32>
    %754 = vector.shape_cast %753 : vector<2x8xf32> to vector<2x8x1xf32>
    %755 = vector.broadcast %754 : vector<2x8x1xf32> to vector<2x8x16xf32>
    %756 = arith.subf %752, %755 : vector<2x8x16xf32>
    %757 = math.exp %756 : vector<2x8x16xf32>
    %cst_324 = arith.constant dense<0.000000e+00> : vector<2x8xf32>
    %758 = vector.multi_reduction <add>, %757, %cst_324 [2] : vector<2x8x16xf32> to vector<2x8xf32>
    %759 = vector.shape_cast %758 : vector<2x8xf32> to vector<2x8x1xf32>
    %760 = tpu.reciprocal %759 {approx = true} : vector<2x8x1xf32> -> vector<2x8x1xf32>
    %761 = vector.broadcast %760 : vector<2x8x1xf32> to vector<2x8x16xf32>
    %762 = arith.mulf %757, %761 : vector<2x8x16xf32>
    "tpu.trace_start"() <{level = 10 : i32, message = "bqk,bkd->bqd"}> : () -> ()
    %cst_325 = arith.constant dense<0.000000e+00> : vector<2x8x8xf32>
    %763 = tpu.matmul %762, %749, %cst_325 {dimension_numbers = #tpu.dot_dimension_numbers<[2], [1], [1], [2], [0, 0, 0, 1, 1, 2], [0], [0]>} : vector<2x8x16xf32>, vector<2x16x8xf32>, vector<2x8x8xf32> -> vector<2x8x8xf32>
    "tpu.trace_stop"() : () -> ()
    %764 = vector.shape_cast %763 : vector<2x8x8xf32> to vector<16x8xf32>
    %c2440 = arith.constant 2440 : index
    %c0_326 = arith.constant 0 : index
    %765 = vector.load %arg3[%c2440, %c0_326] : memref<3872x128xf32, #tpu.memory_space<vmem>>, vector<8x32xf32>
    %cst_327 = arith.constant dense<0.000000e+00> : vector<16x32xf32>
    %766 = tpu.matmul %764, %765, %cst_327 {dimension_numbers = #tpu.dot_dimension_numbers<[1], [0], [0], [1], [0, 0, 1, 1], [], []>} : vector<16x8xf32>, vector<8x32xf32>, vector<16x32xf32> -> vector<16x32xf32>
    %767 = arith.addf %731, %766 : vector<16x32xf32>
    %c2472 = arith.constant 2472 : index
    %c0_328 = arith.constant 0 : index
    %768 = vector.load %arg3[%c2472, %c0_328] : memref<3872x128xf32, #tpu.memory_space<vmem>>, vector<1x32xf32>
    %769 = vector.broadcast %768 : vector<1x32xf32> to vector<16x32xf32>
    %770 = arith.addf %767, %769 : vector<16x32xf32>
    %771 = arith.addf %624, %770 : vector<16x32xf32>
    %c2608 = arith.constant 2608 : index
    %c0_329 = arith.constant 0 : index
    %772 = vector.load %arg3[%c2608, %c0_329] : memref<3872x128xf32, #tpu.memory_space<vmem>>, vector<1x32xf32>
    %c2616 = arith.constant 2616 : index
    %c0_330 = arith.constant 0 : index
    %773 = vector.load %arg3[%c2616, %c0_330] : memref<3872x128xf32, #tpu.memory_space<vmem>>, vector<1x32xf32>
    %cst_331 = arith.constant dense<0.000000e+00> : vector<16xf32>
    %774 = vector.multi_reduction <add>, %771, %cst_331 [1] : vector<16x32xf32> to vector<16xf32>
    %775 = vector.shape_cast %774 : vector<16xf32> to vector<16x1xf32>
    %cst_332 = arith.constant 3.200000e+01 : f32
    %776 = vector.broadcast %cst_332 : f32 to vector<16x1xf32>
    %777 = arith.divf %775, %776 : vector<16x1xf32>
    %778 = vector.broadcast %777 : vector<16x1xf32> to vector<16x32xf32>
    %779 = arith.subf %771, %778 : vector<16x32xf32>
    %780 = arith.mulf %779, %779 : vector<16x32xf32>
    %cst_333 = arith.constant dense<0.000000e+00> : vector<16xf32>
    %781 = vector.multi_reduction <add>, %780, %cst_333 [1] : vector<16x32xf32> to vector<16xf32>
    %782 = vector.shape_cast %781 : vector<16xf32> to vector<16x1xf32>
    %cst_334 = arith.constant 3.200000e+01 : f32
    %783 = vector.broadcast %cst_334 : f32 to vector<16x1xf32>
    %784 = arith.divf %782, %783 : vector<16x1xf32>
    %cst_335 = arith.constant 9.99999974E-6 : f32
    %785 = vector.broadcast %cst_335 : f32 to vector<16x1xf32>
    %786 = arith.addf %784, %785 : vector<16x1xf32>
    %787 = math.rsqrt %786 : vector<16x1xf32>
    %788 = vector.broadcast %787 : vector<16x1xf32> to vector<16x32xf32>
    %789 = arith.mulf %779, %788 : vector<16x32xf32>
    %790 = vector.broadcast %772 : vector<1x32xf32> to vector<16x32xf32>
    %791 = arith.mulf %789, %790 : vector<16x32xf32>
    %792 = vector.broadcast %773 : vector<1x32xf32> to vector<16x32xf32>
    %793 = arith.addf %791, %792 : vector<16x32xf32>
    %c2480 = arith.constant 2480 : index
    %c0_336 = arith.constant 0 : index
    %794 = vector.load %arg3[%c2480, %c0_336] : memref<3872x128xf32, #tpu.memory_space<vmem>>, vector<32x64xf32>
    %cst_337 = arith.constant dense<0.000000e+00> : vector<16x64xf32>
    %795 = tpu.matmul %793, %794, %cst_337 {dimension_numbers = #tpu.dot_dimension_numbers<[1], [0], [0], [1], [0, 0, 1, 1], [], []>} : vector<16x32xf32>, vector<32x64xf32>, vector<16x64xf32> -> vector<16x64xf32>
    %c2512 = arith.constant 2512 : index
    %c0_338 = arith.constant 0 : index
    %796 = vector.load %arg3[%c2512, %c0_338] : memref<3872x128xf32, #tpu.memory_space<vmem>>, vector<1x64xf32>
    %797 = vector.broadcast %796 : vector<1x64xf32> to vector<16x64xf32>
    %798 = arith.addf %795, %797 : vector<16x64xf32>
    %cst_339 = arith.constant 0.000000e+00 : f32
    %799 = vector.broadcast %cst_339 : f32 to vector<16x64xf32>
    %800 = arith.maximumf %798, %799 : vector<16x64xf32>
    %c2520 = arith.constant 2520 : index
    %c0_340 = arith.constant 0 : index
    %801 = vector.load %arg3[%c2520, %c0_340] : memref<3872x128xf32, #tpu.memory_space<vmem>>, vector<64x32xf32>
    %cst_341 = arith.constant dense<0.000000e+00> : vector<16x32xf32>
    %802 = tpu.matmul %800, %801, %cst_341 {dimension_numbers = #tpu.dot_dimension_numbers<[1], [0], [0], [1], [0, 0, 1, 1], [], []>} : vector<16x64xf32>, vector<64x32xf32>, vector<16x32xf32> -> vector<16x32xf32>
    %c2584 = arith.constant 2584 : index
    %c0_342 = arith.constant 0 : index
    %803 = vector.load %arg3[%c2584, %c0_342] : memref<3872x128xf32, #tpu.memory_space<vmem>>, vector<1x32xf32>
    %804 = vector.broadcast %803 : vector<1x32xf32> to vector<16x32xf32>
    %805 = arith.addf %802, %804 : vector<16x32xf32>
    %806 = arith.addf %793, %805 : vector<16x32xf32>
    %c2624 = arith.constant 2624 : index
    %c0_343 = arith.constant 0 : index
    %807 = vector.load %arg3[%c2624, %c0_343] : memref<3872x128xf32, #tpu.memory_space<vmem>>, vector<1x32xf32>
    %c2632 = arith.constant 2632 : index
    %c0_344 = arith.constant 0 : index
    %808 = vector.load %arg3[%c2632, %c0_344] : memref<3872x128xf32, #tpu.memory_space<vmem>>, vector<1x32xf32>
    %cst_345 = arith.constant dense<0.000000e+00> : vector<16xf32>
    %809 = vector.multi_reduction <add>, %806, %cst_345 [1] : vector<16x32xf32> to vector<16xf32>
    %810 = vector.shape_cast %809 : vector<16xf32> to vector<16x1xf32>
    %cst_346 = arith.constant 3.200000e+01 : f32
    %811 = vector.broadcast %cst_346 : f32 to vector<16x1xf32>
    %812 = arith.divf %810, %811 : vector<16x1xf32>
    %813 = vector.broadcast %812 : vector<16x1xf32> to vector<16x32xf32>
    %814 = arith.subf %806, %813 : vector<16x32xf32>
    %815 = arith.mulf %814, %814 : vector<16x32xf32>
    %cst_347 = arith.constant dense<0.000000e+00> : vector<16xf32>
    %816 = vector.multi_reduction <add>, %815, %cst_347 [1] : vector<16x32xf32> to vector<16xf32>
    %817 = vector.shape_cast %816 : vector<16xf32> to vector<16x1xf32>
    %cst_348 = arith.constant 3.200000e+01 : f32
    %818 = vector.broadcast %cst_348 : f32 to vector<16x1xf32>
    %819 = arith.divf %817, %818 : vector<16x1xf32>
    %cst_349 = arith.constant 9.99999974E-6 : f32
    %820 = vector.broadcast %cst_349 : f32 to vector<16x1xf32>
    %821 = arith.addf %819, %820 : vector<16x1xf32>
    %822 = math.rsqrt %821 : vector<16x1xf32>
    %823 = vector.broadcast %822 : vector<16x1xf32> to vector<16x32xf32>
    %824 = arith.mulf %814, %823 : vector<16x32xf32>
    %825 = vector.broadcast %807 : vector<1x32xf32> to vector<16x32xf32>
    %826 = arith.mulf %824, %825 : vector<16x32xf32>
    %827 = vector.broadcast %808 : vector<1x32xf32> to vector<16x32xf32>
    %828 = arith.addf %826, %827 : vector<16x32xf32>
    %c2640 = arith.constant 2640 : index
    %c0_350 = arith.constant 0 : index
    %829 = vector.load %arg3[%c2640, %c0_350] : memref<3872x128xf32, #tpu.memory_space<vmem>>, vector<32x8xf32>
    %cst_351 = arith.constant dense<0.000000e+00> : vector<16x8xf32>
    %830 = tpu.matmul %828, %829, %cst_351 {dimension_numbers = #tpu.dot_dimension_numbers<[1], [0], [0], [1], [0, 0, 1, 1], [], []>} : vector<16x32xf32>, vector<32x8xf32>, vector<16x8xf32> -> vector<16x8xf32>
    %c2744 = arith.constant 2744 : index
    %c0_352 = arith.constant 0 : index
    %831 = vector.load %arg3[%c2744, %c0_352] : memref<3872x128xf32, #tpu.memory_space<vmem>>, vector<1x8xf32>
    %832 = vector.broadcast %831 : vector<1x8xf32> to vector<16x8xf32>
    %833 = arith.addf %830, %832 : vector<16x8xf32>
    %834 = vector.shape_cast %833 : vector<16x8xf32> to vector<2x8x8xf32>
    %c2672 = arith.constant 2672 : index
    %c0_353 = arith.constant 0 : index
    %835 = vector.load %arg3[%c2672, %c0_353] : memref<3872x128xf32, #tpu.memory_space<vmem>>, vector<32x8xf32>
    %cst_354 = arith.constant dense<0.000000e+00> : vector<16x8xf32>
    %836 = tpu.matmul %828, %835, %cst_354 {dimension_numbers = #tpu.dot_dimension_numbers<[1], [0], [0], [1], [0, 0, 1, 1], [], []>} : vector<16x32xf32>, vector<32x8xf32>, vector<16x8xf32> -> vector<16x8xf32>
    %c2752 = arith.constant 2752 : index
    %c0_355 = arith.constant 0 : index
    %837 = vector.load %arg3[%c2752, %c0_355] : memref<3872x128xf32, #tpu.memory_space<vmem>>, vector<1x8xf32>
    %838 = vector.broadcast %837 : vector<1x8xf32> to vector<16x8xf32>
    %839 = arith.addf %836, %838 : vector<16x8xf32>
    %840 = vector.shape_cast %839 : vector<16x8xf32> to vector<2x8x8xf32>
    %c2704 = arith.constant 2704 : index
    %c0_356 = arith.constant 0 : index
    %841 = vector.load %arg3[%c2704, %c0_356] : memref<3872x128xf32, #tpu.memory_space<vmem>>, vector<32x8xf32>
    %cst_357 = arith.constant dense<0.000000e+00> : vector<16x8xf32>
    %842 = tpu.matmul %828, %841, %cst_357 {dimension_numbers = #tpu.dot_dimension_numbers<[1], [0], [0], [1], [0, 0, 1, 1], [], []>} : vector<16x32xf32>, vector<32x8xf32>, vector<16x8xf32> -> vector<16x8xf32>
    %c2760 = arith.constant 2760 : index
    %c0_358 = arith.constant 0 : index
    %843 = vector.load %arg3[%c2760, %c0_358] : memref<3872x128xf32, #tpu.memory_space<vmem>>, vector<1x8xf32>
    %844 = vector.broadcast %843 : vector<1x8xf32> to vector<16x8xf32>
    %845 = arith.addf %842, %844 : vector<16x8xf32>
    %846 = vector.shape_cast %845 : vector<16x8xf32> to vector<2x8x8xf32>
    "tpu.trace_start"() <{level = 10 : i32, message = "bqd,bkd->bqk"}> : () -> ()
    %cst_359 = arith.constant dense<0.000000e+00> : vector<2x8x8xf32>
    %847 = tpu.matmul %834, %840, %cst_359 {dimension_numbers = #tpu.dot_dimension_numbers<[2], [2], [1], [1], [0, 0, 0, 1, 1, 1], [0], [0]>} : vector<2x8x8xf32>, vector<2x8x8xf32>, vector<2x8x8xf32> -> vector<2x8x8xf32>
    "tpu.trace_stop"() : () -> ()
    %cst_360 = arith.constant 0.353553385 : f32
    %848 = vector.broadcast %cst_360 : f32 to vector<2x8x8xf32>
    %849 = arith.mulf %847, %848 : vector<2x8x8xf32>
    %cst_361 = arith.constant dense<0xFF800000> : vector<2x8xf32>
    %850 = vector.multi_reduction <maximumf>, %849, %cst_361 [2] : vector<2x8x8xf32> to vector<2x8xf32>
    %851 = vector.shape_cast %850 : vector<2x8xf32> to vector<2x8x1xf32>
    %852 = vector.broadcast %851 : vector<2x8x1xf32> to vector<2x8x8xf32>
    %853 = arith.subf %849, %852 : vector<2x8x8xf32>
    %854 = math.exp %853 : vector<2x8x8xf32>
    %cst_362 = arith.constant dense<0.000000e+00> : vector<2x8xf32>
    %855 = vector.multi_reduction <add>, %854, %cst_362 [2] : vector<2x8x8xf32> to vector<2x8xf32>
    %856 = vector.shape_cast %855 : vector<2x8xf32> to vector<2x8x1xf32>
    %857 = tpu.reciprocal %856 {approx = true} : vector<2x8x1xf32> -> vector<2x8x1xf32>
    %858 = vector.broadcast %857 : vector<2x8x1xf32> to vector<2x8x8xf32>
    %859 = arith.mulf %854, %858 : vector<2x8x8xf32>
    "tpu.trace_start"() <{level = 10 : i32, message = "bqk,bkd->bqd"}> : () -> ()
    %cst_363 = arith.constant dense<0.000000e+00> : vector<2x8x8xf32>
    %860 = tpu.matmul %859, %846, %cst_363 {dimension_numbers = #tpu.dot_dimension_numbers<[2], [1], [1], [2], [0, 0, 0, 1, 1, 2], [0], [0]>} : vector<2x8x8xf32>, vector<2x8x8xf32>, vector<2x8x8xf32> -> vector<2x8x8xf32>
    "tpu.trace_stop"() : () -> ()
    %861 = vector.shape_cast %860 : vector<2x8x8xf32> to vector<16x8xf32>
    %c2736 = arith.constant 2736 : index
    %c0_364 = arith.constant 0 : index
    %862 = vector.load %arg3[%c2736, %c0_364] : memref<3872x128xf32, #tpu.memory_space<vmem>>, vector<8x32xf32>
    %cst_365 = arith.constant dense<0.000000e+00> : vector<16x32xf32>
    %863 = tpu.matmul %861, %862, %cst_365 {dimension_numbers = #tpu.dot_dimension_numbers<[1], [0], [0], [1], [0, 0, 1, 1], [], []>} : vector<16x8xf32>, vector<8x32xf32>, vector<16x32xf32> -> vector<16x32xf32>
    %c2768 = arith.constant 2768 : index
    %c0_366 = arith.constant 0 : index
    %864 = vector.load %arg3[%c2768, %c0_366] : memref<3872x128xf32, #tpu.memory_space<vmem>>, vector<32x8xf32>
    %cst_367 = arith.constant dense<0.000000e+00> : vector<16x8xf32>
    %865 = tpu.matmul %828, %864, %cst_367 {dimension_numbers = #tpu.dot_dimension_numbers<[1], [0], [0], [1], [0, 0, 1, 1], [], []>} : vector<16x32xf32>, vector<32x8xf32>, vector<16x8xf32> -> vector<16x8xf32>
    %c2872 = arith.constant 2872 : index
    %c0_368 = arith.constant 0 : index
    %866 = vector.load %arg3[%c2872, %c0_368] : memref<3872x128xf32, #tpu.memory_space<vmem>>, vector<1x8xf32>
    %867 = vector.broadcast %866 : vector<1x8xf32> to vector<16x8xf32>
    %868 = arith.addf %865, %867 : vector<16x8xf32>
    %869 = vector.shape_cast %868 : vector<16x8xf32> to vector<2x8x8xf32>
    %c2800 = arith.constant 2800 : index
    %c0_369 = arith.constant 0 : index
    %870 = vector.load %arg3[%c2800, %c0_369] : memref<3872x128xf32, #tpu.memory_space<vmem>>, vector<32x8xf32>
    %cst_370 = arith.constant dense<0.000000e+00> : vector<16x8xf32>
    %871 = tpu.matmul %828, %870, %cst_370 {dimension_numbers = #tpu.dot_dimension_numbers<[1], [0], [0], [1], [0, 0, 1, 1], [], []>} : vector<16x32xf32>, vector<32x8xf32>, vector<16x8xf32> -> vector<16x8xf32>
    %c2880 = arith.constant 2880 : index
    %c0_371 = arith.constant 0 : index
    %872 = vector.load %arg3[%c2880, %c0_371] : memref<3872x128xf32, #tpu.memory_space<vmem>>, vector<1x8xf32>
    %873 = vector.broadcast %872 : vector<1x8xf32> to vector<16x8xf32>
    %874 = arith.addf %871, %873 : vector<16x8xf32>
    %875 = vector.shape_cast %874 : vector<16x8xf32> to vector<2x8x8xf32>
    %c2832 = arith.constant 2832 : index
    %c0_372 = arith.constant 0 : index
    %876 = vector.load %arg3[%c2832, %c0_372] : memref<3872x128xf32, #tpu.memory_space<vmem>>, vector<32x8xf32>
    %cst_373 = arith.constant dense<0.000000e+00> : vector<16x8xf32>
    %877 = tpu.matmul %828, %876, %cst_373 {dimension_numbers = #tpu.dot_dimension_numbers<[1], [0], [0], [1], [0, 0, 1, 1], [], []>} : vector<16x32xf32>, vector<32x8xf32>, vector<16x8xf32> -> vector<16x8xf32>
    %c2888 = arith.constant 2888 : index
    %c0_374 = arith.constant 0 : index
    %878 = vector.load %arg3[%c2888, %c0_374] : memref<3872x128xf32, #tpu.memory_space<vmem>>, vector<1x8xf32>
    %879 = vector.broadcast %878 : vector<1x8xf32> to vector<16x8xf32>
    %880 = arith.addf %877, %879 : vector<16x8xf32>
    %881 = vector.shape_cast %880 : vector<16x8xf32> to vector<2x8x8xf32>
    "tpu.trace_start"() <{level = 10 : i32, message = "bqd,bkd->bqk"}> : () -> ()
    %cst_375 = arith.constant dense<0.000000e+00> : vector<2x8x8xf32>
    %882 = tpu.matmul %869, %875, %cst_375 {dimension_numbers = #tpu.dot_dimension_numbers<[2], [2], [1], [1], [0, 0, 0, 1, 1, 1], [0], [0]>} : vector<2x8x8xf32>, vector<2x8x8xf32>, vector<2x8x8xf32> -> vector<2x8x8xf32>
    "tpu.trace_stop"() : () -> ()
    %cst_376 = arith.constant 0.353553385 : f32
    %883 = vector.broadcast %cst_376 : f32 to vector<2x8x8xf32>
    %884 = arith.mulf %882, %883 : vector<2x8x8xf32>
    %cst_377 = arith.constant dense<0xFF800000> : vector<2x8xf32>
    %885 = vector.multi_reduction <maximumf>, %884, %cst_377 [2] : vector<2x8x8xf32> to vector<2x8xf32>
    %886 = vector.shape_cast %885 : vector<2x8xf32> to vector<2x8x1xf32>
    %887 = vector.broadcast %886 : vector<2x8x1xf32> to vector<2x8x8xf32>
    %888 = arith.subf %884, %887 : vector<2x8x8xf32>
    %889 = math.exp %888 : vector<2x8x8xf32>
    %cst_378 = arith.constant dense<0.000000e+00> : vector<2x8xf32>
    %890 = vector.multi_reduction <add>, %889, %cst_378 [2] : vector<2x8x8xf32> to vector<2x8xf32>
    %891 = vector.shape_cast %890 : vector<2x8xf32> to vector<2x8x1xf32>
    %892 = tpu.reciprocal %891 {approx = true} : vector<2x8x1xf32> -> vector<2x8x1xf32>
    %893 = vector.broadcast %892 : vector<2x8x1xf32> to vector<2x8x8xf32>
    %894 = arith.mulf %889, %893 : vector<2x8x8xf32>
    "tpu.trace_start"() <{level = 10 : i32, message = "bqk,bkd->bqd"}> : () -> ()
    %cst_379 = arith.constant dense<0.000000e+00> : vector<2x8x8xf32>
    %895 = tpu.matmul %894, %881, %cst_379 {dimension_numbers = #tpu.dot_dimension_numbers<[2], [1], [1], [2], [0, 0, 0, 1, 1, 2], [0], [0]>} : vector<2x8x8xf32>, vector<2x8x8xf32>, vector<2x8x8xf32> -> vector<2x8x8xf32>
    "tpu.trace_stop"() : () -> ()
    %896 = vector.shape_cast %895 : vector<2x8x8xf32> to vector<16x8xf32>
    %c2864 = arith.constant 2864 : index
    %c0_380 = arith.constant 0 : index
    %897 = vector.load %arg3[%c2864, %c0_380] : memref<3872x128xf32, #tpu.memory_space<vmem>>, vector<8x32xf32>
    %cst_381 = arith.constant dense<0.000000e+00> : vector<16x32xf32>
    %898 = tpu.matmul %896, %897, %cst_381 {dimension_numbers = #tpu.dot_dimension_numbers<[1], [0], [0], [1], [0, 0, 1, 1], [], []>} : vector<16x8xf32>, vector<8x32xf32>, vector<16x32xf32> -> vector<16x32xf32>
    %899 = arith.addf %863, %898 : vector<16x32xf32>
    %c2896 = arith.constant 2896 : index
    %c0_382 = arith.constant 0 : index
    %900 = vector.load %arg3[%c2896, %c0_382] : memref<3872x128xf32, #tpu.memory_space<vmem>>, vector<32x8xf32>
    %cst_383 = arith.constant dense<0.000000e+00> : vector<16x8xf32>
    %901 = tpu.matmul %828, %900, %cst_383 {dimension_numbers = #tpu.dot_dimension_numbers<[1], [0], [0], [1], [0, 0, 1, 1], [], []>} : vector<16x32xf32>, vector<32x8xf32>, vector<16x8xf32> -> vector<16x8xf32>
    %c3000 = arith.constant 3000 : index
    %c0_384 = arith.constant 0 : index
    %902 = vector.load %arg3[%c3000, %c0_384] : memref<3872x128xf32, #tpu.memory_space<vmem>>, vector<1x8xf32>
    %903 = vector.broadcast %902 : vector<1x8xf32> to vector<16x8xf32>
    %904 = arith.addf %901, %903 : vector<16x8xf32>
    %905 = vector.shape_cast %904 : vector<16x8xf32> to vector<2x8x8xf32>
    %c2928 = arith.constant 2928 : index
    %c0_385 = arith.constant 0 : index
    %906 = vector.load %arg3[%c2928, %c0_385] : memref<3872x128xf32, #tpu.memory_space<vmem>>, vector<32x8xf32>
    %cst_386 = arith.constant dense<0.000000e+00> : vector<16x8xf32>
    %907 = tpu.matmul %828, %906, %cst_386 {dimension_numbers = #tpu.dot_dimension_numbers<[1], [0], [0], [1], [0, 0, 1, 1], [], []>} : vector<16x32xf32>, vector<32x8xf32>, vector<16x8xf32> -> vector<16x8xf32>
    %c3008 = arith.constant 3008 : index
    %c0_387 = arith.constant 0 : index
    %908 = vector.load %arg3[%c3008, %c0_387] : memref<3872x128xf32, #tpu.memory_space<vmem>>, vector<1x8xf32>
    %909 = vector.broadcast %908 : vector<1x8xf32> to vector<16x8xf32>
    %910 = arith.addf %907, %909 : vector<16x8xf32>
    %911 = vector.shape_cast %910 : vector<16x8xf32> to vector<2x8x8xf32>
    %c2960 = arith.constant 2960 : index
    %c0_388 = arith.constant 0 : index
    %912 = vector.load %arg3[%c2960, %c0_388] : memref<3872x128xf32, #tpu.memory_space<vmem>>, vector<32x8xf32>
    %cst_389 = arith.constant dense<0.000000e+00> : vector<16x8xf32>
    %913 = tpu.matmul %828, %912, %cst_389 {dimension_numbers = #tpu.dot_dimension_numbers<[1], [0], [0], [1], [0, 0, 1, 1], [], []>} : vector<16x32xf32>, vector<32x8xf32>, vector<16x8xf32> -> vector<16x8xf32>
    %c3016 = arith.constant 3016 : index
    %c0_390 = arith.constant 0 : index
    %914 = vector.load %arg3[%c3016, %c0_390] : memref<3872x128xf32, #tpu.memory_space<vmem>>, vector<1x8xf32>
    %915 = vector.broadcast %914 : vector<1x8xf32> to vector<16x8xf32>
    %916 = arith.addf %913, %915 : vector<16x8xf32>
    %917 = vector.shape_cast %916 : vector<16x8xf32> to vector<2x8x8xf32>
    "tpu.trace_start"() <{level = 10 : i32, message = "bqd,bkd->bqk"}> : () -> ()
    %cst_391 = arith.constant dense<0.000000e+00> : vector<2x8x8xf32>
    %918 = tpu.matmul %905, %911, %cst_391 {dimension_numbers = #tpu.dot_dimension_numbers<[2], [2], [1], [1], [0, 0, 0, 1, 1, 1], [0], [0]>} : vector<2x8x8xf32>, vector<2x8x8xf32>, vector<2x8x8xf32> -> vector<2x8x8xf32>
    "tpu.trace_stop"() : () -> ()
    %cst_392 = arith.constant 0.353553385 : f32
    %919 = vector.broadcast %cst_392 : f32 to vector<2x8x8xf32>
    %920 = arith.mulf %918, %919 : vector<2x8x8xf32>
    %cst_393 = arith.constant dense<0xFF800000> : vector<2x8xf32>
    %921 = vector.multi_reduction <maximumf>, %920, %cst_393 [2] : vector<2x8x8xf32> to vector<2x8xf32>
    %922 = vector.shape_cast %921 : vector<2x8xf32> to vector<2x8x1xf32>
    %923 = vector.broadcast %922 : vector<2x8x1xf32> to vector<2x8x8xf32>
    %924 = arith.subf %920, %923 : vector<2x8x8xf32>
    %925 = math.exp %924 : vector<2x8x8xf32>
    %cst_394 = arith.constant dense<0.000000e+00> : vector<2x8xf32>
    %926 = vector.multi_reduction <add>, %925, %cst_394 [2] : vector<2x8x8xf32> to vector<2x8xf32>
    %927 = vector.shape_cast %926 : vector<2x8xf32> to vector<2x8x1xf32>
    %928 = tpu.reciprocal %927 {approx = true} : vector<2x8x1xf32> -> vector<2x8x1xf32>
    %929 = vector.broadcast %928 : vector<2x8x1xf32> to vector<2x8x8xf32>
    %930 = arith.mulf %925, %929 : vector<2x8x8xf32>
    "tpu.trace_start"() <{level = 10 : i32, message = "bqk,bkd->bqd"}> : () -> ()
    %cst_395 = arith.constant dense<0.000000e+00> : vector<2x8x8xf32>
    %931 = tpu.matmul %930, %917, %cst_395 {dimension_numbers = #tpu.dot_dimension_numbers<[2], [1], [1], [2], [0, 0, 0, 1, 1, 2], [0], [0]>} : vector<2x8x8xf32>, vector<2x8x8xf32>, vector<2x8x8xf32> -> vector<2x8x8xf32>
    "tpu.trace_stop"() : () -> ()
    %932 = vector.shape_cast %931 : vector<2x8x8xf32> to vector<16x8xf32>
    %c2992 = arith.constant 2992 : index
    %c0_396 = arith.constant 0 : index
    %933 = vector.load %arg3[%c2992, %c0_396] : memref<3872x128xf32, #tpu.memory_space<vmem>>, vector<8x32xf32>
    %cst_397 = arith.constant dense<0.000000e+00> : vector<16x32xf32>
    %934 = tpu.matmul %932, %933, %cst_397 {dimension_numbers = #tpu.dot_dimension_numbers<[1], [0], [0], [1], [0, 0, 1, 1], [], []>} : vector<16x8xf32>, vector<8x32xf32>, vector<16x32xf32> -> vector<16x32xf32>
    %935 = arith.addf %899, %934 : vector<16x32xf32>
    %c3024 = arith.constant 3024 : index
    %c0_398 = arith.constant 0 : index
    %936 = vector.load %arg3[%c3024, %c0_398] : memref<3872x128xf32, #tpu.memory_space<vmem>>, vector<32x8xf32>
    %cst_399 = arith.constant dense<0.000000e+00> : vector<16x8xf32>
    %937 = tpu.matmul %828, %936, %cst_399 {dimension_numbers = #tpu.dot_dimension_numbers<[1], [0], [0], [1], [0, 0, 1, 1], [], []>} : vector<16x32xf32>, vector<32x8xf32>, vector<16x8xf32> -> vector<16x8xf32>
    %c3128 = arith.constant 3128 : index
    %c0_400 = arith.constant 0 : index
    %938 = vector.load %arg3[%c3128, %c0_400] : memref<3872x128xf32, #tpu.memory_space<vmem>>, vector<1x8xf32>
    %939 = vector.broadcast %938 : vector<1x8xf32> to vector<16x8xf32>
    %940 = arith.addf %937, %939 : vector<16x8xf32>
    %941 = vector.shape_cast %940 : vector<16x8xf32> to vector<2x8x8xf32>
    %c3056 = arith.constant 3056 : index
    %c0_401 = arith.constant 0 : index
    %942 = vector.load %arg3[%c3056, %c0_401] : memref<3872x128xf32, #tpu.memory_space<vmem>>, vector<32x8xf32>
    %cst_402 = arith.constant dense<0.000000e+00> : vector<16x8xf32>
    %943 = tpu.matmul %828, %942, %cst_402 {dimension_numbers = #tpu.dot_dimension_numbers<[1], [0], [0], [1], [0, 0, 1, 1], [], []>} : vector<16x32xf32>, vector<32x8xf32>, vector<16x8xf32> -> vector<16x8xf32>
    %c3136 = arith.constant 3136 : index
    %c0_403 = arith.constant 0 : index
    %944 = vector.load %arg3[%c3136, %c0_403] : memref<3872x128xf32, #tpu.memory_space<vmem>>, vector<1x8xf32>
    %945 = vector.broadcast %944 : vector<1x8xf32> to vector<16x8xf32>
    %946 = arith.addf %943, %945 : vector<16x8xf32>
    %947 = vector.shape_cast %946 : vector<16x8xf32> to vector<2x8x8xf32>
    %c3088 = arith.constant 3088 : index
    %c0_404 = arith.constant 0 : index
    %948 = vector.load %arg3[%c3088, %c0_404] : memref<3872x128xf32, #tpu.memory_space<vmem>>, vector<32x8xf32>
    %cst_405 = arith.constant dense<0.000000e+00> : vector<16x8xf32>
    %949 = tpu.matmul %828, %948, %cst_405 {dimension_numbers = #tpu.dot_dimension_numbers<[1], [0], [0], [1], [0, 0, 1, 1], [], []>} : vector<16x32xf32>, vector<32x8xf32>, vector<16x8xf32> -> vector<16x8xf32>
    %c3144 = arith.constant 3144 : index
    %c0_406 = arith.constant 0 : index
    %950 = vector.load %arg3[%c3144, %c0_406] : memref<3872x128xf32, #tpu.memory_space<vmem>>, vector<1x8xf32>
    %951 = vector.broadcast %950 : vector<1x8xf32> to vector<16x8xf32>
    %952 = arith.addf %949, %951 : vector<16x8xf32>
    %953 = vector.shape_cast %952 : vector<16x8xf32> to vector<2x8x8xf32>
    "tpu.trace_start"() <{level = 10 : i32, message = "bqd,bkd->bqk"}> : () -> ()
    %cst_407 = arith.constant dense<0.000000e+00> : vector<2x8x8xf32>
    %954 = tpu.matmul %941, %947, %cst_407 {dimension_numbers = #tpu.dot_dimension_numbers<[2], [2], [1], [1], [0, 0, 0, 1, 1, 1], [0], [0]>} : vector<2x8x8xf32>, vector<2x8x8xf32>, vector<2x8x8xf32> -> vector<2x8x8xf32>
    "tpu.trace_stop"() : () -> ()
    %cst_408 = arith.constant 0.353553385 : f32
    %955 = vector.broadcast %cst_408 : f32 to vector<2x8x8xf32>
    %956 = arith.mulf %954, %955 : vector<2x8x8xf32>
    %cst_409 = arith.constant dense<0xFF800000> : vector<2x8xf32>
    %957 = vector.multi_reduction <maximumf>, %956, %cst_409 [2] : vector<2x8x8xf32> to vector<2x8xf32>
    %958 = vector.shape_cast %957 : vector<2x8xf32> to vector<2x8x1xf32>
    %959 = vector.broadcast %958 : vector<2x8x1xf32> to vector<2x8x8xf32>
    %960 = arith.subf %956, %959 : vector<2x8x8xf32>
    %961 = math.exp %960 : vector<2x8x8xf32>
    %cst_410 = arith.constant dense<0.000000e+00> : vector<2x8xf32>
    %962 = vector.multi_reduction <add>, %961, %cst_410 [2] : vector<2x8x8xf32> to vector<2x8xf32>
    %963 = vector.shape_cast %962 : vector<2x8xf32> to vector<2x8x1xf32>
    %964 = tpu.reciprocal %963 {approx = true} : vector<2x8x1xf32> -> vector<2x8x1xf32>
    %965 = vector.broadcast %964 : vector<2x8x1xf32> to vector<2x8x8xf32>
    %966 = arith.mulf %961, %965 : vector<2x8x8xf32>
    "tpu.trace_start"() <{level = 10 : i32, message = "bqk,bkd->bqd"}> : () -> ()
    %cst_411 = arith.constant dense<0.000000e+00> : vector<2x8x8xf32>
    %967 = tpu.matmul %966, %953, %cst_411 {dimension_numbers = #tpu.dot_dimension_numbers<[2], [1], [1], [2], [0, 0, 0, 1, 1, 2], [0], [0]>} : vector<2x8x8xf32>, vector<2x8x8xf32>, vector<2x8x8xf32> -> vector<2x8x8xf32>
    "tpu.trace_stop"() : () -> ()
    %968 = vector.shape_cast %967 : vector<2x8x8xf32> to vector<16x8xf32>
    %c3120 = arith.constant 3120 : index
    %c0_412 = arith.constant 0 : index
    %969 = vector.load %arg3[%c3120, %c0_412] : memref<3872x128xf32, #tpu.memory_space<vmem>>, vector<8x32xf32>
    %cst_413 = arith.constant dense<0.000000e+00> : vector<16x32xf32>
    %970 = tpu.matmul %968, %969, %cst_413 {dimension_numbers = #tpu.dot_dimension_numbers<[1], [0], [0], [1], [0, 0, 1, 1], [], []>} : vector<16x8xf32>, vector<8x32xf32>, vector<16x32xf32> -> vector<16x32xf32>
    %971 = arith.addf %935, %970 : vector<16x32xf32>
    %c3152 = arith.constant 3152 : index
    %c0_414 = arith.constant 0 : index
    %972 = vector.load %arg3[%c3152, %c0_414] : memref<3872x128xf32, #tpu.memory_space<vmem>>, vector<1x32xf32>
    %973 = vector.broadcast %972 : vector<1x32xf32> to vector<16x32xf32>
    %974 = arith.addf %971, %973 : vector<16x32xf32>
    %975 = arith.addf %828, %974 : vector<16x32xf32>
    %c3792 = arith.constant 3792 : index
    %c0_415 = arith.constant 0 : index
    %976 = vector.load %arg3[%c3792, %c0_415] : memref<3872x128xf32, #tpu.memory_space<vmem>>, vector<1x32xf32>
    %c3800 = arith.constant 3800 : index
    %c0_416 = arith.constant 0 : index
    %977 = vector.load %arg3[%c3800, %c0_416] : memref<3872x128xf32, #tpu.memory_space<vmem>>, vector<1x32xf32>
    %cst_417 = arith.constant dense<0.000000e+00> : vector<16xf32>
    %978 = vector.multi_reduction <add>, %975, %cst_417 [1] : vector<16x32xf32> to vector<16xf32>
    %979 = vector.shape_cast %978 : vector<16xf32> to vector<16x1xf32>
    %cst_418 = arith.constant 3.200000e+01 : f32
    %980 = vector.broadcast %cst_418 : f32 to vector<16x1xf32>
    %981 = arith.divf %979, %980 : vector<16x1xf32>
    %982 = vector.broadcast %981 : vector<16x1xf32> to vector<16x32xf32>
    %983 = arith.subf %975, %982 : vector<16x32xf32>
    %984 = arith.mulf %983, %983 : vector<16x32xf32>
    %cst_419 = arith.constant dense<0.000000e+00> : vector<16xf32>
    %985 = vector.multi_reduction <add>, %984, %cst_419 [1] : vector<16x32xf32> to vector<16xf32>
    %986 = vector.shape_cast %985 : vector<16xf32> to vector<16x1xf32>
    %cst_420 = arith.constant 3.200000e+01 : f32
    %987 = vector.broadcast %cst_420 : f32 to vector<16x1xf32>
    %988 = arith.divf %986, %987 : vector<16x1xf32>
    %cst_421 = arith.constant 9.99999974E-6 : f32
    %989 = vector.broadcast %cst_421 : f32 to vector<16x1xf32>
    %990 = arith.addf %988, %989 : vector<16x1xf32>
    %991 = math.rsqrt %990 : vector<16x1xf32>
    %992 = vector.broadcast %991 : vector<16x1xf32> to vector<16x32xf32>
    %993 = arith.mulf %983, %992 : vector<16x32xf32>
    %994 = vector.broadcast %976 : vector<1x32xf32> to vector<16x32xf32>
    %995 = arith.mulf %993, %994 : vector<16x32xf32>
    %996 = vector.broadcast %977 : vector<1x32xf32> to vector<16x32xf32>
    %997 = arith.addf %995, %996 : vector<16x32xf32>
    %c3160 = arith.constant 3160 : index
    %c0_422 = arith.constant 0 : index
    %998 = vector.load %arg3[%c3160, %c0_422] : memref<3872x128xf32, #tpu.memory_space<vmem>>, vector<32x8xf32>
    %cst_423 = arith.constant dense<0.000000e+00> : vector<16x8xf32>
    %999 = tpu.matmul %997, %998, %cst_423 {dimension_numbers = #tpu.dot_dimension_numbers<[1], [0], [0], [1], [0, 0, 1, 1], [], []>} : vector<16x32xf32>, vector<32x8xf32>, vector<16x8xf32> -> vector<16x8xf32>
    %c3264 = arith.constant 3264 : index
    %c0_424 = arith.constant 0 : index
    %1000 = vector.load %arg3[%c3264, %c0_424] : memref<3872x128xf32, #tpu.memory_space<vmem>>, vector<1x8xf32>
    %1001 = vector.broadcast %1000 : vector<1x8xf32> to vector<16x8xf32>
    %1002 = arith.addf %999, %1001 : vector<16x8xf32>
    %1003 = vector.shape_cast %1002 : vector<16x8xf32> to vector<2x8x8xf32>
    %c3192 = arith.constant 3192 : index
    %c0_425 = arith.constant 0 : index
    %1004 = vector.load %arg3[%c3192, %c0_425] : memref<3872x128xf32, #tpu.memory_space<vmem>>, vector<32x8xf32>
    %cst_426 = arith.constant dense<0.000000e+00> : vector<32x8xf32>
    %1005 = tpu.matmul %455, %1004, %cst_426 {dimension_numbers = #tpu.dot_dimension_numbers<[1], [0], [0], [1], [0, 0, 1, 1], [], []>} : vector<32x32xf32>, vector<32x8xf32>, vector<32x8xf32> -> vector<32x8xf32>
    %c3272 = arith.constant 3272 : index
    %c0_427 = arith.constant 0 : index
    %1006 = vector.load %arg3[%c3272, %c0_427] : memref<3872x128xf32, #tpu.memory_space<vmem>>, vector<1x8xf32>
    %1007 = vector.broadcast %1006 : vector<1x8xf32> to vector<32x8xf32>
    %1008 = arith.addf %1005, %1007 : vector<32x8xf32>
    %1009 = vector.shape_cast %1008 : vector<32x8xf32> to vector<2x16x8xf32>
    %c3224 = arith.constant 3224 : index
    %c0_428 = arith.constant 0 : index
    %1010 = vector.load %arg3[%c3224, %c0_428] : memref<3872x128xf32, #tpu.memory_space<vmem>>, vector<32x8xf32>
    %cst_429 = arith.constant dense<0.000000e+00> : vector<32x8xf32>
    %1011 = tpu.matmul %455, %1010, %cst_429 {dimension_numbers = #tpu.dot_dimension_numbers<[1], [0], [0], [1], [0, 0, 1, 1], [], []>} : vector<32x32xf32>, vector<32x8xf32>, vector<32x8xf32> -> vector<32x8xf32>
    %c3280 = arith.constant 3280 : index
    %c0_430 = arith.constant 0 : index
    %1012 = vector.load %arg3[%c3280, %c0_430] : memref<3872x128xf32, #tpu.memory_space<vmem>>, vector<1x8xf32>
    %1013 = vector.broadcast %1012 : vector<1x8xf32> to vector<32x8xf32>
    %1014 = arith.addf %1011, %1013 : vector<32x8xf32>
    %1015 = vector.shape_cast %1014 : vector<32x8xf32> to vector<2x16x8xf32>
    "tpu.trace_start"() <{level = 10 : i32, message = "bqd,bkd->bqk"}> : () -> ()
    %cst_431 = arith.constant dense<0.000000e+00> : vector<2x8x16xf32>
    %1016 = tpu.matmul %1003, %1009, %cst_431 {dimension_numbers = #tpu.dot_dimension_numbers<[2], [2], [1], [1], [0, 0, 0, 1, 1, 1], [0], [0]>} : vector<2x8x8xf32>, vector<2x16x8xf32>, vector<2x8x16xf32> -> vector<2x8x16xf32>
    "tpu.trace_stop"() : () -> ()
    %cst_432 = arith.constant 0.353553385 : f32
    %1017 = vector.broadcast %cst_432 : f32 to vector<2x8x16xf32>
    %1018 = arith.mulf %1016, %1017 : vector<2x8x16xf32>
    %cst_433 = arith.constant dense<0xFF800000> : vector<2x8xf32>
    %1019 = vector.multi_reduction <maximumf>, %1018, %cst_433 [2] : vector<2x8x16xf32> to vector<2x8xf32>
    %1020 = vector.shape_cast %1019 : vector<2x8xf32> to vector<2x8x1xf32>
    %1021 = vector.broadcast %1020 : vector<2x8x1xf32> to vector<2x8x16xf32>
    %1022 = arith.subf %1018, %1021 : vector<2x8x16xf32>
    %1023 = math.exp %1022 : vector<2x8x16xf32>
    %cst_434 = arith.constant dense<0.000000e+00> : vector<2x8xf32>
    %1024 = vector.multi_reduction <add>, %1023, %cst_434 [2] : vector<2x8x16xf32> to vector<2x8xf32>
    %1025 = vector.shape_cast %1024 : vector<2x8xf32> to vector<2x8x1xf32>
    %1026 = tpu.reciprocal %1025 {approx = true} : vector<2x8x1xf32> -> vector<2x8x1xf32>
    %1027 = vector.broadcast %1026 : vector<2x8x1xf32> to vector<2x8x16xf32>
    %1028 = arith.mulf %1023, %1027 : vector<2x8x16xf32>
    "tpu.trace_start"() <{level = 10 : i32, message = "bqk,bkd->bqd"}> : () -> ()
    %cst_435 = arith.constant dense<0.000000e+00> : vector<2x8x8xf32>
    %1029 = tpu.matmul %1028, %1015, %cst_435 {dimension_numbers = #tpu.dot_dimension_numbers<[2], [1], [1], [2], [0, 0, 0, 1, 1, 2], [0], [0]>} : vector<2x8x16xf32>, vector<2x16x8xf32>, vector<2x8x8xf32> -> vector<2x8x8xf32>
    "tpu.trace_stop"() : () -> ()
    %1030 = vector.shape_cast %1029 : vector<2x8x8xf32> to vector<16x8xf32>
    %c3256 = arith.constant 3256 : index
    %c0_436 = arith.constant 0 : index
    %1031 = vector.load %arg3[%c3256, %c0_436] : memref<3872x128xf32, #tpu.memory_space<vmem>>, vector<8x32xf32>
    %cst_437 = arith.constant dense<0.000000e+00> : vector<16x32xf32>
    %1032 = tpu.matmul %1030, %1031, %cst_437 {dimension_numbers = #tpu.dot_dimension_numbers<[1], [0], [0], [1], [0, 0, 1, 1], [], []>} : vector<16x8xf32>, vector<8x32xf32>, vector<16x32xf32> -> vector<16x32xf32>
    %c3288 = arith.constant 3288 : index
    %c0_438 = arith.constant 0 : index
    %1033 = vector.load %arg3[%c3288, %c0_438] : memref<3872x128xf32, #tpu.memory_space<vmem>>, vector<32x8xf32>
    %cst_439 = arith.constant dense<0.000000e+00> : vector<16x8xf32>
    %1034 = tpu.matmul %997, %1033, %cst_439 {dimension_numbers = #tpu.dot_dimension_numbers<[1], [0], [0], [1], [0, 0, 1, 1], [], []>} : vector<16x32xf32>, vector<32x8xf32>, vector<16x8xf32> -> vector<16x8xf32>
    %c3392 = arith.constant 3392 : index
    %c0_440 = arith.constant 0 : index
    %1035 = vector.load %arg3[%c3392, %c0_440] : memref<3872x128xf32, #tpu.memory_space<vmem>>, vector<1x8xf32>
    %1036 = vector.broadcast %1035 : vector<1x8xf32> to vector<16x8xf32>
    %1037 = arith.addf %1034, %1036 : vector<16x8xf32>
    %1038 = vector.shape_cast %1037 : vector<16x8xf32> to vector<2x8x8xf32>
    %c3320 = arith.constant 3320 : index
    %c0_441 = arith.constant 0 : index
    %1039 = vector.load %arg3[%c3320, %c0_441] : memref<3872x128xf32, #tpu.memory_space<vmem>>, vector<32x8xf32>
    %cst_442 = arith.constant dense<0.000000e+00> : vector<32x8xf32>
    %1040 = tpu.matmul %455, %1039, %cst_442 {dimension_numbers = #tpu.dot_dimension_numbers<[1], [0], [0], [1], [0, 0, 1, 1], [], []>} : vector<32x32xf32>, vector<32x8xf32>, vector<32x8xf32> -> vector<32x8xf32>
    %c3400 = arith.constant 3400 : index
    %c0_443 = arith.constant 0 : index
    %1041 = vector.load %arg3[%c3400, %c0_443] : memref<3872x128xf32, #tpu.memory_space<vmem>>, vector<1x8xf32>
    %1042 = vector.broadcast %1041 : vector<1x8xf32> to vector<32x8xf32>
    %1043 = arith.addf %1040, %1042 : vector<32x8xf32>
    %1044 = vector.shape_cast %1043 : vector<32x8xf32> to vector<2x16x8xf32>
    %c3352 = arith.constant 3352 : index
    %c0_444 = arith.constant 0 : index
    %1045 = vector.load %arg3[%c3352, %c0_444] : memref<3872x128xf32, #tpu.memory_space<vmem>>, vector<32x8xf32>
    %cst_445 = arith.constant dense<0.000000e+00> : vector<32x8xf32>
    %1046 = tpu.matmul %455, %1045, %cst_445 {dimension_numbers = #tpu.dot_dimension_numbers<[1], [0], [0], [1], [0, 0, 1, 1], [], []>} : vector<32x32xf32>, vector<32x8xf32>, vector<32x8xf32> -> vector<32x8xf32>
    %c3408 = arith.constant 3408 : index
    %c0_446 = arith.constant 0 : index
    %1047 = vector.load %arg3[%c3408, %c0_446] : memref<3872x128xf32, #tpu.memory_space<vmem>>, vector<1x8xf32>
    %1048 = vector.broadcast %1047 : vector<1x8xf32> to vector<32x8xf32>
    %1049 = arith.addf %1046, %1048 : vector<32x8xf32>
    %1050 = vector.shape_cast %1049 : vector<32x8xf32> to vector<2x16x8xf32>
    "tpu.trace_start"() <{level = 10 : i32, message = "bqd,bkd->bqk"}> : () -> ()
    %cst_447 = arith.constant dense<0.000000e+00> : vector<2x8x16xf32>
    %1051 = tpu.matmul %1038, %1044, %cst_447 {dimension_numbers = #tpu.dot_dimension_numbers<[2], [2], [1], [1], [0, 0, 0, 1, 1, 1], [0], [0]>} : vector<2x8x8xf32>, vector<2x16x8xf32>, vector<2x8x16xf32> -> vector<2x8x16xf32>
    "tpu.trace_stop"() : () -> ()
    %cst_448 = arith.constant 0.353553385 : f32
    %1052 = vector.broadcast %cst_448 : f32 to vector<2x8x16xf32>
    %1053 = arith.mulf %1051, %1052 : vector<2x8x16xf32>
    %cst_449 = arith.constant dense<0xFF800000> : vector<2x8xf32>
    %1054 = vector.multi_reduction <maximumf>, %1053, %cst_449 [2] : vector<2x8x16xf32> to vector<2x8xf32>
    %1055 = vector.shape_cast %1054 : vector<2x8xf32> to vector<2x8x1xf32>
    %1056 = vector.broadcast %1055 : vector<2x8x1xf32> to vector<2x8x16xf32>
    %1057 = arith.subf %1053, %1056 : vector<2x8x16xf32>
    %1058 = math.exp %1057 : vector<2x8x16xf32>
    %cst_450 = arith.constant dense<0.000000e+00> : vector<2x8xf32>
    %1059 = vector.multi_reduction <add>, %1058, %cst_450 [2] : vector<2x8x16xf32> to vector<2x8xf32>
    %1060 = vector.shape_cast %1059 : vector<2x8xf32> to vector<2x8x1xf32>
    %1061 = tpu.reciprocal %1060 {approx = true} : vector<2x8x1xf32> -> vector<2x8x1xf32>
    %1062 = vector.broadcast %1061 : vector<2x8x1xf32> to vector<2x8x16xf32>
    %1063 = arith.mulf %1058, %1062 : vector<2x8x16xf32>
    "tpu.trace_start"() <{level = 10 : i32, message = "bqk,bkd->bqd"}> : () -> ()
    %cst_451 = arith.constant dense<0.000000e+00> : vector<2x8x8xf32>
    %1064 = tpu.matmul %1063, %1050, %cst_451 {dimension_numbers = #tpu.dot_dimension_numbers<[2], [1], [1], [2], [0, 0, 0, 1, 1, 2], [0], [0]>} : vector<2x8x16xf32>, vector<2x16x8xf32>, vector<2x8x8xf32> -> vector<2x8x8xf32>
    "tpu.trace_stop"() : () -> ()
    %1065 = vector.shape_cast %1064 : vector<2x8x8xf32> to vector<16x8xf32>
    %c3384 = arith.constant 3384 : index
    %c0_452 = arith.constant 0 : index
    %1066 = vector.load %arg3[%c3384, %c0_452] : memref<3872x128xf32, #tpu.memory_space<vmem>>, vector<8x32xf32>
    %cst_453 = arith.constant dense<0.000000e+00> : vector<16x32xf32>
    %1067 = tpu.matmul %1065, %1066, %cst_453 {dimension_numbers = #tpu.dot_dimension_numbers<[1], [0], [0], [1], [0, 0, 1, 1], [], []>} : vector<16x8xf32>, vector<8x32xf32>, vector<16x32xf32> -> vector<16x32xf32>
    %1068 = arith.addf %1032, %1067 : vector<16x32xf32>
    %c3416 = arith.constant 3416 : index
    %c0_454 = arith.constant 0 : index
    %1069 = vector.load %arg3[%c3416, %c0_454] : memref<3872x128xf32, #tpu.memory_space<vmem>>, vector<32x8xf32>
    %cst_455 = arith.constant dense<0.000000e+00> : vector<16x8xf32>
    %1070 = tpu.matmul %997, %1069, %cst_455 {dimension_numbers = #tpu.dot_dimension_numbers<[1], [0], [0], [1], [0, 0, 1, 1], [], []>} : vector<16x32xf32>, vector<32x8xf32>, vector<16x8xf32> -> vector<16x8xf32>
    %c3520 = arith.constant 3520 : index
    %c0_456 = arith.constant 0 : index
    %1071 = vector.load %arg3[%c3520, %c0_456] : memref<3872x128xf32, #tpu.memory_space<vmem>>, vector<1x8xf32>
    %1072 = vector.broadcast %1071 : vector<1x8xf32> to vector<16x8xf32>
    %1073 = arith.addf %1070, %1072 : vector<16x8xf32>
    %1074 = vector.shape_cast %1073 : vector<16x8xf32> to vector<2x8x8xf32>
    %c3448 = arith.constant 3448 : index
    %c0_457 = arith.constant 0 : index
    %1075 = vector.load %arg3[%c3448, %c0_457] : memref<3872x128xf32, #tpu.memory_space<vmem>>, vector<32x8xf32>
    %cst_458 = arith.constant dense<0.000000e+00> : vector<32x8xf32>
    %1076 = tpu.matmul %455, %1075, %cst_458 {dimension_numbers = #tpu.dot_dimension_numbers<[1], [0], [0], [1], [0, 0, 1, 1], [], []>} : vector<32x32xf32>, vector<32x8xf32>, vector<32x8xf32> -> vector<32x8xf32>
    %c3528 = arith.constant 3528 : index
    %c0_459 = arith.constant 0 : index
    %1077 = vector.load %arg3[%c3528, %c0_459] : memref<3872x128xf32, #tpu.memory_space<vmem>>, vector<1x8xf32>
    %1078 = vector.broadcast %1077 : vector<1x8xf32> to vector<32x8xf32>
    %1079 = arith.addf %1076, %1078 : vector<32x8xf32>
    %1080 = vector.shape_cast %1079 : vector<32x8xf32> to vector<2x16x8xf32>
    %c3480 = arith.constant 3480 : index
    %c0_460 = arith.constant 0 : index
    %1081 = vector.load %arg3[%c3480, %c0_460] : memref<3872x128xf32, #tpu.memory_space<vmem>>, vector<32x8xf32>
    %cst_461 = arith.constant dense<0.000000e+00> : vector<32x8xf32>
    %1082 = tpu.matmul %455, %1081, %cst_461 {dimension_numbers = #tpu.dot_dimension_numbers<[1], [0], [0], [1], [0, 0, 1, 1], [], []>} : vector<32x32xf32>, vector<32x8xf32>, vector<32x8xf32> -> vector<32x8xf32>
    %c3536 = arith.constant 3536 : index
    %c0_462 = arith.constant 0 : index
    %1083 = vector.load %arg3[%c3536, %c0_462] : memref<3872x128xf32, #tpu.memory_space<vmem>>, vector<1x8xf32>
    %1084 = vector.broadcast %1083 : vector<1x8xf32> to vector<32x8xf32>
    %1085 = arith.addf %1082, %1084 : vector<32x8xf32>
    %1086 = vector.shape_cast %1085 : vector<32x8xf32> to vector<2x16x8xf32>
    "tpu.trace_start"() <{level = 10 : i32, message = "bqd,bkd->bqk"}> : () -> ()
    %cst_463 = arith.constant dense<0.000000e+00> : vector<2x8x16xf32>
    %1087 = tpu.matmul %1074, %1080, %cst_463 {dimension_numbers = #tpu.dot_dimension_numbers<[2], [2], [1], [1], [0, 0, 0, 1, 1, 1], [0], [0]>} : vector<2x8x8xf32>, vector<2x16x8xf32>, vector<2x8x16xf32> -> vector<2x8x16xf32>
    "tpu.trace_stop"() : () -> ()
    %cst_464 = arith.constant 0.353553385 : f32
    %1088 = vector.broadcast %cst_464 : f32 to vector<2x8x16xf32>
    %1089 = arith.mulf %1087, %1088 : vector<2x8x16xf32>
    %cst_465 = arith.constant dense<0xFF800000> : vector<2x8xf32>
    %1090 = vector.multi_reduction <maximumf>, %1089, %cst_465 [2] : vector<2x8x16xf32> to vector<2x8xf32>
    %1091 = vector.shape_cast %1090 : vector<2x8xf32> to vector<2x8x1xf32>
    %1092 = vector.broadcast %1091 : vector<2x8x1xf32> to vector<2x8x16xf32>
    %1093 = arith.subf %1089, %1092 : vector<2x8x16xf32>
    %1094 = math.exp %1093 : vector<2x8x16xf32>
    %cst_466 = arith.constant dense<0.000000e+00> : vector<2x8xf32>
    %1095 = vector.multi_reduction <add>, %1094, %cst_466 [2] : vector<2x8x16xf32> to vector<2x8xf32>
    %1096 = vector.shape_cast %1095 : vector<2x8xf32> to vector<2x8x1xf32>
    %1097 = tpu.reciprocal %1096 {approx = true} : vector<2x8x1xf32> -> vector<2x8x1xf32>
    %1098 = vector.broadcast %1097 : vector<2x8x1xf32> to vector<2x8x16xf32>
    %1099 = arith.mulf %1094, %1098 : vector<2x8x16xf32>
    "tpu.trace_start"() <{level = 10 : i32, message = "bqk,bkd->bqd"}> : () -> ()
    %cst_467 = arith.constant dense<0.000000e+00> : vector<2x8x8xf32>
    %1100 = tpu.matmul %1099, %1086, %cst_467 {dimension_numbers = #tpu.dot_dimension_numbers<[2], [1], [1], [2], [0, 0, 0, 1, 1, 2], [0], [0]>} : vector<2x8x16xf32>, vector<2x16x8xf32>, vector<2x8x8xf32> -> vector<2x8x8xf32>
    "tpu.trace_stop"() : () -> ()
    %1101 = vector.shape_cast %1100 : vector<2x8x8xf32> to vector<16x8xf32>
    %c3512 = arith.constant 3512 : index
    %c0_468 = arith.constant 0 : index
    %1102 = vector.load %arg3[%c3512, %c0_468] : memref<3872x128xf32, #tpu.memory_space<vmem>>, vector<8x32xf32>
    %cst_469 = arith.constant dense<0.000000e+00> : vector<16x32xf32>
    %1103 = tpu.matmul %1101, %1102, %cst_469 {dimension_numbers = #tpu.dot_dimension_numbers<[1], [0], [0], [1], [0, 0, 1, 1], [], []>} : vector<16x8xf32>, vector<8x32xf32>, vector<16x32xf32> -> vector<16x32xf32>
    %1104 = arith.addf %1068, %1103 : vector<16x32xf32>
    %c3544 = arith.constant 3544 : index
    %c0_470 = arith.constant 0 : index
    %1105 = vector.load %arg3[%c3544, %c0_470] : memref<3872x128xf32, #tpu.memory_space<vmem>>, vector<32x8xf32>
    %cst_471 = arith.constant dense<0.000000e+00> : vector<16x8xf32>
    %1106 = tpu.matmul %997, %1105, %cst_471 {dimension_numbers = #tpu.dot_dimension_numbers<[1], [0], [0], [1], [0, 0, 1, 1], [], []>} : vector<16x32xf32>, vector<32x8xf32>, vector<16x8xf32> -> vector<16x8xf32>
    %c3648 = arith.constant 3648 : index
    %c0_472 = arith.constant 0 : index
    %1107 = vector.load %arg3[%c3648, %c0_472] : memref<3872x128xf32, #tpu.memory_space<vmem>>, vector<1x8xf32>
    %1108 = vector.broadcast %1107 : vector<1x8xf32> to vector<16x8xf32>
    %1109 = arith.addf %1106, %1108 : vector<16x8xf32>
    %1110 = vector.shape_cast %1109 : vector<16x8xf32> to vector<2x8x8xf32>
    %c3576 = arith.constant 3576 : index
    %c0_473 = arith.constant 0 : index
    %1111 = vector.load %arg3[%c3576, %c0_473] : memref<3872x128xf32, #tpu.memory_space<vmem>>, vector<32x8xf32>
    %cst_474 = arith.constant dense<0.000000e+00> : vector<32x8xf32>
    %1112 = tpu.matmul %455, %1111, %cst_474 {dimension_numbers = #tpu.dot_dimension_numbers<[1], [0], [0], [1], [0, 0, 1, 1], [], []>} : vector<32x32xf32>, vector<32x8xf32>, vector<32x8xf32> -> vector<32x8xf32>
    %c3656 = arith.constant 3656 : index
    %c0_475 = arith.constant 0 : index
    %1113 = vector.load %arg3[%c3656, %c0_475] : memref<3872x128xf32, #tpu.memory_space<vmem>>, vector<1x8xf32>
    %1114 = vector.broadcast %1113 : vector<1x8xf32> to vector<32x8xf32>
    %1115 = arith.addf %1112, %1114 : vector<32x8xf32>
    %1116 = vector.shape_cast %1115 : vector<32x8xf32> to vector<2x16x8xf32>
    %c3608 = arith.constant 3608 : index
    %c0_476 = arith.constant 0 : index
    %1117 = vector.load %arg3[%c3608, %c0_476] : memref<3872x128xf32, #tpu.memory_space<vmem>>, vector<32x8xf32>
    %cst_477 = arith.constant dense<0.000000e+00> : vector<32x8xf32>
    %1118 = tpu.matmul %455, %1117, %cst_477 {dimension_numbers = #tpu.dot_dimension_numbers<[1], [0], [0], [1], [0, 0, 1, 1], [], []>} : vector<32x32xf32>, vector<32x8xf32>, vector<32x8xf32> -> vector<32x8xf32>
    %c3664 = arith.constant 3664 : index
    %c0_478 = arith.constant 0 : index
    %1119 = vector.load %arg3[%c3664, %c0_478] : memref<3872x128xf32, #tpu.memory_space<vmem>>, vector<1x8xf32>
    %1120 = vector.broadcast %1119 : vector<1x8xf32> to vector<32x8xf32>
    %1121 = arith.addf %1118, %1120 : vector<32x8xf32>
    %1122 = vector.shape_cast %1121 : vector<32x8xf32> to vector<2x16x8xf32>
    "tpu.trace_start"() <{level = 10 : i32, message = "bqd,bkd->bqk"}> : () -> ()
    %cst_479 = arith.constant dense<0.000000e+00> : vector<2x8x16xf32>
    %1123 = tpu.matmul %1110, %1116, %cst_479 {dimension_numbers = #tpu.dot_dimension_numbers<[2], [2], [1], [1], [0, 0, 0, 1, 1, 1], [0], [0]>} : vector<2x8x8xf32>, vector<2x16x8xf32>, vector<2x8x16xf32> -> vector<2x8x16xf32>
    "tpu.trace_stop"() : () -> ()
    %cst_480 = arith.constant 0.353553385 : f32
    %1124 = vector.broadcast %cst_480 : f32 to vector<2x8x16xf32>
    %1125 = arith.mulf %1123, %1124 : vector<2x8x16xf32>
    %cst_481 = arith.constant dense<0xFF800000> : vector<2x8xf32>
    %1126 = vector.multi_reduction <maximumf>, %1125, %cst_481 [2] : vector<2x8x16xf32> to vector<2x8xf32>
    %1127 = vector.shape_cast %1126 : vector<2x8xf32> to vector<2x8x1xf32>
    %1128 = vector.broadcast %1127 : vector<2x8x1xf32> to vector<2x8x16xf32>
    %1129 = arith.subf %1125, %1128 : vector<2x8x16xf32>
    %1130 = math.exp %1129 : vector<2x8x16xf32>
    %cst_482 = arith.constant dense<0.000000e+00> : vector<2x8xf32>
    %1131 = vector.multi_reduction <add>, %1130, %cst_482 [2] : vector<2x8x16xf32> to vector<2x8xf32>
    %1132 = vector.shape_cast %1131 : vector<2x8xf32> to vector<2x8x1xf32>
    %1133 = tpu.reciprocal %1132 {approx = true} : vector<2x8x1xf32> -> vector<2x8x1xf32>
    %1134 = vector.broadcast %1133 : vector<2x8x1xf32> to vector<2x8x16xf32>
    %1135 = arith.mulf %1130, %1134 : vector<2x8x16xf32>
    "tpu.trace_start"() <{level = 10 : i32, message = "bqk,bkd->bqd"}> : () -> ()
    %cst_483 = arith.constant dense<0.000000e+00> : vector<2x8x8xf32>
    %1136 = tpu.matmul %1135, %1122, %cst_483 {dimension_numbers = #tpu.dot_dimension_numbers<[2], [1], [1], [2], [0, 0, 0, 1, 1, 2], [0], [0]>} : vector<2x8x16xf32>, vector<2x16x8xf32>, vector<2x8x8xf32> -> vector<2x8x8xf32>
    "tpu.trace_stop"() : () -> ()
    %1137 = vector.shape_cast %1136 : vector<2x8x8xf32> to vector<16x8xf32>
    %c3640 = arith.constant 3640 : index
    %c0_484 = arith.constant 0 : index
    %1138 = vector.load %arg3[%c3640, %c0_484] : memref<3872x128xf32, #tpu.memory_space<vmem>>, vector<8x32xf32>
    %cst_485 = arith.constant dense<0.000000e+00> : vector<16x32xf32>
    %1139 = tpu.matmul %1137, %1138, %cst_485 {dimension_numbers = #tpu.dot_dimension_numbers<[1], [0], [0], [1], [0, 0, 1, 1], [], []>} : vector<16x8xf32>, vector<8x32xf32>, vector<16x32xf32> -> vector<16x32xf32>
    %1140 = arith.addf %1104, %1139 : vector<16x32xf32>
    %c3672 = arith.constant 3672 : index
    %c0_486 = arith.constant 0 : index
    %1141 = vector.load %arg3[%c3672, %c0_486] : memref<3872x128xf32, #tpu.memory_space<vmem>>, vector<1x32xf32>
    %1142 = vector.broadcast %1141 : vector<1x32xf32> to vector<16x32xf32>
    %1143 = arith.addf %1140, %1142 : vector<16x32xf32>
    %1144 = arith.addf %997, %1143 : vector<16x32xf32>
    %c3808 = arith.constant 3808 : index
    %c0_487 = arith.constant 0 : index
    %1145 = vector.load %arg3[%c3808, %c0_487] : memref<3872x128xf32, #tpu.memory_space<vmem>>, vector<1x32xf32>
    %c3816 = arith.constant 3816 : index
    %c0_488 = arith.constant 0 : index
    %1146 = vector.load %arg3[%c3816, %c0_488] : memref<3872x128xf32, #tpu.memory_space<vmem>>, vector<1x32xf32>
    %cst_489 = arith.constant dense<0.000000e+00> : vector<16xf32>
    %1147 = vector.multi_reduction <add>, %1144, %cst_489 [1] : vector<16x32xf32> to vector<16xf32>
    %1148 = vector.shape_cast %1147 : vector<16xf32> to vector<16x1xf32>
    %cst_490 = arith.constant 3.200000e+01 : f32
    %1149 = vector.broadcast %cst_490 : f32 to vector<16x1xf32>
    %1150 = arith.divf %1148, %1149 : vector<16x1xf32>
    %1151 = vector.broadcast %1150 : vector<16x1xf32> to vector<16x32xf32>
    %1152 = arith.subf %1144, %1151 : vector<16x32xf32>
    %1153 = arith.mulf %1152, %1152 : vector<16x32xf32>
    %cst_491 = arith.constant dense<0.000000e+00> : vector<16xf32>
    %1154 = vector.multi_reduction <add>, %1153, %cst_491 [1] : vector<16x32xf32> to vector<16xf32>
    %1155 = vector.shape_cast %1154 : vector<16xf32> to vector<16x1xf32>
    %cst_492 = arith.constant 3.200000e+01 : f32
    %1156 = vector.broadcast %cst_492 : f32 to vector<16x1xf32>
    %1157 = arith.divf %1155, %1156 : vector<16x1xf32>
    %cst_493 = arith.constant 9.99999974E-6 : f32
    %1158 = vector.broadcast %cst_493 : f32 to vector<16x1xf32>
    %1159 = arith.addf %1157, %1158 : vector<16x1xf32>
    %1160 = math.rsqrt %1159 : vector<16x1xf32>
    %1161 = vector.broadcast %1160 : vector<16x1xf32> to vector<16x32xf32>
    %1162 = arith.mulf %1152, %1161 : vector<16x32xf32>
    %1163 = vector.broadcast %1145 : vector<1x32xf32> to vector<16x32xf32>
    %1164 = arith.mulf %1162, %1163 : vector<16x32xf32>
    %1165 = vector.broadcast %1146 : vector<1x32xf32> to vector<16x32xf32>
    %1166 = arith.addf %1164, %1165 : vector<16x32xf32>
    %c3680 = arith.constant 3680 : index
    %c0_494 = arith.constant 0 : index
    %1167 = vector.load %arg3[%c3680, %c0_494] : memref<3872x128xf32, #tpu.memory_space<vmem>>, vector<32x64xf32>
    %cst_495 = arith.constant dense<0.000000e+00> : vector<16x64xf32>
    %1168 = tpu.matmul %1166, %1167, %cst_495 {dimension_numbers = #tpu.dot_dimension_numbers<[1], [0], [0], [1], [0, 0, 1, 1], [], []>} : vector<16x32xf32>, vector<32x64xf32>, vector<16x64xf32> -> vector<16x64xf32>
    %c3712 = arith.constant 3712 : index
    %c0_496 = arith.constant 0 : index
    %1169 = vector.load %arg3[%c3712, %c0_496] : memref<3872x128xf32, #tpu.memory_space<vmem>>, vector<1x64xf32>
    %1170 = vector.broadcast %1169 : vector<1x64xf32> to vector<16x64xf32>
    %1171 = arith.addf %1168, %1170 : vector<16x64xf32>
    %cst_497 = arith.constant 0.000000e+00 : f32
    %1172 = vector.broadcast %cst_497 : f32 to vector<16x64xf32>
    %1173 = arith.maximumf %1171, %1172 : vector<16x64xf32>
    %c3720 = arith.constant 3720 : index
    %c0_498 = arith.constant 0 : index
    %1174 = vector.load %arg3[%c3720, %c0_498] : memref<3872x128xf32, #tpu.memory_space<vmem>>, vector<64x32xf32>
    %cst_499 = arith.constant dense<0.000000e+00> : vector<16x32xf32>
    %1175 = tpu.matmul %1173, %1174, %cst_499 {dimension_numbers = #tpu.dot_dimension_numbers<[1], [0], [0], [1], [0, 0, 1, 1], [], []>} : vector<16x64xf32>, vector<64x32xf32>, vector<16x32xf32> -> vector<16x32xf32>
    %c3784 = arith.constant 3784 : index
    %c0_500 = arith.constant 0 : index
    %1176 = vector.load %arg3[%c3784, %c0_500] : memref<3872x128xf32, #tpu.memory_space<vmem>>, vector<1x32xf32>
    %1177 = vector.broadcast %1176 : vector<1x32xf32> to vector<16x32xf32>
    %1178 = arith.addf %1175, %1177 : vector<16x32xf32>
    %1179 = arith.addf %1166, %1178 : vector<16x32xf32>
    %c3824 = arith.constant 3824 : index
    %c0_501 = arith.constant 0 : index
    %1180 = vector.load %arg3[%c3824, %c0_501] : memref<3872x128xf32, #tpu.memory_space<vmem>>, vector<1x32xf32>
    %c3832 = arith.constant 3832 : index
    %c0_502 = arith.constant 0 : index
    %1181 = vector.load %arg3[%c3832, %c0_502] : memref<3872x128xf32, #tpu.memory_space<vmem>>, vector<1x32xf32>
    %cst_503 = arith.constant dense<0.000000e+00> : vector<16xf32>
    %1182 = vector.multi_reduction <add>, %1179, %cst_503 [1] : vector<16x32xf32> to vector<16xf32>
    %1183 = vector.shape_cast %1182 : vector<16xf32> to vector<16x1xf32>
    %cst_504 = arith.constant 3.200000e+01 : f32
    %1184 = vector.broadcast %cst_504 : f32 to vector<16x1xf32>
    %1185 = arith.divf %1183, %1184 : vector<16x1xf32>
    %1186 = vector.broadcast %1185 : vector<16x1xf32> to vector<16x32xf32>
    %1187 = arith.subf %1179, %1186 : vector<16x32xf32>
    %1188 = arith.mulf %1187, %1187 : vector<16x32xf32>
    %cst_505 = arith.constant dense<0.000000e+00> : vector<16xf32>
    %1189 = vector.multi_reduction <add>, %1188, %cst_505 [1] : vector<16x32xf32> to vector<16xf32>
    %1190 = vector.shape_cast %1189 : vector<16xf32> to vector<16x1xf32>
    %cst_506 = arith.constant 3.200000e+01 : f32
    %1191 = vector.broadcast %cst_506 : f32 to vector<16x1xf32>
    %1192 = arith.divf %1190, %1191 : vector<16x1xf32>
    %cst_507 = arith.constant 9.99999974E-6 : f32
    %1193 = vector.broadcast %cst_507 : f32 to vector<16x1xf32>
    %1194 = arith.addf %1192, %1193 : vector<16x1xf32>
    %1195 = math.rsqrt %1194 : vector<16x1xf32>
    %1196 = vector.broadcast %1195 : vector<16x1xf32> to vector<16x32xf32>
    %1197 = arith.mulf %1187, %1196 : vector<16x32xf32>
    %1198 = vector.broadcast %1180 : vector<1x32xf32> to vector<16x32xf32>
    %1199 = arith.mulf %1197, %1198 : vector<16x32xf32>
    %1200 = vector.broadcast %1181 : vector<1x32xf32> to vector<16x32xf32>
    %1201 = arith.addf %1199, %1200 : vector<16x32xf32>
    %c3840 = arith.constant 3840 : index
    %c0_508 = arith.constant 0 : index
    %1202 = vector.load %arg3[%c3840, %c0_508] : memref<3872x128xf32, #tpu.memory_space<vmem>>, vector<1x32xf32>
    %c3848 = arith.constant 3848 : index
    %c0_509 = arith.constant 0 : index
    %1203 = vector.load %arg3[%c3848, %c0_509] : memref<3872x128xf32, #tpu.memory_space<vmem>>, vector<1x32xf32>
    %cst_510 = arith.constant dense<0.000000e+00> : vector<16xf32>
    %1204 = vector.multi_reduction <add>, %1201, %cst_510 [1] : vector<16x32xf32> to vector<16xf32>
    %1205 = vector.shape_cast %1204 : vector<16xf32> to vector<16x1xf32>
    %cst_511 = arith.constant 3.200000e+01 : f32
    %1206 = vector.broadcast %cst_511 : f32 to vector<16x1xf32>
    %1207 = arith.divf %1205, %1206 : vector<16x1xf32>
    %1208 = vector.broadcast %1207 : vector<16x1xf32> to vector<16x32xf32>
    %1209 = arith.subf %1201, %1208 : vector<16x32xf32>
    %1210 = arith.mulf %1209, %1209 : vector<16x32xf32>
    %cst_512 = arith.constant dense<0.000000e+00> : vector<16xf32>
    %1211 = vector.multi_reduction <add>, %1210, %cst_512 [1] : vector<16x32xf32> to vector<16xf32>
    %1212 = vector.shape_cast %1211 : vector<16xf32> to vector<16x1xf32>
    %cst_513 = arith.constant 3.200000e+01 : f32
    %1213 = vector.broadcast %cst_513 : f32 to vector<16x1xf32>
    %1214 = arith.divf %1212, %1213 : vector<16x1xf32>
    %cst_514 = arith.constant 9.99999974E-6 : f32
    %1215 = vector.broadcast %cst_514 : f32 to vector<16x1xf32>
    %1216 = arith.addf %1214, %1215 : vector<16x1xf32>
    %1217 = math.rsqrt %1216 : vector<16x1xf32>
    %1218 = vector.broadcast %1217 : vector<16x1xf32> to vector<16x32xf32>
    %1219 = arith.mulf %1209, %1218 : vector<16x32xf32>
    %1220 = vector.broadcast %1202 : vector<1x32xf32> to vector<16x32xf32>
    %1221 = arith.mulf %1219, %1220 : vector<16x32xf32>
    %1222 = vector.broadcast %1203 : vector<1x32xf32> to vector<16x32xf32>
    %1223 = arith.addf %1221, %1222 : vector<16x32xf32>
    %1224 = vector.shape_cast %1223 : vector<16x32xf32> to vector<2x8x32xf32>
    %c3856 = arith.constant 3856 : index
    %c0_515 = arith.constant 0 : index
    %1225 = vector.load %arg3[%c3856, %c0_515] : memref<3872x128xf32, #tpu.memory_space<vmem>>, vector<1x32xf32>
    %1226 = vector.shape_cast %1225 : vector<1x32xf32> to vector<1x1x32xf32>
    %1227 = vector.broadcast %1226 : vector<1x1x32xf32> to vector<2x8x32xf32>
    %1228 = arith.mulf %1224, %1227 : vector<2x8x32xf32>
    %cst_516 = arith.constant dense<0.000000e+00> : vector<2x8xf32>
    %1229 = vector.multi_reduction <add>, %1228, %cst_516 [2] : vector<2x8x32xf32> to vector<2x8xf32>
    %c3864 = arith.constant 3864 : index
    %c0_517 = arith.constant 0 : index
    %1230 = vector.load %arg3[%c3864, %c0_517] : memref<3872x128xf32, #tpu.memory_space<vmem>>, vector<1x1xf32>
    %1231 = vector.broadcast %1230 : vector<1x1xf32> to vector<2x8xf32>
    %1232 = arith.addf %1229, %1231 : vector<2x8xf32>
    %c0_518 = arith.constant 0 : index
    %c0_519 = arith.constant 0 : index
    %1233 = vector.load %arg4[%c0_518, %c0_519] : memref<2x8xf32, #tpu.memory_space<vmem>>, vector<2x8xf32>
    tpu.vector_store %arg4[%c0_518, %c0_519], %1232 {strides = array<i32>} : memref<2x8xf32, #tpu.memory_space<vmem>>, vector<2x8xf32>,
    return
  }
  func.func @transform_0(%arg0: i32) -> (i32, i32, i32) {
    %c0_i32 = arith.constant 0 : i32
    %c0_i32_0 = arith.constant 0 : i32
    %c0_i32_1 = arith.constant 0 : i32
    %c0_i32_2 = arith.constant 0 : i32
    return %c0_i32, %c0_i32_0, %c0_i32_1 : i32, i32, i32
  }
  func.func @transform_1(%arg0: i32) -> (i32, i32, i32) {
    %c0_i32 = arith.constant 0 : i32
    %c0_i32_0 = arith.constant 0 : i32
    %c0_i32_1 = arith.constant 0 : i32
    %c0_i32_2 = arith.constant 0 : i32
    return %c0_i32, %c0_i32_0, %c0_i32_1 : i32, i32, i32
  }
  func.func @transform_2(%arg0: i32) -> (i32, i32) {
    %c0_i32 = arith.constant 0 : i32
    %c0_i32_0 = arith.constant 0 : i32
    %c0_i32_1 = arith.constant 0 : i32
    return %c0_i32, %c0_i32_0 : i32, i32
  }
  func.func @transform_3(%arg0: i32) -> (i32, i32) {
    %c0_i32 = arith.constant 0 : i32
    %c0_i32_0 = arith.constant 0 : i32
    %c0_i32_1 = arith.constant 0 : i32
    return %c0_i32, %c0_i32_0 : i32, i32
  }
}

</mosaic_0001>

<bundles_post_ra>
// kernel: transformer_forward.1
= control target key start
LH: loop header
LB: loop body
LE: loop exit
PB: predicated region body
PF: predicated region fallthrough
CT: control target
= control target key end

     0   :  { %8 = vsyncpa [#allocation3], 0  ;;  %s25044_s0 = inlined_call_operand.vmem [shape: f32[2,16,12], index: 0, kind: input, shape index: {}]   ;;  %s25045_s1 = inlined_call_operand.vmem [shape: f32[2,8,4], index: 1, kind: input, shape index: {}]   ;;  %s25046_s2 = inlined_call_operand.hbm [shape: f32[3872,128], index: 2, kind: input, shape index: {}]   ;;  %s25047_s3 = inlined_call_operand.hbm [shape: f32[2,8], index: 3, kind: output, shape index: {}]  }
   0x1   :  { %9 = vsyncpa [#allocation4], 0  ;;  %s23526_s12 = smov [#allocation2]   ;;  %s23478_s16 = scalar_lea.hbm %s25046_s2, 61952 }
   0x2   :  { %s19_s13 = sshll.u32 %s23526_s12, 4  ;;  %p23479_p0 = scmp.ne.s32.totalorder %s25046_s2, %s23478_s16  ;;  %s20_s13 = int_to_ptr.vmem [resolvable:$true] %s19_s13 }
   0x3   :  { %p23482_p1 = scmp.lt.u32.totalorder %s23478_s16, %s25046_s2 }
   0x5   :  { %p23484_p2 = pnand %p23482_p1, %p23479_p0 }
   0x7   :  { %23487 = shalt.err (!%p23484_p2)
}
   0x8   :  { %s23488_s21 = scalar_lea.vmem %s20_s13, 61952  ;;  %p23493_p4 = scmp.lt.s32.totalorder %s20_s13, %s20_s13 }
   0x9   :  { %p23489_p3 = scmp.ne.s32.totalorder %s20_s13, %s23488_s21  ;;  %p23494_p5 = scmp.lt.s32.totalorder %s23488_s21, %s23488_s21 }
   0xb   :  { %p23495_p6 = por %p23494_p5, %p23493_p4 }
   0xd   :  { %p23496_p7 = pnand %p23495_p6, %p23489_p3 }
   0xf   :  { %23499 = shalt.err (!%p23496_p7)
}
  0x10   :  { %s23527_s22 = smov 128   ;;  %s23528_s23 = smov 8  }
  0x11   :  { %25 = dma.hbm_to_vmem [thread:$0]  %s25046_s2, 61952, %s20_s13, [#allocation3], %s23527_s22, %s23527_s22, %s23528_s23  }
  0x12   :  { %23522 = dma.done.wait [#allocation3], 61952  }
  0x13   :  { %23523 = vsyncadd [#allocation3], 4294905344  ;;  %vm53_vm0 = vcmask 1043456   ;;  %vm40_vm1 = vcmask 97280   ;;  %vm23529_vm2 = vmmov 1   ;;  %v33_v0 = vld [vmem:[#allocation2 + $0x38] sm:$0xff] }
  0x14   :  { %vm22147_vm3 = vmpackc.low %vm53_vm0, %vm23529_vm2  ;;  %v34_v1 = vld [vmem:[#allocation2 + $0x40] sm:$0xf]  ;;  %v150_v4 = vld [vmem:[#allocation2 + $0x50] sm:$0xf]  ;;  %vm156_vm4 = vcmask 31744   ;;  %vm253_vm5 = vcmask 261120  }
  0x15   :  { %v29_v2 = vld [vmem:[%s25044_s0] sm:$0xff]  ;;  %v22146_v3 = vpack.c.bf16 %v34_v1, %v33_v0  ;;  %20345 = vmatprep.subr.msk.mxu1 %vm53_vm0, %v150_v4  ;;  %v245_v7 = vld [vmem:[#allocation2 + $0x68] sm:$0xff]  ;;  %v31_v13 = vld [vmem:[%s25044_s0 + $0x10] sm:$0xff]  ;;  %vm539_vm6 = vcmask 64512   ;;  %vm718_vm8 = vcmask 130048   ;;  %vm3530_vm9 = vcmask 523264  }
  0x16   :  { %20339 = vmatprep.mubr.msk.f32.mxu0 %vm40_vm1, %v29_v2  ;;  %v148_v5 = vld [vmem:[%s25045_s1] sm:$0xff]  ;;  %v352_v9 = vld [vmem:[#allocation2 + $0x88] sm:$0xff]  ;;  %20346 = vmatpush3.msk.msra.mxu1 %vm53_vm0, %v150_v4  ;;  %v32_v14 = vld [vmem:[%s25044_s0 + $0x18] sm:$0xff]  ;;  %vm23531_vm10 = vmmov 0   ;;  %vm18705_vm11 = vcmask 1041409   ;;  %vm18708_vm12 = vcmask 58368  }
  0x17   :  { %v244_v6 = vld [vmem:[#allocation2 + $0x60] sm:$0xff]  ;;  %22148 = vmatprep.subr.msk.bf16.mxu0 %vm22147_vm3, %v22146_v3  ;;  %v30_v10 = vld [vmem:[%s25044_s0 + $0x8] sm:$0xff]  ;;  %20347 = vmatprep.mubr.msk.f32.mxu1 %vm156_vm4, %v148_v5  ;;  %v246_v16 = vld [vmem:[#allocation2 + $0x70] sm:$0xff] }
  0x18   :  { %v351_v8 = vld [vmem:[#allocation2 + $0x80] sm:$0xff]  ;;  %22151 = vmatpush3.bf16.msk.msra.mxu0 %vm22147_vm3, %v22146_v3  ;;  %v22152_v11 = vpack.c.bf16 %v245_v7, %v244_v6  ;;  %v149_v15 = vld [vmem:[%s25045_s1 + $0x8] sm:$0xff]  ;;  %v247_v17 = vld [vmem:[#allocation2 + $0x78] sm:$0xff]  ;;  %s23533_s1 = smov [#allocation5]  }
  0x19   :  { %v22160_v12 = vpack.c.bf16 %v352_v9, %v351_v8  ;;  %20348 = vmatmul.mubr.msk.f32.vlgmr.msra.gmra.mrb[0].mxu1 %vm156_vm4, %v149_v15  ;;  %v22156_v18 = vpack.c.bf16 %v247_v17, %v246_v16  ;;  %v353_v19 = vld [vmem:[#allocation2 + $0x90] sm:$0xff]  ;;  %v354_v20 = vld [vmem:[#allocation2 + $0x98] sm:$0xff]  ;;  %v445_v22 = vld [vmem:[#allocation2 + $0xa0] sm:$0xff]  ;;  %s18716_s10 = sshll.u32 %s23533_s1, 4  ;;  %s18717_s10 = int_to_ptr.vmem [resolvable:$true] %s18716_s10 }
  0x1a   :  { %22153 = vmatprep.subr.bf16.mxu1 %v22152_v11  ;;  %v22164_v21 = vpack.c.bf16 %v354_v20, %v353_v19  ;;  %v446_v23 = vld [vmem:[#allocation2 + $0xa8] sm:$0xff]  ;;  %v142_v29 = vld [vmem:[#allocation2] sm:$0xff]  ;;  %v447_v32 = vld [vmem:[#allocation2 + $0xb0] sm:$0xff]  ;;  %s23500_s11 = scalar_lea.vmem %s18717_s10, 32  ;;  %p23505_p9 = scmp.lt.s32.totalorder %s18717_s10, %s18717_s10 }
  0x1b   :  { %22161 = vmatprep.subr.bf16.mxu0 %v22160_v12  ;;  %20340 = vmatmul.mubr.msk.f32.vlgmr.msra.gmra.mrb[0].mxu0 %vm40_vm1, %v30_v10  ;;  %v22168_v24 = vpack.c.bf16 %v446_v23, %v445_v22  ;;  %v18725_v25 = vld [vmem:[#allocation2 + $0x48] ss:$0 sm:$0xff]  ;;  %v448_v33 = vld [vmem:[#allocation2 + $0xb8] sm:$0xff]  ;;  %v18740_v45 = vld [vmem:[#allocation2 + $0xd0] ss:$0 sm:$0xff]  ;;  %p23501_p8 = scmp.ne.s32.totalorder %s18717_s10, %s23500_s11  ;;  %p23506_p10 = scmp.lt.s32.totalorder %s23500_s11, %s23500_s11 }
  0x1c   :  { %20342 = vmatprep.mubr.msk.f32.mxu0 %vm40_vm1, %v31_v13  ;;  %22163 = vmatpush3.bf16.msra.mxu0 %v22160_v12  ;;  %v143_v30 = vld [vmem:[#allocation2 + $0x8] sm:$0xff]  ;;  %v22172_v39 = vpack.c.bf16 %v448_v33, %v447_v32  ;;  %vm23631_vm7 = vmpackc.low %vm539_vm6, %vm539_vm6  ;;  %v926_v61 = vld [vmem:[#allocation2 + $0xe0] sm:$0xff] }
  0x1d   :  { %22155 = vmatpush3.bf16.msra.mxu1 %v22152_v11  ;;  %22165 = vmatprep.subr.bf16.mxu0 %v22164_v21  ;;  %v18735_v46 = vld [vmem:[#allocation2 + $0xc8] ss:$0 sm:$0xff]  ;;  %v18745_v1 = vld [vmem:[#allocation2 + $0xd8] ss:$0 sm:$0xff]  ;;  %v928_v13 = vld [vmem:[#allocation2 + $0xf0] sm:$0xff]  ;;  %p23507_p11 = por %p23506_p10, %p23505_p9 }
  0x1e   :  { %22157 = vmatprep.subr.bf16.mxu1 %v22156_v18  ;;  %v927_v62 = vld [vmem:[#allocation2 + $0xe8] sm:$0xff]  ;;  %v1114_v19 = vld [vmem:[#allocation2 + $0x120] sm:$0xff]  ;;  %v1116_v22 = vld [vmem:[#allocation2 + $0x130] sm:$0xff] }
  0x1f   :  { %20343 = vmatmul.mubr.msk.f32.gmra.mrb[2].mxu0 %vm40_vm1, %v32_v14  ;;  %v22196_v4 = vpack.c.bf16 %v927_v62, %v926_v61  ;;  %v929_v14 = vld [vmem:[#allocation2 + $0xf8] sm:$0xff]  ;;  %v1115_v20 = vld [vmem:[#allocation2 + $0x128] sm:$0xff]  ;;  %p23508_p12 = pnand %p23507_p11, %p23501_p8 }
  0x20   :  { %22167 = vmatpush3.bf16.msra.mxu0 %v22164_v21  ;;  %v22212_v21 = vpack.c.bf16 %v1115_v20, %v1114_v19  ;;  %v1117_v23 = vld [vmem:[#allocation2 + $0x138] sm:$0xff] }
  0x21   :  { %22159 = vmatpush3.bf16.msra.mxu1 %v22156_v18  ;;  %v22200_v18 = vpack.c.bf16 %v929_v14, %v928_v13 }
  0x22   :  { %22169 = vmatprep.subr.bf16.mxu1 %v22168_v24 }
  0xec   :  { %v23625_v43 = vpop.f32.mrb[0].mxu1 }
  0xed   :  { %v23627_v44 = vpop.f32.mrb[1].mxu1 }
  0xee   :  { %v20341_v26 = vpop.f32.mrb[0].mxu0 }
  0xef   :  { %v129_v27 = vadd.f32 %v20341_v26, %v18725_v25  ;;  %v123_v28 = vpop.f32.mrb[1].mxu0 }
  0xf0   :  { %v124_v31 = vadd.f32 %v18725_v25, %v123_v28 }
  0xf1   :  { %v23595_v36 = vadd.f32 %v143_v30, %v129_v27 }
  0xf2   :  { %v23593_v34 = vadd.f32 %v142_v29, %v124_v31  ;;  %v20344_v35 = vpop.f32.mrb[2].mxu0 }
  0xf3   :  { %v139_v37 = vadd.f32 %v20344_v35, %v18725_v25  ;;  %v133_v38 = vpop.f32.mrb[3].mxu0 }
  0xf4   :  { %v134_v40 = vadd.f32 %v18725_v25, %v133_v38  ;;  %20358 = vmatprep.mubr.msk.f32.mxu1 %vm253_vm5, %v23593_v34  ;;  %20372 = vmatprep.mubr.msk.f32.mxu0 %vm253_vm5, %v23593_v34  ;;  %v18762_v38 = vld [vmem:[#allocation2 + $0x148] ss:$0 sm:$0xff] }
  0xf5   :  { %20359 = vmatmul.mubr.msk.f32.vlgmr.msra.gmra.mrb[2].mxu1 %vm253_vm5, %v23595_v36  ;;  %20373 = vmatmul.mubr.msk.f32.vlgmr.msra.gmra.mrb[4].mxu0 %vm253_vm5, %v23595_v36  ;;  %v23607_v42 = vadd.f32 %v143_v30, %v139_v37 }
  0xf6   :  { %v23605_v41 = vadd.f32 %v142_v29, %v134_v40  ;;  %22171 = vmatpush3.bf16.msra.mxu1 %v22168_v24  ;;  %v22216_v24 = vpack.c.bf16 %v1117_v23, %v1116_v22 }
  0xf7   :  { %22173 = vmatprep.subr.bf16.mxu1 %v22172_v39 }
  0xf8   :  { %20361 = vmatprep.mubr.msk.f32.mxu1 %vm253_vm5, %v23605_v41  ;;  %20375 = vmatprep.mubr.msk.f32.mxu0 %vm253_vm5, %v23605_v41 }
  0xf9   :  { %20362 = vmatmul.mubr.msk.f32.gmra.mrb[4].mxu1 %vm253_vm5, %v23607_v42  ;;  %20376 = vmatmul.mubr.msk.f32.gmra.mrb[6].mxu0 %vm253_vm5, %v23607_v42 }
  0xfa   :  { %22175 = vmatpush3.bf16.msra.mxu1 %v22172_v39  ;;  %20386 = vmatprep.mubr.msk.f32.mxu1 %vm253_vm5, %v23593_v34 }
  0xfd   :  { %20387 = vmatmul.mubr.msk.f32.vlgmr.msra.gmra.mrb[6].mxu1 %vm253_vm5, %v23595_v36 }
  0xfe   :  { %20389 = vmatprep.mubr.msk.f32.mxu1 %vm253_vm5, %v23605_v41 }
 0x101   :  { %20390 = vmatmul.mubr.msk.f32.gmra.mrb[8].mxu1 %vm253_vm5, %v23607_v42 }
 0x1c8   :  { %v20360_v47 = vpop.f32.mrb[2].mxu1  ;;  %v20374_v48 = vpop.f32.mrb[4].mxu0 }
 0x1c9   :  { %v432_v49 = vadd.f32 %v20374_v48, %v18740_v45  ;;  %v332_v50 = vpop.f32.mrb[3].mxu1  ;;  %v426_v51 = vpop.f32.mrb[5].mxu0  ;;  %v338_v8 = vadd.f32 %v20360_v47, %v18735_v46 }
 0x1ca   :  { %v333_v52 = vadd.f32 %v18735_v46, %v332_v50  ;;  %v427_v53 = vadd.f32 %v18740_v45, %v426_v51 }
 0x1cc   :  { %v22176_v55 = vpack.c.bf16 %v432_v49, %v427_v53  ;;  %v20363_v56 = vpop.f32.mrb[4].mxu1  ;;  %v20377_v57 = vpop.f32.mrb[6].mxu0  ;;  %20396 = vmatprep.mubr.msk.f32.mxu0 %vm539_vm6, %v333_v52  ;;  %v18772_v52 = vld [vmem:[#allocation2 + $0x158] ss:$0 sm:$0xff] }
 0x1cd   :  { %v442_v58 = vadd.f32 %v20377_v57, %v18740_v45  ;;  %v342_v59 = vpop.f32.mrb[5].mxu1  ;;  %v436_v60 = vpop.f32.mrb[7].mxu0  ;;  %v348_v16 = vadd.f32 %v20363_v56, %v18735_v46 }
 0x1ce   :  { %v343_v63 = vadd.f32 %v18735_v46, %v342_v59  ;;  %v437_v0 = vadd.f32 %v18740_v45, %v436_v60  ;;  %22178 = vmatprep.subr.msk.bf16.mxu0 %vm23631_vm7, %v22176_v55 }
 0x1cf   :  { %22181 = vmatpush3.bf16.xpose.msk.msra.mxu0 %vm23631_vm7, %v22176_v55 }
 0x1d0   :  { %v22182_v2 = vpack.c.bf16 %v442_v58, %v437_v0  ;;  %v20388_v3 = vpop.f32.mrb[6].mxu1  ;;  %20403 = vmatprep.mubr.msk.f32.mxu1 %vm539_vm6, %v343_v63 }
 0x1d1   :  { %v526_v5 = vadd.f32 %v20388_v3, %v18745_v1  ;;  %v520_v6 = vpop.f32.mrb[7].mxu1 }
 0x1d2   :  { %v521_v7 = vadd.f32 %v18745_v1, %v520_v6  ;;  %22184 = vmatprep.subr.msk.bf16.mxu1 %vm23631_vm7, %v22182_v2 }
 0x1d3   :  { %22187 = vmatpush3.bf16.xpose.msk.msra.mxu1 %vm23631_vm7, %v22182_v2 }
 0x1d4   :  { %v22188_v9 = vpack.c.bf16 %v526_v5, %v521_v7  ;;  %v20391_v10 = vpop.f32.mrb[8].mxu1  ;;  %22197 = vmatprep.subr.bf16.mxu1 %v22196_v4 }
 0x1d5   :  { %v536_v11 = vadd.f32 %v20391_v10, %v18745_v1  ;;  %v530_v12 = vpop.f32.mrb[9].mxu1 }
 0x1d6   :  { %v531_v15 = vadd.f32 %v18745_v1, %v530_v12  ;;  %20397 = vmatmul.mubr.msk.f32.vlgmr.msra.gmra.mrb[8].mxu0 %vm539_vm6, %v338_v8  ;;  %22189 = vmatprep.subr.bf16.mxu0 %v22188_v9 }
 0x1d7   :  { %22191 = vmatpush3.bf16.msra.mxu0 %v22188_v9 }
 0x1d8   :  { %v23646_v17 = vpack.c.bf16 %v536_v11, %v531_v15 }
 0x1da   :  { %20404 = vmatmul.mubr.msk.f32.vlgmr.msra.gmra.mrb[10].mxu1 %vm539_vm6, %v348_v16  ;;  %22193 = vmatprep.subr.bf16.mxu0 %v23646_v17 }
 0x1db   :  { %22199 = vmatpush3.bf16.msra.mxu1 %v22196_v4  ;;  %20428 = vmatprep.mubr.msk.f32.mxu1 %vm253_vm5, %v23593_v34 }
 0x1dc   :  { %22201 = vmatprep.subr.bf16.mxu1 %v22200_v18 }
 0x1df   :  { %22203 = vmatpush3.bf16.msra.mxu1 %v22200_v18 }
 0x1e0   :  { %22213 = vmatprep.subr.bf16.mxu1 %v22212_v21 }
 0x1e2   :  { %20429 = vmatmul.mubr.msk.f32.vlgmr.msra.gmra.mrb[12].mxu1 %vm253_vm5, %v23595_v36 }
 0x1e3   :  { %20431 = vmatprep.mubr.msk.f32.mxu1 %vm253_vm5, %v23605_v41  ;;  %22215 = vmatpush3.bf16.msra.mxu1 %v22212_v21 }
 0x1e4   :  { %22217 = vmatprep.subr.bf16.mxu1 %v22216_v24 }
 0x1e6   :  { %20432 = vmatmul.mubr.msk.f32.gmra.mrb[14].mxu1 %vm253_vm5, %v23607_v42 }
 0x1e7   :  { %22219 = vmatpush3.bf16.msra.mxu1 %v22216_v24  ;;  %20456 = vmatprep.mubr.msk.f32.mxu1 %vm253_vm5, %v23593_v34 }
 0x1ea   :  { %20457 = vmatmul.mubr.msk.f32.vlgmr.msra.gmra.mrb[16].mxu1 %vm253_vm5, %v23595_v36 }
 0x1eb   :  { %20459 = vmatprep.mubr.msk.f32.mxu1 %vm253_vm5, %v23605_v41 }
 0x1ee   :  { %20460 = vmatmul.mubr.msk.f32.gmra.mrb[18].mxu1 %vm253_vm5, %v23607_v42 }
 0x2a9   :  { %v20398_v25 = vpop.f32.mrb[8].mxu0 }
 0x2aa   :  { %v618_v26 = vpop.f32.mrb[9].mxu0  ;;  %v715_v28 = vmul.f32 0.35355338, %v20398_v25 }
 0x2ab   :  { %v714_v27 = vmul.f32 0.35355338, %v618_v26 }
 0x2ac   :  { %v722_v37 = vsel %vm718_vm8, %v715_v28, -inf }
 0x2ad   :  { %v20405_v29 = vpop.f32.mrb[10].mxu1  ;;  %v719_v30 = vsel %vm718_vm8, %v714_v27, -inf }
 0x2ae   :  { %v705_v31 = vpop.f32.mrb[11].mxu1  ;;  %720 = vmax.xlane.f32.xlu0 %v719_v30  ;;  %v717_v33 = vmul.f32 0.35355338, %v20405_v29 }
 0x2af   :  { %v716_v32 = vmul.f32 0.35355338, %v705_v31 }
 0x2b0   :  { %v728_v40 = vsel %vm718_vm8, %v717_v33, -inf }
 0x2b1   :  { %v725_v35 = vsel %vm718_vm8, %v716_v32, -inf }
 0x2b2   :  { %726 = vmax.xlane.f32.xlu1 %v725_v35  ;;  %723 = vmax.xlane.f32.xlu0 %v722_v37  ;;  %v1022_v35 = vld [vmem:[#allocation2 + $0x110] sm:$0xff]  ;;  %v1023_v37 = vld [vmem:[#allocation2 + $0x118] sm:$0xff] }
 0x2b5   :  { %v20430_v39 = vpop.f32.mrb[12].mxu1 }
 0x2b6   :  { %v23670_v45 = vadd.f32 %v20430_v39, %v18762_v38  ;;  %v1001_v46 = vpop.f32.mrb[13].mxu1  ;;  %729 = vmax.xlane.f32.xlu1 %v728_v40  ;;  %v22208_v40 = vpack.c.bf16 %v1023_v37, %v1022_v35 }
 0x2b7   :  { %v23672_v47 = vadd.f32 %v18762_v38, %v1001_v46 }
 0x2b9   :  { %v20433_v48 = vpop.f32.mrb[14].mxu1 }
 0x2ba   :  { %v23674_v49 = vadd.f32 %v20433_v48, %v18762_v38  ;;  %v1011_v50 = vpop.f32.mrb[15].mxu1 }
 0x2bb   :  { %v1012_v51 = vadd.f32 %v18762_v38, %v1011_v50 }
 0x2bd   :  { %v20458_v53 = vpop.f32.mrb[16].mxu1  ;;  %20473 = vmatprep.mubr.msk.f32.mxu1 %vm539_vm6, %v1012_v51  ;;  %v18767_v51 = vld [vmem:[#allocation2 + $0x150] ss:$0 sm:$0xff] }
 0x2be   :  { %v1195_v55 = vadd.f32 %v20458_v53, %v18772_v52  ;;  %v1189_v56 = vpop.f32.mrb[17].mxu1 }
 0x2bf   :  { %v1190_v57 = vadd.f32 %v18772_v52, %v1189_v56 }
 0x2c1   :  { %v23677_v58 = vpack.c.bf16 %v1195_v55, %v1190_v57  ;;  %v20461_v59 = vpop.f32.mrb[18].mxu1 }
 0x2c2   :  { %v1205_v60 = vadd.f32 %v20461_v59, %v18772_v52  ;;  %v1199_v61 = vpop.f32.mrb[19].mxu1 }
 0x2c3   :  { %v1200_v62 = vadd.f32 %v18772_v52, %v1199_v61 }
 0x2c5   :  { %v23679_v63 = vpack.c.bf16 %v1205_v60, %v1200_v62 }
 0x33b   :  { %v721_v0 = vpop.xlane.xlu0 %720 }
 0x33c   :  { %v731_v1 = vsub.f32 %v714_v27, %v721_v0  ;;  %v1020_v27 = vld [vmem:[#allocation2 + $0x100] sm:$0xff] }
 0x33d   :  { %v925_v0 = vld [vmem:[#allocation2 + $0xc0] sm:$0xff] }
 0x33e   :  { %v735_v2 = vmul.f32 1.442695, %v731_v1  ;;  %v1975_v1 = vld [vmem:[#allocation2 + $0x1a0] sm:$0xff] }
 0x33f   :  { %v727_v3 = vpop.xlane.xlu1 %726  ;;  %v724_v4 = vpop.xlane.xlu0 %723 }
 0x340   :  { %23154 = vpow2.f32 %v735_v2  ;;  %v733_v5 = vsub.f32 %v716_v32, %v727_v3  ;;  %v732_v6 = vsub.f32 %v715_v28, %v724_v4  ;;  %v1021_v28 = vld [vmem:[#allocation2 + $0x108] sm:$0xff]  ;;  %v1977_v4 = vld [vmem:[#allocation2 + $0x1b0] sm:$0xff] }
 0x341   :  { %v1976_v2 = vld [vmem:[#allocation2 + $0x1a8] sm:$0xff] }
 0x342   :  { %v739_v7 = vmul.f32 1.442695, %v733_v5  ;;  %v737_v8 = vmul.f32 1.442695, %v732_v6  ;;  %v22256_v3 = vpack.c.bf16 %v1976_v2, %v1975_v1  ;;  %v1978_v5 = vld [vmem:[#allocation2 + $0x1b8] sm:$0xff] }
 0x343   :  { %v730_v9 = vpop.xlane.xlu1 %729  ;;  %v22260_v6 = vpack.c.bf16 %v1978_v5, %v1977_v4 }
 0x344   :  { %23156 = vpow2.f32 %v739_v7  ;;  %v734_v10 = vsub.f32 %v717_v33, %v730_v9  ;;  %v22204_v33 = vpack.c.bf16 %v1021_v28, %v1020_v27 }
 0x345   :  { %23158 = vpow2.f32 %v737_v8 }
 0x346   :  { %v741_v11 = vmul.f32 1.442695, %v734_v10 }
 0x348   :  { %23160 = vpow2.f32 %v741_v11 }
 0x34a   :  { %v23155_v12 = vpop.eup %23154 }
 0x34b   :  { %v743_v13 = vsel %vm718_vm8, %v23155_v12, 0.0 }
 0x34c   :  { %744 = vadd.xlane.f32.xlu0 %v743_v13 }
 0x34e   :  { %v23157_v14 = vpop.eup %23156 }
 0x34f   :  { %v23159_v15 = vpop.eup %23158  ;;  %v749_v16 = vsel %vm718_vm8, %v23157_v14, 0.0 }
 0x350   :  { %750 = vadd.xlane.f32.xlu0 %v749_v16  ;;  %v746_v18 = vsel %vm718_vm8, %v23159_v15, 0.0  ;;  %v18807_v16 = vld [vmem:[#allocation2 + $0x1d8] ss:$0 sm:$0xff] }
 0x351   :  { %747 = vadd.xlane.f32.xlu1 %v746_v18 }
 0x352   :  { %v23161_v19 = vpop.eup %23160 }
 0x353   :  { %v752_v20 = vsel %vm718_vm8, %v23161_v19, 0.0 }
 0x355   :  { %753 = vadd.xlane.f32.xlu1 %v752_v20 }
 0x3d9   :  { %v745_v21 = vpop.xlane.xlu0 %744 }
 0x3da   :  { %23162 = vrcp.f32 %v745_v21 }
 0x3dd   :  { %v751_v22 = vpop.xlane.xlu0 %750 }
 0x3de   :  { %v748_v23 = vpop.xlane.xlu1 %747  ;;  %23164 = vrcp.f32 %v751_v22 }
 0x3df   :  { %23166 = vrcp.f32 %v748_v23 }
 0x3e2   :  { %v754_v24 = vpop.xlane.xlu1 %753 }
 0x3e3   :  { %23168 = vrcp.f32 %v754_v24 }
 0x3e4   :  { %v23163_v25 = vpop.eup %23162 }
 0x3e5   :  { %v759_v26 = vmul.f32 %v23163_v25, %v23155_v12 }
 0x3e7   :  { %20410 = vmatprep.mubr.msk.f32.mxu0 %vm718_vm8, %v759_v26 }
 0x3e8   :  { %v23165_v29 = vpop.eup %23164 }
 0x3e9   :  { %v23167_v30 = vpop.eup %23166  ;;  %v761_v31 = vmul.f32 %v23165_v29, %v23157_v14 }
 0x3ea   :  { %v760_v32 = vmul.f32 %v23167_v30, %v23159_v15 }
 0x3ec   :  { %20411 = vmatmul.mubr.msk.f32.vlgmr.msra.gmra.mrb[10].mxu0 %vm718_vm8, %v760_v32 }
 0x3ed   :  { %v23169_v38 = vpop.eup %23168  ;;  %22195 = vmatpush3.bf16.msra.mxu0 %v23646_v17  ;;  %20417 = vmatprep.mubr.msk.f32.mxu0 %vm718_vm8, %v761_v31 }
 0x3ee   :  { %22205 = vmatprep.subr.bf16.mxu0 %v22204_v33  ;;  %v762_v39 = vmul.f32 %v23169_v38, %v23161_v19 }
 0x3f0   :  { %20418 = vmatmul.mubr.msk.f32.vlgmr.msra.gmra.mrb[12].mxu0 %vm718_vm8, %v762_v39 }
 0x3f1   :  { %22207 = vmatpush3.bf16.msra.mxu0 %v22204_v33  ;;  %20442 = vmatprep.mubr.msk.f32.mxu0 %vm253_vm5, %v23593_v34 }
 0x3f2   :  { %22209 = vmatprep.subr.bf16.mxu0 %v22208_v40 }
 0x3f5   :  { %22211 = vmatpush3.bf16.msra.mxu0 %v22208_v40 }
 0x3f8   :  { %20443 = vmatmul.mubr.msk.f32.vlgmr.msra.gmra.mrb[14].mxu0 %vm253_vm5, %v23595_v36 }
 0x3f9   :  { %20445 = vmatprep.mubr.msk.f32.mxu0 %vm253_vm5, %v23605_v41 }
 0x3fc   :  { %20446 = vmatmul.mubr.msk.f32.gmra.mrb[16].mxu0 %vm253_vm5, %v23607_v42 }
 0x3fd   :  { %20466 = vmatprep.mubr.msk.f32.mxu0 %vm539_vm6, %v23672_v47 }
 0x4bf   :  { %v20412_v17 = vpop.f32.mrb[10].mxu0 }
 0x4c0   :  { %v835_v46 = vpop.f32.mrb[11].mxu0 }
 0x4c3   :  { %v20419_v48 = vpop.f32.mrb[12].mxu0 }
 0x4c4   :  { %v916_v50 = vpop.f32.mrb[13].mxu0 }
 0x4cb   :  { %v20444_v52 = vpop.f32.mrb[14].mxu0 }
 0x4cc   :  { %v1101_v53 = vadd.f32 %v20444_v52, %v18767_v51  ;;  %v1095_v55 = vpop.f32.mrb[15].mxu0 }
 0x4cd   :  { %v1096_v56 = vadd.f32 %v18767_v51, %v1095_v55 }
 0x4cf   :  { %v22220_v57 = vpack.c.bf16 %v1101_v53, %v1096_v56  ;;  %v20447_v59 = vpop.f32.mrb[16].mxu0 }
 0x4d0   :  { %v1111_v60 = vadd.f32 %v20447_v59, %v18767_v51  ;;  %v1105_v61 = vpop.f32.mrb[17].mxu0 }
 0x4d1   :  { %v1106_v62 = vadd.f32 %v18767_v51, %v1105_v61  ;;  %22222 = vmatprep.subr.msk.bf16.mxu0 %vm23631_vm7, %v22220_v57 }
 0x4d2   :  { %22225 = vmatpush3.bf16.xpose.msk.msra.mxu0 %vm23631_vm7, %v22220_v57 }
 0x4d3   :  { %v22226_v47 = vpack.c.bf16 %v1111_v60, %v1106_v62  ;;  %22233 = vmatprep.subr.bf16.mxu0 %v23677_v58 }
 0x4d5   :  { %22228 = vmatprep.subr.msk.bf16.mxu1 %vm23631_vm7, %v22226_v47 }
 0x4d6   :  { %22231 = vmatpush3.bf16.xpose.msk.msra.mxu1 %vm23631_vm7, %v22226_v47 }
 0x4d7   :  { %20498 = vmatprep.subr.mxu1 %v925_v0 }
 0x4d9   :  { %20467 = vmatmul.mubr.msk.f32.vlgmr.msra.gmra.mrb[18].mxu0 %vm539_vm6, %v23670_v45 }
 0x4da   :  { %22235 = vmatpush3.bf16.msra.mxu0 %v23677_v58 }
 0x4db   :  { %22237 = vmatprep.subr.bf16.mxu0 %v23679_v63 }
 0x4dd   :  { %20474 = vmatmul.mubr.msk.f32.vlgmr.msra.gmra.mrb[20].mxu1 %vm539_vm6, %v23674_v49 }
 0x4de   :  { %20500 = vmatprep.mubr.msk.f32.mxu1 %vm539_vm6, %v835_v46  ;;  %20499 = vmatpush3.msra.mxu1 %v925_v0 }
 0x4df   :  { %22257 = vmatprep.subr.bf16.mxu1 %v22256_v3 }
 0x4e1   :  { %20501 = vmatmul.mubr.msk.f32.vlgmr.msra.gmra.mrb[22].mxu1 %vm539_vm6, %v20412_v17 }
 0x4e2   :  { %20503 = vmatprep.mubr.msk.f32.mxu1 %vm539_vm6, %v916_v50  ;;  %22259 = vmatpush3.bf16.msra.mxu1 %v22256_v3  ;;  %v1592_v3 = vld [vmem:[#allocation2 + $0x140] sm:$0xff] }
 0x4e3   :  { %22261 = vmatprep.subr.bf16.mxu1 %v22260_v6 }
 0x4e5   :  { %20504 = vmatmul.mubr.msk.f32.gmra.mrb[24].mxu1 %vm539_vm6, %v20419_v48 }
 0x4e6   :  { %22263 = vmatpush3.bf16.msra.mxu1 %v22260_v6  ;;  %20542 = vmatprep.mubr.msk.f32.mxu1 %vm253_vm5, %v23593_v34 }
 0x4e9   :  { %20543 = vmatmul.mubr.msk.f32.vlgmr.msra.gmra.mrb[26].mxu1 %vm253_vm5, %v23595_v36 }
 0x4ea   :  { %20545 = vmatprep.mubr.msk.f32.mxu1 %vm253_vm5, %v23605_v41 }
 0x4ed   :  { %20546 = vmatmul.mubr.msk.f32.gmra.mrb[28].mxu1 %vm253_vm5, %v23607_v42 }
 0x5ac   :  { %v20468_v45 = vpop.f32.mrb[18].mxu0 }
 0x5ad   :  { %v1383_v49 = vmul.f32 0.35355338, %v20468_v45  ;;  %v1286_v58 = vpop.f32.mrb[19].mxu0  ;;  %v1787_v45 = vld [vmem:[#allocation2 + $0x160] sm:$0xff] }
 0x5ae   :  { %v1382_v7 = vmul.f32 0.35355338, %v1286_v58 }
 0x5af   :  { %v1389_v8 = vsel %vm718_vm8, %v1383_v49, -inf }
 0x5b0   :  { %v20475_v9 = vpop.f32.mrb[20].mxu1  ;;  %1390 = vmax.xlane.f32.xlu1 %v1389_v8  ;;  %v1386_v10 = vsel %vm718_vm8, %v1382_v7, -inf  ;;  %v1790_v8 = vld [vmem:[#allocation2 + $0x178] sm:$0xff] }
 0x5b1   :  { %v1385_v11 = vmul.f32 0.35355338, %v20475_v9  ;;  %v1373_v12 = vpop.f32.mrb[21].mxu1  ;;  %1387 = vmax.xlane.f32.xlu0 %v1386_v10 }
 0x5b2   :  { %v1384_v13 = vmul.f32 0.35355338, %v1373_v12  ;;  %v1882_v12 = vld [vmem:[#allocation2 + $0x188] sm:$0xff] }
 0x5b3   :  { %v1395_v14 = vsel %vm718_vm8, %v1385_v11, -inf }
 0x5b4   :  { %1396 = vmax.xlane.f32.xlu1 %v1395_v14  ;;  %v1392_v15 = vsel %vm718_vm8, %v1384_v13, -inf }
 0x5b5   :  { %1393 = vmax.xlane.f32.xlu0 %v1392_v15 }
 0x5bc   :  { %v20544_v18 = vpop.f32.mrb[26].mxu1 }
 0x5bd   :  { %v2056_v19 = vadd.f32 %v20544_v18, %v18807_v16  ;;  %v2050_v20 = vpop.f32.mrb[27].mxu1  ;;  %v1884_v18 = vld [vmem:[#allocation2 + $0x198] sm:$0xff] }
 0x5be   :  { %v2051_v21 = vadd.f32 %v18807_v16, %v2050_v20 }
 0x5c0   :  { %v23731_v22 = vpack.c.bf16 %v2056_v19, %v2051_v21  ;;  %v20547_v23 = vpop.f32.mrb[28].mxu1 }
 0x5c1   :  { %v2066_v24 = vadd.f32 %v20547_v23, %v18807_v16  ;;  %v2060_v25 = vpop.f32.mrb[29].mxu1 }
 0x5c2   :  { %v2061_v26 = vadd.f32 %v18807_v16, %v2060_v25  ;;  %v1883_v16 = vld [vmem:[#allocation2 + $0x190] sm:$0xff]  ;;  %v18797_v25 = vld [vmem:[#allocation2 + $0x1c8] ss:$0 sm:$0xff] }
 0x5c3   :  { %v22252_v19 = vpack.c.bf16 %v1884_v18, %v1883_v16 }
 0x5c4   :  { %v23733_v27 = vpack.c.bf16 %v2066_v24, %v2061_v26 }
 0x63d   :  { %v1391_v28 = vpop.xlane.xlu1 %1390 }
 0x63e   :  { %v1399_v29 = vsub.f32 %v1383_v49, %v1391_v28  ;;  %v1388_v30 = vpop.xlane.xlu0 %1387  ;;  %v1788_v49 = vld [vmem:[#allocation2 + $0x168] sm:$0xff] }
 0x63f   :  { %v1398_v31 = vsub.f32 %v1382_v7, %v1388_v30  ;;  %v22240_v58 = vpack.c.bf16 %v1788_v49, %v1787_v45  ;;  %v1789_v7 = vld [vmem:[#allocation2 + $0x170] sm:$0xff] }
 0x640   :  { %v1404_v32 = vmul.f32 1.442695, %v1399_v29 }
 0x641   :  { %v1402_v33 = vmul.f32 1.442695, %v1398_v31  ;;  %v1397_v35 = vpop.xlane.xlu1 %1396 }
 0x642   :  { %23170 = vpow2.f32 %v1404_v32  ;;  %v1401_v37 = vsub.f32 %v1385_v11, %v1397_v35  ;;  %v1394_v38 = vpop.xlane.xlu0 %1393  ;;  %v22244_v11 = vpack.c.bf16 %v1790_v8, %v1789_v7 }
 0x643   :  { %23172 = vpow2.f32 %v1402_v33  ;;  %v1400_v39 = vsub.f32 %v1384_v13, %v1394_v38  ;;  %v18802_v33 = vld [vmem:[#allocation2 + $0x1d0] ss:$0 sm:$0xff] }
 0x644   :  { %v1408_v40 = vmul.f32 1.442695, %v1401_v37 }
 0x645   :  { %v1406_v17 = vmul.f32 1.442695, %v1400_v39 }
 0x646   :  { %23174 = vpow2.f32 %v1408_v40 }
 0x647   :  { %23176 = vpow2.f32 %v1406_v17 }
 0x64c   :  { %v23171_v46 = vpop.eup %23170 }
 0x64d   :  { %v23173_v48 = vpop.eup %23172  ;;  %v1413_v50 = vsel %vm718_vm8, %v23171_v46, 0.0 }
 0x64e   :  { %1414 = vadd.xlane.f32.xlu1 %v1413_v50  ;;  %v1410_v51 = vsel %vm718_vm8, %v23173_v48, 0.0 }
 0x64f   :  { %1411 = vadd.xlane.f32.xlu0 %v1410_v51 }
 0x650   :  { %v23175_v52 = vpop.eup %23174 }
 0x651   :  { %v23177_v53 = vpop.eup %23176  ;;  %v1419_v55 = vsel %vm718_vm8, %v23175_v52, 0.0 }
 0x652   :  { %1420 = vadd.xlane.f32.xlu1 %v1419_v55  ;;  %v1416_v56 = vsel %vm718_vm8, %v23177_v53, 0.0 }
 0x653   :  { %1417 = vadd.xlane.f32.xlu0 %v1416_v56 }
 0x6db   :  { %v1415_v57 = vpop.xlane.xlu1 %1414 }
 0x6dc   :  { %23178 = vrcp.f32 %v1415_v57  ;;  %v1412_v59 = vpop.xlane.xlu0 %1411 }
 0x6dd   :  { %23180 = vrcp.f32 %v1412_v59 }
 0x6df   :  { %v1421_v60 = vpop.xlane.xlu1 %1420 }
 0x6e0   :  { %23182 = vrcp.f32 %v1421_v60  ;;  %v1418_v61 = vpop.xlane.xlu0 %1417 }
 0x6e1   :  { %23184 = vrcp.f32 %v1418_v61 }
 0x6e6   :  { %v23179_v62 = vpop.eup %23178 }
 0x6e7   :  { %v23181_v47 = vpop.eup %23180  ;;  %v1427_v1 = vmul.f32 %v23179_v62, %v23171_v46 }
 0x6e8   :  { %v1426_v0 = vmul.f32 %v23181_v47, %v23173_v48 }
 0x6ea   :  { %v23183_v2 = vpop.eup %23182  ;;  %20480 = vmatprep.mubr.msk.f32.mxu0 %vm718_vm8, %v1426_v0 }
 0x6eb   :  { %v23185_v4 = vpop.eup %23184  ;;  %20481 = vmatmul.mubr.msk.f32.vlgmr.msra.gmra.mrb[20].mxu0 %vm718_vm8, %v1427_v1  ;;  %v1429_v6 = vmul.f32 %v23183_v2, %v23175_v52 }
 0x6ec   :  { %22239 = vmatpush3.bf16.msra.mxu0 %v23679_v63  ;;  %v1428_v5 = vmul.f32 %v23185_v4, %v23177_v53  ;;  %v1881_v63 = vld [vmem:[#allocation2 + $0x180] sm:$0xff] }
 0x6ed   :  { %20490 = vmatprep.subr.mxu0 %v1592_v3  ;;  %v22248_v15 = vpack.c.bf16 %v1882_v12, %v1881_v63 }
 0x6ee   :  { %20487 = vmatprep.mubr.msk.f32.mxu0 %vm718_vm8, %v1428_v5 }
 0x6ef   :  { %20488 = vmatmul.mubr.msk.f32.vlgmr.msra.gmra.mrb[22].mxu0 %vm718_vm8, %v1429_v6 }
 0x6f0   :  { %20491 = vmatpush3.msra.mxu0 %v1592_v3 }
 0x6f1   :  { %22241 = vmatprep.subr.bf16.mxu0 %v22240_v58 }
 0x7be   :  { %v20482_v9 = vpop.f32.mrb[20].mxu0 }
 0x7bf   :  { %v1502_v10 = vpop.f32.mrb[21].mxu0 }
 0x7c0   :  { %20492 = vmatprep.mubr.msk.f32.mxu0 %vm539_vm6, %v1502_v10 }
 0x7c1   :  { %20493 = vmatmul.mubr.msk.f32.vlgmr.msra.gmra.mrb[24].mxu0 %vm539_vm6, %v20482_v9 }
 0x7c2   :  { %v20489_v13 = vpop.f32.mrb[22].mxu0  ;;  %22243 = vmatpush3.bf16.msra.mxu0 %v22240_v58 }
 0x7c3   :  { %v1583_v14 = vpop.f32.mrb[23].mxu0  ;;  %22245 = vmatprep.subr.bf16.mxu0 %v22244_v11 }
 0x7c4   :  { %20495 = vmatprep.mubr.msk.f32.mxu0 %vm539_vm6, %v1583_v14 }
 0x7c5   :  { %20496 = vmatmul.mubr.msk.f32.gmra.mrb[26].mxu0 %vm539_vm6, %v20489_v13 }
 0x7c6   :  { %22247 = vmatpush3.bf16.msra.mxu0 %v22244_v11  ;;  %20514 = vmatprep.mubr.msk.f32.mxu0 %vm253_vm5, %v23593_v34 }
 0x7c7   :  { %22249 = vmatprep.subr.bf16.mxu0 %v22248_v15 }
 0x7c9   :  { %20515 = vmatmul.mubr.msk.f32.vlgmr.msra.gmra.mrb[28].mxu0 %vm253_vm5, %v23595_v36 }
 0x7ca   :  { %20517 = vmatprep.mubr.msk.f32.mxu0 %vm253_vm5, %v23605_v41  ;;  %22251 = vmatpush3.bf16.msra.mxu0 %v22248_v15 }
 0x7cb   :  { %22253 = vmatprep.subr.bf16.mxu0 %v22252_v19 }
 0x7cd   :  { %20518 = vmatmul.mubr.msk.f32.gmra.mrb[30].mxu0 %vm253_vm5, %v23607_v42 }
 0x7ce   :  { %22255 = vmatpush3.bf16.msra.mxu0 %v22252_v19  ;;  %20528 = vmatprep.mubr.msk.f32.mxu0 %vm253_vm5, %v23593_v34  ;;  %v2555_v19 = vld [vmem:[#allocation2 + $0x1e0] sm:$0xff] }
 0x7d1   :  { %20529 = vmatmul.mubr.msk.f32.vlgmr.msra.gmra.mrb[32].mxu0 %vm253_vm5, %v23595_v36 }
 0x7d2   :  { %20531 = vmatprep.mubr.msk.f32.mxu0 %vm253_vm5, %v23605_v41 }
 0x7d5   :  { %20532 = vmatmul.mubr.msk.f32.gmra.mrb[34].mxu0 %vm253_vm5, %v23607_v42 }
 0x894   :  { %v23764_v20 = vpop.f32.mrb[24].mxu0 }
 0x895   :  { %v23766_v21 = vpop.f32.mrb[25].mxu0 }
 0x898   :  { %v23768_v23 = vpop.f32.mrb[26].mxu0 }
 0x899   :  { %v23770_v24 = vpop.f32.mrb[27].mxu0 }
 0x89c   :  { %v20516_v26 = vpop.f32.mrb[28].mxu0 }
 0x89d   :  { %v1862_v28 = vpop.f32.mrb[29].mxu0  ;;  %v1868_v52 = vadd.f32 %v20516_v26, %v18797_v25 }
 0x89e   :  { %v1863_v29 = vadd.f32 %v18797_v25, %v1862_v28  ;;  %v2453_v28 = vld [vmem:[#allocation2 + $0x1c0] sm:$0xff] }
 0x8a0   :  { %v20519_v30 = vpop.f32.mrb[30].mxu0  ;;  %20552 = vmatprep.mubr.msk.f32.mxu0 %vm539_vm6, %v1863_v29 }
 0x8a1   :  { %v1872_v31 = vpop.f32.mrb[31].mxu0  ;;  %v1878_v53 = vadd.f32 %v20519_v30, %v18797_v25 }
 0x8a2   :  { %v1873_v32 = vadd.f32 %v18797_v25, %v1872_v31  ;;  %v2556_v25 = vld [vmem:[#allocation2 + $0x1e8] sm:$0xff] }
 0x8a3   :  { %v22284_v26 = vpack.c.bf16 %v2556_v25, %v2555_v19 }
 0x8a4   :  { %v20530_v35 = vpop.f32.mrb[32].mxu0  ;;  %20559 = vmatprep.mubr.msk.f32.mxu1 %vm539_vm6, %v1873_v32 }
 0x8a5   :  { %v1962_v37 = vadd.f32 %v20530_v35, %v18802_v33  ;;  %v1956_v38 = vpop.f32.mrb[33].mxu0  ;;  %v2557_v35 = vld [vmem:[#allocation2 + $0x1f0] sm:$0xff] }
 0x8a6   :  { %v1957_v39 = vadd.f32 %v18802_v33, %v1956_v38 }
 0x8a8   :  { %v22264_v40 = vpack.c.bf16 %v1962_v37, %v1957_v39  ;;  %v20533_v17 = vpop.f32.mrb[34].mxu0  ;;  %v2558_v37 = vld [vmem:[#allocation2 + $0x1f8] sm:$0xff] }
 0x8a9   :  { %v1972_v46 = vadd.f32 %v20533_v17, %v18802_v33  ;;  %v1966_v48 = vpop.f32.mrb[35].mxu0  ;;  %v22288_v17 = vpack.c.bf16 %v2558_v37, %v2557_v35 }
 0x8aa   :  { %v1967_v50 = vadd.f32 %v18802_v33, %v1966_v48  ;;  %22266 = vmatprep.subr.msk.bf16.mxu0 %vm23631_vm7, %v22264_v40  ;;  %v2743_v48 = vld [vmem:[#allocation2 + $0x220] sm:$0xff] }
 0x8ab   :  { %22269 = vmatpush3.bf16.xpose.msk.msra.mxu0 %vm23631_vm7, %v22264_v40 }
 0x8ac   :  { %v22270_v51 = vpack.c.bf16 %v1972_v46, %v1967_v50  ;;  %22277 = vmatprep.subr.bf16.mxu0 %v23731_v22  ;;  %v2744_v50 = vld [vmem:[#allocation2 + $0x228] sm:$0xff] }
 0x8ae   :  { %22272 = vmatprep.subr.msk.bf16.mxu1 %vm23631_vm7, %v22270_v51 }
 0x8af   :  { %22275 = vmatpush3.bf16.xpose.msk.msra.mxu1 %vm23631_vm7, %v22270_v51 }
 0x8b0   :  { %22281 = vmatprep.subr.bf16.mxu1 %v23733_v27 }
 0x8b2   :  { %20553 = vmatmul.mubr.msk.f32.vlgmr.msra.gmra.mrb[36].mxu0 %vm539_vm6, %v1868_v52 }
 0x8b3   :  { %22279 = vmatpush3.bf16.msra.mxu0 %v23731_v22 }
 0x8b4   :  { %22285 = vmatprep.subr.bf16.mxu0 %v22284_v26 }
 0x8b6   :  { %20560 = vmatmul.mubr.msk.f32.vlgmr.msra.gmra.mrb[30].mxu1 %vm539_vm6, %v1878_v53 }
 0x8b7   :  { %22283 = vmatpush3.bf16.msra.mxu1 %v23733_v27 }
 0x8b8   :  { %20576 = vmatprep.subr.mxu1 %v2453_v28 }
 0x985   :  { %v20554_v55 = vpop.f32.mrb[36].mxu0 }
 0x986   :  { %v2244_v56 = vmul.f32 0.35355338, %v20554_v55  ;;  %v2147_v57 = vpop.f32.mrb[37].mxu0  ;;  %v22300_v55 = vpack.c.bf16 %v2744_v50, %v2743_v48 }
 0x987   :  { %v2243_v59 = vmul.f32 0.35355338, %v2147_v57  ;;  %v2746_v57 = vld [vmem:[#allocation2 + $0x238] sm:$0xff] }
 0x988   :  { %v2250_v60 = vsel %vm718_vm8, %v2244_v56, -inf }
 0x989   :  { %v20561_v61 = vpop.f32.mrb[30].mxu1  ;;  %2251 = vmax.xlane.f32.xlu1 %v2250_v60  ;;  %v2247_v62 = vsel %vm718_vm8, %v2243_v59, -inf  ;;  %v2649_v60 = vld [vmem:[#allocation2 + $0x200] sm:$0xff] }
 0x98a   :  { %v2246_v47 = vmul.f32 0.35355338, %v20561_v61  ;;  %v2234_v0 = vpop.f32.mrb[31].mxu1  ;;  %2248 = vmax.xlane.f32.xlu0 %v2247_v62  ;;  %v2650_v61 = vld [vmem:[#allocation2 + $0x208] sm:$0xff] }
 0x98b   :  { %v2245_v1 = vmul.f32 0.35355338, %v2234_v0  ;;  %v22292_v62 = vpack.c.bf16 %v2650_v61, %v2649_v60  ;;  %v2652_v0 = vld [vmem:[#allocation2 + $0x218] sm:$0xff] }
 0x98c   :  { %v2256_v22 = vsel %vm718_vm8, %v2246_v47, -inf }
 0x98d   :  { %2257 = vmax.xlane.f32.xlu1 %v2256_v22  ;;  %v2253_v2 = vsel %vm718_vm8, %v2245_v1, -inf }
 0x98e   :  { %2254 = vmax.xlane.f32.xlu0 %v2253_v2 }
 0xa16   :  { %v2252_v27 = vpop.xlane.xlu1 %2251 }
 0xa17   :  { %v2260_v3 = vsub.f32 %v2244_v56, %v2252_v27  ;;  %v2249_v4 = vpop.xlane.xlu0 %2248  ;;  %v2745_v56 = vld [vmem:[#allocation2 + $0x230] sm:$0xff] }
 0xa18   :  { %v2259_v5 = vsub.f32 %v2243_v59, %v2249_v4  ;;  %v22304_v59 = vpack.c.bf16 %v2746_v57, %v2745_v56  ;;  %v18828_v4 = vld [vmem:[#allocation2 + $0x248] ss:$0 sm:$0xff] }
 0xa19   :  { %v2265_v6 = vmul.f32 1.442695, %v2260_v3 }
 0xa1a   :  { %v2263_v45 = vmul.f32 1.442695, %v2259_v5  ;;  %v2258_v49 = vpop.xlane.xlu1 %2257 }
 0xa1b   :  { %23186 = vpow2.f32 %v2265_v6  ;;  %v2262_v58 = vsub.f32 %v2246_v47, %v2258_v49  ;;  %v2255_v7 = vpop.xlane.xlu0 %2254  ;;  %v2651_v47 = vld [vmem:[#allocation2 + $0x210] sm:$0xff] }
 0xa1c   :  { %23188 = vpow2.f32 %v2263_v45  ;;  %v2261_v8 = vsub.f32 %v2245_v1, %v2255_v7  ;;  %v22296_v2 = vpack.c.bf16 %v2652_v0, %v2651_v47 }
 0xa1d   :  { %v2269_v9 = vmul.f32 1.442695, %v2262_v58 }
 0xa1e   :  { %v2267_v10 = vmul.f32 1.442695, %v2261_v8 }
 0xa1f   :  { %23190 = vpow2.f32 %v2269_v9 }
 0xa20   :  { %23192 = vpow2.f32 %v2267_v10  ;;  %v18838_v10 = vld [vmem:[#allocation2 + $0x258] ss:$0 sm:$0xff] }
 0xa25   :  { %v23187_v11 = vpop.eup %23186 }
 0xa26   :  { %v23189_v63 = vpop.eup %23188  ;;  %v2274_v12 = vsel %vm718_vm8, %v23187_v11, 0.0 }
 0xa27   :  { %2275 = vadd.xlane.f32.xlu1 %v2274_v12  ;;  %v2271_v13 = vsel %vm718_vm8, %v23189_v63, 0.0 }
 0xa28   :  { %2272 = vadd.xlane.f32.xlu0 %v2271_v13 }
 0xa29   :  { %v23191_v14 = vpop.eup %23190 }
 0xa2a   :  { %v23193_v15 = vpop.eup %23192  ;;  %v2280_v16 = vsel %vm718_vm8, %v23191_v14, 0.0 }
 0xa2b   :  { %2281 = vadd.xlane.f32.xlu1 %v2280_v16  ;;  %v2277_v18 = vsel %vm718_vm8, %v23193_v15, 0.0 }
 0xa2c   :  { %2278 = vadd.xlane.f32.xlu0 %v2277_v18 }
 0xab4   :  { %v2276_v29 = vpop.xlane.xlu1 %2275 }
 0xab5   :  { %23194 = vrcp.f32 %v2276_v29  ;;  %v2273_v30 = vpop.xlane.xlu0 %2272 }
 0xab6   :  { %23196 = vrcp.f32 %v2273_v30 }
 0xab8   :  { %v2282_v31 = vpop.xlane.xlu1 %2281 }
 0xab9   :  { %23198 = vrcp.f32 %v2282_v31  ;;  %v2279_v32 = vpop.xlane.xlu0 %2278 }
 0xaba   :  { %23200 = vrcp.f32 %v2279_v32 }
 0xabf   :  { %v23195_v33 = vpop.eup %23194 }
 0xac0   :  { %v23197_v38 = vpop.eup %23196  ;;  %v2288_v40 = vmul.f32 %v23195_v33, %v23187_v11 }
 0xac1   :  { %v2287_v39 = vmul.f32 %v23197_v38, %v23189_v63 }
 0xac3   :  { %v23199_v46 = vpop.eup %23198  ;;  %20566 = vmatprep.mubr.msk.f32.mxu0 %vm718_vm8, %v2287_v39 }
 0xac4   :  { %v23201_v51 = vpop.eup %23200  ;;  %20567 = vmatmul.mubr.msk.f32.vlgmr.msra.gmra.mrb[38].mxu0 %vm718_vm8, %v2288_v40  ;;  %v2290_v53 = vmul.f32 %v23199_v46, %v23191_v14 }
 0xac5   :  { %22287 = vmatpush3.bf16.msra.mxu0 %v22284_v26  ;;  %20592 = vmatprep.mubr.msk.f32.mxu0 %vm253_vm5, %v23593_v34  ;;  %v2289_v52 = vmul.f32 %v23201_v51, %v23193_v15  ;;  %v18833_v26 = vld [vmem:[#allocation2 + $0x250] ss:$0 sm:$0xff] }
 0xac6   :  { %22289 = vmatprep.subr.bf16.mxu0 %v22288_v17 }
 0xac7   :  { %20573 = vmatprep.mubr.msk.f32.mxu1 %vm718_vm8, %v2289_v52 }
 0xac8   :  { %20574 = vmatmul.mubr.msk.f32.vlgmr.msra.gmra.mrb[32].mxu1 %vm718_vm8, %v2290_v53 }
 0xac9   :  { %22291 = vmatpush3.bf16.msra.mxu0 %v22288_v17  ;;  %20577 = vmatpush3.msra.mxu1 %v2453_v28 }
 0xaca   :  { %22301 = vmatprep.subr.bf16.mxu0 %v22300_v55  ;;  %22293 = vmatprep.subr.bf16.mxu1 %v22292_v62 }
 0xacc   :  { %20593 = vmatmul.mubr.msk.f32.vlgmr.msra.gmra.mrb[40].mxu0 %vm253_vm5, %v23595_v36 }
 0xacd   :  { %20595 = vmatprep.mubr.msk.f32.mxu0 %vm253_vm5, %v23605_v41  ;;  %22303 = vmatpush3.bf16.msra.mxu0 %v22300_v55 }
 0xace   :  { %22305 = vmatprep.subr.bf16.mxu0 %v22304_v59 }
 0xad0   :  { %20596 = vmatmul.mubr.msk.f32.gmra.mrb[42].mxu0 %vm253_vm5, %v23607_v42 }
 0xad1   :  { %22307 = vmatpush3.bf16.msra.mxu0 %v22304_v59  ;;  %20620 = vmatprep.mubr.msk.f32.mxu0 %vm253_vm5, %v23593_v34 }
 0xad4   :  { %20621 = vmatmul.mubr.msk.f32.vlgmr.msra.gmra.mrb[44].mxu0 %vm253_vm5, %v23595_v36 }
 0xad5   :  { %20623 = vmatprep.mubr.msk.f32.mxu0 %vm253_vm5, %v23605_v41 }
 0xad8   :  { %20624 = vmatmul.mubr.msk.f32.gmra.mrb[46].mxu0 %vm253_vm5, %v23607_v42 }
 0xb97   :  { %v20568_v1 = vpop.f32.mrb[38].mxu0 }
 0xb98   :  { %v2363_v22 = vpop.f32.mrb[39].mxu0 }
 0xb99   :  { %20578 = vmatprep.mubr.msk.f32.mxu1 %vm539_vm6, %v2363_v22 }
 0xb9a   :  { %20579 = vmatmul.mubr.msk.f32.vlgmr.msra.gmra.mrb[22].mxu1 %vm539_vm6, %v20568_v1 }
 0xb9b   :  { %v20575_v27 = vpop.f32.mrb[32].mxu1  ;;  %22295 = vmatpush3.bf16.msra.mxu1 %v22292_v62 }
 0xb9c   :  { %v2444_v3 = vpop.f32.mrb[33].mxu1  ;;  %22297 = vmatprep.subr.bf16.mxu1 %v22296_v2 }
 0xb9d   :  { %20581 = vmatprep.mubr.msk.f32.mxu1 %vm539_vm6, %v2444_v3 }
 0xb9e   :  { %20582 = vmatmul.mubr.msk.f32.gmra.mrb[24].mxu1 %vm539_vm6, %v20575_v27 }
 0xb9f   :  { %v20594_v5 = vpop.f32.mrb[40].mxu0  ;;  %22299 = vmatpush3.bf16.msra.mxu1 %v22296_v2  ;;  %20606 = vmatprep.mubr.msk.f32.mxu1 %vm253_vm5, %v23593_v34 }
 0xba0   :  { %v2636_v6 = vadd.f32 %v20594_v5, %v18828_v4  ;;  %v2630_v45 = vpop.f32.mrb[41].mxu0 }
 0xba1   :  { %v2631_v8 = vadd.f32 %v18828_v4, %v2630_v45 }
 0xba2   :  { %20607 = vmatmul.mubr.msk.f32.vlgmr.msra.gmra.mrb[34].mxu1 %vm253_vm5, %v23595_v36 }
 0xba3   :  { %v20597_v49 = vpop.f32.mrb[42].mxu0  ;;  %20609 = vmatprep.mubr.msk.f32.mxu1 %vm253_vm5, %v23605_v41 }
 0xba4   :  { %v2646_v58 = vadd.f32 %v20597_v49, %v18828_v4  ;;  %v2640_v7 = vpop.f32.mrb[43].mxu0 }
 0xba5   :  { %v2641_v9 = vadd.f32 %v18828_v4, %v2640_v7 }
 0xba6   :  { %20610 = vmatmul.mubr.msk.f32.gmra.mrb[36].mxu1 %vm253_vm5, %v23607_v42 }
 0xba7   :  { %v20622_v11 = vpop.f32.mrb[44].mxu0  ;;  %20637 = vmatprep.mubr.msk.f32.mxu0 %vm539_vm6, %v2641_v9  ;;  %20630 = vmatprep.mubr.msk.f32.mxu1 %vm539_vm6, %v2631_v8 }
 0xba8   :  { %v2824_v63 = vadd.f32 %v20622_v11, %v18838_v10  ;;  %v2818_v12 = vpop.f32.mrb[45].mxu0  ;;  %v3221_v11 = vld [vmem:[#allocation2 + $0x240] sm:$0xff] }
 0xba9   :  { %v2819_v13 = vadd.f32 %v18838_v10, %v2818_v12 }
 0xbab   :  { %v22320_v14 = vpack.c.bf16 %v2824_v63, %v2819_v13  ;;  %v20625_v15 = vpop.f32.mrb[46].mxu0 }
 0xbac   :  { %v2834_v16 = vadd.f32 %v20625_v15, %v18838_v10  ;;  %v2828_v18 = vpop.f32.mrb[47].mxu0 }
 0xbad   :  { %v2829_v19 = vadd.f32 %v18838_v10, %v2828_v18 }
 0xbaf   :  { %v22324_v25 = vpack.c.bf16 %v2834_v16, %v2829_v19 }
 0xc75   :  { %v20608_v28 = vpop.f32.mrb[34].mxu1 }
 0xc76   :  { %v2730_v29 = vadd.f32 %v20608_v28, %v18833_v26  ;;  %v2724_v30 = vpop.f32.mrb[35].mxu1 }
 0xc77   :  { %v2725_v31 = vadd.f32 %v18833_v26, %v2724_v30 }
 0xc79   :  { %v22308_v32 = vpack.c.bf16 %v2730_v29, %v2725_v31  ;;  %v20611_v33 = vpop.f32.mrb[36].mxu1 }
 0xc7a   :  { %v2740_v35 = vadd.f32 %v20611_v33, %v18833_v26  ;;  %v2734_v37 = vpop.f32.mrb[37].mxu1 }
 0xc7b   :  { %v2735_v38 = vadd.f32 %v18833_v26, %v2734_v37  ;;  %22310 = vmatprep.subr.msk.bf16.mxu1 %vm23631_vm7, %v22308_v32  ;;  %v18859_v37 = vld [vmem:[#allocation2 + $0x260] ss:$0 sm:$0xff] }
 0xc7c   :  { %22313 = vmatpush3.bf16.xpose.msk.msra.mxu1 %vm23631_vm7, %v22308_v32 }
 0xc7d   :  { %v22314_v39 = vpack.c.bf16 %v2740_v35, %v2735_v38  ;;  %22321 = vmatprep.subr.bf16.mxu1 %v22320_v14 }
 0xc7f   :  { %22316 = vmatprep.subr.msk.bf16.mxu0 %vm23631_vm7, %v22314_v39 }
 0xc80   :  { %22319 = vmatpush3.bf16.xpose.msk.msra.mxu0 %vm23631_vm7, %v22314_v39 }
 0xc81   :  { %22325 = vmatprep.subr.bf16.mxu0 %v22324_v25 }
 0xc83   :  { %20631 = vmatmul.mubr.msk.f32.vlgmr.msra.gmra.mrb[38].mxu1 %vm539_vm6, %v2636_v6 }
 0xc84   :  { %22323 = vmatpush3.bf16.msra.mxu1 %v22320_v14 }
 0xc85   :  { %20654 = vmatprep.subr.mxu1 %v3221_v11 }
 0xc87   :  { %20638 = vmatmul.mubr.msk.f32.vlgmr.msra.gmra.mrb[48].mxu0 %vm539_vm6, %v2646_v58 }
 0xc88   :  { %22327 = vmatpush3.bf16.msra.mxu0 %v22324_v25 }
 0xd56   :  { %v20632_v40 = vpop.f32.mrb[38].mxu1 }
 0xd57   :  { %v3012_v17 = vmul.f32 0.35355338, %v20632_v40  ;;  %v2915_v46 = vpop.f32.mrb[39].mxu1 }
 0xd58   :  { %v3011_v48 = vmul.f32 0.35355338, %v2915_v46 }
 0xd59   :  { %v3018_v50 = vsel %vm718_vm8, %v3012_v17, -inf }
 0xd5a   :  { %v20639_v51 = vpop.f32.mrb[48].mxu0  ;;  %3019 = vmax.xlane.f32.xlu1 %v3018_v50  ;;  %v3015_v52 = vsel %vm718_vm8, %v3011_v48, -inf }
 0xd5b   :  { %v3014_v53 = vmul.f32 0.35355338, %v20639_v51  ;;  %v3002_v55 = vpop.f32.mrb[49].mxu0  ;;  %3016 = vmax.xlane.f32.xlu0 %v3015_v52 }
 0xd5c   :  { %v3013_v56 = vmul.f32 0.35355338, %v3002_v55 }
 0xd5d   :  { %v3024_v57 = vsel %vm718_vm8, %v3014_v53, -inf }
 0xd5e   :  { %3025 = vmax.xlane.f32.xlu1 %v3024_v57  ;;  %v3021_v59 = vsel %vm718_vm8, %v3013_v56, -inf }
 0xd5f   :  { %3022 = vmax.xlane.f32.xlu0 %v3021_v59 }
 0xde7   :  { %v3020_v60 = vpop.xlane.xlu1 %3019 }
 0xde8   :  { %v3028_v61 = vsub.f32 %v3012_v17, %v3020_v60  ;;  %v3017_v62 = vpop.xlane.xlu0 %3016 }
 0xde9   :  { %v3027_v47 = vsub.f32 %v3011_v48, %v3017_v62 }
 0xdea   :  { %v3033_v0 = vmul.f32 1.442695, %v3028_v61 }
 0xdeb   :  { %v3031_v1 = vmul.f32 1.442695, %v3027_v47  ;;  %v3026_v22 = vpop.xlane.xlu1 %3025 }
 0xdec   :  { %23202 = vpow2.f32 %v3033_v0  ;;  %v3030_v2 = vsub.f32 %v3014_v53, %v3026_v22  ;;  %v3023_v27 = vpop.xlane.xlu0 %3022 }
 0xded   :  { %23204 = vpow2.f32 %v3031_v1  ;;  %v3029_v3 = vsub.f32 %v3013_v56, %v3023_v27 }
 0xdee   :  { %v3037_v4 = vmul.f32 1.442695, %v3030_v2 }
 0xdef   :  { %v3035_v5 = vmul.f32 1.442695, %v3029_v3 }
 0xdf0   :  { %23206 = vpow2.f32 %v3037_v4 }
 0xdf1   :  { %23208 = vpow2.f32 %v3035_v5 }
 0xdf6   :  { %v23203_v6 = vpop.eup %23202 }
 0xdf7   :  { %v23205_v45 = vpop.eup %23204  ;;  %v3042_v49 = vsel %vm718_vm8, %v23203_v6, 0.0 }
 0xdf8   :  { %3043 = vadd.xlane.f32.xlu1 %v3042_v49  ;;  %v3039_v58 = vsel %vm718_vm8, %v23205_v45, 0.0 }
 0xdf9   :  { %3040 = vadd.xlane.f32.xlu0 %v3039_v58 }
 0xdfa   :  { %v23207_v7 = vpop.eup %23206 }
 0xdfb   :  { %v23209_v8 = vpop.eup %23208  ;;  %v3048_v9 = vsel %vm718_vm8, %v23207_v7, 0.0 }
 0xdfc   :  { %3049 = vadd.xlane.f32.xlu1 %v3048_v9  ;;  %v3045_v10 = vsel %vm718_vm8, %v23209_v8, 0.0  ;;  %v3408_v9 = vld [vmem:[#allocation2 + $0x270] sm:$0xff] }
 0xdfd   :  { %3046 = vadd.xlane.f32.xlu0 %v3045_v10 }
 0xe85   :  { %v3044_v63 = vpop.xlane.xlu1 %3043 }
 0xe86   :  { %23210 = vrcp.f32 %v3044_v63  ;;  %v3041_v12 = vpop.xlane.xlu0 %3040  ;;  %v3410_v63 = vld [vmem:[#allocation2 + $0x280] sm:$0xff] }
 0xe87   :  { %23212 = vrcp.f32 %v3041_v12 }
 0xe89   :  { %v3050_v13 = vpop.xlane.xlu1 %3049 }
 0xe8a   :  { %23214 = vrcp.f32 %v3050_v13  ;;  %v3047_v14 = vpop.xlane.xlu0 %3046  ;;  %v3517_v13 = vld [vmem:[#allocation2 + $0x290] sm:$0xff] }
 0xe8b   :  { %23216 = vrcp.f32 %v3047_v14  ;;  %v3518_v14 = vld [vmem:[#allocation2 + $0x298] sm:$0xff] }
 0xe90   :  { %v23211_v15 = vpop.eup %23210 }
 0xe91   :  { %v23213_v16 = vpop.eup %23212  ;;  %v3056_v19 = vmul.f32 %v23211_v15, %v23203_v6  ;;  %v3519_v15 = vld [vmem:[#allocation2 + $0x2a0] sm:$0xff] }
 0xe92   :  { %v3055_v18 = vmul.f32 %v23213_v16, %v23205_v45  ;;  %v22336_v16 = vpack.c.bf16 %v3518_v14, %v3517_v13 }
 0xe94   :  { %v23215_v25 = vpop.eup %23214  ;;  %20644 = vmatprep.mubr.msk.f32.mxu1 %vm718_vm8, %v3055_v18  ;;  %v3520_v18 = vld [vmem:[#allocation2 + $0x2a8] sm:$0xff] }
 0xe95   :  { %v23217_v26 = vpop.eup %23216  ;;  %20645 = vmatmul.mubr.msk.f32.vlgmr.msra.gmra.mrb[40].mxu1 %vm718_vm8, %v3056_v19  ;;  %v3058_v29 = vmul.f32 %v23215_v25, %v23207_v7  ;;  %v22340_v19 = vpack.c.bf16 %v3520_v18, %v3519_v15  ;;  %v3521_v25 = vld [vmem:[#allocation2 + $0x2b0] sm:$0xff] }
 0xe96   :  { %v3057_v28 = vmul.f32 %v23217_v26, %v23209_v8  ;;  %20655 = vmatpush3.msra.mxu1 %v3221_v11  ;;  %v3407_v8 = vld [vmem:[#allocation2 + $0x268] sm:$0xff]  ;;  %v3409_v11 = vld [vmem:[#allocation2 + $0x278] sm:$0xff] }
 0xe97   :  { %v22328_v10 = vpack.c.bf16 %v3408_v9, %v3407_v8  ;;  %v22332_v12 = vpack.c.bf16 %v3410_v63, %v3409_v11  ;;  %v3522_v26 = vld [vmem:[#allocation2 + $0x2b8] sm:$0xff]  ;;  %22337 = vmatprep.subr.bf16.mxu1 %v22336_v16  ;;  %v18867_v8 = vld [vmem:[#allocation2 + $0x2d0] ss:$0 sm:$0xff] }
 0xe98   :  { %20651 = vmatprep.mubr.msk.f32.mxu0 %vm718_vm8, %v3057_v28  ;;  %v22344_v28 = vpack.c.bf16 %v3522_v26, %v3521_v25 }
 0xe99   :  { %20652 = vmatmul.mubr.msk.f32.vlgmr.msra.gmra.mrb[50].mxu0 %vm718_vm8, %v3058_v29  ;;  %22329 = vmatprep.subr.bf16.mxu0 %v22328_v10 }
 0xe9a   :  { %22331 = vmatpush3.bf16.msra.mxu0 %v22328_v10 }
 0xe9b   :  { %22333 = vmatprep.subr.bf16.mxu0 %v22332_v12 }
 0xe9e   :  { %22335 = vmatpush3.bf16.msra.mxu0 %v22332_v12 }
 0xf68   :  { %v20646_v30 = vpop.f32.mrb[40].mxu1 }
 0xf69   :  { %v3131_v31 = vpop.f32.mrb[41].mxu1 }
 0xf6a   :  { %20656 = vmatprep.mubr.msk.f32.mxu1 %vm539_vm6, %v3131_v31 }
 0xf6b   :  { %20657 = vmatmul.mubr.msk.f32.vlgmr.msra.gmra.mrb[22].mxu1 %vm539_vm6, %v20646_v30 }
 0xf6c   :  { %v20653_v32 = vpop.f32.mrb[50].mxu0  ;;  %22339 = vmatpush3.bf16.msra.mxu1 %v22336_v16 }
 0xf6d   :  { %v3212_v33 = vpop.f32.mrb[51].mxu0  ;;  %22341 = vmatprep.subr.bf16.mxu1 %v22340_v19 }
 0xf6e   :  { %20659 = vmatprep.mubr.msk.f32.mxu1 %vm539_vm6, %v3212_v33 }
 0xf6f   :  { %20660 = vmatmul.mubr.msk.f32.gmra.mrb[24].mxu1 %vm539_vm6, %v20653_v32 }
 0xf70   :  { %22343 = vmatpush3.bf16.msra.mxu1 %v22340_v19 }
 0xf71   :  { %22345 = vmatprep.subr.bf16.mxu1 %v22344_v28 }
 0xf74   :  { %22347 = vmatpush3.bf16.msra.mxu1 %v22344_v28 }
0x103e   :  { %v20658_v35 = vpop.f32.mrb[22].mxu1 }
0x103f   :  { %v23096_v38 = vadd.f32 %v20658_v35, %v23764_v20  ;;  %v3300_v39 = vpop.f32.mrb[23].mxu1 }
0x1040   :  { %v23097_v40 = vadd.f32 %v3300_v39, %v23766_v21 }
0x1041   :  { %v3329_v17 = vadd.f32 %v23096_v38, %v18859_v37 }
0x1042   :  { %v3328_v46 = vadd.f32 %v23097_v40, %v18859_v37  ;;  %v20661_v48 = vpop.f32.mrb[24].mxu1 }
0x1043   :  { %v23098_v50 = vadd.f32 %v20661_v48, %v23768_v23  ;;  %v3310_v51 = vpop.f32.mrb[25].mxu1  ;;  %v3333_v52 = vadd.f32 %v3329_v17, %v23595_v36 }
0x1044   :  { %v23099_v53 = vadd.f32 %v3310_v51, %v23770_v24  ;;  %v3332_v55 = vadd.f32 %v3328_v46, %v23593_v34 }
0x1045   :  { %v3331_v56 = vadd.f32 %v23098_v50, %v18859_v37  ;;  %v3341_v57 = vsel %vm253_vm5, %v3333_v52, 0.0  ;;  %v18860_v50 = vld [vmem:[#allocation2 + $0x2d8] ss:$0 sm:$0xff] }
0x1046   :  { %v3330_v59 = vadd.f32 %v23099_v53, %v18859_v37  ;;  %3342 = vadd.xlane.f32.xlu1 %v3341_v57  ;;  %v3338_v20 = vsel %vm253_vm5, %v3332_v55, 0.0 }
0x1047   :  { %3339 = vadd.xlane.f32.xlu0 %v3338_v20  ;;  %v3335_v21 = vadd.f32 %v3331_v56, %v23607_v42 }
0x1048   :  { %v3334_v60 = vadd.f32 %v3330_v59, %v23605_v41 }
0x1049   :  { %v3347_v23 = vsel %vm253_vm5, %v3335_v21, 0.0 }
0x104a   :  { %3348 = vadd.xlane.f32.xlu1 %v3347_v23  ;;  %v3344_v36 = vsel %vm253_vm5, %v3334_v60, 0.0 }
0x104b   :  { %3345 = vadd.xlane.f32.xlu0 %v3344_v36 }
0x10d3   :  { %v3343_v24 = vpop.xlane.xlu1 %3342 }
0x10d4   :  { %v3352_v34 = vmul.f32 0.03125, %v3343_v24  ;;  %v3340_v61 = vpop.xlane.xlu0 %3339 }
0x10d5   :  { %v3351_v62 = vmul.f32 0.03125, %v3340_v61 }
0x10d6   :  { %v23868_v47 = vsub.f32 %v3333_v52, %v3352_v34 }
0x10d7   :  { %v23870_v0 = vsub.f32 %v3332_v55, %v3351_v62  ;;  %v3349_v1 = vpop.xlane.xlu1 %3348  ;;  %v18861_v55 = vld [vmem:[#allocation2 + $0x2e0] ss:$0 sm:$0xff] }
0x10d8   :  { %v3354_v22 = vmul.f32 0.03125, %v3349_v1  ;;  %v3346_v2 = vpop.xlane.xlu0 %3345  ;;  %v3360_v41 = vmul.f32 %v23868_v47, %v23868_v47 }
0x10d9   :  { %v3353_v42 = vmul.f32 0.03125, %v3346_v2  ;;  %v3359_v27 = vmul.f32 %v23870_v0, %v23870_v0 }
0x10da   :  { %v23876_v3 = vsub.f32 %v3335_v21, %v3354_v22  ;;  %v3366_v4 = vsel %vm253_vm5, %v3360_v41, 0.0  ;;  %v18862_v22 = vld [vmem:[#allocation2 + $0x288] ss:$0 sm:$0xff] }
0x10db   :  { %v23879_v5 = vsub.f32 %v3334_v60, %v3353_v42  ;;  %3367 = vadd.xlane.f32.xlu1 %v3366_v4  ;;  %v3363_v6 = vsel %vm253_vm5, %v3359_v27, 0.0 }
0x10dc   :  { %3364 = vadd.xlane.f32.xlu0 %v3363_v6  ;;  %v3362_v45 = vmul.f32 %v23876_v3, %v23876_v3 }
0x10dd   :  { %v3361_v49 = vmul.f32 %v23879_v5, %v23879_v5 }
0x10de   :  { %v3372_v58 = vsel %vm253_vm5, %v3362_v45, 0.0 }
0x10df   :  { %3373 = vadd.xlane.f32.xlu1 %v3372_v58  ;;  %v3369_v7 = vsel %vm253_vm5, %v3361_v49, 0.0 }
0x10e0   :  { %3370 = vadd.xlane.f32.xlu0 %v3369_v7 }
0x1168   :  { %v3368_v29 = vpop.xlane.xlu1 %3367 }
0x1169   :  { %v3376_v30 = vmul.f32 0.03125, %v3368_v29  ;;  %v3365_v31 = vpop.xlane.xlu0 %3364 }
0x116a   :  { %v3375_v32 = vmul.f32 0.03125, %v3365_v31 }
0x116b   :  { %v3380_v33 = vadd.f32 1e-05, %v3376_v30 }
0x116c   :  { %v3379_v35 = vadd.f32 1e-05, %v3375_v32  ;;  %v3374_v37 = vpop.xlane.xlu1 %3373 }
0x116d   :  { %23218 = vrsqrt.f32 %v3380_v33  ;;  %v3378_v38 = vmul.f32 0.03125, %v3374_v37  ;;  %v3371_v39 = vpop.xlane.xlu0 %3370 }
0x116e   :  { %23220 = vrsqrt.f32 %v3379_v35  ;;  %v3377_v40 = vmul.f32 0.03125, %v3371_v39 }
0x116f   :  { %v3382_v17 = vadd.f32 1e-05, %v3378_v38 }
0x1170   :  { %v3381_v46 = vadd.f32 1e-05, %v3377_v40 }
0x1171   :  { %23222 = vrsqrt.f32 %v3382_v17 }
0x1172   :  { %23224 = vrsqrt.f32 %v3381_v46 }
0x1177   :  { %v23219_v48 = vpop.eup %23218 }
0x1178   :  { %v23221_v51 = vpop.eup %23220  ;;  %v3388_v52 = vmul.f32 %v23219_v48, %v23868_v47  ;;  %v3523_v47 = vld [vmem:[#allocation2 + $0x2c0] sm:$0xff] }
0x1179   :  { %v3387_v53 = vmul.f32 %v23221_v51, %v23870_v0  ;;  %v3524_v0 = vld [vmem:[#allocation2 + $0x2c8] sm:$0xff] }
0x117a   :  { %v3396_v56 = vmul.f32 %v18860_v50, %v3388_v52  ;;  %v22348_v1 = vpack.c.bf16 %v3524_v0, %v3523_v47  ;;  %v3904_v47 = vld [vmem:[#allocation2 + $0x348] sm:$0xff] }
0x117b   :  { %v23223_v57 = vpop.eup %23222  ;;  %v3395_v59 = vmul.f32 %v18860_v50, %v3387_v53 }
0x117c   :  { %v23225_v20 = vpop.eup %23224  ;;  %v3390_v21 = vmul.f32 %v23223_v57, %v23876_v3  ;;  %v3404_v36 = vadd.f32 %v18861_v55, %v3396_v56  ;;  %22349 = vmatprep.subr.bf16.mxu1 %v22348_v1 }
0x117d   :  { %v3403_v60 = vadd.f32 %v18861_v55, %v3395_v59  ;;  %v3389_v23 = vmul.f32 %v23225_v20, %v23879_v5  ;;  %22351 = vmatpush3.bf16.msra.mxu1 %v22348_v1  ;;  %v3905_v1 = vld [vmem:[#allocation2 + $0x350] sm:$0xff] }
0x117e   :  { %v3398_v24 = vmul.f32 %v18860_v50, %v3390_v21  ;;  %v3702_v21 = vld [vmem:[#allocation2 + $0x2f8] sm:$0xff] }
0x117f   :  { %20670 = vmatprep.mubr.msk.f32.mxu0 %vm253_vm5, %v3403_v60  ;;  %v3397_v34 = vmul.f32 %v18860_v50, %v3389_v23  ;;  %v3902_v23 = vld [vmem:[#allocation2 + $0x338] sm:$0xff] }
0x1180   :  { %20671 = vmatmul.mubr.msk.f32.vlgmr.msra.gmra.mrb[52].mxu0 %vm253_vm5, %v3404_v36  ;;  %v3406_v62 = vadd.f32 %v18861_v55, %v3398_v24  ;;  %v3903_v24 = vld [vmem:[#allocation2 + $0x340] sm:$0xff] }
0x1181   :  { %v3405_v61 = vadd.f32 %v18861_v55, %v3397_v34  ;;  %v22368_v34 = vpack.c.bf16 %v3903_v24, %v3902_v23  ;;  %v18879_v24 = vld [vmem:[#allocation2 + $0x368] ss:$0 sm:$0xff] }
0x1183   :  { %20673 = vmatprep.mubr.msk.f32.mxu0 %vm253_vm5, %v3405_v61  ;;  %22369 = vmatprep.subr.bf16.mxu1 %v22368_v34 }
0x1184   :  { %20674 = vmatmul.mubr.msk.f32.gmra.mrb[54].mxu0 %vm253_vm5, %v3406_v62 }
0x1253   :  { %v20672_v2 = vpop.f32.mrb[52].mxu0 }
0x1254   :  { %v3500_v41 = vadd.f32 %v20672_v2, %v18862_v22  ;;  %v3494_v42 = vpop.f32.mrb[53].mxu0  ;;  %v3808_v2 = vld [vmem:[#allocation2 + $0x318] sm:$0xff] }
0x1255   :  { %v3495_v27 = vadd.f32 %v18862_v22, %v3494_v42 }
0x1256   :  { %v3514_v5 = vmax.f32 %v3500_v41, 0.0  ;;  %v3809_v41 = vld [vmem:[#allocation2 + $0x320] sm:$0xff] }
0x1257   :  { %v3513_v3 = vmax.f32 %v3495_v27, 0.0  ;;  %v20675_v4 = vpop.f32.mrb[54].mxu0  ;;  %v22360_v42 = vpack.c.bf16 %v3809_v41, %v3808_v2 }
0x1258   :  { %v3510_v6 = vadd.f32 %v20675_v4, %v18862_v22  ;;  %v3504_v45 = vpop.f32.mrb[55].mxu0 }
0x1259   :  { %v3505_v49 = vadd.f32 %v18862_v22, %v3504_v45  ;;  %20692 = vmatprep.mubr.msk.f32.mxu1 %vm3530_vm9, %v3513_v3  ;;  %v22372_v22 = vpack.c.bf16 %v3905_v1, %v3904_v47 }
0x125a   :  { %20693 = vmatmul.mubr.msk.f32.vlgmr.msra.gmra.mrb[42].mxu1 %vm3530_vm9, %v3514_v5  ;;  %v3516_v7 = vmax.f32 %v3510_v6, 0.0 }
0x125b   :  { %v3515_v58 = vmax.f32 %v3505_v49, 0.0  ;;  %22371 = vmatpush3.bf16.msra.mxu1 %v22368_v34 }
0x125c   :  { %22373 = vmatprep.subr.bf16.mxu1 %v22372_v22 }
0x125d   :  { %20695 = vmatprep.mubr.msk.f32.mxu1 %vm3530_vm9, %v3515_v58 }
0x125e   :  { %20696 = vmatmul.mubr.msk.f32.gmra.mrb[44].mxu1 %vm3530_vm9, %v3516_v7 }
0x125f   :  { %22375 = vmatpush3.bf16.msra.mxu1 %v22372_v22 }
0x132d   :  { %v20694_v9 = vpop.f32.mrb[42].mxu1 }
0x132e   :  { %v3615_v10 = vadd.f32 %v20694_v9, %v18867_v8  ;;  %v3609_v11 = vpop.f32.mrb[43].mxu1 }
0x132f   :  { %v3610_v63 = vadd.f32 %v18867_v8, %v3609_v11 }
0x1330   :  { %v3629_v12 = vadd.f32 %v3615_v10, %v3404_v36 }
0x1331   :  { %v20697_v13 = vpop.f32.mrb[44].mxu1  ;;  %v3628_v14 = vadd.f32 %v3610_v63, %v3403_v60  ;;  %v3703_v60 = vld [vmem:[#allocation2 + $0x300] sm:$0xff]  ;;  %v18872_v63 = vld [vmem:[#allocation2 + $0x2e8] ss:$0 sm:$0xff] }
0x1332   :  { %v3625_v15 = vadd.f32 %v20697_v13, %v18867_v8  ;;  %v3619_v16 = vpop.f32.mrb[45].mxu1  ;;  %v3637_v18 = vsel %vm253_vm5, %v3629_v12, 0.0  ;;  %v22352_v36 = vpack.c.bf16 %v3703_v60, %v3702_v21 }
0x1333   :  { %v3620_v19 = vadd.f32 %v18867_v8, %v3619_v16  ;;  %3638 = vadd.xlane.f32.xlu1 %v3637_v18  ;;  %v3634_v25 = vsel %vm253_vm5, %v3628_v14, 0.0 }
0x1334   :  { %3635 = vadd.xlane.f32.xlu0 %v3634_v25  ;;  %v3631_v26 = vadd.f32 %v3625_v15, %v3406_v62  ;;  %22353 = vmatprep.subr.bf16.mxu0 %v22352_v36  ;;  %v3705_v62 = vld [vmem:[#allocation2 + $0x310] sm:$0xff]  ;;  %v3810_v25 = vld [vmem:[#allocation2 + $0x328] sm:$0xff] }
0x1335   :  { %v3630_v28 = vadd.f32 %v3620_v19, %v3405_v61  ;;  %22355 = vmatpush3.bf16.msra.mxu0 %v22352_v36  ;;  %v3704_v61 = vld [vmem:[#allocation2 + $0x308] sm:$0xff]  ;;  %v18873_v15 = vld [vmem:[#allocation2 + $0x2f0] ss:$0 sm:$0xff] }
0x1336   :  { %v3643_v29 = vsel %vm253_vm5, %v3631_v26, 0.0  ;;  %v22356_v0 = vpack.c.bf16 %v3705_v62, %v3704_v61 }
0x1337   :  { %3644 = vadd.xlane.f32.xlu1 %v3643_v29  ;;  %v3640_v30 = vsel %vm253_vm5, %v3630_v28, 0.0 }
0x1338   :  { %3641 = vadd.xlane.f32.xlu0 %v3640_v30  ;;  %22357 = vmatprep.subr.bf16.mxu0 %v22356_v0 }
0x1339   :  { %22359 = vmatpush3.bf16.msra.mxu0 %v22356_v0 }
0x133a   :  { %22361 = vmatprep.subr.bf16.mxu0 %v22360_v42 }
0x13c0   :  { %v3639_v31 = vpop.xlane.xlu1 %3638 }
0x13c1   :  { %v3647_v32 = vmul.f32 0.03125, %v3639_v31  ;;  %v3636_v33 = vpop.xlane.xlu0 %3635 }
0x13c2   :  { %v3646_v35 = vmul.f32 0.03125, %v3636_v33 }
0x13c3   :  { %v23904_v37 = vsub.f32 %v3629_v12, %v3647_v32 }
0x13c4   :  { %v23906_v38 = vsub.f32 %v3628_v14, %v3646_v35  ;;  %v3645_v39 = vpop.xlane.xlu1 %3644 }
0x13c5   :  { %v3649_v40 = vmul.f32 0.03125, %v3645_v39  ;;  %v3642_v17 = vpop.xlane.xlu0 %3641  ;;  %v3655_v46 = vmul.f32 %v23904_v37, %v23904_v37 }
0x13c6   :  { %v3648_v48 = vmul.f32 0.03125, %v3642_v17  ;;  %v3654_v50 = vmul.f32 %v23906_v38, %v23906_v38  ;;  %v18874_v17 = vld [vmem:[#allocation2 + $0x360] ss:$0 sm:$0xff] }
0x13c7   :  { %v23912_v51 = vsub.f32 %v3631_v26, %v3649_v40  ;;  %v3661_v52 = vsel %vm253_vm5, %v3655_v46, 0.0  ;;  %v3811_v26 = vld [vmem:[#allocation2 + $0x330] sm:$0xff] }
0x13c8   :  { %v23915_v53 = vsub.f32 %v3630_v28, %v3648_v48  ;;  %3662 = vadd.xlane.f32.xlu1 %v3661_v52  ;;  %v3658_v55 = vsel %vm253_vm5, %v3654_v50, 0.0  ;;  %v22364_v35 = vpack.c.bf16 %v3811_v26, %v3810_v25  ;;  %v18884_v40 = vld [vmem:[#allocation2 + $0x370] ss:$0 sm:$0xff] }
0x13c9   :  { %3659 = vadd.xlane.f32.xlu0 %v3658_v55  ;;  %v3657_v56 = vmul.f32 %v23912_v51, %v23912_v51 }
0x13ca   :  { %v3656_v57 = vmul.f32 %v23915_v53, %v23915_v53 }
0x13cb   :  { %v3667_v59 = vsel %vm253_vm5, %v3657_v56, 0.0 }
0x13cc   :  { %3668 = vadd.xlane.f32.xlu1 %v3667_v59  ;;  %v3664_v20 = vsel %vm253_vm5, %v3656_v57, 0.0 }
0x13cd   :  { %3665 = vadd.xlane.f32.xlu0 %v3664_v20 }
0x1455   :  { %v3663_v27 = vpop.xlane.xlu1 %3662 }
0x1456   :  { %v3671_v3 = vmul.f32 0.03125, %v3663_v27  ;;  %v3660_v4 = vpop.xlane.xlu0 %3659 }
0x1457   :  { %v3670_v5 = vmul.f32 0.03125, %v3660_v4 }
0x1458   :  { %v3675_v6 = vadd.f32 1e-05, %v3671_v3 }
0x1459   :  { %v3674_v45 = vadd.f32 1e-05, %v3670_v5  ;;  %v3669_v49 = vpop.xlane.xlu1 %3668 }
0x145a   :  { %23226 = vrsqrt.f32 %v3675_v6  ;;  %v3673_v58 = vmul.f32 0.03125, %v3669_v49  ;;  %v3666_v7 = vpop.xlane.xlu0 %3665 }
0x145b   :  { %23228 = vrsqrt.f32 %v3674_v45  ;;  %v3672_v8 = vmul.f32 0.03125, %v3666_v7 }
0x145c   :  { %v3677_v9 = vadd.f32 1e-05, %v3673_v58 }
0x145d   :  { %v3676_v10 = vadd.f32 1e-05, %v3672_v8 }
0x145e   :  { %23230 = vrsqrt.f32 %v3677_v9 }
0x145f   :  { %23232 = vrsqrt.f32 %v3676_v10 }
0x1464   :  { %v23227_v11 = vpop.eup %23226 }
0x1465   :  { %v23229_v12 = vpop.eup %23228  ;;  %v3683_v13 = vmul.f32 %v23227_v11, %v23904_v37 }
0x1466   :  { %v3682_v14 = vmul.f32 %v23229_v12, %v23906_v38 }
0x1467   :  { %v3691_v16 = vmul.f32 %v18872_v63, %v3683_v13 }
0x1468   :  { %v23231_v18 = vpop.eup %23230  ;;  %v3690_v19 = vmul.f32 %v18872_v63, %v3682_v14 }
0x1469   :  { %v23233_v28 = vpop.eup %23232  ;;  %v3685_v29 = vmul.f32 %v23231_v18, %v23912_v51  ;;  %v23930_v32 = vadd.f32 %v18873_v15, %v3691_v16 }
0x146a   :  { %v23927_v30 = vadd.f32 %v18873_v15, %v3690_v19  ;;  %v3684_v31 = vmul.f32 %v23233_v28, %v23915_v53 }
0x146b   :  { %v3693_v33 = vmul.f32 %v18872_v63, %v3685_v29 }
0x146c   :  { %v3692_v37 = vmul.f32 %v18872_v63, %v3684_v31  ;;  %20706 = vmatprep.mubr.msk.f32.mxu0 %vm253_vm5, %v23927_v30  ;;  %20734 = vmatprep.mubr.msk.f32.mxu1 %vm253_vm5, %v23927_v30 }
0x146d   :  { %20707 = vmatmul.mubr.msk.f32.vlgmr.msra.gmra.mrb[56].mxu0 %vm253_vm5, %v23930_v32  ;;  %20735 = vmatmul.mubr.msk.f32.vlgmr.msra.gmra.mrb[46].mxu1 %vm253_vm5, %v23930_v32  ;;  %v23942_v39 = vadd.f32 %v18873_v15, %v3693_v33 }
0x146e   :  { %v23940_v38 = vadd.f32 %v18873_v15, %v3692_v37  ;;  %22363 = vmatpush3.bf16.msra.mxu0 %v22360_v42 }
0x146f   :  { %22365 = vmatprep.subr.bf16.mxu0 %v22364_v35 }
0x1470   :  { %20709 = vmatprep.mubr.msk.f32.mxu0 %vm253_vm5, %v23940_v38  ;;  %20737 = vmatprep.mubr.msk.f32.mxu1 %vm253_vm5, %v23940_v38 }
0x1471   :  { %20710 = vmatmul.mubr.msk.f32.gmra.mrb[58].mxu0 %vm253_vm5, %v23942_v39  ;;  %20738 = vmatmul.mubr.msk.f32.gmra.mrb[48].mxu1 %vm253_vm5, %v23942_v39 }
0x1472   :  { %22367 = vmatpush3.bf16.msra.mxu0 %v22364_v35  ;;  %20720 = vmatprep.mubr.msk.f32.mxu0 %vm253_vm5, %v23927_v30 }
0x1475   :  { %20721 = vmatmul.mubr.msk.f32.vlgmr.msra.gmra.mrb[60].mxu0 %vm253_vm5, %v23930_v32 }
0x1476   :  { %20723 = vmatprep.mubr.msk.f32.mxu0 %vm253_vm5, %v23940_v38 }
0x1479   :  { %20724 = vmatmul.mubr.msk.f32.gmra.mrb[62].mxu0 %vm253_vm5, %v23942_v39 }
0x1540   :  { %v20708_v46 = vpop.f32.mrb[56].mxu0  ;;  %v20736_v48 = vpop.f32.mrb[46].mxu1 }
0x1541   :  { %v3983_v50 = vadd.f32 %v20736_v48, %v18884_v40  ;;  %v3789_v51 = vpop.f32.mrb[57].mxu0  ;;  %v3977_v52 = vpop.f32.mrb[47].mxu1  ;;  %v3795_v3 = vadd.f32 %v20708_v46, %v18874_v17 }
0x1542   :  { %v3790_v53 = vadd.f32 %v18874_v17, %v3789_v51  ;;  %v3978_v55 = vadd.f32 %v18884_v40, %v3977_v52  ;;  %v4475_v52 = vld [vmem:[#allocation2 + $0x398] sm:$0xff] }
0x1544   :  { %v22388_v56 = vpack.c.bf16 %v3983_v50, %v3978_v55  ;;  %v20711_v57 = vpop.f32.mrb[58].mxu0  ;;  %v20739_v59 = vpop.f32.mrb[48].mxu1  ;;  %20744 = vmatprep.mubr.msk.f32.mxu0 %vm539_vm6, %v3790_v53  ;;  %v4476_v53 = vld [vmem:[#allocation2 + $0x3a0] sm:$0xff] }
0x1545   :  { %v3993_v20 = vadd.f32 %v20739_v59, %v18884_v40  ;;  %v3799_v21 = vpop.f32.mrb[59].mxu0  ;;  %v3987_v60 = vpop.f32.mrb[49].mxu1  ;;  %v3805_v4 = vadd.f32 %v20711_v57, %v18874_v17  ;;  %v22404_v55 = vpack.c.bf16 %v4476_v53, %v4475_v52  ;;  %v4382_v57 = vld [vmem:[#allocation2 + $0x380] sm:$0xff] }
0x1546   :  { %v3800_v23 = vadd.f32 %v18874_v17, %v3799_v21  ;;  %v3988_v36 = vadd.f32 %v18884_v40, %v3987_v60 }
0x1548   :  { %v22392_v34 = vpack.c.bf16 %v3993_v20, %v3988_v36  ;;  %v20722_v61 = vpop.f32.mrb[60].mxu0  ;;  %20751 = vmatprep.mubr.msk.f32.mxu1 %vm539_vm6, %v3800_v23 }
0x1549   :  { %v3889_v62 = vadd.f32 %v20722_v61, %v18879_v24  ;;  %v3883_v47 = vpop.f32.mrb[61].mxu0 }
0x154a   :  { %v3884_v0 = vadd.f32 %v18879_v24, %v3883_v47 }
0x154c   :  { %v22376_v1 = vpack.c.bf16 %v3889_v62, %v3884_v0  ;;  %v20725_v22 = vpop.f32.mrb[62].mxu0 }
0x154d   :  { %v3899_v2 = vadd.f32 %v20725_v22, %v18879_v24  ;;  %v3893_v41 = vpop.f32.mrb[63].mxu0  ;;  %v4383_v22 = vld [vmem:[#allocation2 + $0x388] sm:$0xff] }
0x154e   :  { %v3894_v42 = vadd.f32 %v18879_v24, %v3893_v41  ;;  %22378 = vmatprep.subr.msk.bf16.mxu0 %vm23631_vm7, %v22376_v1  ;;  %v4477_v24 = vld [vmem:[#allocation2 + $0x3a8] sm:$0xff] }
0x154f   :  { %22381 = vmatpush3.bf16.xpose.msk.msra.mxu0 %vm23631_vm7, %v22376_v1 }
0x1550   :  { %v22382_v27 = vpack.c.bf16 %v3899_v2, %v3894_v42  ;;  %22389 = vmatprep.subr.bf16.mxu0 %v22388_v56  ;;  %v4384_v2 = vld [vmem:[#allocation2 + $0x390] sm:$0xff] }
0x1552   :  { %22384 = vmatprep.subr.msk.bf16.mxu1 %vm23631_vm7, %v22382_v27 }
0x1553   :  { %22387 = vmatpush3.bf16.xpose.msk.msra.mxu1 %vm23631_vm7, %v22382_v27 }
0x1554   :  { %22393 = vmatprep.subr.bf16.mxu1 %v22392_v34 }
0x1556   :  { %20745 = vmatmul.mubr.msk.f32.vlgmr.msra.gmra.mrb[64].mxu0 %vm539_vm6, %v3795_v3  ;;  %v22400_v3 = vpack.c.bf16 %v4384_v2, %v4383_v22 }
0x1557   :  { %22391 = vmatpush3.bf16.msra.mxu0 %v22388_v56  ;;  %v4381_v56 = vld [vmem:[#allocation2 + $0x378] sm:$0xff] }
0x1558   :  { %v22396_v59 = vpack.c.bf16 %v4382_v57, %v4381_v56 }
0x155a   :  { %20752 = vmatmul.mubr.msk.f32.vlgmr.msra.gmra.mrb[50].mxu1 %vm539_vm6, %v3805_v4  ;;  %22397 = vmatprep.subr.bf16.mxu0 %v22396_v59  ;;  %v4569_v4 = vld [vmem:[#allocation2 + $0x3b8] sm:$0xff] }
0x155b   :  { %22395 = vmatpush3.bf16.msra.mxu1 %v22392_v34  ;;  %v4478_v34 = vld [vmem:[#allocation2 + $0x3b0] sm:$0xff] }
0x155c   :  { %22405 = vmatprep.subr.bf16.mxu1 %v22404_v55  ;;  %v22408_v0 = vpack.c.bf16 %v4478_v34, %v4477_v24 }
0x1629   :  { %v20746_v5 = vpop.f32.mrb[64].mxu0 }
0x162a   :  { %v4074_v6 = vpop.f32.mrb[65].mxu0  ;;  %v4171_v8 = vmul.f32 0.35355338, %v20746_v5  ;;  %v4570_v5 = vld [vmem:[#allocation2 + $0x3c0] sm:$0xff] }
0x162b   :  { %v4170_v10 = vmul.f32 0.35355338, %v4074_v6  ;;  %v22412_v6 = vpack.c.bf16 %v4570_v5, %v4569_v4 }
0x162c   :  { %v4177_v63 = vsel %vm718_vm8, %v4171_v8, -inf }
0x162d   :  { %v20753_v45 = vpop.f32.mrb[50].mxu1  ;;  %v4174_v12 = vsel %vm718_vm8, %v4170_v10, -inf }
0x162e   :  { %v4173_v49 = vmul.f32 0.35355338, %v20753_v45  ;;  %v4161_v58 = vpop.f32.mrb[51].mxu1  ;;  %v4571_v45 = vld [vmem:[#allocation2 + $0x3c8] sm:$0xff] }
0x162f   :  { %v4172_v7 = vmul.f32 0.35355338, %v4161_v58 }
0x1630   :  { %v4183_v9 = vsel %vm718_vm8, %v4173_v49, -inf }
0x1631   :  { %4184 = vmax.xlane.f32.xlu1 %v4183_v9  ;;  %v4180_v11 = vsel %vm718_vm8, %v4172_v7, -inf }
0x1632   :  { %4181 = vmax.xlane.f32.xlu0 %v4180_v11  ;;  %v18906_v11 = vld [vmem:[#allocation2 + $0x3e8] ss:$0 sm:$0xff] }
0x1635   :  { %4178 = vmax.xlane.f32.xlu1 %v4177_v63 }
0x1636   :  { %4175 = vmax.xlane.f32.xlu0 %v4174_v12 }
0x16be   :  { %v4185_v13 = vpop.xlane.xlu1 %4184 }
0x16bf   :  { %v4189_v14 = vsub.f32 %v4173_v49, %v4185_v13  ;;  %v4182_v15 = vpop.xlane.xlu0 %4181  ;;  %v4572_v49 = vld [vmem:[#allocation2 + $0x3d0] sm:$0xff] }
0x16c0   :  { %v4188_v16 = vsub.f32 %v4172_v7, %v4182_v15  ;;  %v22416_v58 = vpack.c.bf16 %v4572_v49, %v4571_v45  ;;  %v18901_v15 = vld [vmem:[#allocation2 + $0x3e0] ss:$0 sm:$0xff] }
0x16c1   :  { %v4196_v18 = vmul.f32 1.442695, %v4189_v14 }
0x16c2   :  { %v4194_v19 = vmul.f32 1.442695, %v4188_v16  ;;  %v4179_v25 = vpop.xlane.xlu1 %4178 }
0x16c3   :  { %23234 = vpow2.f32 %v4196_v18  ;;  %v4187_v26 = vsub.f32 %v4171_v8, %v4179_v25  ;;  %v4176_v28 = vpop.xlane.xlu0 %4175 }
0x16c4   :  { %23236 = vpow2.f32 %v4194_v19  ;;  %v4186_v29 = vsub.f32 %v4170_v10, %v4176_v28 }
0x16c5   :  { %v4192_v31 = vmul.f32 1.442695, %v4187_v26 }
0x16c6   :  { %v4190_v33 = vmul.f32 1.442695, %v4186_v29 }
0x16c7   :  { %23238 = vpow2.f32 %v4192_v31 }
0x16c8   :  { %23240 = vpow2.f32 %v4190_v33 }
0x16cd   :  { %v23235_v35 = vpop.eup %23234 }
0x16ce   :  { %v23237_v37 = vpop.eup %23236  ;;  %v4207_v40 = vsel %vm718_vm8, %v23235_v35, 0.0 }
0x16cf   :  { %4208 = vadd.xlane.f32.xlu1 %v4207_v40  ;;  %v4204_v17 = vsel %vm718_vm8, %v23237_v37, 0.0 }
0x16d0   :  { %4205 = vadd.xlane.f32.xlu0 %v4204_v17  ;;  %v18911_v17 = vld [vmem:[#allocation2 + $0x3f0] ss:$0 sm:$0xff] }
0x16d1   :  { %v23239_v46 = vpop.eup %23238 }
0x16d2   :  { %v23241_v48 = vpop.eup %23240  ;;  %v4201_v50 = vsel %vm718_vm8, %v23239_v46, 0.0 }
0x16d3   :  { %4202 = vadd.xlane.f32.xlu1 %v4201_v50  ;;  %v4198_v51 = vsel %vm718_vm8, %v23241_v48, 0.0 }
0x16d4   :  { %4199 = vadd.xlane.f32.xlu0 %v4198_v51 }
0x175c   :  { %v4209_v20 = vpop.xlane.xlu1 %4208 }
0x175d   :  { %23242 = vrcp.f32 %v4209_v20  ;;  %v4206_v21 = vpop.xlane.xlu0 %4205 }
0x175e   :  { %23244 = vrcp.f32 %v4206_v21 }
0x1760   :  { %v4203_v60 = vpop.xlane.xlu1 %4202 }
0x1761   :  { %23246 = vrcp.f32 %v4203_v60  ;;  %v4200_v23 = vpop.xlane.xlu0 %4199 }
0x1762   :  { %23248 = vrcp.f32 %v4200_v23 }
0x1767   :  { %v23243_v36 = vpop.eup %23242 }
0x1768   :  { %v23245_v61 = vpop.eup %23244  ;;  %v4217_v47 = vmul.f32 %v23243_v36, %v23235_v35 }
0x1769   :  { %v4216_v62 = vmul.f32 %v23245_v61, %v23237_v37 }
0x176b   :  { %v23247_v1 = vpop.eup %23246  ;;  %20765 = vmatprep.mubr.msk.f32.mxu1 %vm718_vm8, %v4216_v62 }
0x176c   :  { %v23249_v41 = vpop.eup %23248  ;;  %20766 = vmatmul.mubr.msk.f32.vlgmr.msra.gmra.mrb[52].mxu1 %vm718_vm8, %v4217_v47  ;;  %v4215_v27 = vmul.f32 %v23247_v1, %v23239_v46 }
0x176d   :  { %22407 = vmatpush3.bf16.msra.mxu1 %v22404_v55  ;;  %20790 = vmatprep.mubr.msk.f32.mxu1 %vm253_vm5, %v23927_v30  ;;  %v4214_v42 = vmul.f32 %v23249_v41, %v23241_v48 }
0x176e   :  { %22409 = vmatprep.subr.bf16.mxu1 %v22408_v0 }
0x176f   :  { %20758 = vmatprep.mubr.msk.f32.mxu0 %vm718_vm8, %v4214_v42 }
0x1770   :  { %20759 = vmatmul.mubr.msk.f32.vlgmr.msra.gmra.mrb[66].mxu0 %vm718_vm8, %v4215_v27 }
0x1771   :  { %22399 = vmatpush3.bf16.msra.mxu0 %v22396_v59  ;;  %22411 = vmatpush3.bf16.msra.mxu1 %v22408_v0 }
0x1772   :  { %20776 = vmatprep.mubr.msk.f32.mxu0 %vm253_vm5, %v23927_v30  ;;  %22401 = vmatprep.subr.bf16.mxu0 %v22400_v3 }
0x1774   :  { %20791 = vmatmul.mubr.msk.f32.vlgmr.msra.gmra.mrb[54].mxu1 %vm253_vm5, %v23930_v32 }
0x1775   :  { %22403 = vmatpush3.bf16.msra.mxu0 %v22400_v3  ;;  %20793 = vmatprep.mubr.msk.f32.mxu1 %vm253_vm5, %v23940_v38 }
0x1776   :  { %22413 = vmatprep.subr.bf16.mxu0 %v22412_v6 }
0x1778   :  { %20777 = vmatmul.mubr.msk.f32.vlgmr.msra.gmra.mrb[68].mxu0 %vm253_vm5, %v23930_v32  ;;  %20794 = vmatmul.mubr.msk.f32.gmra.mrb[56].mxu1 %vm253_vm5, %v23942_v39 }
0x1779   :  { %20779 = vmatprep.mubr.msk.f32.mxu0 %vm253_vm5, %v23940_v38  ;;  %22415 = vmatpush3.bf16.msra.mxu0 %v22412_v6 }
0x177a   :  { %22417 = vmatprep.subr.bf16.mxu0 %v22416_v58 }
0x177c   :  { %20780 = vmatmul.mubr.msk.f32.gmra.mrb[70].mxu0 %vm253_vm5, %v23942_v39 }
0x177d   :  { %22419 = vmatpush3.bf16.msra.mxu0 %v22416_v58  ;;  %20804 = vmatprep.mubr.msk.f32.mxu0 %vm253_vm5, %v23927_v30 }
0x1780   :  { %20805 = vmatmul.mubr.msk.f32.vlgmr.msra.gmra.mrb[72].mxu0 %vm253_vm5, %v23930_v32 }
0x1781   :  { %20807 = vmatprep.mubr.msk.f32.mxu0 %vm253_vm5, %v23940_v38 }
0x1784   :  { %20808 = vmatmul.mubr.msk.f32.gmra.mrb[74].mxu0 %vm253_vm5, %v23942_v39 }
0x183f   :  { %v24008_v7 = vpop.f32.mrb[52].mxu1 }
0x1840   :  { %v24010_v8 = vpop.f32.mrb[53].mxu1 }
0x1843   :  { %v24012_v9 = vpop.f32.mrb[66].mxu0 }
0x1844   :  { %v24014_v10 = vpop.f32.mrb[67].mxu0 }
0x1847   :  { %v20792_v63 = vpop.f32.mrb[54].mxu1 }
0x1848   :  { %v4556_v12 = vadd.f32 %v20792_v63, %v18906_v11  ;;  %v4550_v13 = vpop.f32.mrb[55].mxu1 }
0x1849   :  { %v4551_v14 = vadd.f32 %v18906_v11, %v4550_v13 }
0x184b   :  { %v22420_v16 = vpack.c.bf16 %v4556_v12, %v4551_v14  ;;  %v20778_v18 = vpop.f32.mrb[68].mxu0  ;;  %v20795_v19 = vpop.f32.mrb[56].mxu1 }
0x184c   :  { %v4566_v25 = vadd.f32 %v20795_v19, %v18906_v11  ;;  %v4456_v26 = vpop.f32.mrb[69].mxu0  ;;  %v4560_v28 = vpop.f32.mrb[57].mxu1  ;;  %v4462_v46 = vadd.f32 %v20778_v18, %v18901_v15 }
0x184d   :  { %v4457_v29 = vadd.f32 %v18901_v15, %v4456_v26  ;;  %v4561_v31 = vadd.f32 %v18906_v11, %v4560_v28  ;;  %22422 = vmatprep.subr.msk.bf16.mxu1 %vm23631_vm7, %v22420_v16 }
0x184e   :  { %22425 = vmatpush3.bf16.xpose.msk.msra.mxu1 %vm23631_vm7, %v22420_v16 }
0x184f   :  { %v22426_v33 = vpack.c.bf16 %v4566_v25, %v4561_v31  ;;  %v20781_v35 = vpop.f32.mrb[70].mxu0  ;;  %20814 = vmatprep.mubr.msk.f32.mxu1 %vm539_vm6, %v4457_v29 }
0x1850   :  { %v4466_v37 = vpop.f32.mrb[71].mxu0  ;;  %v4472_v53 = vadd.f32 %v20781_v35, %v18901_v15  ;;  %v5242_v35 = vld [vmem:[#allocation2 + $0x3f8] sm:$0xff] }
0x1851   :  { %v4467_v40 = vadd.f32 %v18901_v15, %v4466_v37  ;;  %22428 = vmatprep.subr.msk.bf16.mxu0 %vm23631_vm7, %v22426_v33  ;;  %v5243_v37 = vld [vmem:[#allocation2 + $0x400] sm:$0xff] }
0x1852   :  { %22431 = vmatpush3.bf16.xpose.msk.msra.mxu0 %vm23631_vm7, %v22426_v33 }
0x1853   :  { %v20806_v48 = vpop.f32.mrb[72].mxu0  ;;  %20821 = vmatprep.mubr.msk.f32.mxu0 %vm539_vm6, %v4467_v40 }
0x1854   :  { %v4650_v50 = vadd.f32 %v20806_v48, %v18911_v17  ;;  %v4644_v51 = vpop.f32.mrb[73].mxu0  ;;  %v22440_v48 = vpack.c.bf16 %v5243_v37, %v5242_v35 }
0x1855   :  { %v4645_v52 = vadd.f32 %v18911_v17, %v4644_v51  ;;  %20815 = vmatmul.mubr.msk.f32.vlgmr.msra.gmra.mrb[58].mxu1 %vm539_vm6, %v4462_v46  ;;  %v5244_v51 = vld [vmem:[#allocation2 + $0x408] sm:$0xff] }
0x1857   :  { %v22432_v55 = vpack.c.bf16 %v4650_v50, %v4645_v52  ;;  %v20809_v56 = vpop.f32.mrb[74].mxu0  ;;  %v5245_v52 = vld [vmem:[#allocation2 + $0x410] sm:$0xff] }
0x1858   :  { %v4660_v57 = vadd.f32 %v20809_v56, %v18911_v17  ;;  %v4654_v59 = vpop.f32.mrb[75].mxu0 }
0x1859   :  { %v4655_v20 = vadd.f32 %v18911_v17, %v4654_v59  ;;  %20822 = vmatmul.mubr.msk.f32.vlgmr.msra.gmra.mrb[76].mxu0 %vm539_vm6, %v4472_v53  ;;  %22433 = vmatprep.subr.bf16.mxu1 %v22432_v55  ;;  %v5336_v59 = vld [vmem:[#allocation2 + $0x418] sm:$0xff] }
0x185a   :  { %22435 = vmatpush3.bf16.msra.mxu1 %v22432_v55 }
0x185b   :  { %v24028_v21 = vpack.c.bf16 %v4660_v57, %v4655_v20  ;;  %v22444_v57 = vpack.c.bf16 %v5245_v52, %v5244_v51  ;;  %v5337_v20 = vld [vmem:[#allocation2 + $0x420] sm:$0xff] }
0x185d   :  { %22437 = vmatprep.subr.bf16.mxu1 %v24028_v21 }
0x1928   :  { %v20816_v60 = vpop.f32.mrb[58].mxu1 }
0x1929   :  { %v4838_v23 = vmul.f32 0.35355338, %v20816_v60  ;;  %v4741_v36 = vpop.f32.mrb[59].mxu1  ;;  %v22448_v60 = vpack.c.bf16 %v5337_v20, %v5336_v59 }
0x192a   :  { %v4837_v24 = vmul.f32 0.35355338, %v4741_v36  ;;  %v5339_v36 = vld [vmem:[#allocation2 + $0x430] sm:$0xff] }
0x192b   :  { %v4844_v34 = vsel %vm718_vm8, %v4838_v23, -inf }
0x192c   :  { %v20823_v61 = vpop.f32.mrb[76].mxu0  ;;  %4845 = vmax.xlane.f32.xlu1 %v4844_v34  ;;  %v4841_v62 = vsel %vm718_vm8, %v4837_v24, -inf  ;;  %v4380_v34 = vld [vmem:[#allocation2 + $0x358] sm:$0xff] }
0x192d   :  { %v4840_v47 = vmul.f32 0.35355338, %v20823_v61  ;;  %v4828_v0 = vpop.f32.mrb[77].mxu0  ;;  %4842 = vmax.xlane.f32.xlu0 %v4841_v62  ;;  %v5430_v61 = vld [vmem:[#allocation2 + $0x438] sm:$0xff]  ;;  %v5431_v62 = vld [vmem:[#allocation2 + $0x440] sm:$0xff] }
0x192e   :  { %v4839_v1 = vmul.f32 0.35355338, %v4828_v0 }
0x192f   :  { %v4850_v22 = vsel %vm718_vm8, %v4840_v47, -inf }
0x1930   :  { %4851 = vmax.xlane.f32.xlu1 %v4850_v22  ;;  %v4847_v2 = vsel %vm718_vm8, %v4839_v1, -inf }
0x1931   :  { %4848 = vmax.xlane.f32.xlu0 %v4847_v2 }
0x19b9   :  { %v4846_v41 = vpop.xlane.xlu1 %4845 }
0x19ba   :  { %v4854_v42 = vsub.f32 %v4838_v23, %v4846_v41  ;;  %v4843_v27 = vpop.xlane.xlu0 %4842  ;;  %v5338_v23 = vld [vmem:[#allocation2 + $0x428] sm:$0xff] }
0x19bb   :  { %v4853_v3 = vsub.f32 %v4837_v24, %v4843_v27  ;;  %v5047_v24 = vld [vmem:[#allocation2 + $0x3d8] sm:$0xff]  ;;  %v5432_v41 = vld [vmem:[#allocation2 + $0x448] sm:$0xff] }
0x19bc   :  { %v4859_v4 = vmul.f32 1.442695, %v4854_v42  ;;  %20838 = vmatprep.subr.mxu0 %v5047_v24  ;;  %v5433_v42 = vld [vmem:[#allocation2 + $0x450] sm:$0xff] }
0x19bd   :  { %v4857_v5 = vmul.f32 1.442695, %v4853_v3  ;;  %v4852_v6 = vpop.xlane.xlu1 %4851  ;;  %20839 = vmatpush3.msra.mxu0 %v5047_v24  ;;  %v22460_v27 = vpack.c.bf16 %v5433_v42, %v5432_v41  ;;  %v18936_v3 = vld [vmem:[#allocation2 + $0x460] ss:$0 sm:$0xff] }
0x19be   :  { %23250 = vpow2.f32 %v4859_v4  ;;  %v4856_v45 = vsub.f32 %v4840_v47, %v4852_v6  ;;  %v4849_v49 = vpop.xlane.xlu0 %4848  ;;  %20846 = vmatprep.subr.mxu0 %v4380_v34 }
0x19bf   :  { %23252 = vpow2.f32 %v4857_v5  ;;  %v4855_v58 = vsub.f32 %v4839_v1, %v4849_v49  ;;  %v22456_v1 = vpack.c.bf16 %v5431_v62, %v5430_v61 }
0x19c0   :  { %v4863_v11 = vmul.f32 1.442695, %v4856_v45 }
0x19c1   :  { %v4861_v63 = vmul.f32 1.442695, %v4855_v58 }
0x19c2   :  { %23254 = vpow2.f32 %v4863_v11 }
0x19c3   :  { %23256 = vpow2.f32 %v4861_v63 }
0x19c8   :  { %v23251_v12 = vpop.eup %23250 }
0x19c9   :  { %v23253_v13 = vpop.eup %23252  ;;  %v4868_v14 = vsel %vm718_vm8, %v23251_v12, 0.0 }
0x19ca   :  { %4869 = vadd.xlane.f32.xlu1 %v4868_v14  ;;  %v4865_v15 = vsel %vm718_vm8, %v23253_v13, 0.0 }
0x19cb   :  { %4866 = vadd.xlane.f32.xlu0 %v4865_v15 }
0x19cc   :  { %v23255_v16 = vpop.eup %23254 }
0x19cd   :  { %v23257_v18 = vpop.eup %23256  ;;  %v4874_v19 = vsel %vm718_vm8, %v23255_v16, 0.0 }
0x19ce   :  { %4875 = vadd.xlane.f32.xlu1 %v4874_v19  ;;  %v4871_v25 = vsel %vm718_vm8, %v23257_v18, 0.0 }
0x19cf   :  { %4872 = vadd.xlane.f32.xlu0 %v4871_v25  ;;  %v18946_v25 = vld [vmem:[#allocation2 + $0x470] ss:$0 sm:$0xff] }
0x1a57   :  { %v4870_v26 = vpop.xlane.xlu1 %4869 }
0x1a58   :  { %23258 = vrcp.f32 %v4870_v26  ;;  %v4867_v28 = vpop.xlane.xlu0 %4866 }
0x1a59   :  { %23260 = vrcp.f32 %v4867_v28 }
0x1a5b   :  { %v4876_v29 = vpop.xlane.xlu1 %4875 }
0x1a5c   :  { %23262 = vrcp.f32 %v4876_v29  ;;  %v4873_v31 = vpop.xlane.xlu0 %4872 }
0x1a5d   :  { %23264 = vrcp.f32 %v4873_v31 }
0x1a62   :  { %v23259_v33 = vpop.eup %23258 }
0x1a63   :  { %v23261_v40 = vpop.eup %23260  ;;  %v4882_v46 = vmul.f32 %v23259_v33, %v23251_v12 }
0x1a64   :  { %v4881_v17 = vmul.f32 %v23261_v40, %v23253_v13 }
0x1a66   :  { %v23263_v50 = vpop.eup %23262  ;;  %20828 = vmatprep.mubr.msk.f32.mxu1 %vm718_vm8, %v4881_v17 }
0x1a67   :  { %v23265_v53 = vpop.eup %23264  ;;  %20829 = vmatmul.mubr.msk.f32.vlgmr.msra.gmra.mrb[60].mxu1 %vm718_vm8, %v4882_v46  ;;  %v4884_v56 = vmul.f32 %v23263_v50, %v23255_v16 }
0x1a68   :  { %22439 = vmatpush3.bf16.msra.mxu1 %v24028_v21  ;;  %v4883_v55 = vmul.f32 %v23265_v53, %v23257_v18  ;;  %v22452_v21 = vpack.c.bf16 %v5339_v36, %v5338_v23 }
0x1a69   :  { %22441 = vmatprep.subr.bf16.mxu1 %v22440_v48 }
0x1a6a   :  { %20835 = vmatprep.mubr.msk.f32.mxu1 %vm718_vm8, %v4883_v55 }
0x1a6b   :  { %20836 = vmatmul.mubr.msk.f32.vlgmr.msra.gmra.mrb[62].mxu1 %vm718_vm8, %v4884_v56 }
0x1a6c   :  { %22443 = vmatpush3.bf16.msra.mxu1 %v22440_v48  ;;  %20862 = vmatprep.mubr.msk.f32.mxu1 %vm253_vm5, %v23927_v30 }
0x1a6d   :  { %22445 = vmatprep.subr.bf16.mxu1 %v22444_v57 }
0x1a70   :  { %22447 = vmatpush3.bf16.msra.mxu1 %v22444_v57 }
0x1a71   :  { %22449 = vmatprep.subr.bf16.mxu1 %v22448_v60 }
0x1a73   :  { %20863 = vmatmul.mubr.msk.f32.vlgmr.msra.gmra.mrb[64].mxu1 %vm253_vm5, %v23930_v32 }
0x1a74   :  { %20865 = vmatprep.mubr.msk.f32.mxu1 %vm253_vm5, %v23940_v38  ;;  %22451 = vmatpush3.bf16.msra.mxu1 %v22448_v60 }
0x1a75   :  { %22453 = vmatprep.subr.bf16.mxu1 %v22452_v21 }
0x1a77   :  { %20866 = vmatmul.mubr.msk.f32.gmra.mrb[66].mxu1 %vm253_vm5, %v23942_v39 }
0x1a78   :  { %22455 = vmatpush3.bf16.msra.mxu1 %v22452_v21  ;;  %20876 = vmatprep.mubr.msk.f32.mxu1 %vm253_vm5, %v23927_v30 }
0x1a7b   :  { %20877 = vmatmul.mubr.msk.f32.vlgmr.msra.gmra.mrb[68].mxu1 %vm253_vm5, %v23930_v32 }
0x1a7c   :  { %20879 = vmatprep.mubr.msk.f32.mxu1 %vm253_vm5, %v23940_v38 }
0x1a7f   :  { %20880 = vmatmul.mubr.msk.f32.gmra.mrb[70].mxu1 %vm253_vm5, %v23942_v39 }
0x1b3a   :  { %v20830_v47 = vpop.f32.mrb[60].mxu1 }
0x1b3b   :  { %v4957_v0 = vpop.f32.mrb[61].mxu1 }
0x1b3c   :  { %20840 = vmatprep.mubr.msk.f32.mxu0 %vm539_vm6, %v4957_v0 }
0x1b3d   :  { %20841 = vmatmul.mubr.msk.f32.vlgmr.msra.gmra.mrb[78].mxu0 %vm539_vm6, %v20830_v47 }
0x1b3e   :  { %v20837_v22 = vpop.f32.mrb[62].mxu1  ;;  %20847 = vmatpush3.msra.mxu0 %v4380_v34 }
0x1b3f   :  { %v5038_v2 = vpop.f32.mrb[63].mxu1  ;;  %22457 = vmatprep.subr.bf16.mxu0 %v22456_v1 }
0x1b40   :  { %20843 = vmatprep.mubr.msk.f32.mxu0 %vm539_vm6, %v5038_v2 }
0x1b41   :  { %20844 = vmatmul.mubr.msk.f32.gmra.mrb[80].mxu0 %vm539_vm6, %v20837_v22 }
0x1b42   :  { %20848 = vmatprep.mubr.msk.f32.mxu0 %vm539_vm6, %v24014_v10 }
0x1b45   :  { %20849 = vmatmul.mubr.msk.f32.vlgmr.msra.gmra.mrb[78].mxu0 %vm539_vm6, %v24012_v9  ;;  %v18941_v9 = vld [vmem:[#allocation2 + $0x468] ss:$0 sm:$0xff] }
0x1b46   :  { %v20864_v4 = vpop.f32.mrb[64].mxu1  ;;  %20851 = vmatprep.mubr.msk.f32.mxu0 %vm539_vm6, %v24010_v8  ;;  %22459 = vmatpush3.bf16.msra.mxu0 %v22456_v1 }
0x1b47   :  { %v5317_v5 = vpop.f32.mrb[65].mxu1  ;;  %22461 = vmatprep.subr.bf16.mxu0 %v22460_v27  ;;  %v5323_v18 = vadd.f32 %v20864_v4, %v18936_v3 }
0x1b48   :  { %v5318_v6 = vadd.f32 %v18936_v3, %v5317_v5 }
0x1b49   :  { %20852 = vmatmul.mubr.msk.f32.gmra.mrb[80].mxu0 %vm539_vm6, %v24008_v7 }
0x1b4a   :  { %v20867_v45 = vpop.f32.mrb[66].mxu1  ;;  %20900 = vmatprep.mubr.msk.f32.mxu1 %vm539_vm6, %v5318_v6  ;;  %22463 = vmatpush3.bf16.msra.mxu0 %v22460_v27 }
0x1b4b   :  { %v5327_v10 = vpop.f32.mrb[67].mxu1  ;;  %20890 = vmatprep.mubr.msk.f32.mxu0 %vm253_vm5, %v23927_v30  ;;  %v5333_v19 = vadd.f32 %v20867_v45, %v18936_v3 }
0x1b4c   :  { %v5328_v11 = vadd.f32 %v18936_v3, %v5327_v10 }
0x1b4d   :  { %20891 = vmatmul.mubr.msk.f32.vlgmr.msra.gmra.mrb[82].mxu0 %vm253_vm5, %v23930_v32 }
0x1b4e   :  { %v20878_v8 = vpop.f32.mrb[68].mxu1  ;;  %20893 = vmatprep.mubr.msk.f32.mxu0 %vm253_vm5, %v23940_v38 }
0x1b4f   :  { %v5417_v49 = vadd.f32 %v20878_v8, %v18941_v9  ;;  %v5411_v58 = vpop.f32.mrb[69].mxu1  ;;  %v6011_v8 = vld [vmem:[#allocation2 + $0x480] sm:$0xff] }
0x1b50   :  { %v5412_v7 = vadd.f32 %v18941_v9, %v5411_v58  ;;  %v5908_v58 = vld [vmem:[#allocation2 + $0x458] sm:$0xff] }
0x1b51   :  { %20894 = vmatmul.mubr.msk.f32.gmra.mrb[84].mxu0 %vm253_vm5, %v23942_v39 }
0x1b52   :  { %v22464_v63 = vpack.c.bf16 %v5417_v49, %v5412_v7  ;;  %v20881_v12 = vpop.f32.mrb[70].mxu1  ;;  %20907 = vmatprep.mubr.msk.f32.mxu0 %vm539_vm6, %v5328_v11 }
0x1b53   :  { %v5427_v13 = vadd.f32 %v20881_v12, %v18941_v9  ;;  %v5421_v14 = vpop.f32.mrb[71].mxu1 }
0x1b54   :  { %v5422_v15 = vadd.f32 %v18941_v9, %v5421_v14  ;;  %22466 = vmatprep.subr.msk.bf16.mxu1 %vm23631_vm7, %v22464_v63  ;;  %v6010_v9 = vld [vmem:[#allocation2 + $0x478] sm:$0xff]  ;;  %v6012_v14 = vld [vmem:[#allocation2 + $0x488] sm:$0xff] }
0x1b55   :  { %22469 = vmatpush3.bf16.xpose.msk.msra.mxu1 %vm23631_vm7, %v22464_v63  ;;  %v22484_v49 = vpack.c.bf16 %v6011_v8, %v6010_v9 }
0x1b56   :  { %v22470_v16 = vpack.c.bf16 %v5427_v13, %v5422_v15  ;;  %v6013_v15 = vld [vmem:[#allocation2 + $0x490] sm:$0xff] }
0x1b58   :  { %22472 = vmatprep.subr.msk.bf16.mxu0 %vm23631_vm7, %v22470_v16 }
0x1b59   :  { %22475 = vmatpush3.bf16.xpose.msk.msra.mxu0 %vm23631_vm7, %v22470_v16 }
0x1b5c   :  { %20901 = vmatmul.mubr.msk.f32.vlgmr.msra.gmra.mrb[72].mxu1 %vm539_vm6, %v5323_v18 }
0x1b60   :  { %20908 = vmatmul.mubr.msk.f32.vlgmr.msra.gmra.mrb[86].mxu0 %vm539_vm6, %v5333_v19 }
0x1c20   :  { %v20892_v26 = vpop.f32.mrb[82].mxu0 }
0x1c21   :  { %v5511_v28 = vadd.f32 %v20892_v26, %v18946_v25  ;;  %v5505_v29 = vpop.f32.mrb[83].mxu0 }
0x1c22   :  { %v5506_v31 = vadd.f32 %v18946_v25, %v5505_v29  ;;  %v6199_v29 = vld [vmem:[#allocation2 + $0x4c0] sm:$0xff] }
0x1c24   :  { %v22476_v33 = vpack.c.bf16 %v5511_v28, %v5506_v31  ;;  %v20895_v35 = vpop.f32.mrb[84].mxu0  ;;  %v6198_v28 = vld [vmem:[#allocation2 + $0x4b8] sm:$0xff] }
0x1c25   :  { %v5521_v37 = vadd.f32 %v20895_v35, %v18946_v25  ;;  %v5515_v40 = vpop.f32.mrb[85].mxu0 }
0x1c26   :  { %v5516_v17 = vadd.f32 %v18946_v25, %v5515_v40  ;;  %22477 = vmatprep.subr.bf16.mxu1 %v22476_v33  ;;  %v22488_v25 = vpack.c.bf16 %v6013_v15, %v6012_v14  ;;  %v6200_v40 = vld [vmem:[#allocation2 + $0x4c8] sm:$0xff] }
0x1c27   :  { %22479 = vmatpush3.bf16.msra.mxu1 %v22476_v33 }
0x1c28   :  { %v22480_v46 = vpack.c.bf16 %v5521_v37, %v5516_v17  ;;  %22485 = vmatprep.subr.bf16.mxu1 %v22484_v49  ;;  %v22500_v37 = vpack.c.bf16 %v6199_v29, %v6198_v28  ;;  %v6201_v17 = vld [vmem:[#allocation2 + $0x4d0] sm:$0xff] }
0x1c2a   :  { %22481 = vmatprep.subr.bf16.mxu0 %v22480_v46 }
0x1c2b   :  { %22483 = vmatpush3.bf16.msra.mxu0 %v22480_v46  ;;  %v22504_v46 = vpack.c.bf16 %v6201_v17, %v6200_v40 }
0x1c2c   :  { %20924 = vmatprep.subr.mxu0 %v5908_v58 }
0x1c2f   :  { %v20902_v48 = vpop.f32.mrb[72].mxu1 }
0x1c30   :  { %v5699_v50 = vmul.f32 0.35355338, %v20902_v48  ;;  %v5602_v51 = vpop.f32.mrb[73].mxu1  ;;  %v6104_v48 = vld [vmem:[#allocation2 + $0x498] sm:$0xff] }
0x1c31   :  { %v5698_v52 = vmul.f32 0.35355338, %v5602_v51 }
0x1c32   :  { %v5705_v53 = vsel %vm718_vm8, %v5699_v50, -inf }
0x1c33   :  { %5706 = vmax.xlane.f32.xlu1 %v5705_v53  ;;  %v20909_v55 = vpop.f32.mrb[86].mxu0  ;;  %v5702_v56 = vsel %vm718_vm8, %v5698_v52, -inf  ;;  %v6107_v53 = vld [vmem:[#allocation2 + $0x4b0] sm:$0xff] }
0x1c34   :  { %v5701_v57 = vmul.f32 0.35355338, %v20909_v55  ;;  %5703 = vmax.xlane.f32.xlu0 %v5702_v56  ;;  %v5689_v59 = vpop.f32.mrb[87].mxu0 }
0x1c35   :  { %v5700_v20 = vmul.f32 0.35355338, %v5689_v59 }
0x1c36   :  { %v5711_v60 = vsel %vm718_vm8, %v5701_v57, -inf }
0x1c37   :  { %5712 = vmax.xlane.f32.xlu1 %v5711_v60  ;;  %v5708_v23 = vsel %vm718_vm8, %v5700_v20, -inf  ;;  %v18967_v60 = vld [vmem:[#allocation2 + $0x4e0] ss:$0 sm:$0xff] }
0x1c38   :  { %5709 = vmax.xlane.f32.xlu0 %v5708_v23 }
0x1cc0   :  { %v5707_v36 = vpop.xlane.xlu1 %5706 }
0x1cc1   :  { %v5715_v21 = vsub.f32 %v5699_v50, %v5707_v36  ;;  %v5704_v24 = vpop.xlane.xlu0 %5703  ;;  %v6105_v50 = vld [vmem:[#allocation2 + $0x4a0] sm:$0xff] }
0x1cc2   :  { %v5714_v34 = vsub.f32 %v5698_v52, %v5704_v24  ;;  %v22492_v51 = vpack.c.bf16 %v6105_v50, %v6104_v48  ;;  %v6106_v52 = vld [vmem:[#allocation2 + $0x4a8] sm:$0xff] }
0x1cc3   :  { %v5720_v61 = vmul.f32 1.442695, %v5715_v21 }
0x1cc4   :  { %v5718_v62 = vmul.f32 1.442695, %v5714_v34  ;;  %v5713_v47 = vpop.xlane.xlu1 %5712 }
0x1cc5   :  { %23266 = vpow2.f32 %v5720_v61  ;;  %v5717_v0 = vsub.f32 %v5701_v57, %v5713_v47  ;;  %v5710_v1 = vpop.xlane.xlu0 %5709  ;;  %v22496_v57 = vpack.c.bf16 %v6107_v53, %v6106_v52 }
0x1cc6   :  { %23268 = vpow2.f32 %v5718_v62  ;;  %v5716_v22 = vsub.f32 %v5700_v20, %v5710_v1 }
0x1cc7   :  { %v5724_v2 = vmul.f32 1.442695, %v5717_v0  ;;  %v18977_v0 = vld [vmem:[#allocation2 + $0x4f0] ss:$0 sm:$0xff] }
0x1cc8   :  { %v5722_v41 = vmul.f32 1.442695, %v5716_v22 }
0x1cc9   :  { %23270 = vpow2.f32 %v5724_v2 }
0x1cca   :  { %23272 = vpow2.f32 %v5722_v41 }
0x1ccf   :  { %v23267_v42 = vpop.eup %23266 }
0x1cd0   :  { %v23269_v27 = vpop.eup %23268  ;;  %v5729_v3 = vsel %vm718_vm8, %v23267_v42, 0.0 }
0x1cd1   :  { %5730 = vadd.xlane.f32.xlu1 %v5729_v3  ;;  %v5726_v4 = vsel %vm718_vm8, %v23269_v27, 0.0 }
0x1cd2   :  { %5727 = vadd.xlane.f32.xlu0 %v5726_v4 }
0x1cd3   :  { %v23271_v5 = vpop.eup %23270 }
0x1cd4   :  { %v23273_v6 = vpop.eup %23272  ;;  %v5735_v45 = vsel %vm718_vm8, %v23271_v5, 0.0 }
0x1cd5   :  { %5736 = vadd.xlane.f32.xlu1 %v5735_v45  ;;  %v5732_v10 = vsel %vm718_vm8, %v23273_v6, 0.0  ;;  %v18972_v45 = vld [vmem:[#allocation2 + $0x4e8] ss:$0 sm:$0xff] }
0x1cd6   :  { %5733 = vadd.xlane.f32.xlu0 %v5732_v10 }
0x1d5e   :  { %v5731_v11 = vpop.xlane.xlu1 %5730 }
0x1d5f   :  { %23274 = vrcp.f32 %v5731_v11  ;;  %v5728_v7 = vpop.xlane.xlu0 %5727 }
0x1d60   :  { %23276 = vrcp.f32 %v5728_v7 }
0x1d62   :  { %v5737_v63 = vpop.xlane.xlu1 %5736 }
0x1d63   :  { %23278 = vrcp.f32 %v5737_v63  ;;  %v5734_v12 = vpop.xlane.xlu0 %5733 }
0x1d64   :  { %23280 = vrcp.f32 %v5734_v12 }
0x1d69   :  { %v23275_v13 = vpop.eup %23274 }
0x1d6a   :  { %v23277_v16 = vpop.eup %23276  ;;  %v5743_v19 = vmul.f32 %v23275_v13, %v23267_v42 }
0x1d6b   :  { %v5742_v18 = vmul.f32 %v23277_v16, %v23269_v27 }
0x1d6d   :  { %v23279_v26 = vpop.eup %23278  ;;  %20914 = vmatprep.mubr.msk.f32.mxu1 %vm718_vm8, %v5742_v18 }
0x1d6e   :  { %v23281_v31 = vpop.eup %23280  ;;  %20915 = vmatmul.mubr.msk.f32.vlgmr.msra.gmra.mrb[74].mxu1 %vm718_vm8, %v5743_v19  ;;  %v5745_v35 = vmul.f32 %v23279_v26, %v23271_v5 }
0x1d6f   :  { %22487 = vmatpush3.bf16.msra.mxu1 %v22484_v49  ;;  %20940 = vmatprep.mubr.msk.f32.mxu1 %vm253_vm5, %v23927_v30  ;;  %v5744_v33 = vmul.f32 %v23281_v31, %v23273_v6 }
0x1d70   :  { %22489 = vmatprep.subr.bf16.mxu1 %v22488_v25 }
0x1d71   :  { %20921 = vmatprep.mubr.msk.f32.mxu0 %vm718_vm8, %v5744_v33 }
0x1d72   :  { %20922 = vmatmul.mubr.msk.f32.vlgmr.msra.gmra.mrb[88].mxu0 %vm718_vm8, %v5745_v35 }
0x1d73   :  { %22491 = vmatpush3.bf16.msra.mxu1 %v22488_v25  ;;  %20925 = vmatpush3.msra.mxu0 %v5908_v58 }
0x1d74   :  { %22501 = vmatprep.subr.bf16.mxu1 %v22500_v37  ;;  %22493 = vmatprep.subr.bf16.mxu0 %v22492_v51 }
0x1d76   :  { %20941 = vmatmul.mubr.msk.f32.vlgmr.msra.gmra.mrb[76].mxu1 %vm253_vm5, %v23930_v32 }
0x1d77   :  { %20943 = vmatprep.mubr.msk.f32.mxu1 %vm253_vm5, %v23940_v38  ;;  %22503 = vmatpush3.bf16.msra.mxu1 %v22500_v37 }
0x1d78   :  { %22505 = vmatprep.subr.bf16.mxu1 %v22504_v46 }
0x1d7a   :  { %20944 = vmatmul.mubr.msk.f32.gmra.mrb[78].mxu1 %vm253_vm5, %v23942_v39 }
0x1d7b   :  { %22507 = vmatpush3.bf16.msra.mxu1 %v22504_v46  ;;  %20968 = vmatprep.mubr.msk.f32.mxu1 %vm253_vm5, %v23927_v30 }
0x1d7e   :  { %20969 = vmatmul.mubr.msk.f32.vlgmr.msra.gmra.mrb[80].mxu1 %vm253_vm5, %v23930_v32 }
0x1d7f   :  { %20971 = vmatprep.mubr.msk.f32.mxu1 %vm253_vm5, %v23940_v38 }
0x1d82   :  { %20972 = vmatmul.mubr.msk.f32.gmra.mrb[82].mxu1 %vm253_vm5, %v23942_v39 }
0x1e41   :  { %v20916_v55 = vpop.f32.mrb[74].mxu1 }
0x1e42   :  { %v5818_v56 = vpop.f32.mrb[75].mxu1 }
0x1e43   :  { %20926 = vmatprep.mubr.msk.f32.mxu0 %vm539_vm6, %v5818_v56 }
0x1e44   :  { %20927 = vmatmul.mubr.msk.f32.vlgmr.msra.gmra.mrb[78].mxu0 %vm539_vm6, %v20916_v55 }
0x1e45   :  { %v20923_v59 = vpop.f32.mrb[88].mxu0  ;;  %22495 = vmatpush3.bf16.msra.mxu0 %v22492_v51 }
0x1e46   :  { %v5899_v20 = vpop.f32.mrb[89].mxu0  ;;  %22497 = vmatprep.subr.bf16.mxu0 %v22496_v57 }
0x1e47   :  { %20929 = vmatprep.mubr.msk.f32.mxu0 %vm539_vm6, %v5899_v20 }
0x1e48   :  { %20930 = vmatmul.mubr.msk.f32.gmra.mrb[80].mxu0 %vm539_vm6, %v20923_v59 }
0x1e49   :  { %v20942_v23 = vpop.f32.mrb[76].mxu1  ;;  %22499 = vmatpush3.bf16.msra.mxu0 %v22496_v57  ;;  %20954 = vmatprep.mubr.msk.f32.mxu0 %vm253_vm5, %v23927_v30 }
0x1e4a   :  { %v6091_v36 = vadd.f32 %v20942_v23, %v18967_v60  ;;  %v6085_v21 = vpop.f32.mrb[77].mxu1 }
0x1e4b   :  { %v6086_v62 = vadd.f32 %v18967_v60, %v6085_v21 }
0x1e4c   :  { %20955 = vmatmul.mubr.msk.f32.vlgmr.msra.gmra.mrb[90].mxu0 %vm253_vm5, %v23930_v32 }
0x1e4d   :  { %v20945_v24 = vpop.f32.mrb[78].mxu1  ;;  %20957 = vmatprep.mubr.msk.f32.mxu0 %vm253_vm5, %v23940_v38 }
0x1e4e   :  { %v6101_v34 = vadd.f32 %v20945_v24, %v18967_v60  ;;  %v6095_v61 = vpop.f32.mrb[79].mxu1 }
0x1e4f   :  { %v6096_v47 = vadd.f32 %v18967_v60, %v6095_v61  ;;  %v6676_v61 = vld [vmem:[#allocation2 + $0x4d8] sm:$0xff] }
0x1e50   :  { %20958 = vmatmul.mubr.msk.f32.gmra.mrb[92].mxu0 %vm253_vm5, %v23942_v39 }
0x1e51   :  { %v20970_v1 = vpop.f32.mrb[80].mxu1  ;;  %20985 = vmatprep.mubr.msk.f32.mxu1 %vm539_vm6, %v6096_v47  ;;  %20978 = vmatprep.mubr.msk.f32.mxu0 %vm539_vm6, %v6086_v62 }
0x1e52   :  { %v6279_v22 = vadd.f32 %v20970_v1, %v18977_v0  ;;  %v6273_v2 = vpop.f32.mrb[81].mxu1 }
0x1e53   :  { %v6274_v41 = vadd.f32 %v18977_v0, %v6273_v2 }
0x1e55   :  { %v22520_v42 = vpack.c.bf16 %v6279_v22, %v6274_v41  ;;  %v20973_v27 = vpop.f32.mrb[82].mxu1 }
0x1e56   :  { %v6289_v3 = vadd.f32 %v20973_v27, %v18977_v0  ;;  %v6283_v4 = vpop.f32.mrb[83].mxu1 }
0x1e57   :  { %v6284_v5 = vadd.f32 %v18977_v0, %v6283_v4 }
0x1e59   :  { %v22524_v6 = vpack.c.bf16 %v6289_v3, %v6284_v5 }
0x1f1f   :  { %v20956_v10 = vpop.f32.mrb[90].mxu0 }
0x1f20   :  { %v6185_v9 = vadd.f32 %v20956_v10, %v18972_v45  ;;  %v6179_v8 = vpop.f32.mrb[91].mxu0 }
0x1f21   :  { %v6180_v49 = vadd.f32 %v18972_v45, %v6179_v8  ;;  %v18998_v8 = vld [vmem:[#allocation2 + $0x4f8] ss:$0 sm:$0xff] }
0x1f23   :  { %v22508_v58 = vpack.c.bf16 %v6185_v9, %v6180_v49  ;;  %v20959_v11 = vpop.f32.mrb[92].mxu0 }
0x1f24   :  { %v6195_v7 = vadd.f32 %v20959_v11, %v18972_v45  ;;  %v6189_v63 = vpop.f32.mrb[93].mxu0 }
0x1f25   :  { %v6190_v12 = vadd.f32 %v18972_v45, %v6189_v63  ;;  %22510 = vmatprep.subr.msk.bf16.mxu0 %vm23631_vm7, %v22508_v58 }
0x1f26   :  { %22513 = vmatpush3.bf16.xpose.msk.msra.mxu0 %vm23631_vm7, %v22508_v58 }
0x1f27   :  { %v22514_v13 = vpack.c.bf16 %v6195_v7, %v6190_v12  ;;  %22521 = vmatprep.subr.bf16.mxu0 %v22520_v42 }
0x1f29   :  { %22516 = vmatprep.subr.msk.bf16.mxu1 %vm23631_vm7, %v22514_v13 }
0x1f2a   :  { %22519 = vmatpush3.bf16.xpose.msk.msra.mxu1 %vm23631_vm7, %v22514_v13 }
0x1f2b   :  { %22525 = vmatprep.subr.bf16.mxu1 %v22524_v6 }
0x1f2d   :  { %20979 = vmatmul.mubr.msk.f32.vlgmr.msra.gmra.mrb[94].mxu0 %vm539_vm6, %v6091_v36 }
0x1f2e   :  { %22523 = vmatpush3.bf16.msra.mxu0 %v22520_v42 }
0x1f2f   :  { %21002 = vmatprep.subr.mxu0 %v6676_v61 }
0x1f31   :  { %20986 = vmatmul.mubr.msk.f32.vlgmr.msra.gmra.mrb[84].mxu1 %vm539_vm6, %v6101_v34 }
0x1f32   :  { %22527 = vmatpush3.bf16.msra.mxu1 %v22524_v6 }
0x2000   :  { %v20980_v14 = vpop.f32.mrb[94].mxu0 }
0x2001   :  { %v6467_v15 = vmul.f32 0.35355338, %v20980_v14  ;;  %v6370_v16 = vpop.f32.mrb[95].mxu0 }
0x2002   :  { %v6466_v18 = vmul.f32 0.35355338, %v6370_v16 }
0x2003   :  { %v6473_v19 = vsel %vm718_vm8, %v6467_v15, -inf }
0x2004   :  { %v20987_v25 = vpop.f32.mrb[84].mxu1  ;;  %6474 = vmax.xlane.f32.xlu1 %v6473_v19  ;;  %v6470_v26 = vsel %vm718_vm8, %v6466_v18, -inf }
0x2005   :  { %v6469_v28 = vmul.f32 0.35355338, %v20987_v25  ;;  %v6457_v29 = vpop.f32.mrb[85].mxu1  ;;  %6471 = vmax.xlane.f32.xlu0 %v6470_v26 }
0x2006   :  { %v6468_v31 = vmul.f32 0.35355338, %v6457_v29 }
0x2007   :  { %v6479_v33 = vsel %vm718_vm8, %v6469_v28, -inf }
0x2008   :  { %6480 = vmax.xlane.f32.xlu1 %v6479_v33  ;;  %v6476_v35 = vsel %vm718_vm8, %v6468_v31, -inf }
0x2009   :  { %6477 = vmax.xlane.f32.xlu0 %v6476_v35 }
0x2091   :  { %v6475_v37 = vpop.xlane.xlu1 %6474 }
0x2092   :  { %v6483_v40 = vsub.f32 %v6467_v15, %v6475_v37  ;;  %v6472_v17 = vpop.xlane.xlu0 %6471 }
0x2093   :  { %v6482_v46 = vsub.f32 %v6466_v18, %v6472_v17 }
0x2094   :  { %v6488_v48 = vmul.f32 1.442695, %v6483_v40 }
0x2095   :  { %v6486_v50 = vmul.f32 1.442695, %v6482_v46  ;;  %v6481_v51 = vpop.xlane.xlu1 %6480 }
0x2096   :  { %23282 = vpow2.f32 %v6488_v48  ;;  %v6485_v52 = vsub.f32 %v6469_v28, %v6481_v51  ;;  %v6478_v53 = vpop.xlane.xlu0 %6477 }
0x2097   :  { %23284 = vpow2.f32 %v6486_v50  ;;  %v6484_v55 = vsub.f32 %v6468_v31, %v6478_v53 }
0x2098   :  { %v6492_v56 = vmul.f32 1.442695, %v6485_v52 }
0x2099   :  { %v6490_v57 = vmul.f32 1.442695, %v6484_v55 }
0x209a   :  { %23286 = vpow2.f32 %v6492_v56 }
0x209b   :  { %23288 = vpow2.f32 %v6490_v57 }
0x20a0   :  { %v23283_v59 = vpop.eup %23282 }
0x20a1   :  { %v23285_v20 = vpop.eup %23284  ;;  %v6497_v60 = vsel %vm718_vm8, %v23283_v59, 0.0 }
0x20a2   :  { %6498 = vadd.xlane.f32.xlu1 %v6497_v60  ;;  %v6494_v23 = vsel %vm718_vm8, %v23285_v20, 0.0  ;;  %v6862_v60 = vld [vmem:[#allocation2 + $0x508] sm:$0xff] }
0x20a3   :  { %6495 = vadd.xlane.f32.xlu0 %v6494_v23 }
0x20a4   :  { %v23287_v36 = vpop.eup %23286 }
0x20a5   :  { %v23289_v21 = vpop.eup %23288  ;;  %v6503_v24 = vsel %vm718_vm8, %v23287_v36, 0.0 }
0x20a6   :  { %6504 = vadd.xlane.f32.xlu1 %v6503_v24  ;;  %v6500_v34 = vsel %vm718_vm8, %v23289_v21, 0.0 }
0x20a7   :  { %6501 = vadd.xlane.f32.xlu0 %v6500_v34  ;;  %v7225_v34 = vld [vmem:[#allocation2 + $0x5a0] sm:$0xff] }
0x212f   :  { %v6499_v62 = vpop.xlane.xlu1 %6498 }
0x2130   :  { %23290 = vrcp.f32 %v6499_v62  ;;  %v6496_v47 = vpop.xlane.xlu0 %6495 }
0x2131   :  { %23292 = vrcp.f32 %v6496_v47  ;;  %v6971_v47 = vld [vmem:[#allocation2 + $0x528] sm:$0xff] }
0x2133   :  { %v6505_v0 = vpop.xlane.xlu1 %6504 }
0x2134   :  { %23294 = vrcp.f32 %v6505_v0  ;;  %v6502_v1 = vpop.xlane.xlu0 %6501  ;;  %v6972_v0 = vld [vmem:[#allocation2 + $0x530] sm:$0xff] }
0x2135   :  { %23296 = vrcp.f32 %v6502_v1  ;;  %v6973_v1 = vld [vmem:[#allocation2 + $0x538] sm:$0xff] }
0x213a   :  { %v23291_v22 = vpop.eup %23290 }
0x213b   :  { %v23293_v2 = vpop.eup %23292  ;;  %v6511_v42 = vmul.f32 %v23291_v22, %v23283_v59  ;;  %v22536_v22 = vpack.c.bf16 %v6972_v0, %v6971_v47 }
0x213c   :  { %v6510_v41 = vmul.f32 %v23293_v2, %v23285_v20  ;;  %v6861_v20 = vld [vmem:[#allocation2 + $0x500] sm:$0xff] }
0x213d   :  { %v22528_v23 = vpack.c.bf16 %v6862_v60, %v6861_v20  ;;  %v6974_v2 = vld [vmem:[#allocation2 + $0x540] sm:$0xff]  ;;  %v6977_v20 = vld [vmem:[#allocation2 + $0x558] sm:$0xff] }
0x213e   :  { %v23295_v27 = vpop.eup %23294  ;;  %20992 = vmatprep.mubr.msk.f32.mxu0 %vm718_vm8, %v6510_v41  ;;  %v22540_v41 = vpack.c.bf16 %v6974_v2, %v6973_v1  ;;  %v6978_v60 = vld [vmem:[#allocation2 + $0x560] sm:$0xff]  ;;  %v7402_v2 = vld [vmem:[#allocation2 + $0x5f8] sm:$0xff] }
0x213f   :  { %v23297_v3 = vpop.eup %23296  ;;  %20993 = vmatmul.mubr.msk.f32.vlgmr.msra.gmra.mrb[96].mxu0 %vm718_vm8, %v6511_v42  ;;  %v6513_v5 = vmul.f32 %v23295_v27, %v23287_v36  ;;  %22529 = vmatprep.subr.bf16.mxu1 %v22528_v23  ;;  %v6863_v36 = vld [vmem:[#allocation2 + $0x510] sm:$0xff]  ;;  %v6975_v42 = vld [vmem:[#allocation2 + $0x548] sm:$0xff] }
0x2140   :  { %v6512_v4 = vmul.f32 %v23297_v3, %v23289_v21  ;;  %21003 = vmatpush3.msra.mxu0 %v6676_v61  ;;  %v6864_v21 = vld [vmem:[#allocation2 + $0x518] sm:$0xff]  ;;  %v7226_v61 = vld [vmem:[#allocation2 + $0x5a8] sm:$0xff]  ;;  %v6976_v27 = vld [vmem:[#allocation2 + $0x550] sm:$0xff] }
0x2141   :  { %v22532_v24 = vpack.c.bf16 %v6864_v21, %v6863_v36  ;;  %v22552_v62 = vpack.c.bf16 %v7226_v61, %v7225_v34  ;;  %22537 = vmatprep.subr.bf16.mxu0 %v22536_v22  ;;  %v22544_v3 = vpack.c.bf16 %v6976_v27, %v6975_v42  ;;  %v7399_v36 = vld [vmem:[#allocation2 + $0x5e0] sm:$0xff]  ;;  %v7400_v21 = vld [vmem:[#allocation2 + $0x5e8] sm:$0xff]  ;;  %v23530_v34 = vmov 0.0  }
0x2142   :  { %20999 = vmatprep.mubr.msk.f32.mxu1 %vm718_vm8, %v6512_v4  ;;  %v19001_v61 = vld [vmem:[#allocation2 + $0x520] ss:$0 sm:$0xff] }
0x2143   :  { %21000 = vmatmul.mubr.msk.f32.vlgmr.msra.gmra.mrb[86].mxu1 %vm718_vm8, %v6513_v5 }
0x2144   :  { %22531 = vmatpush3.bf16.msra.mxu1 %v22528_v23  ;;  %v22548_v23 = vpack.c.bf16 %v6978_v60, %v6977_v20 }
0x2145   :  { %22533 = vmatprep.subr.bf16.mxu1 %v22532_v24 }
0x2148   :  { %22535 = vmatpush3.bf16.msra.mxu1 %v22532_v24  ;;  %v22568_v24 = vpack.c.bf16 %v7400_v21, %v7399_v36  ;;  %v7806_v36 = vld [vmem:[#allocation2 + $0x620] sm:$0xff]  ;;  %v7807_v21 = vld [vmem:[#allocation2 + $0x628] sm:$0xff] }
0x2149   :  { %22553 = vmatprep.subr.bf16.mxu1 %v22552_v62 }
0x2212   :  { %v20994_v6 = vpop.f32.mrb[96].mxu0 }
0x2213   :  { %v6586_v45 = vpop.f32.mrb[97].mxu0 }
0x2214   :  { %21004 = vmatprep.mubr.msk.f32.mxu0 %vm539_vm6, %v6586_v45 }
0x2215   :  { %21005 = vmatmul.mubr.msk.f32.vlgmr.msra.gmra.mrb[78].mxu0 %vm539_vm6, %v20994_v6 }
0x2216   :  { %v21001_v10 = vpop.f32.mrb[86].mxu1  ;;  %22539 = vmatpush3.bf16.msra.mxu0 %v22536_v22  ;;  %v7401_v22 = vld [vmem:[#allocation2 + $0x5f0] sm:$0xff] }
0x2217   :  { %v6667_v9 = vpop.f32.mrb[87].mxu1  ;;  %22541 = vmatprep.subr.bf16.mxu0 %v22540_v41 }
0x2218   :  { %21007 = vmatprep.mubr.msk.f32.mxu0 %vm539_vm6, %v6667_v9 }
0x2219   :  { %21008 = vmatmul.mubr.msk.f32.gmra.mrb[80].mxu0 %vm539_vm6, %v21001_v10 }
0x221a   :  { %22543 = vmatpush3.bf16.msra.mxu0 %v22540_v41 }
0x221b   :  { %22545 = vmatprep.subr.bf16.mxu0 %v22544_v3 }
0x221e   :  { %22547 = vmatpush3.bf16.msra.mxu0 %v22544_v3 }
0x221f   :  { %22549 = vmatprep.subr.bf16.mxu0 %v22548_v23 }
0x2222   :  { %22551 = vmatpush3.bf16.msra.mxu0 %v22548_v23 }
0x2223   :  { %22569 = vmatprep.subr.bf16.mxu0 %v22568_v24 }
0x22e8   :  { %v21006_v49 = vpop.f32.mrb[78].mxu0 }
0x22e9   :  { %v6784_v58 = vadd.f32 %v21006_v49, %v18998_v8  ;;  %v6755_v11 = vpop.f32.mrb[79].mxu0 }
0x22ea   :  { %v6783_v7 = vadd.f32 %v18998_v8, %v6755_v11 }
0x22eb   :  { %v6788_v63 = vadd.f32 %v6784_v58, %v23930_v32 }
0x22ec   :  { %v21009_v12 = vpop.f32.mrb[80].mxu0  ;;  %v6787_v13 = vadd.f32 %v6783_v7, %v23927_v30 }
0x22ed   :  { %v6786_v14 = vadd.f32 %v21009_v12, %v18998_v8  ;;  %v6765_v15 = vpop.f32.mrb[81].mxu0  ;;  %v6796_v16 = vsel %vm253_vm5, %v6788_v63, 0.0 }
0x22ee   :  { %v6785_v18 = vadd.f32 %v18998_v8, %v6765_v15  ;;  %6797 = vadd.xlane.f32.xlu1 %v6796_v16  ;;  %v6793_v19 = vsel %vm253_vm5, %v6787_v13, 0.0 }
0x22ef   :  { %6794 = vadd.xlane.f32.xlu0 %v6793_v19  ;;  %v6790_v25 = vadd.f32 %v6786_v14, %v23942_v39 }
0x22f0   :  { %v6789_v26 = vadd.f32 %v6785_v18, %v23940_v38  ;;  %v19000_v18 = vld [vmem:[#allocation2 + $0x578] ss:$0 sm:$0xff] }
0x22f1   :  { %v6802_v28 = vsel %vm253_vm5, %v6790_v25, 0.0 }
0x22f2   :  { %6803 = vadd.xlane.f32.xlu1 %v6802_v28  ;;  %v6799_v32 = vsel %vm253_vm5, %v6789_v26, 0.0  ;;  %v7227_v28 = vld [vmem:[#allocation2 + $0x5b0] sm:$0xff] }
0x22f3   :  { %6800 = vadd.xlane.f32.xlu0 %v6799_v32  ;;  %v7228_v32 = vld [vmem:[#allocation2 + $0x5b8] sm:$0xff] }
0x237b   :  { %v6798_v30 = vpop.xlane.xlu1 %6797 }
0x237c   :  { %v6806_v29 = vmul.f32 0.03125, %v6798_v30  ;;  %v6795_v31 = vpop.xlane.xlu0 %6794 }
0x237d   :  { %v6805_v33 = vmul.f32 0.03125, %v6795_v31 }
0x237e   :  { %v24168_v35 = vsub.f32 %v6788_v63, %v6806_v29  ;;  %v18731_v29 = vld [vmem:[#allocation2 + $0x58] ss:$0 sm:$0xff] }
0x237f   :  { %v24170_v37 = vsub.f32 %v6787_v13, %v6805_v33  ;;  %v6804_v40 = vpop.xlane.xlu1 %6803  ;;  %v18999_v13 = vld [vmem:[#allocation2 + $0x570] ss:$0 sm:$0xff] }
0x2380   :  { %v6808_v17 = vmul.f32 0.03125, %v6804_v40  ;;  %v6801_v46 = vpop.xlane.xlu0 %6800  ;;  %v6814_v38 = vmul.f32 %v24168_v35, %v24168_v35 }
0x2381   :  { %v6807_v39 = vmul.f32 0.03125, %v6801_v46  ;;  %v6813_v48 = vmul.f32 %v24170_v37, %v24170_v37  ;;  %v22556_v46 = vpack.c.bf16 %v7228_v32, %v7227_v28 }
0x2382   :  { %v24176_v50 = vsub.f32 %v6790_v25, %v6808_v17  ;;  %v6820_v51 = vsel %vm253_vm5, %v6814_v38, 0.0 }
0x2383   :  { %v24179_v52 = vsub.f32 %v6789_v26, %v6807_v39  ;;  %6821 = vadd.xlane.f32.xlu1 %v6820_v51  ;;  %v6817_v53 = vsel %vm253_vm5, %v6813_v48, 0.0  ;;  %v7315_v39 = vld [vmem:[#allocation2 + $0x5c0] sm:$0xff]  ;;  %v7316_v48 = vld [vmem:[#allocation2 + $0x5c8] sm:$0xff] }
0x2384   :  { %6818 = vadd.xlane.f32.xlu0 %v6817_v53  ;;  %v6816_v55 = vmul.f32 %v24176_v50, %v24176_v50  ;;  %v241_v51 = vld [vmem:[#allocation2 + $0x28] sm:$0xff] }
0x2385   :  { %v6815_v56 = vmul.f32 %v24179_v52, %v24179_v52 }
0x2386   :  { %v6826_v57 = vsel %vm253_vm5, %v6816_v55, 0.0  ;;  %v22560_v55 = vpack.c.bf16 %v7316_v48, %v7315_v39 }
0x2387   :  { %6827 = vadd.xlane.f32.xlu1 %v6826_v57  ;;  %v6823_v59 = vsel %vm253_vm5, %v6815_v56, 0.0  ;;  %v7317_v56 = vld [vmem:[#allocation2 + $0x5d0] sm:$0xff]  ;;  %v7318_v57 = vld [vmem:[#allocation2 + $0x5d8] sm:$0xff] }
0x2388   :  { %6824 = vadd.xlane.f32.xlu0 %v6823_v59 }
0x2410   :  { %v6822_v4 = vpop.xlane.xlu1 %6821 }
0x2411   :  { %v6830_v5 = vmul.f32 0.03125, %v6822_v4  ;;  %v6819_v6 = vpop.xlane.xlu0 %6818 }
0x2412   :  { %v6829_v45 = vmul.f32 0.03125, %v6819_v6 }
0x2413   :  { %v6834_v10 = vadd.f32 1e-05, %v6830_v5  ;;  %v22572_v5 = vpack.c.bf16 %v7402_v2, %v7401_v22  ;;  %v7808_v22 = vld [vmem:[#allocation2 + $0x630] sm:$0xff]  ;;  %v7809_v2 = vld [vmem:[#allocation2 + $0x638] sm:$0xff] }
0x2414   :  { %v6833_v9 = vadd.f32 1e-05, %v6829_v45  ;;  %v6828_v8 = vpop.xlane.xlu1 %6827 }
0x2415   :  { %23298 = vrsqrt.f32 %v6834_v10  ;;  %v6832_v49 = vmul.f32 0.03125, %v6828_v8  ;;  %v6825_v58 = vpop.xlane.xlu0 %6824 }
0x2416   :  { %23300 = vrsqrt.f32 %v6833_v9  ;;  %v6831_v11 = vmul.f32 0.03125, %v6825_v58 }
0x2417   :  { %v6836_v7 = vadd.f32 1e-05, %v6832_v49  ;;  %v19018_v49 = vld [vmem:[#allocation2 + $0x610] ss:$0 sm:$0xff] }
0x2418   :  { %v6835_v63 = vadd.f32 1e-05, %v6831_v11 }
0x2419   :  { %23302 = vrsqrt.f32 %v6836_v7  ;;  %v19015_v7 = vld [vmem:[#allocation2 + $0x608] ss:$0 sm:$0xff] }
0x241a   :  { %23304 = vrsqrt.f32 %v6835_v63 }
0x241f   :  { %v23299_v12 = vpop.eup %23298 }
0x2420   :  { %v23301_v14 = vpop.eup %23300  ;;  %v6842_v15 = vmul.f32 %v23299_v12, %v24168_v35 }
0x2421   :  { %v6841_v16 = vmul.f32 %v23301_v14, %v24170_v37  ;;  %v233_v37 = vadd.f32 %v18731_v29, %v23627_v44 }
0x2422   :  { %v6850_v19 = vmul.f32 %v18999_v13, %v6842_v15 }
0x2423   :  { %v23303_v25 = vpop.eup %23302  ;;  %v6849_v26 = vmul.f32 %v18999_v13, %v6841_v16  ;;  %v24206_v44 = vadd.f32 %v241_v51, %v233_v37 }
0x2424   :  { %v23305_v30 = vpop.eup %23304  ;;  %v6844_v31 = vmul.f32 %v23303_v25, %v24176_v50  ;;  %v24194_v17 = vadd.f32 %v19000_v18, %v6850_v19  ;;  %v19021_v25 = vld [vmem:[#allocation2 + $0x618] ss:$0 sm:$0xff] }
0x2425   :  { %v24191_v33 = vadd.f32 %v19000_v18, %v6849_v26  ;;  %v6843_v40 = vmul.f32 %v23305_v30, %v24179_v52  ;;  %v238_v52 = vadd.f32 %v23625_v43, %v18731_v29  ;;  %v22564_v43 = vpack.c.bf16 %v7318_v57, %v7317_v56 }
0x2426   :  { %v6852_v35 = vmul.f32 %v18999_v13, %v6844_v31 }
0x2427   :  { %21018 = vmatprep.mubr.msk.f32.mxu1 %vm253_vm5, %v24191_v33  ;;  %v6851_v38 = vmul.f32 %v18999_v13, %v6843_v40  ;;  %v24214_v59 = vadd.f32 %v241_v51, %v238_v52 }
0x2428   :  { %21019 = vmatmul.mubr.msk.f32.vlgmr.msra.gmra.mrb[88].mxu1 %vm253_vm5, %v24194_v17  ;;  %v24204_v53 = vadd.f32 %v19000_v18, %v6852_v35 }
0x2429   :  { %22555 = vmatpush3.bf16.msra.mxu1 %v22552_v62  ;;  %v24201_v50 = vadd.f32 %v19000_v18, %v6851_v38 }
0x242a   :  { %22557 = vmatprep.subr.bf16.mxu1 %v22556_v46 }
0x242b   :  { %21021 = vmatprep.mubr.msk.f32.mxu1 %vm253_vm5, %v24201_v50 }
0x242c   :  { %21022 = vmatmul.mubr.msk.f32.gmra.mrb[90].mxu1 %vm253_vm5, %v24204_v53 }
0x242d   :  { %22559 = vmatpush3.bf16.msra.mxu1 %v22556_v46  ;;  %21054 = vmatprep.mubr.msk.f32.mxu1 %vm253_vm5, %v24206_v44 }
0x242e   :  { %22561 = vmatprep.subr.bf16.mxu1 %v22560_v55 }
0x2430   :  { %21055 = vmatmul.mubr.msk.f32.vlgmr.msra.gmra.mrb[92].mxu1 %vm253_vm5, %v24214_v59 }
0x2431   :  { %22563 = vmatpush3.bf16.msra.mxu1 %v22560_v55  ;;  %21065 = vmatprep.mubr.msk.f32.mxu1 %vm253_vm5, %v24206_v44 }
0x2432   :  { %22565 = vmatprep.subr.bf16.mxu1 %v22564_v43 }
0x2435   :  { %22567 = vmatpush3.bf16.msra.mxu1 %v22564_v43 }
0x2436   :  { %21079 = vmatprep.subr.mxu1 %v23530_v34 }
0x2438   :  { %21066 = vmatmul.mubr.msk.f32.vlgmr.msra.gmra.mrb[94].mxu1 %vm253_vm5, %v24214_v59 }
0x2439   :  { %21081 = vmatprep.mubr.msk.f32.mxu1 %vm23531_vm10, %v23530_v34 }
0x24fb   :  { %v21020_v62 = vpop.f32.mrb[88].mxu1 }
0x24fc   :  { %v6954_v47 = vadd.f32 %v21020_v62, %v19001_v61  ;;  %v6948_v0 = vpop.f32.mrb[89].mxu1  ;;  %v7891_v62 = vld [vmem:[#allocation2 + $0x648] sm:$0xff] }
0x24fd   :  { %v6949_v1 = vadd.f32 %v19001_v61, %v6948_v0 }
0x24fe   :  { %v6968_v27 = vmax.f32 %v6954_v47, 0.0 }
0x24ff   :  { %v6967_v41 = vmax.f32 %v6949_v1, 0.0  ;;  %v21023_v42 = vpop.f32.mrb[90].mxu1 }
0x2500   :  { %v6964_v3 = vadd.f32 %v21023_v42, %v19001_v61  ;;  %v6958_v4 = vpop.f32.mrb[91].mxu1  ;;  %v7892_v42 = vld [vmem:[#allocation2 + $0x650] sm:$0xff] }
0x2501   :  { %v6959_v6 = vadd.f32 %v19001_v61, %v6958_v4  ;;  %21040 = vmatprep.mubr.msk.f32.mxu0 %vm3530_vm9, %v6967_v41  ;;  %v7890_v61 = vld [vmem:[#allocation2 + $0x640] sm:$0xff] }
0x2502   :  { %21041 = vmatmul.mubr.msk.f32.vlgmr.msra.gmra.mrb[98].mxu0 %vm3530_vm9, %v6968_v27  ;;  %v6970_v9 = vmax.f32 %v6964_v3, 0.0  ;;  %v22584_v47 = vpack.c.bf16 %v7891_v62, %v7890_v61  ;;  %v7893_v27 = vld [vmem:[#allocation2 + $0x658] sm:$0xff] }
0x2503   :  { %v6969_v45 = vmax.f32 %v6959_v6, 0.0  ;;  %22571 = vmatpush3.bf16.msra.mxu0 %v22568_v24  ;;  %v21056_v10 = vpop.f32.mrb[92].mxu1  ;;  %v22576_v24 = vpack.c.bf16 %v7807_v21, %v7806_v36  ;;  %v22580_v6 = vpack.c.bf16 %v7809_v2, %v7808_v22  ;;  %v8543_v2 = vld [vmem:[#allocation2 + $0x6a0] sm:$0xff] }
0x2504   :  { %v7306_v8 = vpop.f32.mrb[93].mxu1  ;;  %22573 = vmatprep.subr.bf16.mxu0 %v22572_v5  ;;  %v7312_v14 = vadd.f32 %v21056_v10, %v19015_v7  ;;  %v7975_v10 = vld [vmem:[#allocation2 + $0x668] sm:$0xff] }
0x2505   :  { %21043 = vmatprep.mubr.msk.f32.mxu0 %vm3530_vm9, %v6969_v45  ;;  %v7307_v13 = vadd.f32 %v19015_v7, %v7306_v8  ;;  %v7974_v45 = vld [vmem:[#allocation2 + $0x660] sm:$0xff] }
0x2506   :  { %21044 = vmatmul.mubr.msk.f32.gmra.mrb[100].mxu0 %vm3530_vm9, %v6970_v9  ;;  %v22588_v9 = vpack.c.bf16 %v7893_v27, %v7892_v42  ;;  %v22592_v8 = vpack.c.bf16 %v7975_v10, %v7974_v45  ;;  %v8546_v45 = vld [vmem:[#allocation2 + $0x6b8] sm:$0xff] }
0x2507   :  { %22575 = vmatpush3.bf16.msra.mxu0 %v22572_v5  ;;  %21076 = vmatprep.mubr.msk.f32.mxu0 %vm253_vm5, %v24206_v44 }
0x2508   :  { %21084 = vmatprep.subr.mxu0 %v23530_v34 }
0x250a   :  { %21077 = vmatmul.mubr.msk.f32.vlgmr.msra.gmra.mrb[102].mxu0 %vm253_vm5, %v24214_v59 }
0x250b   :  { %v21067_v58 = vpop.f32.mrb[94].mxu1  ;;  %21086 = vmatprep.mubr.msk.f32.mxu0 %vm23531_vm10, %v23530_v34 }
0x250c   :  { %v7390_v11 = vpop.f32.mrb[95].mxu1  ;;  %v7396_v12 = vadd.f32 %v21067_v58, %v19018_v49  ;;  %v7977_v58 = vld [vmem:[#allocation2 + $0x678] sm:$0xff] }
0x250d   :  { %v7391_v63 = vadd.f32 %v19018_v49, %v7390_v11  ;;  %v7976_v49 = vld [vmem:[#allocation2 + $0x670] sm:$0xff] }
0x250e   :  { %v22596_v11 = vpack.c.bf16 %v7977_v58, %v7976_v49  ;;  %v8711_v49 = vld [vmem:[#allocation2 + $0x6e0] sm:$0xff]  ;;  %v8712_v58 = vld [vmem:[#allocation2 + $0x6e8] sm:$0xff] }
0x250f   :  { %21080 = vmatpush3.xpose.msk.msra.mxu1 %vm539_vm6, %v7391_v63 }
0x2510   :  { %21085 = vmatpush3.xpose.msk.msra.mxu0 %vm539_vm6, %v7396_v12  ;;  %21089 = vmatprep.subr.mxu1 %v23530_v34 }
0x2511   :  { %21094 = vmatprep.subr.mxu0 %v23530_v34 }
0x2512   :  { %21082 = vmatmul.mubr.msk.f32.vlgmr.msra.gmra.mrb[96].mxu1 %vm539_vm6, %v7307_v13 }
0x2513   :  { %21087 = vmatmul.mubr.msk.f32.vlgmr.msra.gmra.mrb[104].mxu0 %vm539_vm6, %v7312_v14  ;;  %21091 = vmatprep.mubr.msk.f32.mxu1 %vm23531_vm10, %v23530_v34 }
0x2514   :  { %21096 = vmatprep.mubr.msk.f32.mxu0 %vm23531_vm10, %v23530_v34 }
0x25d5   :  { %v24246_v15 = vpop.f32.mrb[98].mxu0 }
0x25d6   :  { %v24248_v16 = vpop.f32.mrb[99].mxu0 }
0x25d9   :  { %v24250_v18 = vpop.f32.mrb[100].mxu0 }
0x25da   :  { %v24252_v19 = vpop.f32.mrb[101].mxu0 }
0x25dd   :  { %v21078_v26 = vpop.f32.mrb[102].mxu0 }
0x25de   :  { %v7480_v28 = vadd.f32 %v21078_v26, %v19021_v25  ;;  %v7474_v32 = vpop.f32.mrb[103].mxu0 }
0x25df   :  { %v7475_v30 = vadd.f32 %v19021_v25, %v7474_v32  ;;  %v19033_v25 = vld [vmem:[#allocation2 + $0x690] ss:$0 sm:$0xff] }
0x25e0   :  { %21095 = vmatpush3.msra.mxu0 %v7480_v28 }
0x25e1   :  { %21090 = vmatpush3.msra.mxu1 %v7475_v30  ;;  %22585 = vmatprep.subr.bf16.mxu0 %v22584_v47  ;;  %v19030_v30 = vld [vmem:[#allocation2 + $0x688] ss:$0 sm:$0xff] }
0x25e2   :  { %22577 = vmatprep.subr.bf16.mxu1 %v22576_v24 }
0x25e5   :  { %v7555_v29 = vpop.f32.mrb[96].mxu1 }
0x25e6   :  { %v7635_v31 = vmul.f32 0.35355338, %v7555_v29  ;;  %v21083_v40 = vpop.f32.mrb[97].mxu1  ;;  %v7631_v46 = vpop.f32.mrb[104].mxu0 }
0x25e7   :  { %v7636_v35 = vmul.f32 0.35355338, %v7631_v46  ;;  %v21088_v37 = vpop.f32.mrb[105].mxu0  ;;  %v19036_v46 = vld [vmem:[#allocation2 + $0x698] ss:$0 sm:$0xff] }
0x25e8   :  { %v7637_v38 = vsel %vm539_vm6, %v7635_v31, -inf }
0x25e9   :  { %7638 = vmax.xlane.f32.xlu1 %v7637_v38  ;;  %v7640_v39 = vsel %vm539_vm6, %v7636_v35, -inf }
0x25ea   :  { %7641 = vmax.xlane.f32.xlu0 %v7640_v39 }
0x2676   :  { %v7639_v48 = vpop.xlane.xlu1 %7638 }
0x2677   :  { %v7643_v51 = vsub.f32 %v7635_v31, %v7639_v48  ;;  %v7642_v52 = vpop.xlane.xlu0 %7641 }
0x2678   :  { %v7644_v55 = vsub.f32 %v7636_v35, %v7642_v52 }
0x2679   :  { %v7645_v56 = vmul.f32 1.442695, %v7643_v51 }
0x267a   :  { %v7647_v57 = vmul.f32 1.442695, %v7644_v55 }
0x267b   :  { %23306 = vpow2.f32 %v7645_v56 }
0x267c   :  { %23308 = vpow2.f32 %v7647_v57 }
0x2685   :  { %v23307_v43 = vpop.eup %23306 }
0x2686   :  { %v23309_v20 = vpop.eup %23308  ;;  %v7649_v60 = vsel %vm539_vm6, %v23307_v43, 0.0 }
0x2687   :  { %7650 = vadd.xlane.f32.xlu1 %v7649_v60  ;;  %v7652_v23 = vsel %vm539_vm6, %v23309_v20, 0.0 }
0x2688   :  { %7653 = vadd.xlane.f32.xlu0 %v7652_v23 }
0x2714   :  { %v7651_v0 = vpop.xlane.xlu1 %7650 }
0x2715   :  { %23310 = vrcp.f32 %v7651_v0  ;;  %v7654_v1 = vpop.xlane.xlu0 %7653 }
0x2716   :  { %23312 = vrcp.f32 %v7654_v1 }
0x271f   :  { %v23311_v41 = vpop.eup %23310 }
0x2720   :  { %v23313_v3 = vpop.eup %23312  ;;  %v7657_v4 = vmul.f32 %v23311_v41, %v23307_v43  ;;  %v8544_v41 = vld [vmem:[#allocation2 + $0x6a8] sm:$0xff] }
0x2721   :  { %v7658_v5 = vmul.f32 %v23313_v3, %v23309_v20  ;;  %v22600_v42 = vpack.c.bf16 %v8544_v41, %v8543_v2 }
0x2722   :  { %21092 = vmatmul.mubr.msk.f32.vlgmr.msra.gmra.mrb[98].mxu1 %vm539_vm6, %v7657_v4 }
0x2723   :  { %22579 = vmatpush3.bf16.msra.mxu1 %v22576_v24  ;;  %21097 = vmatmul.mubr.msk.f32.vlgmr.msra.gmra.mrb[106].mxu0 %vm539_vm6, %v7658_v5 }
0x2724   :  { %21107 = vmatprep.mubr.msk.f32.mxu1 %vm253_vm5, %v24206_v44  ;;  %22587 = vmatpush3.bf16.msra.mxu0 %v22584_v47 }
0x2725   :  { %21118 = vmatprep.mubr.msk.f32.mxu0 %vm253_vm5, %v24206_v44  ;;  %22581 = vmatprep.subr.bf16.mxu1 %v22580_v6 }
0x2726   :  { %22589 = vmatprep.subr.bf16.mxu0 %v22588_v9 }
0x2727   :  { %22583 = vmatpush3.bf16.msra.mxu1 %v22580_v6  ;;  %v8545_v6 = vld [vmem:[#allocation2 + $0x6b0] sm:$0xff] }
0x2728   :  { %22591 = vmatpush3.bf16.msra.mxu0 %v22588_v9  ;;  %22593 = vmatprep.subr.bf16.mxu1 %v22592_v8 }
0x2729   :  { %21132 = vmatprep.subr.mxu0 %v23530_v34 }
0x272a   :  { %21108 = vmatmul.mubr.msk.f32.vlgmr.msra.gmra.mrb[100].mxu1 %vm253_vm5, %v24214_v59 }
0x272b   :  { %21119 = vmatmul.mubr.msk.f32.vlgmr.msra.gmra.mrb[108].mxu0 %vm253_vm5, %v24214_v59  ;;  %22595 = vmatpush3.bf16.msra.mxu1 %v22592_v8  ;;  %v22604_v8 = vpack.c.bf16 %v8546_v45, %v8545_v6 }
0x272c   :  { %21129 = vmatprep.mubr.msk.f32.mxu1 %vm253_vm5, %v24206_v44  ;;  %22597 = vmatprep.subr.bf16.mxu1 %v22596_v11 }
0x272d   :  { %21134 = vmatprep.mubr.msk.f32.mxu0 %vm23531_vm10, %v23530_v34 }
0x272f   :  { %22599 = vmatpush3.bf16.msra.mxu1 %v22596_v11  ;;  %v22616_v11 = vpack.c.bf16 %v8712_v58, %v8711_v49  ;;  %v9202_v49 = vld [vmem:[#allocation2 + $0x728] sm:$0xff] }
0x2730   :  { %21142 = vmatprep.subr.mxu1 %v23530_v34 }
0x2732   :  { %21130 = vmatmul.mubr.msk.f32.vlgmr.msra.gmra.mrb[102].mxu1 %vm253_vm5, %v24214_v59 }
0x2733   :  { %21144 = vmatprep.mubr.msk.f32.mxu1 %vm23531_vm10, %v23530_v34 }
0x27f5   :  { %v24278_v7 = vpop.f32.mrb[98].mxu1 }
0x27f6   :  { %v21093_v63 = vpop.f32.mrb[99].mxu1  ;;  %v24280_v12 = vpop.f32.mrb[106].mxu0 }
0x27f7   :  { %v21098_v13 = vpop.f32.mrb[107].mxu0  ;;  %v8713_v63 = vld [vmem:[#allocation2 + $0x6f0] sm:$0xff] }
0x27f8   :  { %v8714_v13 = vld [vmem:[#allocation2 + $0x6f8] sm:$0xff] }
0x27fd   :  { %v21109_v14 = vpop.f32.mrb[100].mxu1 }
0x27fe   :  { %v7881_v26 = vpop.f32.mrb[101].mxu1  ;;  %v21120_v28 = vpop.f32.mrb[108].mxu0  ;;  %v7887_v38 = vadd.f32 %v21109_v14, %v19030_v30  ;;  %v22620_v14 = vpack.c.bf16 %v8714_v13, %v8713_v63 }
0x27ff   :  { %v7965_v32 = vpop.f32.mrb[109].mxu0  ;;  %v7882_v31 = vadd.f32 %v19030_v30, %v7881_v26  ;;  %v7971_v40 = vadd.f32 %v21120_v28, %v19033_v25  ;;  %v7805_v26 = vld [vmem:[#allocation2 + $0x600] sm:$0xff]  ;;  %v8628_v30 = vld [vmem:[#allocation2 + $0x6c8] sm:$0xff] }
0x2800   :  { %v7966_v29 = vadd.f32 %v19033_v25, %v7965_v32  ;;  %v8380_v25 = vld [vmem:[#allocation2 + $0x680] sm:$0xff] }
0x2801   :  { %v8627_v32 = vld [vmem:[#allocation2 + $0x6c0] sm:$0xff] }
0x2802   :  { %21133 = vmatpush3.xpose.msk.msra.mxu0 %vm539_vm6, %v7966_v29 }
0x2803   :  { %21137 = vmatprep.subr.mxu0 %v23530_v34 }
0x2805   :  { %v21131_v35 = vpop.f32.mrb[102].mxu1  ;;  %21135 = vmatmul.mubr.msk.f32.vlgmr.msra.gmra.mrb[110].mxu0 %vm539_vm6, %v7882_v31  ;;  %v22608_v31 = vpack.c.bf16 %v8628_v30, %v8627_v32 }
0x2806   :  { %v8049_v37 = vpop.f32.mrb[103].mxu1  ;;  %21138 = vmatpush3.xpose.msk.msra.mxu0 %vm539_vm6, %v7971_v40  ;;  %21139 = vmatprep.mubr.msk.f32.mxu0 %vm23531_vm10, %v23530_v34  ;;  %v8055_v48 = vadd.f32 %v21131_v35, %v19036_v46  ;;  %v8629_v35 = vld [vmem:[#allocation2 + $0x6d0] sm:$0xff] }
0x2807   :  { %v8050_v39 = vadd.f32 %v19036_v46, %v8049_v37  ;;  %21147 = vmatprep.subr.mxu0 %v23530_v34  ;;  %v8630_v37 = vld [vmem:[#allocation2 + $0x6d8] sm:$0xff] }
0x2809   :  { %21140 = vmatmul.mubr.msk.f32.vlgmr.msra.gmra.mrb[112].mxu0 %vm539_vm6, %v7887_v38  ;;  %21143 = vmatpush3.msra.mxu1 %v8050_v39  ;;  %v22612_v38 = vpack.c.bf16 %v8630_v37, %v8629_v35  ;;  %v9371_v35 = vld [vmem:[#allocation2 + $0x770] sm:$0xff]  ;;  %v9372_v37 = vld [vmem:[#allocation2 + $0x778] sm:$0xff] }
0x280a   :  { %21148 = vmatpush3.msra.mxu0 %v8055_v48  ;;  %21149 = vmatprep.mubr.msk.f32.mxu0 %vm23531_vm10, %v23530_v34 }
0x280b   :  { %22601 = vmatprep.subr.bf16.mxu0 %v22600_v42  ;;  %21152 = vmatprep.subr.mxu1 %v8380_v25 }
0x28d8   :  { %v8130_v51 = vpop.f32.mrb[110].mxu0 }
0x28d9   :  { %v8210_v52 = vmul.f32 0.35355338, %v8130_v51  ;;  %v21136_v55 = vpop.f32.mrb[111].mxu0 }
0x28db   :  { %v8212_v56 = vsel %vm539_vm6, %v8210_v52, -inf }
0x28dc   :  { %8213 = vmax.xlane.f32.xlu0 %v8212_v56  ;;  %v8206_v57 = vpop.f32.mrb[112].mxu0  ;;  %v19049_v56 = vld [vmem:[#allocation2 + $0x708] ss:$0 sm:$0xff] }
0x28dd   :  { %v8211_v43 = vmul.f32 0.35355338, %v8206_v57  ;;  %v21141_v20 = vpop.f32.mrb[113].mxu0 }
0x28df   :  { %v8215_v60 = vsel %vm539_vm6, %v8211_v43, -inf }
0x28e0   :  { %8216 = vmax.xlane.f32.xlu1 %v8215_v60 }
0x2969   :  { %v8214_v23 = vpop.xlane.xlu0 %8213 }
0x296a   :  { %v8218_v36 = vsub.f32 %v8210_v52, %v8214_v23  ;;  %v19052_v52 = vld [vmem:[#allocation2 + $0x710] ss:$0 sm:$0xff] }
0x296c   :  { %v8220_v21 = vmul.f32 1.442695, %v8218_v36 }
0x296d   :  { %v8217_v24 = vpop.xlane.xlu1 %8216 }
0x296e   :  { %23314 = vpow2.f32 %v8220_v21  ;;  %v8219_v61 = vsub.f32 %v8211_v43, %v8217_v24  ;;  %v19055_v43 = vld [vmem:[#allocation2 + $0x718] ss:$0 sm:$0xff] }
0x2970   :  { %v8222_v62 = vmul.f32 1.442695, %v8219_v61 }
0x2972   :  { %23316 = vpow2.f32 %v8222_v62 }
0x2978   :  { %v23315_v47 = vpop.eup %23314 }
0x2979   :  { %v8224_v0 = vsel %vm539_vm6, %v23315_v47, 0.0 }
0x297a   :  { %8225 = vadd.xlane.f32.xlu0 %v8224_v0 }
0x297c   :  { %v23317_v1 = vpop.eup %23316 }
0x297d   :  { %v8227_v22 = vsel %vm539_vm6, %v23317_v1, 0.0 }
0x297e   :  { %8228 = vadd.xlane.f32.xlu1 %v8227_v22 }
0x2a07   :  { %v8226_v27 = vpop.xlane.xlu0 %8225 }
0x2a08   :  { %23318 = vrcp.f32 %v8226_v27 }
0x2a0b   :  { %v8229_v3 = vpop.xlane.xlu1 %8228 }
0x2a0c   :  { %23320 = vrcp.f32 %v8229_v3 }
0x2a12   :  { %v23319_v4 = vpop.eup %23318 }
0x2a13   :  { %v8232_v5 = vmul.f32 %v23319_v4, %v23315_v47 }
0x2a15   :  { %21145 = vmatmul.mubr.msk.f32.vlgmr.msra.gmra.mrb[104].mxu1 %vm539_vm6, %v8232_v5 }
0x2a16   :  { %v23321_v10 = vpop.eup %23320  ;;  %21153 = vmatpush3.msra.mxu1 %v8380_v25  ;;  %v9204_v25 = vld [vmem:[#allocation2 + $0x738] sm:$0xff] }
0x2a17   :  { %v8233_v9 = vmul.f32 %v23321_v10, %v23317_v1  ;;  %21157 = vmatprep.subr.mxu1 %v7805_v26 }
0x2a19   :  { %21150 = vmatmul.mubr.msk.f32.vlgmr.msra.gmra.mrb[114].mxu0 %vm539_vm6, %v8233_v9 }
0x2a1a   :  { %22603 = vmatpush3.bf16.msra.mxu0 %v22600_v42  ;;  %21170 = vmatprep.mubr.msk.f32.mxu0 %vm253_vm5, %v24206_v44 }
0x2a1b   :  { %22605 = vmatprep.subr.bf16.mxu0 %v22604_v8 }
0x2a1e   :  { %22607 = vmatpush3.bf16.msra.mxu0 %v22604_v8  ;;  %v9201_v8 = vld [vmem:[#allocation2 + $0x720] sm:$0xff] }
0x2a1f   :  { %22617 = vmatprep.subr.bf16.mxu0 %v22616_v11  ;;  %v22624_v58 = vpack.c.bf16 %v9202_v49, %v9201_v8 }
0x2a21   :  { %21171 = vmatmul.mubr.msk.f32.vlgmr.msra.gmra.mrb[116].mxu0 %vm253_vm5, %v24214_v59 }
0x2a22   :  { %22619 = vmatpush3.bf16.msra.mxu0 %v22616_v11  ;;  %21192 = vmatprep.mubr.msk.f32.mxu0 %vm253_vm5, %v24206_v44  ;;  %v9117_v11 = vld [vmem:[#allocation2 + $0x700] sm:$0xff] }
0x2a23   :  { %22621 = vmatprep.subr.bf16.mxu0 %v22620_v14 }
0x2a26   :  { %22623 = vmatpush3.bf16.msra.mxu0 %v22620_v14  ;;  %v9203_v14 = vld [vmem:[#allocation2 + $0x730] sm:$0xff] }
0x2a27   :  { %21200 = vmatprep.subr.mxu0 %v23530_v34  ;;  %v22628_v30 = vpack.c.bf16 %v9204_v25, %v9203_v14  ;;  %v19006_v14 = vld [vmem:[#allocation2 + $0x568] ss:$0 sm:$0xff] }
0x2a28   :  { %v7063_v25 = vadd.f32 %v19006_v14, %v24248_v16 }
0x2a29   :  { %21193 = vmatmul.mubr.msk.f32.vlgmr.msra.gmra.mrb[118].mxu0 %vm253_vm5, %v24214_v59 }
0x2a2a   :  { %21202 = vmatprep.mubr.msk.f32.mxu0 %vm23531_vm10, %v23530_v34 }
0x2ae8   :  { %v8303_v28 = vpop.f32.mrb[104].mxu1 }
0x2ae9   :  { %v21146_v29 = vpop.f32.mrb[105].mxu1  ;;  %21154 = vmatprep.mubr.msk.f32.mxu1 %vm539_vm6, %v8303_v28 }
0x2aec   :  { %v8376_v40 = vpop.f32.mrb[114].mxu0 }
0x2aed   :  { %v21151_v46 = vpop.f32.mrb[115].mxu0  ;;  %21155 = vmatmul.mubr.msk.f32.vlgmr.msra.gmra.mrb[106].mxu1 %vm539_vm6, %v8376_v40  ;;  %v9370_v40 = vld [vmem:[#allocation2 + $0x768] sm:$0xff] }
0x2aee   :  { %21158 = vmatpush3.msra.mxu1 %v7805_v26  ;;  %21159 = vmatprep.mubr.msk.f32.mxu1 %vm539_vm6, %v24278_v7 }
0x2aef   :  { %22609 = vmatprep.subr.bf16.mxu1 %v22608_v31 }
0x2af4   :  { %v21172_v39 = vpop.f32.mrb[116].mxu0 }
0x2af5   :  { %v8618_v48 = vpop.f32.mrb[117].mxu0  ;;  %21160 = vmatmul.mubr.msk.f32.vlgmr.msra.gmra.mrb[106].mxu1 %vm539_vm6, %v24280_v12  ;;  %v8624_v60 = vadd.f32 %v21172_v39, %v19049_v56  ;;  %v9285_v39 = vld [vmem:[#allocation2 + $0x740] sm:$0xff] }
0x2af6   :  { %22611 = vmatpush3.bf16.msra.mxu1 %v22608_v31  ;;  %21181 = vmatprep.mubr.msk.f32.mxu1 %vm253_vm5, %v24206_v44  ;;  %v8619_v23 = vadd.f32 %v19049_v56, %v8618_v48  ;;  %v9369_v31 = vld [vmem:[#allocation2 + $0x760] sm:$0xff]  ;;  %v9286_v48 = vld [vmem:[#allocation2 + $0x748] sm:$0xff] }
0x2af7   :  { %22613 = vmatprep.subr.bf16.mxu1 %v22612_v38  ;;  %v22640_v46 = vpack.c.bf16 %v9370_v40, %v9369_v31 }
0x2afa   :  { %22615 = vmatpush3.bf16.msra.mxu1 %v22612_v38  ;;  %v22644_v38 = vpack.c.bf16 %v9372_v37, %v9371_v35 }
0x2afb   :  { %21195 = vmatprep.subr.mxu1 %v23530_v34 }
0x2afc   :  { %v21194_v51 = vpop.f32.mrb[118].mxu0 }
0x2afd   :  { %21182 = vmatmul.mubr.msk.f32.vlgmr.msra.gmra.mrb[108].mxu1 %vm253_vm5, %v24214_v59  ;;  %v8786_v7 = vpop.f32.mrb[119].mxu0  ;;  %v8792_v36 = vadd.f32 %v21194_v51, %v19055_v43  ;;  %v22632_v51 = vpack.c.bf16 %v9286_v48, %v9285_v39 }
0x2afe   :  { %21197 = vmatprep.mubr.msk.f32.mxu1 %vm23531_vm10, %v23530_v34  ;;  %v8787_v21 = vadd.f32 %v19055_v43, %v8786_v7  ;;  %v9287_v7 = vld [vmem:[#allocation2 + $0x750] sm:$0xff] }
0x2bd0   :  { %v21183_v55 = vpop.f32.mrb[108].mxu1 }
0x2bd1   :  { %v8708_v12 = vadd.f32 %v21183_v55, %v19052_v52  ;;  %v8702_v57 = vpop.f32.mrb[109].mxu1 }
0x2bd2   :  { %v8703_v20 = vadd.f32 %v19052_v52, %v8702_v57  ;;  %v9288_v52 = vld [vmem:[#allocation2 + $0x758] sm:$0xff] }
0x2bd3   :  { %21201 = vmatpush3.xpose.msk.msra.mxu0 %vm539_vm6, %v8708_v12  ;;  %v22636_v57 = vpack.c.bf16 %v9288_v52, %v9287_v7 }
0x2bd4   :  { %21196 = vmatpush3.xpose.msk.msra.mxu1 %vm539_vm6, %v8703_v20  ;;  %21210 = vmatprep.subr.mxu0 %v23530_v34 }
0x2bd5   :  { %21205 = vmatprep.subr.mxu1 %v23530_v34 }
0x2bd6   :  { %21203 = vmatmul.mubr.msk.f32.vlgmr.msra.gmra.mrb[120].mxu0 %vm539_vm6, %v8624_v60 }
0x2bd7   :  { %21198 = vmatmul.mubr.msk.f32.vlgmr.msra.gmra.mrb[110].mxu1 %vm539_vm6, %v8619_v23  ;;  %21211 = vmatpush3.msra.mxu0 %v8792_v36  ;;  %v19072_v23 = vld [vmem:[#allocation2 + $0x798] ss:$0 sm:$0xff] }
0x2bd8   :  { %21206 = vmatpush3.msra.mxu1 %v8787_v21  ;;  %21212 = vmatprep.mubr.msk.f32.mxu0 %vm23531_vm10, %v23530_v34 }
0x2bd9   :  { %21207 = vmatprep.mubr.msk.f32.mxu1 %vm23531_vm10, %v23530_v34  ;;  %22625 = vmatprep.subr.bf16.mxu0 %v22624_v58 }
0x2bda   :  { %21215 = vmatprep.subr.mxu1 %v9117_v11 }
0x2ca9   :  { %v8943_v24 = vpop.f32.mrb[120].mxu0 }
0x2caa   :  { %v8948_v61 = vmul.f32 0.35355338, %v8943_v24  ;;  %v8867_v62 = vpop.f32.mrb[110].mxu1  ;;  %v21204_v47 = vpop.f32.mrb[121].mxu0 }
0x2cab   :  { %v8947_v0 = vmul.f32 0.35355338, %v8867_v62  ;;  %v21199_v1 = vpop.f32.mrb[111].mxu1  ;;  %v19069_v62 = vld [vmem:[#allocation2 + $0x790] ss:$0 sm:$0xff] }
0x2cac   :  { %v8952_v22 = vsel %vm539_vm6, %v8948_v61, -inf  ;;  %v19066_v1 = vld [vmem:[#allocation2 + $0x788] ss:$0 sm:$0xff] }
0x2cad   :  { %8953 = vmax.xlane.f32.xlu1 %v8952_v22  ;;  %v8949_v2 = vsel %vm539_vm6, %v8947_v0, -inf }
0x2cae   :  { %8950 = vmax.xlane.f32.xlu0 %v8949_v2 }
0x2d3a   :  { %v8954_v41 = vpop.xlane.xlu1 %8953 }
0x2d3b   :  { %v8956_v42 = vsub.f32 %v8948_v61, %v8954_v41  ;;  %v8951_v27 = vpop.xlane.xlu0 %8950 }
0x2d3c   :  { %v8955_v3 = vsub.f32 %v8947_v0, %v8951_v27 }
0x2d3d   :  { %v8959_v4 = vmul.f32 1.442695, %v8956_v42 }
0x2d3e   :  { %v8957_v5 = vmul.f32 1.442695, %v8955_v3 }
0x2d3f   :  { %23322 = vpow2.f32 %v8959_v4 }
0x2d40   :  { %23324 = vpow2.f32 %v8957_v5 }
0x2d49   :  { %v23323_v6 = vpop.eup %23322 }
0x2d4a   :  { %v23325_v45 = vpop.eup %23324  ;;  %v8964_v10 = vsel %vm539_vm6, %v23323_v6, 0.0 }
0x2d4b   :  { %8965 = vadd.xlane.f32.xlu1 %v8964_v10  ;;  %v8961_v9 = vsel %vm539_vm6, %v23325_v45, 0.0 }
0x2d4c   :  { %8962 = vadd.xlane.f32.xlu0 %v8961_v9 }
0x2dd8   :  { %v8966_v63 = vpop.xlane.xlu1 %8965 }
0x2dd9   :  { %23326 = vrcp.f32 %v8966_v63  ;;  %v8963_v13 = vpop.xlane.xlu0 %8962 }
0x2dda   :  { %23328 = vrcp.f32 %v8963_v13 }
0x2de3   :  { %v23327_v26 = vpop.eup %23326 }
0x2de4   :  { %v23329_v28 = vpop.eup %23328  ;;  %v8970_v32 = vmul.f32 %v23327_v26, %v23323_v6 }
0x2de5   :  { %v8969_v29 = vmul.f32 %v23329_v28, %v23325_v45  ;;  %v7068_v28 = vadd.f32 %v24246_v15, %v19006_v14 }
0x2de6   :  { %21213 = vmatmul.mubr.msk.f32.vlgmr.msra.gmra.mrb[122].mxu0 %vm539_vm6, %v8970_v32  ;;  %v7081_v32 = vadd.f32 %v7063_v25, %v24191_v33 }
0x2de7   :  { %22627 = vmatpush3.bf16.msra.mxu0 %v22624_v58  ;;  %21208 = vmatmul.mubr.msk.f32.vlgmr.msra.gmra.mrb[112].mxu1 %vm539_vm6, %v8969_v29  ;;  %v7082_v40 = vadd.f32 %v7068_v28, %v24194_v17 }
0x2de8   :  { %21228 = vmatprep.mubr.msk.f32.mxu0 %vm253_vm5, %v24206_v44  ;;  %22629 = vmatprep.subr.bf16.mxu0 %v22628_v30  ;;  %v7087_v37 = vsel %vm253_vm5, %v7081_v32, 0.0 }
0x2de9   :  { %21216 = vmatpush3.msra.mxu1 %v9117_v11  ;;  %v7090_v15 = vsel %vm253_vm5, %v7082_v40, 0.0 }
0x2dea   :  { %22633 = vmatprep.subr.bf16.mxu1 %v22632_v51 }
0x2deb   :  { %22631 = vmatpush3.bf16.msra.mxu0 %v22628_v30  ;;  %v7073_v30 = vadd.f32 %v19006_v14, %v24252_v19 }
0x2dec   :  { %22641 = vmatprep.subr.bf16.mxu0 %v22640_v46 }
0x2ded   :  { %v7083_v35 = vadd.f32 %v7073_v30, %v24201_v50 }
0x2dee   :  { %21229 = vmatmul.mubr.msk.f32.vlgmr.msra.gmra.mrb[124].mxu0 %vm253_vm5, %v24214_v59 }
0x2def   :  { %22643 = vmatpush3.bf16.msra.mxu0 %v22640_v46  ;;  %21250 = vmatprep.mubr.msk.f32.mxu0 %vm253_vm5, %v24206_v44  ;;  %v7078_v46 = vadd.f32 %v24250_v18, %v19006_v14  ;;  %v7093_v19 = vsel %vm253_vm5, %v7083_v35, 0.0 }
0x2df0   :  { %22645 = vmatprep.subr.bf16.mxu0 %v22644_v38 }
0x2df1   :  { %v7084_v33 = vadd.f32 %v7078_v46, %v24204_v53 }
0x2df3   :  { %22647 = vmatpush3.bf16.msra.mxu0 %v22644_v38  ;;  %v7096_v17 = vsel %vm253_vm5, %v7084_v33, 0.0 }
0x2df4   :  { %21263 = vmatprep.subr.mxu0 %v23530_v34 }
0x2df6   :  { %21251 = vmatmul.mubr.msk.f32.vlgmr.msra.gmra.mrb[126].mxu0 %vm253_vm5, %v24214_v59 }
0x2df7   :  { %21265 = vmatprep.mubr.msk.f32.mxu0 %vm23531_vm10, %v23530_v34 }
0x2eb9   :  { %v9113_v55 = vpop.f32.mrb[122].mxu0 }
0x2eba   :  { %v9040_v56 = vpop.f32.mrb[112].mxu1  ;;  %v21214_v12 = vpop.f32.mrb[123].mxu0 }
0x2ebb   :  { %v21209_v43 = vpop.f32.mrb[113].mxu1  ;;  %21217 = vmatprep.mubr.msk.f32.mxu1 %vm539_vm6, %v9040_v56 }
0x2ebc   :  { %21218 = vmatmul.mubr.msk.f32.vlgmr.msra.gmra.mrb[106].mxu1 %vm539_vm6, %v9113_v55 }
0x2ebd   :  { %22635 = vmatpush3.bf16.msra.mxu1 %v22632_v51  ;;  %21239 = vmatprep.mubr.msk.f32.mxu1 %vm253_vm5, %v24206_v44 }
0x2ebe   :  { %22637 = vmatprep.subr.bf16.mxu1 %v22636_v57 }
0x2ec1   :  { %v21230_v20 = vpop.f32.mrb[124].mxu0  ;;  %22639 = vmatpush3.bf16.msra.mxu1 %v22636_v57 }
0x2ec2   :  { %v9276_v60 = vpop.f32.mrb[125].mxu0  ;;  %21253 = vmatprep.subr.mxu1 %v23530_v34  ;;  %v9282_v42 = vadd.f32 %v21230_v20, %v19066_v1 }
0x2ec3   :  { %v9277_v2 = vadd.f32 %v19066_v1, %v9276_v60 }
0x2ec4   :  { %21240 = vmatmul.mubr.msk.f32.vlgmr.msra.gmra.mrb[114].mxu1 %vm253_vm5, %v24214_v59 }
0x2ec5   :  { %21255 = vmatprep.mubr.msk.f32.mxu1 %vm23531_vm10, %v23530_v34 }
0x2ec9   :  { %v21252_v36 = vpop.f32.mrb[126].mxu0 }
0x2eca   :  { %v9450_v21 = vadd.f32 %v21252_v36, %v19072_v23  ;;  %v9444_v24 = vpop.f32.mrb[127].mxu0 }
0x2ecb   :  { %v9445_v61 = vadd.f32 %v19072_v23, %v9444_v24 }
0x2ecd   :  { %21264 = vmatpush3.msra.mxu0 %v9445_v61 }
0x2f97   :  { %v21241_v47 = vpop.f32.mrb[114].mxu1 }
0x2f98   :  { %v9360_v0 = vpop.f32.mrb[115].mxu1  ;;  %v9366_v41 = vadd.f32 %v21241_v47, %v19069_v62 }
0x2f99   :  { %v9361_v22 = vadd.f32 %v19069_v62, %v9360_v0 }
0x2f9b   :  { %21254 = vmatpush3.xpose.msk.msra.mxu1 %vm539_vm6, %v9361_v22 }
0x2f9c   :  { %21258 = vmatprep.subr.mxu1 %v23530_v34 }
0x2f9e   :  { %21256 = vmatmul.mubr.msk.f32.vlgmr.msra.gmra.mrb[116].mxu1 %vm539_vm6, %v9277_v2  ;;  %v9775_v2 = vld [vmem:[#allocation2 + $0x780] sm:$0xff] }
0x2f9f   :  { %21259 = vmatpush3.xpose.msk.msra.mxu1 %vm539_vm6, %v9366_v41  ;;  %21260 = vmatprep.mubr.msk.f32.mxu1 %vm23531_vm10, %v23530_v34 }
0x2fa0   :  { %21268 = vmatprep.subr.mxu1 %v23530_v34 }
0x2fa2   :  { %21261 = vmatmul.mubr.msk.f32.vlgmr.msra.gmra.mrb[118].mxu1 %vm539_vm6, %v9282_v42 }
0x2fa3   :  { %21269 = vmatpush3.msra.mxu1 %v9450_v21  ;;  %21270 = vmatprep.mubr.msk.f32.mxu1 %vm23531_vm10, %v23530_v34 }
0x2fa4   :  { %21273 = vmatprep.subr.mxu1 %v9775_v2 }
0x3071   :  { %v9525_v27 = vpop.f32.mrb[116].mxu1 }
0x3072   :  { %v9605_v3 = vmul.f32 0.35355338, %v9525_v27  ;;  %v21257_v4 = vpop.f32.mrb[117].mxu1 }
0x3074   :  { %v9607_v5 = vsel %vm539_vm6, %v9605_v3, -inf }
0x3075   :  { %9608 = vmax.xlane.f32.xlu0 %v9607_v5  ;;  %v9601_v6 = vpop.f32.mrb[118].mxu1 }
0x3076   :  { %v9606_v45 = vmul.f32 0.35355338, %v9601_v6  ;;  %v21262_v10 = vpop.f32.mrb[119].mxu1 }
0x3078   :  { %v9610_v9 = vsel %vm539_vm6, %v9606_v45, -inf }
0x3079   :  { %9611 = vmax.xlane.f32.xlu1 %v9610_v9 }
0x3102   :  { %v9609_v8 = vpop.xlane.xlu0 %9608 }
0x3103   :  { %v9613_v49 = vsub.f32 %v9605_v3, %v9609_v8 }
0x3105   :  { %v9615_v58 = vmul.f32 1.442695, %v9613_v49 }
0x3106   :  { %v9612_v11 = vpop.xlane.xlu1 %9611 }
0x3107   :  { %23330 = vpow2.f32 %v9615_v58  ;;  %v9614_v63 = vsub.f32 %v9606_v45, %v9612_v11  ;;  %v19011_v11 = vld [vmem:[#allocation2 + $0x580] ss:$0 sm:$0xff] }
0x3109   :  { %v9617_v13 = vmul.f32 1.442695, %v9614_v63 }
0x310b   :  { %23332 = vpow2.f32 %v9617_v13  ;;  %v19012_v13 = vld [vmem:[#allocation2 + $0x588] ss:$0 sm:$0xff] }
0x3111   :  { %v23331_v26 = vpop.eup %23330 }
0x3112   :  { %v9619_v29 = vsel %vm539_vm6, %v23331_v26, 0.0 }
0x3113   :  { %9620 = vadd.xlane.f32.xlu0 %v9619_v29 }
0x3115   :  { %v23333_v31 = vpop.eup %23332 }
0x3116   :  { %v9622_v16 = vsel %vm539_vm6, %v23333_v31, 0.0 }
0x3117   :  { %7088 = vadd.xlane.f32.xlu0 %v7087_v37  ;;  %9623 = vadd.xlane.f32.xlu1 %v9622_v16 }
0x311b   :  { %7091 = vadd.xlane.f32.xlu1 %v7090_v15  ;;  %7094 = vadd.xlane.f32.xlu0 %v7093_v19 }
0x311f   :  { %7097 = vadd.xlane.f32.xlu1 %v7096_v17 }
0x31a0   :  { %v9621_v18 = vpop.xlane.xlu0 %9620 }
0x31a1   :  { %23334 = vrcp.f32 %v9621_v18 }
0x31a4   :  { %v7089_v50 = vpop.xlane.xlu0 %7088  ;;  %v9624_v38 = vpop.xlane.xlu1 %9623 }
0x31a5   :  { %v7099_v39 = vmul.f32 0.03125, %v7089_v50  ;;  %23336 = vrcp.f32 %v9624_v38 }
0x31a7   :  { %v7103_v48 = vsub.f32 %v7081_v32, %v7099_v39 }
0x31a8   :  { %v7092_v51 = vpop.xlane.xlu1 %7091  ;;  %v7095_v7 = vpop.xlane.xlu0 %7094 }
0x31a9   :  { %v7100_v52 = vmul.f32 0.03125, %v7092_v51  ;;  %v7101_v53 = vmul.f32 0.03125, %v7095_v7  ;;  %v7107_v55 = vmul.f32 %v7103_v48, %v7103_v48 }
0x31ab   :  { %v23335_v56 = vpop.eup %23334  ;;  %v7104_v12 = vsub.f32 %v7082_v40, %v7100_v52  ;;  %v7105_v57 = vsub.f32 %v7083_v35, %v7101_v53  ;;  %v7111_v43 = vsel %vm253_vm5, %v7107_v55, 0.0 }
0x31ac   :  { %v9627_v20 = vmul.f32 %v23335_v56, %v23331_v26  ;;  %v7098_v60 = vpop.xlane.xlu1 %7097  ;;  %7112 = vadd.xlane.f32.xlu0 %v7111_v43  ;;  %v19083_v56 = vld [vmem:[#allocation2 + $0x7a0] ss:$0 sm:$0xff] }
0x31ad   :  { %v7102_v23 = vmul.f32 0.03125, %v7098_v60  ;;  %v7108_v36 = vmul.f32 %v7104_v12, %v7104_v12  ;;  %v7109_v21 = vmul.f32 %v7105_v57, %v7105_v57 }
0x31ae   :  { %21266 = vmatmul.mubr.msk.f32.vlgmr.msra.gmra.mrb[128].mxu0 %vm539_vm6, %v9627_v20 }
0x31af   :  { %v23337_v24 = vpop.eup %23336  ;;  %v7106_v61 = vsub.f32 %v7084_v33, %v7102_v23  ;;  %v7114_v62 = vsel %vm253_vm5, %v7108_v36, 0.0  ;;  %v7117_v47 = vsel %vm253_vm5, %v7109_v21, 0.0 }
0x31b0   :  { %v9628_v0 = vmul.f32 %v23337_v24, %v23333_v31  ;;  %7115 = vadd.xlane.f32.xlu1 %v7114_v62  ;;  %7118 = vadd.xlane.f32.xlu0 %v7117_v47 }
0x31b1   :  { %v7110_v1 = vmul.f32 %v7106_v61, %v7106_v61 }
0x31b2   :  { %21271 = vmatmul.mubr.msk.f32.vlgmr.msra.gmra.mrb[120].mxu1 %vm539_vm6, %v9628_v0 }
0x31b3   :  { %v7120_v22 = vsel %vm253_vm5, %v7110_v1, 0.0  ;;  %21274 = vmatpush3.msra.mxu1 %v9775_v2 }
0x31b4   :  { %7121 = vadd.xlane.f32.xlu1 %v7120_v22 }
0x3239   :  { %v7113_v41 = vpop.xlane.xlu0 %7112 }
0x323a   :  { %v7123_v42 = vmul.f32 0.03125, %v7113_v41 }
0x323c   :  { %v7127_v27 = vadd.f32 1e-05, %v7123_v42 }
0x323d   :  { %v7116_v3 = vpop.xlane.xlu1 %7115  ;;  %v7119_v4 = vpop.xlane.xlu0 %7118 }
0x323e   :  { %23338 = vrsqrt.f32 %v7127_v27  ;;  %v7124_v5 = vmul.f32 0.03125, %v7116_v3  ;;  %v7125_v6 = vmul.f32 0.03125, %v7119_v4 }
0x3240   :  { %v7128_v45 = vadd.f32 1e-05, %v7124_v5  ;;  %v7129_v10 = vadd.f32 1e-05, %v7125_v6  ;;  %v9998_v5 = vld [vmem:[#allocation2 + $0x7c8] sm:$0xff]  ;;  %v9999_v6 = vld [vmem:[#allocation2 + $0x7d0] sm:$0xff] }
0x3241   :  { %v7122_v9 = vpop.xlane.xlu1 %7121 }
0x3242   :  { %23340 = vrsqrt.f32 %v7128_v45  ;;  %v7126_v8 = vmul.f32 0.03125, %v7122_v9  ;;  %v22656_v45 = vpack.c.bf16 %v9999_v6, %v9998_v5  ;;  %v10001_v9 = vld [vmem:[#allocation2 + $0x7e0] sm:$0xff] }
0x3243   :  { %23342 = vrsqrt.f32 %v7129_v10  ;;  %v10000_v10 = vld [vmem:[#allocation2 + $0x7d8] sm:$0xff]  ;;  %v19084_v6 = vld [vmem:[#allocation2 + $0xa20] ss:$0 sm:$0xff] }
0x3244   :  { %v7130_v49 = vadd.f32 1e-05, %v7126_v8  ;;  %22657 = vmatprep.subr.bf16.mxu1 %v22656_v45  ;;  %v22660_v8 = vpack.c.bf16 %v10001_v9, %v10000_v10 }
0x3246   :  { %23344 = vrsqrt.f32 %v7130_v49 }
0x3248   :  { %v23339_v58 = vpop.eup %23338 }
0x3249   :  { %v7135_v63 = vmul.f32 %v23339_v58, %v7103_v48 }
0x324b   :  { %v7143_v14 = vmul.f32 %v19011_v11, %v7135_v63 }
0x324c   :  { %v23341_v25 = vpop.eup %23340 }
0x324d   :  { %v23343_v26 = vpop.eup %23342  ;;  %v7151_v28 = vadd.f32 %v19012_v13, %v7143_v14  ;;  %v7136_v32 = vmul.f32 %v23341_v25, %v7104_v12 }
0x324e   :  { %v7137_v30 = vmul.f32 %v23343_v26, %v7105_v57 }
0x324f   :  { %v7157_v29 = vsel %vm253_vm5, %v7151_v28, 0.0  ;;  %v7144_v31 = vmul.f32 %v19011_v11, %v7136_v32 }
0x3250   :  { %v23345_v40 = vpop.eup %23344  ;;  %7158 = vadd.xlane.f32.xlu0 %v7157_v29  ;;  %v7145_v46 = vmul.f32 %v19011_v11, %v7137_v30 }
0x3251   :  { %v7152_v35 = vadd.f32 %v19012_v13, %v7144_v31  ;;  %v7138_v37 = vmul.f32 %v23345_v40, %v7106_v61 }
0x3252   :  { %v7153_v16 = vadd.f32 %v19012_v13, %v7145_v46 }
0x3253   :  { %v7160_v33 = vsel %vm253_vm5, %v7152_v35, 0.0  ;;  %v7146_v15 = vmul.f32 %v19011_v11, %v7138_v37 }
0x3254   :  { %7161 = vadd.xlane.f32.xlu1 %v7160_v33  ;;  %v7163_v19 = vsel %vm253_vm5, %v7153_v16, 0.0 }
0x3255   :  { %7164 = vadd.xlane.f32.xlu0 %v7163_v19  ;;  %v7154_v17 = vadd.f32 %v19012_v13, %v7146_v15 }
0x3257   :  { %v7166_v18 = vsel %vm253_vm5, %v7154_v17, 0.0 }
0x3258   :  { %7167 = vadd.xlane.f32.xlu1 %v7166_v18 }
0x3281   :  { %v9698_v50 = vpop.f32.mrb[128].mxu0 }
0x3282   :  { %v21267_v38 = vpop.f32.mrb[129].mxu0  ;;  %21275 = vmatprep.mubr.msk.f32.mxu1 %vm539_vm6, %v9698_v50  ;;  %v19013_v50 = vld [vmem:[#allocation2 + $0x590] ss:$0 sm:$0xff] }
0x3285   :  { %v9771_v39 = vpop.f32.mrb[120].mxu1 }
0x3286   :  { %v21272_v48 = vpop.f32.mrb[121].mxu1  ;;  %21276 = vmatmul.mubr.msk.f32.vlgmr.msra.gmra.mrb[106].mxu1 %vm539_vm6, %v9771_v39 }
0x3287   :  { %22659 = vmatpush3.bf16.msra.mxu1 %v22656_v45 }
0x3288   :  { %22661 = vmatprep.subr.bf16.mxu1 %v22660_v8 }
0x328b   :  { %22663 = vmatpush3.bf16.msra.mxu1 %v22660_v8  ;;  %v19085_v8 = vld [vmem:[#allocation2 + $0xa28] ss:$0 sm:$0xff] }
0x32dd   :  { %v7159_v7 = vpop.xlane.xlu0 %7158 }
0x32de   :  { %v7169_v53 = vmul.f32 0.03125, %v7159_v7 }
0x32e0   :  { %v24398_v36 = vsub.f32 %v7151_v28, %v7169_v53 }
0x32e1   :  { %v7162_v51 = vpop.xlane.xlu1 %7161 }
0x32e2   :  { %v7170_v52 = vmul.f32 0.03125, %v7162_v51  ;;  %v7165_v12 = vpop.xlane.xlu0 %7164  ;;  %v7177_v41 = vmul.f32 %v24398_v36, %v24398_v36  ;;  %v19014_v51 = vld [vmem:[#allocation2 + $0x598] ss:$0 sm:$0xff] }
0x32e3   :  { %v7171_v21 = vmul.f32 0.03125, %v7165_v12 }
0x32e4   :  { %v24396_v43 = vsub.f32 %v7152_v35, %v7170_v52  ;;  %v7181_v42 = vsel %vm253_vm5, %v7177_v41, 0.0  ;;  %v23532_v41 = vmov 0.0|0.0  }
0x32e5   :  { %v7168_v55 = vpop.xlane.xlu1 %7167  ;;  %v24407_v22 = vsub.f32 %v7153_v16, %v7171_v21  ;;  %v9908_v21 = vld [vmem:[#allocation2 + $0x7a8] sm:$0xff]  ;;  %22672 = vmatprep.subr.bf16.mxu1 %v23532_v41 }
0x32e6   :  { %v7172_v20 = vmul.f32 0.03125, %v7168_v55  ;;  %v7178_v1 = vmul.f32 %v24396_v43, %v24396_v43 }
0x32e7   :  { %v7179_v27 = vmul.f32 %v24407_v22, %v24407_v22 }
0x32e8   :  { %v24402_v47 = vsub.f32 %v7154_v17, %v7172_v20 }
0x32e9   :  { %v7187_v4 = vsel %vm253_vm5, %v7179_v27, 0.0 }
0x3359   :  { %v21277_v57 = vpop.f32.mrb[106].mxu1 }
0x335a   :  { %v9865_v60 = vadd.f32 %v21277_v57, %v19083_v56  ;;  %v9848_v23 = vpop.f32.mrb[107].mxu1 }
0x335b   :  { %v9864_v24 = vadd.f32 %v19083_v56, %v9848_v23 }
0x335c   :  { %v9867_v61 = vadd.f32 %v9865_v60, %v24214_v59  ;;  %v7184_v59 = vsel %vm253_vm5, %v7178_v1, 0.0  ;;  %v10104_v1 = vld [vmem:[#allocation2 + $0x7e8] sm:$0xff] }
0x335d   :  { %v9866_v62 = vadd.f32 %v9864_v24, %v24206_v44  ;;  %v7180_v44 = vmul.f32 %v24402_v47, %v24402_v47  ;;  %v9909_v24 = vld [vmem:[#allocation2 + $0x7b0] sm:$0xff] }
0x335e   :  { %v9873_v0 = vsel %vm253_vm5, %v9867_v61, 0.0 }
0x335f   :  { %9874 = vadd.xlane.f32.xlu1 %v9873_v0  ;;  %v9870_v2 = vsel %vm253_vm5, %v9866_v62, 0.0  ;;  %v7190_v3 = vsel %vm253_vm5, %v7180_v44, 0.0 }
0x3360   :  { %9871 = vadd.xlane.f32.xlu0 %v9870_v2 }
0x3363   :  { %7185 = vadd.xlane.f32.xlu1 %v7184_v59 }
0x3364   :  { %7182 = vadd.xlane.f32.xlu0 %v7181_v42 }
0x3367   :  { %7191 = vadd.xlane.f32.xlu1 %v7190_v3 }
0x3368   :  { %7188 = vadd.xlane.f32.xlu0 %v7187_v4 }
0x33ec   :  { %v9875_v49 = vpop.xlane.xlu1 %9874 }
0x33ed   :  { %v9877_v58 = vmul.f32 0.03125, %v9875_v49  ;;  %v9872_v11 = vpop.xlane.xlu0 %9871 }
0x33ee   :  { %v9876_v63 = vmul.f32 0.03125, %v9872_v11  ;;  %v10106_v11 = vld [vmem:[#allocation2 + $0x7f8] sm:$0xff] }
0x33ef   :  { %v24420_v13 = vsub.f32 %v9867_v61, %v9877_v58  ;;  %v22648_v61 = vpack.c.bf16 %v9909_v24, %v9908_v21 }
0x33f0   :  { %v24422_v14 = vsub.f32 %v9866_v62, %v9876_v63  ;;  %v7186_v25 = vpop.xlane.xlu1 %7185  ;;  %v9910_v62 = vld [vmem:[#allocation2 + $0x7b8] sm:$0xff]  ;;  %v10107_v63 = vld [vmem:[#allocation2 + $0x800] sm:$0xff] }
0x33f1   :  { %v7194_v26 = vmul.f32 0.03125, %v7186_v25  ;;  %v7183_v28 = vpop.xlane.xlu0 %7182  ;;  %v9881_v32 = vmul.f32 %v24420_v13, %v24420_v13  ;;  %22649 = vmatprep.subr.bf16.mxu0 %v22648_v61 }
0x33f2   :  { %v7193_v30 = vmul.f32 0.03125, %v7183_v28  ;;  %v9880_v29 = vmul.f32 %v24422_v14, %v24422_v14  ;;  %22651 = vmatpush3.bf16.msra.mxu0 %v22648_v61  ;;  %v22668_v28 = vpack.c.bf16 %v10107_v63, %v10106_v11  ;;  %v10613_v63 = vld [vmem:[#allocation2 + $0x858] sm:$0xff] }
0x33f3   :  { %v7198_v31 = vadd.f32 1e-05, %v7194_v26  ;;  %v9885_v40 = vsel %vm253_vm5, %v9881_v32, 0.0 }
0x33f4   :  { %v7197_v46 = vadd.f32 1e-05, %v7193_v30  ;;  %9886 = vadd.xlane.f32.xlu1 %v9885_v40  ;;  %v7192_v35 = vpop.xlane.xlu1 %7191  ;;  %v9882_v37 = vsel %vm253_vm5, %v9880_v29, 0.0 }
0x33f5   :  { %23346 = vrsqrt.f32 %v7198_v31  ;;  %v7196_v16 = vmul.f32 0.03125, %v7192_v35  ;;  %9883 = vadd.xlane.f32.xlu0 %v9882_v37  ;;  %v7189_v33 = vpop.xlane.xlu0 %7188 }
0x33f6   :  { %23348 = vrsqrt.f32 %v7197_v46  ;;  %v7195_v15 = vmul.f32 0.03125, %v7189_v33  ;;  %v19086_v33 = vld [vmem:[#allocation2 + $0x810] ss:$0 sm:$0xff] }
0x33f7   :  { %v7200_v19 = vadd.f32 1e-05, %v7196_v16 }
0x33f8   :  { %v7199_v17 = vadd.f32 1e-05, %v7195_v15 }
0x33f9   :  { %23350 = vrsqrt.f32 %v7200_v19 }
0x33fa   :  { %23352 = vrsqrt.f32 %v7199_v17 }
0x33ff   :  { %v23347_v18 = vpop.eup %23346 }
0x3400   :  { %v23349_v38 = vpop.eup %23348  ;;  %v7206_v39 = vmul.f32 %v23347_v18, %v24396_v43 }
0x3401   :  { %v7205_v48 = vmul.f32 %v23349_v38, %v24398_v36 }
0x3402   :  { %v7214_v7 = vmul.f32 %v19013_v50, %v7206_v39 }
0x3403   :  { %v23351_v52 = vpop.eup %23350  ;;  %v7213_v53 = vmul.f32 %v19013_v50, %v7205_v48 }
0x3404   :  { %v23353_v55 = vpop.eup %23352  ;;  %v7208_v56 = vmul.f32 %v23351_v52, %v24402_v47  ;;  %v24436_v20 = vadd.f32 %v19014_v51, %v7214_v7  ;;  %v9911_v47 = vld [vmem:[#allocation2 + $0x7c0] sm:$0xff] }
0x3405   :  { %v24433_v12 = vadd.f32 %v19014_v51, %v7213_v53  ;;  %v7207_v57 = vmul.f32 %v23353_v55, %v24407_v22  ;;  %v22652_v0 = vpack.c.bf16 %v9911_v47, %v9910_v62  ;;  %v10105_v22 = vld [vmem:[#allocation2 + $0x7f0] sm:$0xff] }
0x3406   :  { %v7216_v60 = vmul.f32 %v19013_v50, %v7208_v56  ;;  %v22664_v2 = vpack.c.bf16 %v10105_v22, %v10104_v1 }
0x3407   :  { %v7215_v23 = vmul.f32 %v19013_v50, %v7207_v57  ;;  %21297 = vmatprep.mubr.msk.f32.mxu1 %vm253_vm5, %v24433_v12  ;;  %22653 = vmatprep.subr.bf16.mxu0 %v22652_v0  ;;  %v19094_v50 = vld [vmem:[#allocation2 + $0x820] ss:$0 sm:$0xff] }
0x3408   :  { %21298 = vmatmul.mubr.msk.f32.vlgmr.msra.gmra.mrb[122].mxu1 %vm253_vm5, %v24436_v20  ;;  %v24444_v36 = vadd.f32 %v19014_v51, %v7216_v60  ;;  %22655 = vmatpush3.bf16.msra.mxu0 %v22652_v0 }
0x3409   :  { %v24442_v43 = vadd.f32 %v19014_v51, %v7215_v23  ;;  %22665 = vmatprep.subr.bf16.mxu0 %v22664_v2 }
0x340b   :  { %21300 = vmatprep.mubr.msk.f32.mxu1 %vm253_vm5, %v24442_v43 }
0x340c   :  { %21301 = vmatmul.mubr.msk.f32.gmra.mrb[124].mxu1 %vm253_vm5, %v24444_v36 }
0x340d   :  { %21321 = vmatprep.mubr.msk.f32.mxu1 %vm23531_vm10, %v23530_v34 }
0x3481   :  { %v9887_v59 = vpop.xlane.xlu1 %9886 }
0x3482   :  { %v9889_v44 = vmul.f32 0.03125, %v9887_v59  ;;  %v9884_v42 = vpop.xlane.xlu0 %9883 }
0x3483   :  { %v9888_v27 = vmul.f32 0.03125, %v9884_v42 }
0x3484   :  { %v9891_v3 = vadd.f32 1e-05, %v9889_v44 }
0x3485   :  { %v9890_v4 = vadd.f32 1e-05, %v9888_v27 }
0x3486   :  { %23354 = vrsqrt.f32 %v9891_v3 }
0x3487   :  { %23356 = vrsqrt.f32 %v9890_v4 }
0x3490   :  { %v23355_v5 = vpop.eup %23354 }
0x3491   :  { %v23357_v45 = vpop.eup %23356  ;;  %v9895_v10 = vmul.f32 %v23355_v5, %v24420_v13  ;;  %v19089_v13 = vld [vmem:[#allocation2 + $0x818] ss:$0 sm:$0xff] }
0x3492   :  { %v9894_v9 = vmul.f32 %v23357_v45, %v24422_v14  ;;  %v10612_v45 = vld [vmem:[#allocation2 + $0x850] sm:$0xff] }
0x3493   :  { %v9901_v49 = vmul.f32 %v19084_v6, %v9895_v10 }
0x3494   :  { %v9900_v58 = vmul.f32 %v19084_v6, %v9894_v9  ;;  %v10611_v6 = vld [vmem:[#allocation2 + $0x848] sm:$0xff] }
0x3495   :  { %v24457_v26 = vadd.f32 %v19085_v8, %v9901_v49  ;;  %v22694_v10 = vpack.c.bf16 %v10612_v45, %v10611_v6  ;;  %v10527_v9 = vld [vmem:[#allocation2 + $0x828] sm:$0xff] }
0x3496   :  { %v24455_v25 = vadd.f32 %v19085_v8, %v9900_v58  ;;  %v10528_v8 = vld [vmem:[#allocation2 + $0x830] sm:$0xff] }
0x3497   :  { %v22686_v49 = vpack.c.bf16 %v10528_v8, %v10527_v9 }
0x3498   :  { %21286 = vmatprep.mubr.msk.f32.mxu0 %vm253_vm5, %v24455_v25 }
0x3499   :  { %21287 = vmatmul.mubr.msk.f32.vlgmr.msra.gmra.mrb[130].mxu0 %vm253_vm5, %v24457_v26 }
0x349a   :  { %22667 = vmatpush3.bf16.msra.mxu0 %v22664_v2  ;;  %21311 = vmatprep.mubr.msk.f32.mxu0 %vm253_vm5, %v24433_v12 }
0x349b   :  { %22669 = vmatprep.subr.bf16.mxu0 %v22668_v28 }
0x349e   :  { %22671 = vmatpush3.bf16.msra.mxu0 %v22668_v28  ;;  %v10614_v28 = vld [vmem:[#allocation2 + $0x860] sm:$0xff] }
0x349f   :  { %22676 = vmatprep.subr.bf16.mxu0 %v23532_v41 }
0x34a1   :  { %21312 = vmatmul.mubr.msk.f32.vlgmr.msra.gmra.mrb[132].mxu0 %vm253_vm5, %v24436_v20 }
0x34a2   :  { %21314 = vmatprep.mubr.msk.f32.mxu0 %vm253_vm5, %v24442_v43 }
0x34a5   :  { %21315 = vmatmul.mubr.msk.f32.gmra.mrb[134].mxu0 %vm253_vm5, %v24444_v36 }
0x34a6   :  { %21328 = vmatprep.mubr.msk.f32.mxu0 %vm23531_vm10, %v23530_v34 }
0x34db   :  { %v21299_v14 = vpop.f32.mrb[122].mxu1 }
0x34dc   :  { %v10091_v32 = vadd.f32 %v21299_v14, %v19089_v13  ;;  %v10085_v30 = vpop.f32.mrb[123].mxu1  ;;  %v10529_v14 = vld [vmem:[#allocation2 + $0x838] sm:$0xff] }
0x34dd   :  { %v10086_v29 = vadd.f32 %v19089_v13, %v10085_v30 }
0x34df   :  { %v22673_v31 = vpack.c.bf16 %v10091_v32, %v10086_v29  ;;  %v21302_v40 = vpop.f32.mrb[124].mxu1  ;;  %v10530_v32 = vld [vmem:[#allocation2 + $0x840] sm:$0xff] }
0x34e0   :  { %v10101_v46 = vadd.f32 %v21302_v40, %v19089_v13  ;;  %v10095_v35 = vpop.f32.mrb[125].mxu1  ;;  %v22698_v40 = vpack.c.bf16 %v10614_v28, %v10613_v63 }
0x34e1   :  { %v10096_v37 = vadd.f32 %v19089_v13, %v10095_v35  ;;  %22675 = vmatpush3.bf16.xpose.msk.msra.mxu1 %vm23631_vm7, %v22673_v31  ;;  %v10705_v35 = vld [vmem:[#allocation2 + $0x868] sm:$0xff] }
0x34e2   :  { %22680 = vmatprep.subr.bf16.mxu1 %v23532_v41 }
0x34e3   :  { %v22677_v16 = vpack.c.bf16 %v10101_v46, %v10096_v37  ;;  %v22690_v46 = vpack.c.bf16 %v10530_v32, %v10529_v14  ;;  %v10706_v37 = vld [vmem:[#allocation2 + $0x870] sm:$0xff] }
0x34e5   :  { %22679 = vmatpush3.bf16.xpose.msk.msra.mxu0 %vm23631_vm7, %v22677_v16  ;;  %v22702_v16 = vpack.c.bf16 %v10706_v37, %v10705_v35 }
0x34e6   :  { %22683 = vmatprep.subr.bf16.mxu0 %v23532_v41 }
0x356c   :  { %v21288_v15 = vpop.f32.mrb[130].mxu0 }
0x356d   :  { %v9995_v19 = vadd.f32 %v21288_v15, %v19086_v33  ;;  %v9989_v17 = vpop.f32.mrb[131].mxu0  ;;  %v10708_v15 = vld [vmem:[#allocation2 + $0x880] sm:$0xff] }
0x356e   :  { %v9990_v18 = vadd.f32 %v19086_v33, %v9989_v17  ;;  %v10707_v33 = vld [vmem:[#allocation2 + $0x878] sm:$0xff] }
0x356f   :  { %21329 = vmatmul.mubr.msk.f32.vlgmr.msra.gmra.mrb[136].mxu0 %vm539_vm6, %v9995_v19  ;;  %v22706_v19 = vpack.c.bf16 %v10708_v15, %v10707_v33  ;;  %v11291_v33 = vld [vmem:[#allocation2 + $0x8b0] sm:$0xff] }
0x3570   :  { %21322 = vmatmul.mubr.msk.f32.vlgmr.msra.gmra.mrb[126].mxu1 %vm539_vm6, %v9990_v18  ;;  %21342 = vmatprep.mubr.msk.f32.mxu0 %vm23531_vm10, %v23530_v34 }
0x3571   :  { %21335 = vmatprep.mubr.msk.f32.mxu1 %vm23531_vm10, %v23530_v34 }
0x3574   :  { %v21313_v38 = vpop.f32.mrb[132].mxu0 }
0x3575   :  { %v10185_v39 = vadd.f32 %v21313_v38, %v19094_v50  ;;  %v10179_v48 = vpop.f32.mrb[133].mxu0 }
0x3576   :  { %v10180_v51 = vadd.f32 %v19094_v50, %v10179_v48 }
0x3578   :  { %v22681_v7 = vpack.c.bf16 %v10185_v39, %v10180_v51  ;;  %v21316_v52 = vpop.f32.mrb[134].mxu0  ;;  %v19110_v39 = vld [vmem:[#allocation2 + $0x898] ss:$0 sm:$0xff] }
0x3579   :  { %v10195_v53 = vadd.f32 %v21316_v52, %v19094_v50  ;;  %v10189_v55 = vpop.f32.mrb[135].mxu0 }
0x357a   :  { %v10190_v56 = vadd.f32 %v19094_v50, %v10189_v55  ;;  %22682 = vmatpush3.bf16.msra.mxu1 %v22681_v7 }
0x357b   :  { %22687 = vmatprep.subr.bf16.mxu1 %v22686_v49 }
0x357c   :  { %v22684_v57 = vpack.c.bf16 %v10195_v53, %v10190_v56 }
0x357e   :  { %22685 = vmatpush3.bf16.msra.mxu0 %v22684_v57 }
0x357f   :  { %22695 = vmatprep.subr.bf16.mxu0 %v22694_v10 }
0x3642   :  { %v10352_v60 = vpop.f32.mrb[136].mxu0 }
0x3643   :  { %v10357_v23 = vmul.f32 0.35355338, %v10352_v60  ;;  %v10273_v21 = vpop.f32.mrb[126].mxu1  ;;  %v21330_v24 = vpop.f32.mrb[137].mxu0 }
0x3644   :  { %v10356_v61 = vmul.f32 0.35355338, %v10273_v21  ;;  %v21323_v62 = vpop.f32.mrb[127].mxu1  ;;  %v19115_v24 = vld [vmem:[#allocation2 + $0x8a0] ss:$0 sm:$0xff] }
0x3645   :  { %v10361_v47 = vsel %vm718_vm8, %v10357_v23, -inf }
0x3646   :  { %10362 = vmax.xlane.f32.xlu0 %v10361_v47  ;;  %v10358_v0 = vsel %vm718_vm8, %v10356_v61, -inf }
0x3647   :  { %10359 = vmax.xlane.f32.xlu1 %v10358_v0 }
0x36d3   :  { %v10363_v1 = vpop.xlane.xlu0 %10362 }
0x36d4   :  { %v10365_v22 = vsub.f32 %v10357_v23, %v10363_v1  ;;  %v10360_v2 = vpop.xlane.xlu1 %10359 }
0x36d5   :  { %v10364_v59 = vsub.f32 %v10356_v61, %v10360_v2  ;;  %v19107_v61 = vld [vmem:[#allocation2 + $0x890] ss:$0 sm:$0xff] }
0x36d6   :  { %v10368_v44 = vmul.f32 1.442695, %v10365_v22 }
0x36d7   :  { %v10366_v42 = vmul.f32 1.442695, %v10364_v59 }
0x36d8   :  { %23358 = vpow2.f32 %v10368_v44 }
0x36d9   :  { %23360 = vpow2.f32 %v10366_v42 }
0x36e2   :  { %v23359_v27 = vpop.eup %23358 }
0x36e3   :  { %v23361_v3 = vpop.eup %23360  ;;  %v10373_v4 = vsel %vm718_vm8, %v23359_v27, 0.0 }
0x36e4   :  { %10374 = vadd.xlane.f32.xlu0 %v10373_v4  ;;  %v10370_v5 = vsel %vm718_vm8, %v23361_v3, 0.0 }
0x36e5   :  { %10371 = vadd.xlane.f32.xlu1 %v10370_v5 }
0x3771   :  { %v10375_v58 = vpop.xlane.xlu0 %10374 }
0x3772   :  { %23362 = vrcp.f32 %v10375_v58  ;;  %v10372_v11 = vpop.xlane.xlu1 %10371 }
0x3773   :  { %23364 = vrcp.f32 %v10372_v11 }
0x377c   :  { %v23363_v13 = vpop.eup %23362 }
0x377d   :  { %v23365_v30 = vpop.eup %23364  ;;  %v10379_v29 = vmul.f32 %v23363_v13, %v23359_v27 }
0x377e   :  { %v10378_v31 = vmul.f32 %v23365_v30, %v23361_v3 }
0x377f   :  { %21343 = vmatmul.mubr.msk.f32.vlgmr.msra.gmra.mrb[138].mxu0 %vm718_vm8, %v10379_v29 }
0x3780   :  { %22697 = vmatpush3.bf16.msra.mxu0 %v22694_v10  ;;  %21336 = vmatmul.mubr.msk.f32.vlgmr.msra.gmra.mrb[128].mxu1 %vm718_vm8, %v10378_v31 }
0x3781   :  { %22689 = vmatpush3.bf16.msra.mxu1 %v22686_v49  ;;  %21364 = vmatprep.mubr.msk.f32.mxu0 %vm253_vm5, %v24433_v12 }
0x3782   :  { %21353 = vmatprep.mubr.msk.f32.mxu1 %vm253_vm5, %v24455_v25  ;;  %22699 = vmatprep.subr.bf16.mxu0 %v22698_v40 }
0x3783   :  { %22691 = vmatprep.subr.bf16.mxu1 %v22690_v46 }
0x3784   :  { %22701 = vmatpush3.bf16.msra.mxu0 %v22698_v40 }
0x3785   :  { %22693 = vmatpush3.bf16.msra.mxu1 %v22690_v46  ;;  %22710 = vmatprep.subr.bf16.mxu0 %v23532_v41 }
0x3786   :  { %22703 = vmatprep.subr.bf16.mxu1 %v22702_v16 }
0x3787   :  { %21365 = vmatmul.mubr.msk.f32.vlgmr.msra.gmra.mrb[140].mxu0 %vm253_vm5, %v24436_v20 }
0x3788   :  { %21354 = vmatmul.mubr.msk.f32.vlgmr.msra.gmra.mrb[130].mxu1 %vm253_vm5, %v24457_v26  ;;  %21367 = vmatprep.mubr.msk.f32.mxu0 %vm253_vm5, %v24442_v43 }
0x3789   :  { %22705 = vmatpush3.bf16.msra.mxu1 %v22702_v16  ;;  %21378 = vmatprep.mubr.msk.f32.mxu1 %vm253_vm5, %v24433_v12  ;;  %v11290_v16 = vld [vmem:[#allocation2 + $0x8a8] sm:$0xff] }
0x378a   :  { %22707 = vmatprep.subr.bf16.mxu1 %v22706_v19 }
0x378b   :  { %21368 = vmatmul.mubr.msk.f32.gmra.mrb[142].mxu0 %vm253_vm5, %v24444_v36 }
0x378c   :  { %21388 = vmatprep.mubr.msk.f32.mxu0 %vm23531_vm10, %v23530_v34 }
0x378d   :  { %22709 = vmatpush3.bf16.msra.mxu1 %v22706_v19 }
0x378e   :  { %22714 = vmatprep.subr.bf16.mxu1 %v23532_v41 }
0x3790   :  { %21379 = vmatmul.mubr.msk.f32.vlgmr.msra.gmra.mrb[132].mxu1 %vm253_vm5, %v24436_v20 }
0x3791   :  { %21381 = vmatprep.mubr.msk.f32.mxu1 %vm253_vm5, %v24442_v43 }
0x3794   :  { %21382 = vmatmul.mubr.msk.f32.gmra.mrb[134].mxu1 %vm253_vm5, %v24444_v36 }
0x3795   :  { %21395 = vmatprep.mubr.msk.f32.mxu1 %vm23531_vm10, %v23530_v34 }
0x3852   :  { %v24518_v17 = vpop.f32.mrb[138].mxu0 }
0x3853   :  { %v24520_v18 = vpop.f32.mrb[128].mxu1  ;;  %v21344_v50 = vpop.f32.mrb[139].mxu0 }
0x3854   :  { %v21337_v38 = vpop.f32.mrb[129].mxu1  ;;  %v22724_v50 = vpack.c.bf16 %v11291_v33, %v11290_v16 }
0x3855   :  { %v11292_v38 = vld [vmem:[#allocation2 + $0x8b8] sm:$0xff] }
0x385a   :  { %v21366_v48 = vpop.f32.mrb[140].mxu0 }
0x385b   :  { %v10692_v51 = vadd.f32 %v21366_v48, %v19110_v39  ;;  %v21355_v7 = vpop.f32.mrb[130].mxu1  ;;  %v10686_v52 = vpop.f32.mrb[141].mxu0 }
0x385c   :  { %v10687_v53 = vadd.f32 %v19110_v39, %v10686_v52  ;;  %v10602_v55 = vpop.f32.mrb[131].mxu1  ;;  %v10608_v3 = vadd.f32 %v21355_v7, %v19107_v61  ;;  %v11468_v52 = vld [vmem:[#allocation2 + $0x8e8] sm:$0xff] }
0x385d   :  { %v10603_v22 = vadd.f32 %v19107_v61, %v10602_v55  ;;  %v11374_v61 = vld [vmem:[#allocation2 + $0x8c8] sm:$0xff] }
0x385e   :  { %v22711_v56 = vpack.c.bf16 %v10692_v51, %v10687_v53  ;;  %v21369_v57 = vpop.f32.mrb[142].mxu0  ;;  %v11469_v53 = vld [vmem:[#allocation2 + $0x8f0] sm:$0xff] }
0x385f   :  { %v10702_v60 = vadd.f32 %v21369_v57, %v19110_v39  ;;  %v10696_v23 = vpop.f32.mrb[143].mxu0  ;;  %v22740_v55 = vpack.c.bf16 %v11469_v53, %v11468_v52  ;;  %v11471_v57 = vld [vmem:[#allocation2 + $0x900] sm:$0xff] }
0x3860   :  { %v10697_v21 = vadd.f32 %v19110_v39, %v10696_v23  ;;  %22713 = vmatpush3.bf16.xpose.msk.msra.mxu0 %vm23631_vm7, %v22711_v56  ;;  %v11293_v39 = vld [vmem:[#allocation2 + $0x8c0] sm:$0xff]  ;;  %v11470_v56 = vld [vmem:[#allocation2 + $0x8f8] sm:$0xff]  ;;  %v11127_v23 = vld [vmem:[#allocation2 + $0x888] sm:$0xff] }
0x3861   :  { %22718 = vmatprep.subr.bf16.mxu0 %v23532_v41  ;;  %v22728_v7 = vpack.c.bf16 %v11293_v39, %v11292_v38 }
0x3862   :  { %v22715_v62 = vpack.c.bf16 %v10702_v60, %v10697_v21  ;;  %v22744_v60 = vpack.c.bf16 %v11471_v57, %v11470_v56  ;;  %v10526_v21 = vld [vmem:[#allocation2 + $0x808] sm:$0xff] }
0x3863   :  { %v21380_v47 = vpop.f32.mrb[132].mxu1 }
0x3864   :  { %v10786_v0 = vadd.f32 %v21380_v47, %v19115_v24  ;;  %v10780_v1 = vpop.f32.mrb[133].mxu1  ;;  %22717 = vmatpush3.bf16.xpose.msk.msra.mxu1 %vm23631_vm7, %v22715_v62  ;;  %v11375_v62 = vld [vmem:[#allocation2 + $0x8d0] sm:$0xff] }
0x3865   :  { %v10781_v2 = vadd.f32 %v19115_v24, %v10780_v1  ;;  %21412 = vmatprep.subr.mxu1 %v11127_v23 }
0x3867   :  { %v22719_v59 = vpack.c.bf16 %v10786_v0, %v10781_v2  ;;  %v21383_v44 = vpop.f32.mrb[134].mxu1  ;;  %21389 = vmatmul.mubr.msk.f32.vlgmr.msra.gmra.mrb[144].mxu0 %vm539_vm6, %v10603_v22  ;;  %v22732_v0 = vpack.c.bf16 %v11375_v62, %v11374_v61  ;;  %v11376_v2 = vld [vmem:[#allocation2 + $0x8d8] sm:$0xff]  ;;  %v11975_v61 = vld [vmem:[#allocation2 + $0x930] sm:$0xff] }
0x3868   :  { %v10796_v42 = vadd.f32 %v21383_v44, %v19115_v24  ;;  %v10790_v27 = vpop.f32.mrb[135].mxu1  ;;  %21402 = vmatprep.mubr.msk.f32.mxu0 %vm23531_vm10, %v23530_v34 }
0x3869   :  { %v10791_v4 = vadd.f32 %v19115_v24, %v10790_v27  ;;  %22720 = vmatpush3.bf16.msra.mxu0 %v22719_v59  ;;  %v11377_v59 = vld [vmem:[#allocation2 + $0x8e0] sm:$0xff] }
0x386a   :  { %22721 = vmatprep.subr.bf16.mxu0 %v23532_v41  ;;  %v22736_v44 = vpack.c.bf16 %v11377_v59, %v11376_v2  ;;  %v11976_v2 = vld [vmem:[#allocation2 + $0x938] sm:$0xff]  ;;  %v11977_v59 = vld [vmem:[#allocation2 + $0x940] sm:$0xff] }
0x386b   :  { %v22722_v5 = vpack.c.bf16 %v10796_v42, %v10791_v4  ;;  %21396 = vmatmul.mubr.msk.f32.vlgmr.msra.gmra.mrb[136].mxu1 %vm539_vm6, %v10608_v3  ;;  %v19140_v3 = vld [vmem:[#allocation2 + $0x920] ss:$0 sm:$0xff] }
0x386c   :  { %21413 = vmatpush3.msra.mxu1 %v11127_v23 }
0x386d   :  { %21417 = vmatprep.subr.mxu1 %v10526_v21 }
0x393a   :  { %v10874_v6 = vpop.f32.mrb[144].mxu0 }
0x393b   :  { %v10957_v45 = vmul.f32 0.35355338, %v10874_v6  ;;  %v21390_v10 = vpop.f32.mrb[145].mxu0 }
0x393d   :  { %v10959_v9 = vsel %vm718_vm8, %v10957_v45, -inf }
0x393e   :  { %v10953_v8 = vpop.f32.mrb[136].mxu1  ;;  %10960 = vmax.xlane.f32.xlu0 %v10959_v9 }
0x393f   :  { %v10958_v49 = vmul.f32 0.35355338, %v10953_v8  ;;  %v21397_v58 = vpop.f32.mrb[137].mxu1 }
0x3940   :  { %v19135_v58 = vld [vmem:[#allocation2 + $0x918] ss:$0 sm:$0xff] }
0x3941   :  { %v10962_v11 = vsel %vm718_vm8, %v10958_v49, -inf }
0x3942   :  { %10963 = vmax.xlane.f32.xlu1 %v10962_v11 }
0x39cb   :  { %v10961_v63 = vpop.xlane.xlu0 %10960 }
0x39cc   :  { %v10965_v28 = vsub.f32 %v10957_v45, %v10961_v63 }
0x39ce   :  { %v10967_v13 = vmul.f32 1.442695, %v10965_v28 }
0x39cf   :  { %v10964_v14 = vpop.xlane.xlu1 %10963 }
0x39d0   :  { %23366 = vpow2.f32 %v10967_v13  ;;  %v10966_v32 = vsub.f32 %v10958_v49, %v10964_v14 }
0x39d2   :  { %v10969_v30 = vmul.f32 1.442695, %v10966_v32 }
0x39d4   :  { %23368 = vpow2.f32 %v10969_v30 }
0x39da   :  { %v23367_v29 = vpop.eup %23366 }
0x39db   :  { %v10971_v31 = vsel %vm718_vm8, %v23367_v29, 0.0 }
0x39dc   :  { %10972 = vadd.xlane.f32.xlu0 %v10971_v31 }
0x39de   :  { %v23369_v40 = vpop.eup %23368 }
0x39df   :  { %v10974_v46 = vsel %vm718_vm8, %v23369_v40, 0.0 }
0x39e0   :  { %10975 = vadd.xlane.f32.xlu1 %v10974_v46 }
0x3a69   :  { %v10973_v35 = vpop.xlane.xlu0 %10972 }
0x3a6a   :  { %23370 = vrcp.f32 %v10973_v35 }
0x3a6d   :  { %v10976_v37 = vpop.xlane.xlu1 %10975 }
0x3a6e   :  { %23372 = vrcp.f32 %v10976_v37 }
0x3a74   :  { %v23371_v15 = vpop.eup %23370 }
0x3a75   :  { %v10979_v19 = vmul.f32 %v23371_v15, %v23367_v29 }
0x3a77   :  { %21403 = vmatmul.mubr.msk.f32.vlgmr.msra.gmra.mrb[146].mxu0 %vm718_vm8, %v10979_v19 }
0x3a78   :  { %v23373_v48 = vpop.eup %23372  ;;  %22723 = vmatpush3.bf16.msra.mxu0 %v22722_v5  ;;  %21409 = vmatprep.mubr.msk.f32.mxu0 %vm23531_vm10, %v23530_v34 }
0x3a79   :  { %v10980_v51 = vmul.f32 %v23373_v48, %v23369_v40  ;;  %22725 = vmatprep.subr.bf16.mxu0 %v22724_v50  ;;  %v19132_v40 = vld [vmem:[#allocation2 + $0x910] ss:$0 sm:$0xff] }
0x3a7b   :  { %21410 = vmatmul.mubr.msk.f32.vlgmr.msra.gmra.mrb[148].mxu0 %vm718_vm8, %v10980_v51 }
0x3a7c   :  { %22727 = vmatpush3.bf16.msra.mxu0 %v22724_v50  ;;  %21430 = vmatprep.mubr.msk.f32.mxu0 %vm253_vm5, %v24455_v25 }
0x3a7d   :  { %22729 = vmatprep.subr.bf16.mxu0 %v22728_v7 }
0x3a80   :  { %22731 = vmatpush3.bf16.msra.mxu0 %v22728_v7 }
0x3a81   :  { %22741 = vmatprep.subr.bf16.mxu0 %v22740_v55 }
0x3a83   :  { %21431 = vmatmul.mubr.msk.f32.vlgmr.msra.gmra.mrb[150].mxu0 %vm253_vm5, %v24457_v26 }
0x3a84   :  { %22743 = vmatpush3.bf16.msra.mxu0 %v22740_v55  ;;  %21455 = vmatprep.mubr.msk.f32.mxu0 %vm253_vm5, %v24433_v12 }
0x3a85   :  { %22745 = vmatprep.subr.bf16.mxu0 %v22744_v60 }
0x3a88   :  { %22747 = vmatpush3.bf16.msra.mxu0 %v22744_v60 }
0x3a89   :  { %22752 = vmatprep.subr.bf16.mxu0 %v23532_v41 }
0x3a8b   :  { %21456 = vmatmul.mubr.msk.f32.vlgmr.msra.gmra.mrb[152].mxu0 %vm253_vm5, %v24436_v20 }
0x3a8c   :  { %21458 = vmatprep.mubr.msk.f32.mxu0 %vm253_vm5, %v24442_v43 }
0x3a8f   :  { %21459 = vmatmul.mubr.msk.f32.gmra.mrb[154].mxu0 %vm253_vm5, %v24444_v36 }
0x3a90   :  { %21472 = vmatprep.mubr.msk.f32.mxu0 %vm23531_vm10, %v23530_v34 }
0x3b4a   :  { %v11050_v24 = vpop.f32.mrb[146].mxu0 }
0x3b4b   :  { %v21404_v47 = vpop.f32.mrb[147].mxu0  ;;  %21414 = vmatprep.mubr.msk.f32.mxu1 %vm539_vm6, %v11050_v24  ;;  %v11974_v24 = vld [vmem:[#allocation2 + $0x928] sm:$0xff] }
0x3b4c   :  { %v22762_v62 = vpack.c.bf16 %v11975_v61, %v11974_v24 }
0x3b4e   :  { %v11123_v1 = vpop.f32.mrb[148].mxu0 }
0x3b4f   :  { %v21411_v22 = vpop.f32.mrb[149].mxu0  ;;  %21415 = vmatmul.mubr.msk.f32.vlgmr.msra.gmra.mrb[138].mxu1 %vm539_vm6, %v11123_v1 }
0x3b50   :  { %21418 = vmatpush3.msra.mxu1 %v10526_v21  ;;  %21419 = vmatprep.mubr.msk.f32.mxu1 %vm539_vm6, %v24520_v18 }
0x3b51   :  { %22733 = vmatprep.subr.bf16.mxu1 %v22732_v0 }
0x3b56   :  { %v21432_v42 = vpop.f32.mrb[150].mxu0 }
0x3b57   :  { %v11365_v27 = vpop.f32.mrb[151].mxu0  ;;  %21420 = vmatmul.mubr.msk.f32.vlgmr.msra.gmra.mrb[138].mxu1 %vm539_vm6, %v24518_v17  ;;  %v11371_v37 = vadd.f32 %v21432_v42, %v19132_v40 }
0x3b58   :  { %22735 = vmatpush3.bf16.msra.mxu1 %v22732_v0  ;;  %21441 = vmatprep.mubr.msk.f32.mxu1 %vm253_vm5, %v24433_v12  ;;  %v11366_v35 = vadd.f32 %v19132_v40, %v11365_v27  ;;  %v22766_v27 = vpack.c.bf16 %v11977_v59, %v11976_v2 }
0x3b59   :  { %22737 = vmatprep.subr.bf16.mxu1 %v22736_v44 }
0x3b5c   :  { %22739 = vmatpush3.bf16.msra.mxu1 %v22736_v44 }
0x3b5d   :  { %22748 = vmatprep.subr.bf16.mxu1 %v23532_v41 }
0x3b5e   :  { %v21457_v4 = vpop.f32.mrb[152].mxu0 }
0x3b5f   :  { %v11549_v18 = vadd.f32 %v21457_v4, %v19140_v3  ;;  %21442 = vmatmul.mubr.msk.f32.vlgmr.msra.gmra.mrb[140].mxu1 %vm253_vm5, %v24436_v20  ;;  %v11543_v5 = vpop.f32.mrb[153].mxu0  ;;  %v12153_v4 = vld [vmem:[#allocation2 + $0x970] sm:$0xff] }
0x3b60   :  { %v11544_v6 = vadd.f32 %v19140_v3, %v11543_v5  ;;  %21444 = vmatprep.mubr.msk.f32.mxu1 %vm253_vm5, %v24442_v43  ;;  %v12154_v5 = vld [vmem:[#allocation2 + $0x978] sm:$0xff] }
0x3b62   :  { %v22757_v17 = vpack.c.bf16 %v11549_v18, %v11544_v6  ;;  %v21460_v45 = vpop.f32.mrb[154].mxu0  ;;  %v12155_v6 = vld [vmem:[#allocation2 + $0x980] sm:$0xff] }
0x3b63   :  { %v11559_v10 = vadd.f32 %v21460_v45, %v19140_v3  ;;  %21445 = vmatmul.mubr.msk.f32.gmra.mrb[142].mxu1 %vm253_vm5, %v24444_v36  ;;  %v11553_v9 = vpop.f32.mrb[155].mxu0  ;;  %v11890_v45 = vld [vmem:[#allocation2 + $0x908] sm:$0xff] }
0x3b64   :  { %v11554_v8 = vadd.f32 %v19140_v3, %v11553_v9  ;;  %21465 = vmatprep.mubr.msk.f32.mxu1 %vm23531_vm10, %v23530_v34  ;;  %v12152_v3 = vld [vmem:[#allocation2 + $0x968] sm:$0xff]  ;;  %v12059_v9 = vld [vmem:[#allocation2 + $0x950] sm:$0xff] }
0x3b65   :  { %v22778_v18 = vpack.c.bf16 %v12153_v4, %v12152_v3 }
0x3b66   :  { %v22760_v49 = vpack.c.bf16 %v11559_v10, %v11554_v8  ;;  %v12058_v10 = vld [vmem:[#allocation2 + $0x948] sm:$0xff] }
0x3b67   :  { %v22770_v8 = vpack.c.bf16 %v12059_v9, %v12058_v10 }
0x3c32   :  { %v21443_v11 = vpop.f32.mrb[140].mxu1 }
0x3c33   :  { %v11455_v63 = vadd.f32 %v21443_v11, %v19135_v58  ;;  %v11449_v28 = vpop.f32.mrb[141].mxu1  ;;  %v12061_v11 = vld [vmem:[#allocation2 + $0x960] sm:$0xff] }
0x3c34   :  { %v11450_v13 = vadd.f32 %v19135_v58, %v11449_v28 }
0x3c36   :  { %v22749_v14 = vpack.c.bf16 %v11455_v63, %v11450_v13  ;;  %v21446_v32 = vpop.f32.mrb[142].mxu1 }
0x3c37   :  { %v11465_v30 = vadd.f32 %v21446_v32, %v19135_v58  ;;  %v11459_v29 = vpop.f32.mrb[143].mxu1 }
0x3c38   :  { %v11460_v31 = vadd.f32 %v19135_v58, %v11459_v29  ;;  %22751 = vmatpush3.bf16.xpose.msk.msra.mxu1 %vm23631_vm7, %v22749_v14  ;;  %v12060_v58 = vld [vmem:[#allocation2 + $0x958] sm:$0xff]  ;;  %v19163_v29 = vld [vmem:[#allocation2 + $0x9a0] ss:$0 sm:$0xff] }
0x3c39   :  { %22756 = vmatprep.subr.bf16.mxu1 %v23532_v41  ;;  %v22774_v28 = vpack.c.bf16 %v12061_v11, %v12060_v58 }
0x3c3a   :  { %v22753_v46 = vpack.c.bf16 %v11465_v30, %v11460_v31 }
0x3c3c   :  { %22755 = vmatpush3.bf16.xpose.msk.msra.mxu0 %vm23631_vm7, %v22753_v46 }
0x3c3d   :  { %22759 = vmatprep.subr.bf16.mxu0 %v23532_v41 }
0x3c3f   :  { %21466 = vmatmul.mubr.msk.f32.vlgmr.msra.gmra.mrb[144].mxu1 %vm539_vm6, %v11366_v35 }
0x3c40   :  { %22758 = vmatpush3.bf16.msra.mxu1 %v22757_v17  ;;  %21479 = vmatprep.mubr.msk.f32.mxu1 %vm23531_vm10, %v23530_v34  ;;  %v22782_v17 = vpack.c.bf16 %v12155_v6, %v12154_v5 }
0x3c41   :  { %21489 = vmatprep.subr.mxu1 %v11890_v45 }
0x3c43   :  { %21473 = vmatmul.mubr.msk.f32.vlgmr.msra.gmra.mrb[156].mxu0 %vm539_vm6, %v11371_v37 }
0x3c44   :  { %22761 = vmatpush3.bf16.msra.mxu0 %v22760_v49  ;;  %21486 = vmatprep.mubr.msk.f32.mxu0 %vm23531_vm10, %v23530_v34 }
0x3c45   :  { %22763 = vmatprep.subr.bf16.mxu0 %v22762_v62 }
0x3d12   :  { %v11637_v16 = vpop.f32.mrb[144].mxu1 }
0x3d13   :  { %v11720_v33 = vmul.f32 0.35355338, %v11637_v16  ;;  %v21467_v15 = vpop.f32.mrb[145].mxu1 }
0x3d15   :  { %v11722_v19 = vsel %vm718_vm8, %v11720_v33, -inf }
0x3d16   :  { %v11716_v50 = vpop.f32.mrb[156].mxu0  ;;  %11723 = vmax.xlane.f32.xlu0 %v11722_v19 }
0x3d17   :  { %v11721_v38 = vmul.f32 0.35355338, %v11716_v50  ;;  %v21474_v39 = vpop.f32.mrb[157].mxu0 }
0x3d19   :  { %v11725_v48 = vsel %vm718_vm8, %v11721_v38, -inf }
0x3d1a   :  { %11726 = vmax.xlane.f32.xlu1 %v11725_v48 }
0x3da3   :  { %v11724_v51 = vpop.xlane.xlu0 %11723 }
0x3da4   :  { %v11728_v7 = vsub.f32 %v11720_v33, %v11724_v51 }
0x3da6   :  { %v11730_v52 = vmul.f32 1.442695, %v11728_v7 }
0x3da7   :  { %v11727_v53 = vpop.xlane.xlu1 %11726 }
0x3da8   :  { %23374 = vpow2.f32 %v11730_v52  ;;  %v11729_v55 = vsub.f32 %v11721_v38, %v11727_v53  ;;  %v19158_v38 = vld [vmem:[#allocation2 + $0x998] ss:$0 sm:$0xff] }
0x3daa   :  { %v11732_v56 = vmul.f32 1.442695, %v11729_v55 }
0x3dac   :  { %23376 = vpow2.f32 %v11732_v56 }
0x3db2   :  { %v23375_v57 = vpop.eup %23374 }
0x3db3   :  { %v11734_v60 = vsel %vm718_vm8, %v23375_v57, 0.0 }
0x3db4   :  { %11735 = vadd.xlane.f32.xlu0 %v11734_v60  ;;  %v19155_v60 = vld [vmem:[#allocation2 + $0x990] ss:$0 sm:$0xff] }
0x3db6   :  { %v23377_v23 = vpop.eup %23376 }
0x3db7   :  { %v11737_v21 = vsel %vm718_vm8, %v23377_v23, 0.0 }
0x3db8   :  { %11738 = vadd.xlane.f32.xlu1 %v11737_v21 }
0x3e41   :  { %v11736_v47 = vpop.xlane.xlu0 %11735 }
0x3e42   :  { %23378 = vrcp.f32 %v11736_v47 }
0x3e45   :  { %v11739_v0 = vpop.xlane.xlu1 %11738 }
0x3e46   :  { %23380 = vrcp.f32 %v11739_v0 }
0x3e4c   :  { %v23379_v1 = vpop.eup %23378 }
0x3e4d   :  { %v11742_v22 = vmul.f32 %v23379_v1, %v23375_v57 }
0x3e4f   :  { %21480 = vmatmul.mubr.msk.f32.vlgmr.msra.gmra.mrb[146].mxu1 %vm718_vm8, %v11742_v22 }
0x3e50   :  { %v23381_v44 = vpop.eup %23380  ;;  %21490 = vmatpush3.msra.mxu1 %v11890_v45 }
0x3e51   :  { %v11743_v42 = vmul.f32 %v23381_v44, %v23377_v23  ;;  %22771 = vmatprep.subr.bf16.mxu1 %v22770_v8 }
0x3e53   :  { %21487 = vmatmul.mubr.msk.f32.vlgmr.msra.gmra.mrb[158].mxu0 %vm718_vm8, %v11743_v42 }
0x3e54   :  { %22765 = vmatpush3.bf16.msra.mxu0 %v22762_v62  ;;  %21502 = vmatprep.mubr.msk.f32.mxu0 %vm253_vm5, %v24455_v25 }
0x3e55   :  { %22767 = vmatprep.subr.bf16.mxu0 %v22766_v27 }
0x3e58   :  { %22769 = vmatpush3.bf16.msra.mxu0 %v22766_v27 }
0x3e59   :  { %22779 = vmatprep.subr.bf16.mxu0 %v22778_v18 }
0x3e5b   :  { %21503 = vmatmul.mubr.msk.f32.vlgmr.msra.gmra.mrb[160].mxu0 %vm253_vm5, %v24457_v26 }
0x3e5c   :  { %22781 = vmatpush3.bf16.msra.mxu0 %v22778_v18  ;;  %21527 = vmatprep.mubr.msk.f32.mxu0 %vm253_vm5, %v24433_v12 }
0x3e5d   :  { %22783 = vmatprep.subr.bf16.mxu0 %v22782_v17 }
0x3e60   :  { %22785 = vmatpush3.bf16.msra.mxu0 %v22782_v17 }
0x3e61   :  { %22790 = vmatprep.subr.bf16.mxu0 %v23532_v41 }
0x3e63   :  { %21528 = vmatmul.mubr.msk.f32.vlgmr.msra.gmra.mrb[162].mxu0 %vm253_vm5, %v24436_v20 }
0x3e64   :  { %21530 = vmatprep.mubr.msk.f32.mxu0 %vm253_vm5, %v24442_v43 }
0x3e67   :  { %21531 = vmatmul.mubr.msk.f32.gmra.mrb[164].mxu0 %vm253_vm5, %v24444_v36 }
0x3e68   :  { %21544 = vmatprep.mubr.msk.f32.mxu0 %vm23531_vm10, %v23530_v34 }
0x3f22   :  { %v11813_v49 = vpop.f32.mrb[146].mxu1 }
0x3f23   :  { %v21481_v63 = vpop.f32.mrb[147].mxu1  ;;  %21491 = vmatprep.mubr.msk.f32.mxu1 %vm539_vm6, %v11813_v49 }
0x3f24   :  { %v12574_v63 = vld [vmem:[#allocation2 + $0x988] sm:$0xff] }
0x3f26   :  { %v11886_v13 = vpop.f32.mrb[158].mxu0 }
0x3f27   :  { %v21488_v14 = vpop.f32.mrb[159].mxu0  ;;  %21492 = vmatmul.mubr.msk.f32.vlgmr.msra.gmra.mrb[138].mxu1 %vm539_vm6, %v11886_v13 }
0x3f28   :  { %22773 = vmatpush3.bf16.msra.mxu1 %v22770_v8  ;;  %21513 = vmatprep.mubr.msk.f32.mxu1 %vm253_vm5, %v24433_v12 }
0x3f29   :  { %22775 = vmatprep.subr.bf16.mxu1 %v22774_v28 }
0x3f2c   :  { %22777 = vmatpush3.bf16.msra.mxu1 %v22774_v28 }
0x3f2d   :  { %22786 = vmatprep.subr.bf16.mxu1 %v23532_v41 }
0x3f2e   :  { %v21504_v32 = vpop.f32.mrb[160].mxu0 }
0x3f2f   :  { %v12049_v30 = vpop.f32.mrb[161].mxu0  ;;  %21514 = vmatmul.mubr.msk.f32.vlgmr.msra.gmra.mrb[148].mxu1 %vm253_vm5, %v24436_v20  ;;  %v12055_v24 = vadd.f32 %v21504_v32, %v19155_v60 }
0x3f30   :  { %21516 = vmatprep.mubr.msk.f32.mxu1 %vm253_vm5, %v24442_v43  ;;  %v12050_v21 = vadd.f32 %v19155_v60, %v12049_v30  ;;  %v19178_v30 = vld [vmem:[#allocation2 + $0x9a8] ss:$0 sm:$0xff] }
0x3f33   :  { %21517 = vmatmul.mubr.msk.f32.gmra.mrb[150].mxu1 %vm253_vm5, %v24444_v36 }
0x3f34   :  { %21537 = vmatprep.mubr.msk.f32.mxu1 %vm23531_vm10, %v23530_v34 }
0x3f36   :  { %v21529_v31 = vpop.f32.mrb[162].mxu0 }
0x3f37   :  { %v12233_v40 = vadd.f32 %v21529_v31, %v19163_v29  ;;  %v12227_v46 = vpop.f32.mrb[163].mxu0 }
0x3f38   :  { %v12228_v35 = vadd.f32 %v19163_v29, %v12227_v46 }
0x3f3a   :  { %v22795_v37 = vpack.c.bf16 %v12233_v40, %v12228_v35  ;;  %v21532_v16 = vpop.f32.mrb[164].mxu0 }
0x3f3b   :  { %v12243_v33 = vadd.f32 %v21532_v16, %v19163_v29  ;;  %v12237_v15 = vpop.f32.mrb[165].mxu0 }
0x3f3c   :  { %v12238_v19 = vadd.f32 %v19163_v29, %v12237_v15 }
0x3f3e   :  { %v22798_v50 = vpack.c.bf16 %v12243_v33, %v12238_v19 }
0x4002   :  { %v21515_v39 = vpop.f32.mrb[148].mxu1 }
0x4003   :  { %v12139_v48 = vadd.f32 %v21515_v39, %v19158_v38  ;;  %v12133_v51 = vpop.f32.mrb[149].mxu1 }
0x4004   :  { %v12134_v7 = vadd.f32 %v19158_v38, %v12133_v51 }
0x4006   :  { %v22787_v52 = vpack.c.bf16 %v12139_v48, %v12134_v7  ;;  %v21518_v53 = vpop.f32.mrb[150].mxu1 }
0x4007   :  { %v12149_v55 = vadd.f32 %v21518_v53, %v19158_v38  ;;  %v12143_v56 = vpop.f32.mrb[151].mxu1  ;;  %v12708_v53 = vld [vmem:[#allocation2 + $0x9b8] sm:$0xff] }
0x4008   :  { %v12144_v57 = vadd.f32 %v19158_v38, %v12143_v56  ;;  %22789 = vmatpush3.bf16.xpose.msk.msra.mxu1 %vm23631_vm7, %v22787_v52  ;;  %v12709_v56 = vld [vmem:[#allocation2 + $0x9c0] sm:$0xff] }
0x4009   :  { %22794 = vmatprep.subr.bf16.mxu1 %v23532_v41 }
0x400a   :  { %v22791_v23 = vpack.c.bf16 %v12149_v55, %v12144_v57  ;;  %v12710_v57 = vld [vmem:[#allocation2 + $0x9c8] sm:$0xff] }
0x400b   :  { %v22804_v60 = vpack.c.bf16 %v12710_v57, %v12709_v56  ;;  %v12935_v56 = vld [vmem:[#allocation2 + $0xa50] sm:$0xff]  ;;  %v12936_v57 = vld [vmem:[#allocation2 + $0xa58] sm:$0xff] }
0x400c   :  { %22793 = vmatpush3.bf16.xpose.msk.msra.mxu0 %vm23631_vm7, %v22791_v23  ;;  %v12799_v23 = vld [vmem:[#allocation2 + $0x9d8] sm:$0xff] }
0x400f   :  { %21538 = vmatmul.mubr.msk.f32.vlgmr.msra.gmra.mrb[152].mxu1 %vm539_vm6, %v12050_v21  ;;  %v12800_v21 = vld [vmem:[#allocation2 + $0x9e0] sm:$0xff] }
0x4010   :  { %22796 = vmatpush3.bf16.msra.mxu1 %v22795_v37  ;;  %21551 = vmatprep.mubr.msk.f32.mxu1 %vm23531_vm10, %v23530_v34 }
0x4011   :  { %22797 = vmatprep.subr.bf16.mxu1 %v23532_v41 }
0x4013   :  { %21545 = vmatmul.mubr.msk.f32.vlgmr.msra.gmra.mrb[166].mxu0 %vm539_vm6, %v12055_v24  ;;  %v12801_v24 = vld [vmem:[#allocation2 + $0x9e8] sm:$0xff] }
0x40e2   :  { %v12321_v61 = vpop.f32.mrb[152].mxu1 }
0x40e3   :  { %v12404_v62 = vmul.f32 0.35355338, %v12321_v61  ;;  %v21539_v47 = vpop.f32.mrb[153].mxu1  ;;  %v22808_v61 = vpack.c.bf16 %v12800_v21, %v12799_v23  ;;  %v13109_v23 = vld [vmem:[#allocation2 + $0xa90] sm:$0xff]  ;;  %v13110_v21 = vld [vmem:[#allocation2 + $0xa98] sm:$0xff] }
0x40e5   :  { %v12406_v0 = vsel %vm718_vm8, %v12404_v62, -inf }
0x40e6   :  { %v12400_v1 = vpop.f32.mrb[166].mxu0  ;;  %12407 = vmax.xlane.f32.xlu0 %v12406_v0  ;;  %v12803_v0 = vld [vmem:[#allocation2 + $0x9f8] sm:$0xff] }
0x40e7   :  { %v12405_v22 = vmul.f32 0.35355338, %v12400_v1  ;;  %v21546_v2 = vpop.f32.mrb[167].mxu0  ;;  %v12804_v1 = vld [vmem:[#allocation2 + $0xa00] sm:$0xff] }
0x40e9   :  { %v12409_v59 = vsel %vm718_vm8, %v12405_v22, -inf }
0x40ea   :  { %12410 = vmax.xlane.f32.xlu1 %v12409_v59 }
0x4173   :  { %v12408_v44 = vpop.xlane.xlu0 %12407 }
0x4174   :  { %v12412_v42 = vsub.f32 %v12404_v62, %v12408_v44  ;;  %v12802_v62 = vld [vmem:[#allocation2 + $0x9f0] sm:$0xff] }
0x4175   :  { %v22812_v47 = vpack.c.bf16 %v12802_v62, %v12801_v24  ;;  %v22840_v24 = vpack.c.bf16 %v13110_v21, %v13109_v23  ;;  %v12938_v62 = vld [vmem:[#allocation2 + $0xa68] sm:$0xff] }
0x4176   :  { %v12414_v27 = vmul.f32 1.442695, %v12412_v42 }
0x4177   :  { %v12411_v3 = vpop.xlane.xlu1 %12410 }
0x4178   :  { %23382 = vpow2.f32 %v12414_v27  ;;  %v12413_v4 = vsub.f32 %v12405_v22, %v12411_v3  ;;  %v22816_v22 = vpack.c.bf16 %v12804_v1, %v12803_v0  ;;  %v13111_v0 = vld [vmem:[#allocation2 + $0xaa0] sm:$0xff]  ;;  %v13112_v1 = vld [vmem:[#allocation2 + $0xaa8] sm:$0xff] }
0x417a   :  { %v12416_v18 = vmul.f32 1.442695, %v12413_v4 }
0x417c   :  { %23384 = vpow2.f32 %v12416_v18  ;;  %v19179_v18 = vld [vmem:[#allocation2 + $0xa30] ss:$0 sm:$0xff] }
0x4182   :  { %v23383_v5 = vpop.eup %23382 }
0x4183   :  { %v12418_v6 = vsel %vm718_vm8, %v23383_v5, 0.0 }
0x4184   :  { %12419 = vadd.xlane.f32.xlu0 %v12418_v6 }
0x4186   :  { %v23385_v17 = vpop.eup %23384 }
0x4187   :  { %v12421_v45 = vsel %vm718_vm8, %v23385_v17, 0.0 }
0x4188   :  { %12422 = vadd.xlane.f32.xlu1 %v12421_v45  ;;  %v19180_v45 = vld [vmem:[#allocation2 + $0xa38] ss:$0 sm:$0xff] }
0x4211   :  { %v12420_v10 = vpop.xlane.xlu0 %12419 }
0x4212   :  { %23386 = vrcp.f32 %v12420_v10 }
0x4215   :  { %v12423_v9 = vpop.xlane.xlu1 %12422 }
0x4216   :  { %23388 = vrcp.f32 %v12423_v9 }
0x421c   :  { %v23387_v8 = vpop.eup %23386 }
0x421d   :  { %v12426_v49 = vmul.f32 %v23387_v8, %v23383_v5 }
0x421f   :  { %21552 = vmatmul.mubr.msk.f32.vlgmr.msra.gmra.mrb[154].mxu1 %vm718_vm8, %v12426_v49 }
0x4220   :  { %v23389_v58 = vpop.eup %23388  ;;  %22799 = vmatpush3.bf16.msra.mxu1 %v22798_v50  ;;  %21558 = vmatprep.mubr.msk.f32.mxu1 %vm23531_vm10, %v23530_v34 }
0x4221   :  { %v12427_v11 = vmul.f32 %v23389_v58, %v23385_v17  ;;  %21561 = vmatprep.subr.mxu1 %v12574_v63  ;;  %v12805_v58 = vld [vmem:[#allocation2 + $0xa08] sm:$0xff] }
0x4223   :  { %21559 = vmatmul.mubr.msk.f32.vlgmr.msra.gmra.mrb[156].mxu1 %vm718_vm8, %v12427_v11  ;;  %v12806_v11 = vld [vmem:[#allocation2 + $0xa10] sm:$0xff] }
0x4224   :  { %21562 = vmatpush3.msra.mxu1 %v12574_v63  ;;  %v22820_v63 = vpack.c.bf16 %v12806_v11, %v12805_v58  ;;  %v13027_v11 = vld [vmem:[#allocation2 + $0xa80] sm:$0xff] }
0x4225   :  { %22809 = vmatprep.subr.bf16.mxu1 %v22808_v61 }
0x42f2   :  { %v12497_v28 = vpop.f32.mrb[154].mxu1 }
0x42f3   :  { %v21553_v13 = vpop.f32.mrb[155].mxu1  ;;  %21563 = vmatprep.mubr.msk.f32.mxu1 %vm539_vm6, %v12497_v28  ;;  %v19181_v28 = vld [vmem:[#allocation2 + $0x9d0] ss:$0 sm:$0xff] }
0x42f6   :  { %v12570_v14 = vpop.f32.mrb[156].mxu1 }
0x42f7   :  { %v21560_v32 = vpop.f32.mrb[157].mxu1  ;;  %21564 = vmatmul.mubr.msk.f32.vlgmr.msra.gmra.mrb[138].mxu1 %vm539_vm6, %v12570_v14 }
0x42f8   :  { %22811 = vmatpush3.bf16.msra.mxu1 %v22808_v61  ;;  %v12937_v61 = vld [vmem:[#allocation2 + $0xa60] sm:$0xff] }
0x42f9   :  { %22813 = vmatprep.subr.bf16.mxu1 %v22812_v47 }
0x42fc   :  { %22815 = vmatpush3.bf16.msra.mxu1 %v22812_v47  ;;  %v22828_v47 = vpack.c.bf16 %v12938_v62, %v12937_v61 }
0x42fd   :  { %22817 = vmatprep.subr.bf16.mxu1 %v22816_v22 }
0x4300   :  { %22819 = vmatpush3.bf16.msra.mxu1 %v22816_v22  ;;  %v22844_v22 = vpack.c.bf16 %v13112_v1, %v13111_v0  ;;  %v13516_v1 = vld [vmem:[#allocation2 + $0xad0] sm:$0xff] }
0x4301   :  { %22821 = vmatprep.subr.bf16.mxu1 %v22820_v63 }
0x4304   :  { %22823 = vmatpush3.bf16.msra.mxu1 %v22820_v63  ;;  %v13028_v63 = vld [vmem:[#allocation2 + $0xa88] sm:$0xff] }
0x4305   :  { %22841 = vmatprep.subr.bf16.mxu1 %v22840_v24 }
0x43ca   :  { %v21565_v29 = vpop.f32.mrb[138].mxu1 }
0x43cb   :  { %v12664_v31 = vadd.f32 %v21565_v29, %v19178_v30  ;;  %v12647_v40 = vpop.f32.mrb[139].mxu1 }
0x43cc   :  { %v12663_v46 = vadd.f32 %v19178_v30, %v12647_v40  ;;  %v19184_v40 = vld [vmem:[#allocation2 + $0xa18] ss:$0 sm:$0xff] }
0x43cd   :  { %v12666_v35 = vadd.f32 %v12664_v31, %v24457_v26 }
0x43ce   :  { %v12665_v37 = vadd.f32 %v12663_v46, %v24455_v25  ;;  %v12707_v25 = vld [vmem:[#allocation2 + $0x9b0] sm:$0xff] }
0x43cf   :  { %v12672_v16 = vsel %vm253_vm5, %v12666_v35, 0.0  ;;  %v22800_v55 = vpack.c.bf16 %v12708_v53, %v12707_v25 }
0x43d0   :  { %12673 = vadd.xlane.f32.xlu1 %v12672_v16  ;;  %v12669_v33 = vsel %vm253_vm5, %v12665_v37, 0.0 }
0x43d1   :  { %12670 = vadd.xlane.f32.xlu0 %v12669_v33  ;;  %22801 = vmatprep.subr.bf16.mxu0 %v22800_v55 }
0x43d2   :  { %22803 = vmatpush3.bf16.msra.mxu0 %v22800_v55 }
0x43d3   :  { %22805 = vmatprep.subr.bf16.mxu0 %v22804_v60 }
0x43d6   :  { %22807 = vmatpush3.bf16.msra.mxu0 %v22804_v60  ;;  %v22824_v60 = vpack.c.bf16 %v12936_v57, %v12935_v56 }
0x43d8   :  { %22825 = vmatprep.subr.bf16.mxu0 %v22824_v60 }
0x445d   :  { %v12674_v15 = vpop.xlane.xlu1 %12673 }
0x445e   :  { %v12676_v19 = vmul.f32 0.03125, %v12674_v15  ;;  %v12671_v50 = vpop.xlane.xlu0 %12670 }
0x445f   :  { %v12675_v38 = vmul.f32 0.03125, %v12671_v50 }
0x4460   :  { %v12678_v39 = vsub.f32 %v12666_v35, %v12676_v19 }
0x4461   :  { %v12677_v48 = vsub.f32 %v12665_v37, %v12675_v38 }
0x4462   :  { %v12680_v51 = vmul.f32 %v12678_v39, %v12678_v39 }
0x4463   :  { %v12679_v7 = vmul.f32 %v12677_v48, %v12677_v48 }
0x4464   :  { %v12684_v52 = vsel %vm253_vm5, %v12680_v51, 0.0 }
0x4465   :  { %12685 = vadd.xlane.f32.xlu1 %v12684_v52  ;;  %v12681_v26 = vsel %vm253_vm5, %v12679_v7, 0.0 }
0x4466   :  { %12682 = vadd.xlane.f32.xlu0 %v12681_v26 }
0x44f2   :  { %v12686_v2 = vpop.xlane.xlu1 %12685 }
0x44f3   :  { %v12688_v59 = vmul.f32 0.03125, %v12686_v2  ;;  %v12683_v44 = vpop.xlane.xlu0 %12682  ;;  %v13025_v2 = vld [vmem:[#allocation2 + $0xa70] sm:$0xff] }
0x44f4   :  { %v12687_v42 = vmul.f32 0.03125, %v12683_v44 }
0x44f5   :  { %v12690_v27 = vadd.f32 1e-05, %v12688_v59  ;;  %v13026_v59 = vld [vmem:[#allocation2 + $0xa78] sm:$0xff] }
0x44f6   :  { %v12689_v3 = vadd.f32 1e-05, %v12687_v42  ;;  %v22832_v44 = vpack.c.bf16 %v13026_v59, %v13025_v2  ;;  %v13600_v59 = vld [vmem:[#allocation2 + $0xaf0] sm:$0xff] }
0x44f7   :  { %23390 = vrsqrt.f32 %v12690_v27 }
0x44f8   :  { %23392 = vrsqrt.f32 %v12689_v3 }
0x4501   :  { %v23391_v4 = vpop.eup %23390 }
0x4502   :  { %v23393_v5 = vpop.eup %23392  ;;  %v12694_v6 = vmul.f32 %v23391_v4, %v12678_v39 }
0x4503   :  { %v12693_v17 = vmul.f32 %v23393_v5, %v12677_v48 }
0x4504   :  { %v12700_v10 = vmul.f32 %v19179_v18, %v12694_v6 }
0x4505   :  { %v12699_v9 = vmul.f32 %v19179_v18, %v12693_v17  ;;  %v19187_v17 = vld [vmem:[#allocation2 + $0xa40] ss:$0 sm:$0xff] }
0x4506   :  { %v12706_v49 = vadd.f32 %v19180_v45, %v12700_v10 }
0x4507   :  { %v12705_v8 = vadd.f32 %v19180_v45, %v12699_v9 }
0x4509   :  { %21574 = vmatprep.mubr.msk.f32.mxu0 %vm253_vm5, %v12705_v8 }
0x450a   :  { %21575 = vmatmul.mubr.msk.f32.vlgmr.msra.gmra.mrb[168].mxu0 %vm253_vm5, %v12706_v49 }
0x450b   :  { %22827 = vmatpush3.bf16.msra.mxu0 %v22824_v60 }
0x450c   :  { %22829 = vmatprep.subr.bf16.mxu0 %v22828_v47 }
0x450f   :  { %22831 = vmatpush3.bf16.msra.mxu0 %v22828_v47 }
0x4510   :  { %22833 = vmatprep.subr.bf16.mxu0 %v22832_v44 }
0x45dd   :  { %v21576_v13 = vpop.f32.mrb[168].mxu0 }
0x45de   :  { %v12794_v14 = vadd.f32 %v21576_v13, %v19181_v28  ;;  %v12788_v32 = vpop.f32.mrb[169].mxu0 }
0x45df   :  { %v12789_v30 = vadd.f32 %v19181_v28, %v12788_v32  ;;  %v19195_v32 = vld [vmem:[#allocation2 + $0xac8] ss:$0 sm:$0xff] }
0x45e0   :  { %v12798_v31 = vmax.f32 %v12794_v14, 0.0  ;;  %v22836_v14 = vpack.c.bf16 %v13028_v63, %v13027_v11 }
0x45e1   :  { %v12797_v29 = vmax.f32 %v12789_v30, 0.0 }
0x45e3   :  { %21593 = vmatprep.mubr.msk.f32.mxu1 %vm3530_vm9, %v12797_v29 }
0x45e4   :  { %21594 = vmatmul.mubr.msk.f32.vlgmr.msra.gmra.mrb[158].mxu1 %vm3530_vm9, %v12798_v31 }
0x45e5   :  { %22843 = vmatpush3.bf16.msra.mxu1 %v22840_v24 }
0x45e6   :  { %22845 = vmatprep.subr.bf16.mxu1 %v22844_v22 }
0x45e9   :  { %22847 = vmatpush3.bf16.msra.mxu1 %v22844_v22  ;;  %v13517_v22 = vld [vmem:[#allocation2 + $0xad8] sm:$0xff] }
0x45ea   :  { %21639 = vmatprep.subr.mxu1 %v23530_v34  ;;  %v22848_v2 = vpack.c.bf16 %v13517_v22, %v13516_v1 }
0x46b7   :  { %v21595_v46 = vpop.f32.mrb[158].mxu1 }
0x46b8   :  { %v12890_v35 = vadd.f32 %v21595_v46, %v19184_v40  ;;  %v12884_v37 = vpop.f32.mrb[159].mxu1 }
0x46b9   :  { %v12885_v16 = vadd.f32 %v19184_v40, %v12884_v37 }
0x46ba   :  { %v12894_v33 = vadd.f32 %v12890_v35, %v12706_v49  ;;  %v19192_v35 = vld [vmem:[#allocation2 + $0xac0] ss:$0 sm:$0xff] }
0x46bb   :  { %v12893_v15 = vadd.f32 %v12885_v16, %v12705_v8  ;;  %v19188_v8 = vld [vmem:[#allocation2 + $0xa48] ss:$0 sm:$0xff] }
0x46bc   :  { %v12900_v19 = vsel %vm253_vm5, %v12894_v33, 0.0 }
0x46bd   :  { %12901 = vadd.xlane.f32.xlu1 %v12900_v19  ;;  %v12897_v50 = vsel %vm253_vm5, %v12893_v15, 0.0 }
0x46be   :  { %12898 = vadd.xlane.f32.xlu0 %v12897_v50 }
0x474a   :  { %v12902_v38 = vpop.xlane.xlu1 %12901 }
0x474b   :  { %v12904_v39 = vmul.f32 0.03125, %v12902_v38  ;;  %v12899_v48 = vpop.xlane.xlu0 %12898 }
0x474c   :  { %v12903_v51 = vmul.f32 0.03125, %v12899_v48 }
0x474d   :  { %v12906_v7 = vsub.f32 %v12894_v33, %v12904_v39  ;;  %v19189_v33 = vld [vmem:[#allocation2 + $0xab8] ss:$0 sm:$0xff] }
0x474e   :  { %v12905_v52 = vsub.f32 %v12893_v15, %v12903_v51 }
0x474f   :  { %v12908_v26 = vmul.f32 %v12906_v7, %v12906_v7 }
0x4750   :  { %v12907_v25 = vmul.f32 %v12905_v52, %v12905_v52 }
0x4751   :  { %v12912_v53 = vsel %vm253_vm5, %v12908_v26, 0.0 }
0x4752   :  { %12913 = vadd.xlane.f32.xlu1 %v12912_v53  ;;  %v12909_v55 = vsel %vm253_vm5, %v12907_v25, 0.0 }
0x4753   :  { %12910 = vadd.xlane.f32.xlu0 %v12909_v55 }
0x47df   :  { %v12914_v42 = vpop.xlane.xlu1 %12913 }
0x47e0   :  { %v12916_v27 = vmul.f32 0.03125, %v12914_v42  ;;  %v12911_v3 = vpop.xlane.xlu0 %12910 }
0x47e1   :  { %v12915_v4 = vmul.f32 0.03125, %v12911_v3 }
0x47e2   :  { %v12918_v18 = vadd.f32 1e-05, %v12916_v27 }
0x47e3   :  { %v12917_v5 = vadd.f32 1e-05, %v12915_v4  ;;  %v13518_v4 = vld [vmem:[#allocation2 + $0xae0] sm:$0xff] }
0x47e4   :  { %23394 = vrsqrt.f32 %v12918_v18  ;;  %v13519_v18 = vld [vmem:[#allocation2 + $0xae8] sm:$0xff] }
0x47e5   :  { %23396 = vrsqrt.f32 %v12917_v5 }
0x47ee   :  { %v23395_v6 = vpop.eup %23394 }
0x47ef   :  { %v23397_v45 = vpop.eup %23396  ;;  %v12922_v10 = vmul.f32 %v23395_v6, %v12906_v7 }
0x47f0   :  { %v12921_v9 = vmul.f32 %v23397_v45, %v12905_v52  ;;  %v13602_v45 = vld [vmem:[#allocation2 + $0xb00] sm:$0xff] }
0x47f1   :  { %v12928_v49 = vmul.f32 %v19187_v17, %v12922_v10  ;;  %v13603_v10 = vld [vmem:[#allocation2 + $0xb08] sm:$0xff] }
0x47f2   :  { %v12927_v58 = vmul.f32 %v19187_v17, %v12921_v9  ;;  %v22852_v17 = vpack.c.bf16 %v13519_v18, %v13518_v4  ;;  %v13684_v9 = vld [vmem:[#allocation2 + $0xb10] sm:$0xff]  ;;  %v22860_v11 = vpack.c.bf16 %v13603_v10, %v13602_v45  ;;  %v14255_v45 = vld [vmem:[#allocation2 + $0xb60] sm:$0xff]  ;;  %v14256_v10 = vld [vmem:[#allocation2 + $0xb68] sm:$0xff] }
0x47f3   :  { %v24655_v13 = vadd.f32 %v19188_v8, %v12928_v49 }
0x47f4   :  { %v24653_v28 = vadd.f32 %v19188_v8, %v12927_v58  ;;  %v13685_v8 = vld [vmem:[#allocation2 + $0xb18] sm:$0xff] }
0x47f5   :  { %v22864_v63 = vpack.c.bf16 %v13685_v8, %v13684_v9 }
0x47f6   :  { %21604 = vmatprep.mubr.msk.f32.mxu0 %vm253_vm5, %v24653_v28  ;;  %21626 = vmatprep.mubr.msk.f32.mxu1 %vm253_vm5, %v24653_v28 }
0x47f7   :  { %21605 = vmatmul.mubr.msk.f32.vlgmr.msra.gmra.mrb[170].mxu0 %vm253_vm5, %v24655_v13  ;;  %21627 = vmatmul.mubr.msk.f32.vlgmr.msra.gmra.mrb[160].mxu1 %vm253_vm5, %v24655_v13 }
0x47f8   :  { %22835 = vmatpush3.bf16.msra.mxu0 %v22832_v44  ;;  %21615 = vmatprep.mubr.msk.f32.mxu0 %vm253_vm5, %v24653_v28  ;;  %v13601_v44 = vld [vmem:[#allocation2 + $0xaf8] sm:$0xff] }
0x47f9   :  { %22837 = vmatprep.subr.bf16.mxu0 %v22836_v14  ;;  %21641 = vmatprep.mubr.msk.f32.mxu1 %vm23531_vm10, %v23530_v34  ;;  %v22856_v42 = vpack.c.bf16 %v13601_v44, %v13600_v59 }
0x47fc   :  { %22839 = vmatpush3.bf16.msra.mxu0 %v22836_v14  ;;  %v13686_v14 = vld [vmem:[#allocation2 + $0xb20] sm:$0xff] }
0x47fd   :  { %21629 = vmatprep.subr.mxu0 %v23530_v34 }
0x47ff   :  { %21616 = vmatmul.mubr.msk.f32.vlgmr.msra.gmra.mrb[172].mxu0 %vm253_vm5, %v24655_v13 }
0x4800   :  { %21631 = vmatprep.mubr.msk.f32.mxu0 %vm23531_vm10, %v23530_v34 }
0x48ca   :  { %v21606_v30 = vpop.f32.mrb[170].mxu0  ;;  %v21628_v29 = vpop.f32.mrb[160].mxu1 }
0x48cb   :  { %v13016_v31 = vpop.f32.mrb[171].mxu0  ;;  %v13184_v40 = vpop.f32.mrb[161].mxu1  ;;  %v13022_v38 = vadd.f32 %v21606_v30, %v19189_v33  ;;  %v13190_v39 = vadd.f32 %v21628_v29, %v19195_v32 }
0x48cc   :  { %v13185_v46 = vadd.f32 %v19195_v32, %v13184_v40  ;;  %v13017_v19 = vadd.f32 %v19189_v33, %v13016_v31  ;;  %v13687_v32 = vld [vmem:[#allocation2 + $0xb28] sm:$0xff] }
0x48cd   :  { %v22868_v30 = vpack.c.bf16 %v13687_v32, %v13686_v14  ;;  %v14423_v14 = vld [vmem:[#allocation2 + $0xba0] sm:$0xff]  ;;  %v14424_v32 = vld [vmem:[#allocation2 + $0xba8] sm:$0xff] }
0x48ce   :  { %21640 = vmatpush3.msra.mxu1 %v13185_v46 }
0x48cf   :  { %22849 = vmatprep.subr.bf16.mxu1 %v22848_v2 }
0x48d2   :  { %v21617_v37 = vpop.f32.mrb[172].mxu0 }
0x48d3   :  { %v13100_v16 = vpop.f32.mrb[173].mxu0  ;;  %v13106_v50 = vadd.f32 %v21617_v37, %v19192_v35 }
0x48d4   :  { %v13101_v15 = vadd.f32 %v19192_v35, %v13100_v16  ;;  %v19207_v16 = vld [vmem:[#allocation2 + $0xb40] ss:$0 sm:$0xff] }
0x48d6   :  { %21630 = vmatpush3.xpose.msk.msra.mxu0 %vm539_vm6, %v13101_v15 }
0x48d7   :  { %21634 = vmatprep.subr.mxu0 %v23530_v34 }
0x48d9   :  { %21632 = vmatmul.mubr.msk.f32.vlgmr.msra.gmra.mrb[174].mxu0 %vm539_vm6, %v13017_v19  ;;  %v19204_v19 = vld [vmem:[#allocation2 + $0xb38] ss:$0 sm:$0xff] }
0x48da   :  { %21635 = vmatpush3.xpose.msk.msra.mxu0 %vm539_vm6, %v13106_v50  ;;  %21636 = vmatprep.mubr.msk.f32.mxu0 %vm23531_vm10, %v23530_v34 }
0x48db   :  { %21644 = vmatprep.subr.mxu0 %v23530_v34 }
0x48dd   :  { %21637 = vmatmul.mubr.msk.f32.vlgmr.msra.gmra.mrb[176].mxu0 %vm539_vm6, %v13022_v38  ;;  %v19210_v38 = vld [vmem:[#allocation2 + $0xb48] ss:$0 sm:$0xff] }
0x48de   :  { %21645 = vmatpush3.msra.mxu0 %v13190_v39  ;;  %21646 = vmatprep.mubr.msk.f32.mxu0 %vm23531_vm10, %v23530_v34 }
0x48df   :  { %22857 = vmatprep.subr.bf16.mxu0 %v22856_v42 }
0x49ac   :  { %v13265_v48 = vpop.f32.mrb[174].mxu0 }
0x49ad   :  { %v13345_v51 = vmul.f32 0.35355338, %v13265_v48  ;;  %v21633_v7 = vpop.f32.mrb[175].mxu0 }
0x49af   :  { %v13347_v52 = vsel %vm539_vm6, %v13345_v51, -inf }
0x49b0   :  { %13348 = vmax.xlane.f32.xlu1 %v13347_v52  ;;  %v13341_v26 = vpop.f32.mrb[176].mxu0 }
0x49b1   :  { %v13346_v25 = vmul.f32 0.35355338, %v13341_v26  ;;  %v21638_v53 = vpop.f32.mrb[177].mxu0 }
0x49b3   :  { %v13350_v55 = vsel %vm539_vm6, %v13346_v25, -inf }
0x49b4   :  { %13351 = vmax.xlane.f32.xlu0 %v13350_v55 }
0x4a3d   :  { %v13349_v56 = vpop.xlane.xlu1 %13348 }
0x4a3e   :  { %v13353_v57 = vsub.f32 %v13345_v51, %v13349_v56 }
0x4a40   :  { %v13355_v60 = vmul.f32 1.442695, %v13353_v57 }
0x4a41   :  { %v13352_v23 = vpop.xlane.xlu0 %13351 }
0x4a42   :  { %23398 = vpow2.f32 %v13355_v60  ;;  %v13354_v21 = vsub.f32 %v13346_v25, %v13352_v23 }
0x4a44   :  { %v13357_v24 = vmul.f32 1.442695, %v13354_v21 }
0x4a46   :  { %23400 = vpow2.f32 %v13357_v24 }
0x4a4c   :  { %v23399_v61 = vpop.eup %23398 }
0x4a4d   :  { %v13359_v62 = vsel %vm539_vm6, %v23399_v61, 0.0 }
0x4a4e   :  { %13360 = vadd.xlane.f32.xlu1 %v13359_v62 }
0x4a50   :  { %v23401_v47 = vpop.eup %23400 }
0x4a51   :  { %v13362_v0 = vsel %vm539_vm6, %v23401_v47, 0.0 }
0x4a52   :  { %13363 = vadd.xlane.f32.xlu0 %v13362_v0 }
0x4adb   :  { %v13361_v27 = vpop.xlane.xlu1 %13360 }
0x4adc   :  { %23402 = vrcp.f32 %v13361_v27  ;;  %v14253_v27 = vld [vmem:[#allocation2 + $0xb50] sm:$0xff] }
0x4adf   :  { %v13364_v3 = vpop.xlane.xlu0 %13363 }
0x4ae0   :  { %23404 = vrcp.f32 %v13364_v3  ;;  %v14254_v3 = vld [vmem:[#allocation2 + $0xb58] sm:$0xff] }
0x4ae1   :  { %v22872_v4 = vpack.c.bf16 %v14254_v3, %v14253_v27 }
0x4ae6   :  { %v23403_v5 = vpop.eup %23402 }
0x4ae7   :  { %v13367_v6 = vmul.f32 %v23403_v5, %v23399_v61 }
0x4ae9   :  { %21642 = vmatmul.mubr.msk.f32.vlgmr.msra.gmra.mrb[162].mxu1 %vm539_vm6, %v13367_v6 }
0x4aea   :  { %v23405_v49 = vpop.eup %23404  ;;  %22851 = vmatpush3.bf16.msra.mxu1 %v22848_v2  ;;  %21657 = vmatprep.mubr.msk.f32.mxu1 %vm253_vm5, %v24653_v28 }
0x4aeb   :  { %v13368_v58 = vmul.f32 %v23405_v49, %v23401_v47  ;;  %22853 = vmatprep.subr.bf16.mxu1 %v22852_v17  ;;  %v22876_v49 = vpack.c.bf16 %v14256_v10, %v14255_v45  ;;  %v14911_v10 = vld [vmem:[#allocation2 + $0xbd0] sm:$0xff] }
0x4aed   :  { %21647 = vmatmul.mubr.msk.f32.vlgmr.msra.gmra.mrb[178].mxu0 %vm539_vm6, %v13368_v58  ;;  %v14421_v58 = vld [vmem:[#allocation2 + $0xb90] sm:$0xff] }
0x4aee   :  { %22855 = vmatpush3.bf16.msra.mxu1 %v22852_v17  ;;  %22859 = vmatpush3.bf16.msra.mxu0 %v22856_v42 }
0x4aef   :  { %21668 = vmatprep.mubr.msk.f32.mxu0 %vm253_vm5, %v24653_v28  ;;  %22861 = vmatprep.subr.bf16.mxu0 %v22860_v11 }
0x4af0   :  { %22865 = vmatprep.subr.bf16.mxu1 %v22864_v63 }
0x4af1   :  { %21658 = vmatmul.mubr.msk.f32.vlgmr.msra.gmra.mrb[164].mxu1 %vm253_vm5, %v24655_v13 }
0x4af2   :  { %22863 = vmatpush3.bf16.msra.mxu0 %v22860_v11  ;;  %22867 = vmatpush3.bf16.msra.mxu1 %v22864_v63  ;;  %v14422_v11 = vld [vmem:[#allocation2 + $0xb98] sm:$0xff] }
0x4af3   :  { %21679 = vmatprep.mubr.msk.f32.mxu1 %vm253_vm5, %v24653_v28  ;;  %22869 = vmatprep.subr.bf16.mxu1 %v22868_v30  ;;  %v22888_v63 = vpack.c.bf16 %v14422_v11, %v14421_v58 }
0x4af4   :  { %21682 = vmatprep.subr.mxu0 %v23530_v34 }
0x4af5   :  { %21669 = vmatmul.mubr.msk.f32.vlgmr.msra.gmra.mrb[180].mxu0 %vm253_vm5, %v24655_v13 }
0x4af6   :  { %22871 = vmatpush3.bf16.msra.mxu1 %v22868_v30  ;;  %21684 = vmatprep.mubr.msk.f32.mxu0 %vm23531_vm10, %v23530_v34  ;;  %v22892_v30 = vpack.c.bf16 %v14424_v32, %v14423_v14  ;;  %v14914_v14 = vld [vmem:[#allocation2 + $0xbe8] sm:$0xff] }
0x4af7   :  { %21692 = vmatprep.subr.mxu1 %v23530_v34 }
0x4af9   :  { %21680 = vmatmul.mubr.msk.f32.vlgmr.msra.gmra.mrb[166].mxu1 %vm253_vm5, %v24655_v13 }
0x4afa   :  { %21694 = vmatprep.mubr.msk.f32.mxu1 %vm23531_vm10, %v23530_v34 }
0x4bbc   :  { %v24708_v29 = vpop.f32.mrb[162].mxu1 }
0x4bbd   :  { %v21643_v31 = vpop.f32.mrb[163].mxu1 }
0x4bbe   :  { %v14090_v31 = vld [vmem:[#allocation2 + $0xb30] sm:$0xff] }
0x4bc0   :  { %v24710_v40 = vpop.f32.mrb[178].mxu0 }
0x4bc1   :  { %v21648_v46 = vpop.f32.mrb[179].mxu0 }
0x4bc2   :  { %v13515_v46 = vld [vmem:[#allocation2 + $0xab0] sm:$0xff] }
0x4bc4   :  { %v21659_v35 = vpop.f32.mrb[164].mxu1 }
0x4bc5   :  { %v13591_v37 = vpop.f32.mrb[165].mxu1  ;;  %v13597_v26 = vadd.f32 %v21659_v35, %v19204_v19 }
0x4bc6   :  { %v13592_v48 = vadd.f32 %v19204_v19, %v13591_v37  ;;  %v14337_v37 = vld [vmem:[#allocation2 + $0xb70] sm:$0xff] }
0x4bc8   :  { %v21670_v33 = vpop.f32.mrb[180].mxu0 }
0x4bc9   :  { %v13675_v15 = vpop.f32.mrb[181].mxu0  ;;  %v13681_v7 = vadd.f32 %v21670_v33, %v19207_v16 }
0x4bca   :  { %v13676_v50 = vadd.f32 %v19207_v16, %v13675_v15  ;;  %v14338_v16 = vld [vmem:[#allocation2 + $0xb78] sm:$0xff] }
0x4bcb   :  { %v22880_v15 = vpack.c.bf16 %v14338_v16, %v14337_v37  ;;  %v15079_v37 = vld [vmem:[#allocation2 + $0xc10] sm:$0xff]  ;;  %v15080_v16 = vld [vmem:[#allocation2 + $0xc18] sm:$0xff] }
0x4bcc   :  { %v21681_v39 = vpop.f32.mrb[166].mxu1  ;;  %21683 = vmatpush3.xpose.msk.msra.mxu0 %vm539_vm6, %v13676_v50 }
0x4bcd   :  { %v13759_v51 = vpop.f32.mrb[167].mxu1  ;;  %21687 = vmatprep.subr.mxu0 %v23530_v34  ;;  %v13765_v25 = vadd.f32 %v21681_v39, %v19210_v38  ;;  %v14340_v39 = vld [vmem:[#allocation2 + $0xb88] sm:$0xff] }
0x4bce   :  { %v13760_v52 = vadd.f32 %v19210_v38, %v13759_v51  ;;  %v14339_v38 = vld [vmem:[#allocation2 + $0xb80] sm:$0xff] }
0x4bcf   :  { %21685 = vmatmul.mubr.msk.f32.vlgmr.msra.gmra.mrb[182].mxu0 %vm539_vm6, %v13592_v48  ;;  %v22884_v48 = vpack.c.bf16 %v14340_v39, %v14339_v38  ;;  %v14995_v38 = vld [vmem:[#allocation2 + $0xbf0] sm:$0xff]  ;;  %v14996_v39 = vld [vmem:[#allocation2 + $0xbf8] sm:$0xff] }
0x4bd0   :  { %21688 = vmatpush3.xpose.msk.msra.mxu0 %vm539_vm6, %v13681_v7  ;;  %21693 = vmatpush3.msra.mxu1 %v13760_v52 }
0x4bd1   :  { %21689 = vmatprep.mubr.msk.f32.mxu0 %vm23531_vm10, %v23530_v34  ;;  %21697 = vmatprep.subr.mxu0 %v23530_v34 }
0x4bd2   :  { %21702 = vmatprep.subr.mxu1 %v14090_v31 }
0x4bd3   :  { %21690 = vmatmul.mubr.msk.f32.vlgmr.msra.gmra.mrb[184].mxu0 %vm539_vm6, %v13597_v26  ;;  %v19226_v26 = vld [vmem:[#allocation2 + $0xbc0] ss:$0 sm:$0xff] }
0x4bd4   :  { %21698 = vmatpush3.msra.mxu0 %v13765_v25  ;;  %21699 = vmatprep.mubr.msk.f32.mxu0 %vm23531_vm10, %v23530_v34 }
0x4bd5   :  { %22873 = vmatprep.subr.bf16.mxu0 %v22872_v4 }
0x4ca2   :  { %v13840_v53 = vpop.f32.mrb[182].mxu0 }
0x4ca3   :  { %v13920_v55 = vmul.f32 0.35355338, %v13840_v53  ;;  %v21686_v56 = vpop.f32.mrb[183].mxu0  ;;  %v19223_v53 = vld [vmem:[#allocation2 + $0xbb8] ss:$0 sm:$0xff] }
0x4ca4   :  { %v19229_v56 = vld [vmem:[#allocation2 + $0xbc8] ss:$0 sm:$0xff] }
0x4ca5   :  { %v13922_v57 = vsel %vm539_vm6, %v13920_v55, -inf }
0x4ca6   :  { %13923 = vmax.xlane.f32.xlu0 %v13922_v57  ;;  %v13916_v60 = vpop.f32.mrb[184].mxu0 }
0x4ca7   :  { %v13921_v23 = vmul.f32 0.35355338, %v13916_v60  ;;  %v21691_v21 = vpop.f32.mrb[185].mxu0 }
0x4ca9   :  { %v13925_v24 = vsel %vm539_vm6, %v13921_v23, -inf }
0x4caa   :  { %13926 = vmax.xlane.f32.xlu1 %v13925_v24 }
0x4d33   :  { %v13924_v61 = vpop.xlane.xlu0 %13923 }
0x4d34   :  { %v13928_v62 = vsub.f32 %v13920_v55, %v13924_v61 }
0x4d36   :  { %v13930_v47 = vmul.f32 1.442695, %v13928_v62 }
0x4d37   :  { %v13927_v0 = vpop.xlane.xlu1 %13926 }
0x4d38   :  { %23406 = vpow2.f32 %v13930_v47  ;;  %v13929_v1 = vsub.f32 %v13921_v23, %v13927_v0 }
0x4d3a   :  { %v13932_v22 = vmul.f32 1.442695, %v13929_v1 }
0x4d3c   :  { %23408 = vpow2.f32 %v13932_v22 }
0x4d42   :  { %v23407_v2 = vpop.eup %23406 }
0x4d43   :  { %v13934_v59 = vsel %vm539_vm6, %v23407_v2, 0.0 }
0x4d44   :  { %13935 = vadd.xlane.f32.xlu0 %v13934_v59 }
0x4d46   :  { %v23409_v44 = vpop.eup %23408 }
0x4d47   :  { %v13937_v42 = vsel %vm539_vm6, %v23409_v44, 0.0 }
0x4d48   :  { %13938 = vadd.xlane.f32.xlu1 %v13937_v42 }
0x4dd1   :  { %v13936_v18 = vpop.xlane.xlu0 %13935 }
0x4dd2   :  { %23410 = vrcp.f32 %v13936_v18 }
0x4dd5   :  { %v13939_v5 = vpop.xlane.xlu1 %13938 }
0x4dd6   :  { %23412 = vrcp.f32 %v13939_v5 }
0x4ddc   :  { %v23411_v6 = vpop.eup %23410 }
0x4ddd   :  { %v13942_v17 = vmul.f32 %v23411_v6, %v23407_v2 }
0x4ddf   :  { %21695 = vmatmul.mubr.msk.f32.vlgmr.msra.gmra.mrb[168].mxu1 %vm539_vm6, %v13942_v17 }
0x4de0   :  { %v23413_v9 = vpop.eup %23412  ;;  %21703 = vmatpush3.msra.mxu1 %v14090_v31 }
0x4de1   :  { %v13943_v8 = vmul.f32 %v23413_v9, %v23409_v44  ;;  %21707 = vmatprep.subr.mxu1 %v13515_v46  ;;  %v14912_v9 = vld [vmem:[#allocation2 + $0xbd8] sm:$0xff] }
0x4de3   :  { %21700 = vmatmul.mubr.msk.f32.vlgmr.msra.gmra.mrb[186].mxu0 %vm539_vm6, %v13943_v8  ;;  %v22896_v8 = vpack.c.bf16 %v14912_v9, %v14911_v10 }
0x4de4   :  { %22875 = vmatpush3.bf16.msra.mxu0 %v22872_v4  ;;  %21720 = vmatprep.mubr.msk.f32.mxu0 %vm253_vm5, %v24653_v28 }
0x4de5   :  { %22877 = vmatprep.subr.bf16.mxu0 %v22876_v49 }
0x4de8   :  { %22879 = vmatpush3.bf16.msra.mxu0 %v22876_v49  ;;  %v14827_v49 = vld [vmem:[#allocation2 + $0xbb0] sm:$0xff] }
0x4de9   :  { %22889 = vmatprep.subr.bf16.mxu0 %v22888_v63 }
0x4deb   :  { %21721 = vmatmul.mubr.msk.f32.vlgmr.msra.gmra.mrb[188].mxu0 %vm253_vm5, %v24655_v13 }
0x4dec   :  { %22891 = vmatpush3.bf16.msra.mxu0 %v22888_v63  ;;  %21742 = vmatprep.mubr.msk.f32.mxu0 %vm253_vm5, %v24653_v28  ;;  %v14913_v63 = vld [vmem:[#allocation2 + $0xbe0] sm:$0xff] }
0x4ded   :  { %22893 = vmatprep.subr.bf16.mxu0 %v22892_v30 }
0x4df0   :  { %22895 = vmatpush3.bf16.msra.mxu0 %v22892_v30 }
0x4df1   :  { %21750 = vmatprep.subr.mxu0 %v23530_v34 }
0x4df3   :  { %21743 = vmatmul.mubr.msk.f32.vlgmr.msra.gmra.mrb[190].mxu0 %vm253_vm5, %v24655_v13 }
0x4df4   :  { %21752 = vmatprep.mubr.msk.f32.mxu0 %vm23531_vm10, %v23530_v34 }
0x4eb2   :  { %v14013_v35 = vpop.f32.mrb[168].mxu1 }
0x4eb3   :  { %v21696_v33 = vpop.f32.mrb[169].mxu1  ;;  %21704 = vmatprep.mubr.msk.f32.mxu1 %vm539_vm6, %v14013_v35 }
0x4eb4   :  { %v22912_v33 = vpack.c.bf16 %v15080_v16, %v15079_v37  ;;  %v15485_v37 = vld [vmem:[#allocation2 + $0xc30] sm:$0xff]  ;;  %v15708_v16 = vld [vmem:[#allocation2 + $0xc78] sm:$0xff] }
0x4eb6   :  { %v14086_v19 = vpop.f32.mrb[186].mxu0 }
0x4eb7   :  { %v21701_v50 = vpop.f32.mrb[187].mxu0  ;;  %21705 = vmatmul.mubr.msk.f32.vlgmr.msra.gmra.mrb[170].mxu1 %vm539_vm6, %v14086_v19  ;;  %v15082_v19 = vld [vmem:[#allocation2 + $0xc28] sm:$0xff] }
0x4eb8   :  { %21708 = vmatpush3.msra.mxu1 %v13515_v46  ;;  %21709 = vmatprep.mubr.msk.f32.mxu1 %vm539_vm6, %v24708_v29  ;;  %v22900_v46 = vpack.c.bf16 %v14914_v14, %v14913_v63 }
0x4eb9   :  { %22881 = vmatprep.subr.bf16.mxu1 %v22880_v15 }
0x4ebe   :  { %v21722_v51 = vpop.f32.mrb[188].mxu0 }
0x4ebf   :  { %v14328_v7 = vpop.f32.mrb[189].mxu0  ;;  %21710 = vmatmul.mubr.msk.f32.vlgmr.msra.gmra.mrb[170].mxu1 %vm539_vm6, %v24710_v40  ;;  %v14334_v60 = vadd.f32 %v21722_v51, %v19223_v53  ;;  %v14997_v51 = vld [vmem:[#allocation2 + $0xc00] sm:$0xff] }
0x4ec0   :  { %22883 = vmatpush3.bf16.msra.mxu1 %v22880_v15  ;;  %21731 = vmatprep.mubr.msk.f32.mxu1 %vm253_vm5, %v24653_v28  ;;  %v14329_v23 = vadd.f32 %v19223_v53, %v14328_v7  ;;  %v15081_v15 = vld [vmem:[#allocation2 + $0xc20] sm:$0xff]  ;;  %v14998_v7 = vld [vmem:[#allocation2 + $0xc08] sm:$0xff] }
0x4ec1   :  { %22885 = vmatprep.subr.bf16.mxu1 %v22884_v48  ;;  %v22916_v50 = vpack.c.bf16 %v15082_v19, %v15081_v15 }
0x4ec4   :  { %22887 = vmatpush3.bf16.msra.mxu1 %v22884_v48  ;;  %v22904_v48 = vpack.c.bf16 %v14996_v39, %v14995_v38  ;;  %v15711_v38 = vld [vmem:[#allocation2 + $0xc90] sm:$0xff] }
0x4ec5   :  { %21745 = vmatprep.subr.mxu1 %v23530_v34 }
0x4ec6   :  { %v21744_v52 = vpop.f32.mrb[190].mxu0 }
0x4ec7   :  { %21732 = vmatmul.mubr.msk.f32.vlgmr.msra.gmra.mrb[172].mxu1 %vm253_vm5, %v24655_v13  ;;  %v14496_v29 = vpop.f32.mrb[191].mxu0  ;;  %v14502_v21 = vadd.f32 %v21744_v52, %v19229_v56 }
0x4ec8   :  { %21747 = vmatprep.mubr.msk.f32.mxu1 %vm23531_vm10, %v23530_v34  ;;  %v14497_v24 = vadd.f32 %v19229_v56, %v14496_v29  ;;  %v19246_v56 = vld [vmem:[#allocation2 + $0xc48] ss:$0 sm:$0xff] }
0x4f9a   :  { %v21733_v25 = vpop.f32.mrb[172].mxu1 }
0x4f9b   :  { %v14418_v40 = vadd.f32 %v21733_v25, %v19226_v26  ;;  %v14412_v55 = vpop.f32.mrb[173].mxu1  ;;  %v22908_v25 = vpack.c.bf16 %v14998_v7, %v14997_v51 }
0x4f9c   :  { %v14413_v57 = vadd.f32 %v19226_v26, %v14412_v55 }
0x4f9d   :  { %21751 = vmatpush3.xpose.msk.msra.mxu0 %vm539_vm6, %v14418_v40 }
0x4f9e   :  { %21746 = vmatpush3.xpose.msk.msra.mxu1 %vm539_vm6, %v14413_v57  ;;  %21760 = vmatprep.subr.mxu0 %v23530_v34 }
0x4f9f   :  { %21755 = vmatprep.subr.mxu1 %v23530_v34 }
0x4fa0   :  { %21753 = vmatmul.mubr.msk.f32.vlgmr.msra.gmra.mrb[192].mxu0 %vm539_vm6, %v14334_v60 }
0x4fa1   :  { %21748 = vmatmul.mubr.msk.f32.vlgmr.msra.gmra.mrb[174].mxu1 %vm539_vm6, %v14329_v23  ;;  %21761 = vmatpush3.msra.mxu0 %v14502_v21 }
0x4fa2   :  { %21756 = vmatpush3.msra.mxu1 %v14497_v24  ;;  %21762 = vmatprep.mubr.msk.f32.mxu0 %vm23531_vm10, %v23530_v34  ;;  %v19243_v24 = vld [vmem:[#allocation2 + $0xc40] ss:$0 sm:$0xff] }
0x4fa3   :  { %21757 = vmatprep.mubr.msk.f32.mxu1 %vm23531_vm10, %v23530_v34  ;;  %22897 = vmatprep.subr.bf16.mxu0 %v22896_v8 }
0x4fa4   :  { %21765 = vmatprep.subr.mxu1 %v14827_v49 }
0x5073   :  { %v14653_v61 = vpop.f32.mrb[192].mxu0 }
0x5074   :  { %v14658_v62 = vmul.f32 0.35355338, %v14653_v61  ;;  %v14577_v47 = vpop.f32.mrb[174].mxu1  ;;  %v21754_v0 = vpop.f32.mrb[193].mxu0 }
0x5075   :  { %v14657_v1 = vmul.f32 0.35355338, %v14577_v47  ;;  %v21749_v22 = vpop.f32.mrb[175].mxu1  ;;  %v19240_v47 = vld [vmem:[#allocation2 + $0xc38] ss:$0 sm:$0xff] }
0x5076   :  { %v14662_v2 = vsel %vm539_vm6, %v14658_v62, -inf }
0x5077   :  { %14663 = vmax.xlane.f32.xlu1 %v14662_v2  ;;  %v14659_v59 = vsel %vm539_vm6, %v14657_v1, -inf }
0x5078   :  { %14660 = vmax.xlane.f32.xlu0 %v14659_v59 }
0x5104   :  { %v14664_v44 = vpop.xlane.xlu1 %14663 }
0x5105   :  { %v14666_v42 = vsub.f32 %v14658_v62, %v14664_v44  ;;  %v14661_v27 = vpop.xlane.xlu0 %14660 }
0x5106   :  { %v14665_v3 = vsub.f32 %v14657_v1, %v14661_v27 }
0x5107   :  { %v14669_v4 = vmul.f32 1.442695, %v14666_v42 }
0x5108   :  { %v14667_v18 = vmul.f32 1.442695, %v14665_v3 }
0x5109   :  { %23414 = vpow2.f32 %v14669_v4 }
0x510a   :  { %23416 = vpow2.f32 %v14667_v18 }
0x5113   :  { %v23415_v5 = vpop.eup %23414 }
0x5114   :  { %v23417_v6 = vpop.eup %23416  ;;  %v14674_v17 = vsel %vm539_vm6, %v23415_v5, 0.0 }
0x5115   :  { %14675 = vadd.xlane.f32.xlu1 %v14674_v17  ;;  %v14671_v45 = vsel %vm539_vm6, %v23417_v6, 0.0 }
0x5116   :  { %14672 = vadd.xlane.f32.xlu0 %v14671_v45 }
0x51a2   :  { %v14676_v58 = vpop.xlane.xlu1 %14675 }
0x51a3   :  { %23418 = vrcp.f32 %v14676_v58  ;;  %v14673_v11 = vpop.xlane.xlu0 %14672 }
0x51a4   :  { %23420 = vrcp.f32 %v14673_v11 }
0x51ad   :  { %v23419_v32 = vpop.eup %23418 }
0x51ae   :  { %v23421_v30 = vpop.eup %23420  ;;  %v14680_v31 = vmul.f32 %v23419_v32, %v23415_v5 }
0x51af   :  { %v14679_v35 = vmul.f32 %v23421_v30, %v23417_v6 }
0x51b0   :  { %21763 = vmatmul.mubr.msk.f32.vlgmr.msra.gmra.mrb[194].mxu0 %vm539_vm6, %v14680_v31 }
0x51b1   :  { %22899 = vmatpush3.bf16.msra.mxu0 %v22896_v8  ;;  %21758 = vmatmul.mubr.msk.f32.vlgmr.msra.gmra.mrb[176].mxu1 %vm539_vm6, %v14679_v35 }
0x51b2   :  { %21778 = vmatprep.mubr.msk.f32.mxu0 %vm253_vm5, %v24653_v28  ;;  %22901 = vmatprep.subr.bf16.mxu0 %v22900_v46 }
0x51b3   :  { %21766 = vmatpush3.msra.mxu1 %v14827_v49 }
0x51b4   :  { %22905 = vmatprep.subr.bf16.mxu1 %v22904_v48 }
0x51b5   :  { %22903 = vmatpush3.bf16.msra.mxu0 %v22900_v46 }
0x51b6   :  { %22913 = vmatprep.subr.bf16.mxu0 %v22912_v33 }
0x51b8   :  { %21779 = vmatmul.mubr.msk.f32.vlgmr.msra.gmra.mrb[196].mxu0 %vm253_vm5, %v24655_v13 }
0x51b9   :  { %22915 = vmatpush3.bf16.msra.mxu0 %v22912_v33  ;;  %21800 = vmatprep.mubr.msk.f32.mxu0 %vm253_vm5, %v24653_v28  ;;  %v15709_v33 = vld [vmem:[#allocation2 + $0xc80] sm:$0xff] }
0x51ba   :  { %22917 = vmatprep.subr.bf16.mxu0 %v22916_v50  ;;  %v22928_v15 = vpack.c.bf16 %v15709_v33, %v15708_v16 }
0x51bd   :  { %22919 = vmatpush3.bf16.msra.mxu0 %v22916_v50  ;;  %v15710_v50 = vld [vmem:[#allocation2 + $0xc88] sm:$0xff] }
0x51be   :  { %21813 = vmatprep.subr.mxu0 %v23530_v34 }
0x51c0   :  { %21801 = vmatmul.mubr.msk.f32.vlgmr.msra.gmra.mrb[198].mxu0 %vm253_vm5, %v24655_v13 }
0x51c1   :  { %21815 = vmatprep.mubr.msk.f32.mxu0 %vm23531_vm10, %v23530_v34 }
0x5283   :  { %v14823_v52 = vpop.f32.mrb[194].mxu0 }
0x5284   :  { %v14750_v29 = vpop.f32.mrb[176].mxu1  ;;  %v21764_v26 = vpop.f32.mrb[195].mxu0 }
0x5285   :  { %v21759_v53 = vpop.f32.mrb[177].mxu1  ;;  %21767 = vmatprep.mubr.msk.f32.mxu1 %vm539_vm6, %v14750_v29 }
0x5286   :  { %21768 = vmatmul.mubr.msk.f32.vlgmr.msra.gmra.mrb[170].mxu1 %vm539_vm6, %v14823_v52  ;;  %v19257_v52 = vld [vmem:[#allocation2 + $0xc50] ss:$0 sm:$0xff] }
0x5287   :  { %22907 = vmatpush3.bf16.msra.mxu1 %v22904_v48  ;;  %21789 = vmatprep.mubr.msk.f32.mxu1 %vm253_vm5, %v24653_v28  ;;  %v22932_v48 = vpack.c.bf16 %v15711_v38, %v15710_v50 }
0x5288   :  { %22909 = vmatprep.subr.bf16.mxu1 %v22908_v25 }
0x528b   :  { %v21780_v40 = vpop.f32.mrb[196].mxu0  ;;  %22911 = vmatpush3.bf16.msra.mxu1 %v22908_v25 }
0x528c   :  { %v14986_v55 = vpop.f32.mrb[197].mxu0  ;;  %21803 = vmatprep.subr.mxu1 %v23530_v34  ;;  %v14992_v2 = vadd.f32 %v21780_v40, %v19240_v47 }
0x528d   :  { %v14987_v1 = vadd.f32 %v19240_v47, %v14986_v55 }
0x528e   :  { %21790 = vmatmul.mubr.msk.f32.vlgmr.msra.gmra.mrb[178].mxu1 %vm253_vm5, %v24655_v13 }
0x528f   :  { %21805 = vmatprep.mubr.msk.f32.mxu1 %vm23531_vm10, %v23530_v34 }
0x5293   :  { %v21802_v57 = vpop.f32.mrb[198].mxu0 }
0x5294   :  { %v15160_v60 = vadd.f32 %v21802_v57, %v19246_v56  ;;  %v15154_v23 = vpop.f32.mrb[199].mxu0  ;;  %v19263_v57 = vld [vmem:[#allocation2 + $0xcc8] ss:$0 sm:$0xff] }
0x5295   :  { %v15155_v21 = vadd.f32 %v19246_v56, %v15154_v23 }
0x5297   :  { %21814 = vmatpush3.msra.mxu0 %v15155_v21 }
0x5361   :  { %v21791_v61 = vpop.f32.mrb[178].mxu1 }
0x5362   :  { %v15070_v62 = vpop.f32.mrb[179].mxu1  ;;  %v15076_v22 = vadd.f32 %v21791_v61, %v19243_v24 }
0x5363   :  { %v15071_v0 = vadd.f32 %v19243_v24, %v15070_v62 }
0x5365   :  { %21804 = vmatpush3.xpose.msk.msra.mxu1 %vm539_vm6, %v15071_v0 }
0x5366   :  { %21808 = vmatprep.subr.mxu1 %v23530_v34 }
0x5368   :  { %21806 = vmatmul.mubr.msk.f32.vlgmr.msra.gmra.mrb[180].mxu1 %vm539_vm6, %v14987_v1 }
0x5369   :  { %21809 = vmatpush3.xpose.msk.msra.mxu1 %vm539_vm6, %v15076_v22  ;;  %21810 = vmatprep.mubr.msk.f32.mxu1 %vm23531_vm10, %v23530_v34 }
0x536a   :  { %21818 = vmatprep.subr.mxu1 %v23530_v34 }
0x536c   :  { %21811 = vmatmul.mubr.msk.f32.vlgmr.msra.gmra.mrb[182].mxu1 %vm539_vm6, %v14992_v2 }
0x536d   :  { %21819 = vmatpush3.msra.mxu1 %v15160_v60  ;;  %21820 = vmatprep.mubr.msk.f32.mxu1 %vm23531_vm10, %v23530_v34 }
0x536e   :  { %21823 = vmatprep.subr.mxu1 %v15485_v37 }
0x543b   :  { %v15235_v59 = vpop.f32.mrb[180].mxu1 }
0x543c   :  { %v15315_v44 = vmul.f32 0.35355338, %v15235_v59  ;;  %v21807_v42 = vpop.f32.mrb[181].mxu1 }
0x543e   :  { %v15317_v27 = vsel %vm539_vm6, %v15315_v44, -inf }
0x543f   :  { %15318 = vmax.xlane.f32.xlu0 %v15317_v27  ;;  %v15311_v3 = vpop.f32.mrb[182].mxu1 }
0x5440   :  { %v15316_v4 = vmul.f32 0.35355338, %v15311_v3  ;;  %v21812_v18 = vpop.f32.mrb[183].mxu1 }
0x5442   :  { %v15320_v5 = vsel %vm539_vm6, %v15316_v4, -inf }
0x5443   :  { %15321 = vmax.xlane.f32.xlu1 %v15320_v5 }
0x54cc   :  { %v15319_v6 = vpop.xlane.xlu0 %15318 }
0x54cd   :  { %v15323_v17 = vsub.f32 %v15315_v44, %v15319_v6  ;;  %v15618_v6 = vld [vmem:[#allocation2 + $0xc58] sm:$0xff] }
0x54cf   :  { %v15325_v45 = vmul.f32 1.442695, %v15323_v17  ;;  %v15619_v17 = vld [vmem:[#allocation2 + $0xc60] sm:$0xff] }
0x54d0   :  { %v15322_v10 = vpop.xlane.xlu1 %15321 }
0x54d1   :  { %23422 = vpow2.f32 %v15325_v45  ;;  %v15324_v9 = vsub.f32 %v15316_v4, %v15322_v10  ;;  %v22920_v45 = vpack.c.bf16 %v15619_v17, %v15618_v6  ;;  %v15620_v10 = vld [vmem:[#allocation2 + $0xc68] sm:$0xff] }
0x54d3   :  { %v15327_v8 = vmul.f32 1.442695, %v15324_v9  ;;  %22921 = vmatprep.subr.bf16.mxu0 %v22920_v45  ;;  %v15621_v9 = vld [vmem:[#allocation2 + $0xc70] sm:$0xff] }
0x54d5   :  { %23424 = vpow2.f32 %v15327_v8  ;;  %v22924_v8 = vpack.c.bf16 %v15621_v9, %v15620_v10 }
0x54db   :  { %v23423_v49 = vpop.eup %23422 }
0x54dc   :  { %v15329_v58 = vsel %vm539_vm6, %v23423_v49, 0.0 }
0x54dd   :  { %15330 = vadd.xlane.f32.xlu0 %v15329_v58  ;;  %v15803_v58 = vld [vmem:[#allocation2 + $0xca0] sm:$0xff] }
0x54df   :  { %v23425_v11 = vpop.eup %23424 }
0x54e0   :  { %v15332_v63 = vsel %vm539_vm6, %v23425_v11, 0.0 }
0x54e1   :  { %15333 = vadd.xlane.f32.xlu1 %v15332_v63 }
0x556a   :  { %v15331_v14 = vpop.xlane.xlu0 %15330 }
0x556b   :  { %23426 = vrcp.f32 %v15331_v14 }
0x556e   :  { %v15334_v32 = vpop.xlane.xlu1 %15333 }
0x556f   :  { %23428 = vrcp.f32 %v15334_v32 }
0x5575   :  { %v23427_v30 = vpop.eup %23426 }
0x5576   :  { %v15337_v31 = vmul.f32 %v23427_v30, %v23423_v49  ;;  %v15802_v49 = vld [vmem:[#allocation2 + $0xc98] sm:$0xff] }
0x5578   :  { %21816 = vmatmul.mubr.msk.f32.vlgmr.msra.gmra.mrb[200].mxu0 %vm539_vm6, %v15337_v31 }
0x5579   :  { %v23429_v46 = vpop.eup %23428  ;;  %22923 = vmatpush3.bf16.msra.mxu0 %v22920_v45 }
0x557a   :  { %v15338_v35 = vmul.f32 %v23429_v46, %v23425_v11  ;;  %22925 = vmatprep.subr.bf16.mxu0 %v22924_v8  ;;  %v22936_v11 = vpack.c.bf16 %v15803_v58, %v15802_v49  ;;  %v16310_v49 = vld [vmem:[#allocation2 + $0xd00] sm:$0xff] }
0x557c   :  { %21821 = vmatmul.mubr.msk.f32.vlgmr.msra.gmra.mrb[184].mxu1 %vm539_vm6, %v15338_v35 }
0x557d   :  { %21824 = vmatpush3.msra.mxu1 %v15485_v37  ;;  %22927 = vmatpush3.bf16.msra.mxu0 %v22924_v8  ;;  %v19258_v37 = vld [vmem:[#allocation2 + $0xed0] ss:$0 sm:$0xff]  ;;  %v16309_v8 = vld [vmem:[#allocation2 + $0xcf8] sm:$0xff] }
0x557e   :  { %22929 = vmatprep.subr.bf16.mxu1 %v22928_v15  ;;  %22937 = vmatprep.subr.bf16.mxu0 %v22936_v11  ;;  %v22966_v58 = vpack.c.bf16 %v16310_v49, %v16309_v8 }
0x564b   :  { %v15408_v19 = vpop.f32.mrb[200].mxu0 }
0x564c   :  { %v21817_v39 = vpop.f32.mrb[201].mxu0  ;;  %21825 = vmatprep.mubr.msk.f32.mxu1 %vm539_vm6, %v15408_v19  ;;  %v19259_v19 = vld [vmem:[#allocation2 + $0xed8] ss:$0 sm:$0xff] }
0x564d   :  { %v15804_v39 = vld [vmem:[#allocation2 + $0xca8] sm:$0xff] }
0x564f   :  { %v15481_v51 = vpop.f32.mrb[184].mxu1 }
0x5650   :  { %v21822_v7 = vpop.f32.mrb[185].mxu1  ;;  %21826 = vmatmul.mubr.msk.f32.vlgmr.msra.gmra.mrb[170].mxu1 %vm539_vm6, %v15481_v51 }
0x5651   :  { %22931 = vmatpush3.bf16.msra.mxu1 %v22928_v15  ;;  %21847 = vmatprep.mubr.msk.f32.mxu1 %vm253_vm5, %v24433_v12 }
0x5652   :  { %22933 = vmatprep.subr.bf16.mxu1 %v22932_v48 }
0x5655   :  { %22935 = vmatpush3.bf16.msra.mxu1 %v22932_v48  ;;  %v15805_v48 = vld [vmem:[#allocation2 + $0xcb0] sm:$0xff] }
0x5656   :  { %22944 = vmatprep.subr.bf16.mxu1 %v23532_v41 }
0x5658   :  { %21848 = vmatmul.mubr.msk.f32.vlgmr.msra.gmra.mrb[186].mxu1 %vm253_vm5, %v24436_v20 }
0x5659   :  { %21850 = vmatprep.mubr.msk.f32.mxu1 %vm253_vm5, %v24442_v43 }
0x565c   :  { %21851 = vmatmul.mubr.msk.f32.gmra.mrb[188].mxu1 %vm253_vm5, %v24444_v36 }
0x565d   :  { %21871 = vmatprep.mubr.msk.f32.mxu1 %vm23531_vm10, %v23530_v34 }
0x5723   :  { %v21827_v29 = vpop.f32.mrb[170].mxu1 }
0x5724   :  { %v15575_v26 = vadd.f32 %v21827_v29, %v19257_v52  ;;  %v15558_v25 = vpop.f32.mrb[171].mxu1  ;;  %v19260_v29 = vld [vmem:[#allocation2 + $0xcc0] ss:$0 sm:$0xff] }
0x5725   :  { %v15574_v53 = vadd.f32 %v19257_v52, %v15558_v25  ;;  %v22940_v52 = vpack.c.bf16 %v15805_v48, %v15804_v39  ;;  %v16403_v39 = vld [vmem:[#allocation2 + $0xd18] sm:$0xff]  ;;  %v16404_v48 = vld [vmem:[#allocation2 + $0xd20] sm:$0xff] }
0x5726   :  { %v15577_v40 = vadd.f32 %v15575_v26, %v24655_v13 }
0x5727   :  { %v15576_v55 = vadd.f32 %v15574_v53, %v24653_v28 }
0x5728   :  { %v15583_v56 = vsel %vm253_vm5, %v15577_v40, 0.0 }
0x5729   :  { %15584 = vadd.xlane.f32.xlu1 %v15583_v56  ;;  %v15580_v60 = vsel %vm253_vm5, %v15576_v55, 0.0 }
0x572a   :  { %15581 = vadd.xlane.f32.xlu0 %v15580_v60 }
0x572b   :  { %v21849_v23 = vpop.f32.mrb[186].mxu1 }
0x572c   :  { %v15789_v21 = vadd.f32 %v21849_v23, %v19263_v57  ;;  %v15783_v24 = vpop.f32.mrb[187].mxu1 }
0x572d   :  { %v15784_v61 = vadd.f32 %v19263_v57, %v15783_v24 }
0x572f   :  { %v22945_v62 = vpack.c.bf16 %v15789_v21, %v15784_v61  ;;  %v21852_v47 = vpop.f32.mrb[188].mxu1 }
0x5730   :  { %v24821_v0 = vadd.f32 %v21852_v47, %v19263_v57  ;;  %v15793_v1 = vpop.f32.mrb[189].mxu1 }
0x5731   :  { %v24823_v22 = vadd.f32 %v19263_v57, %v15793_v1  ;;  %22947 = vmatpush3.bf16.xpose.msk.msra.mxu1 %vm23631_vm7, %v22945_v62 }
0x5732   :  { %22952 = vmatprep.subr.bf16.mxu1 %v23532_v41 }
0x5733   :  { %v22949_v28 = vpack.c.bf16 %v24821_v0, %v24823_v22 }
0x57b6   :  { %v15585_v13 = vpop.xlane.xlu1 %15584 }
0x57b7   :  { %v15587_v2 = vmul.f32 0.03125, %v15585_v13  ;;  %v15582_v59 = vpop.xlane.xlu0 %15581 }
0x57b8   :  { %v15586_v44 = vmul.f32 0.03125, %v15582_v59 }
0x57b9   :  { %v15589_v42 = vsub.f32 %v15577_v40, %v15587_v2 }
0x57ba   :  { %v15588_v27 = vsub.f32 %v15576_v55, %v15586_v44  ;;  %v19268_v55 = vld [vmem:[#allocation2 + $0xcd0] ss:$0 sm:$0xff] }
0x57bb   :  { %v15591_v3 = vmul.f32 %v15589_v42, %v15589_v42 }
0x57bc   :  { %v15590_v4 = vmul.f32 %v15588_v27, %v15588_v27 }
0x57bd   :  { %v15595_v18 = vsel %vm253_vm5, %v15591_v3, 0.0 }
0x57be   :  { %15596 = vadd.xlane.f32.xlu1 %v15595_v18  ;;  %v15592_v5 = vsel %vm253_vm5, %v15590_v4, 0.0 }
0x57bf   :  { %15593 = vadd.xlane.f32.xlu0 %v15592_v5 }
0x584b   :  { %v15597_v63 = vpop.xlane.xlu1 %15596 }
0x584c   :  { %v15599_v14 = vmul.f32 0.03125, %v15597_v63  ;;  %v15594_v32 = vpop.xlane.xlu0 %15593  ;;  %v16226_v63 = vld [vmem:[#allocation2 + $0xce0] sm:$0xff] }
0x584d   :  { %v15598_v30 = vmul.f32 0.03125, %v15594_v32 }
0x584e   :  { %v15601_v31 = vadd.f32 1e-05, %v15599_v14 }
0x584f   :  { %v15600_v46 = vadd.f32 1e-05, %v15598_v30 }
0x5850   :  { %23430 = vrsqrt.f32 %v15601_v31  ;;  %v16311_v31 = vld [vmem:[#allocation2 + $0xd08] sm:$0xff] }
0x5851   :  { %23432 = vrsqrt.f32 %v15600_v46  ;;  %v16312_v46 = vld [vmem:[#allocation2 + $0xd10] sm:$0xff] }
0x585a   :  { %v23431_v35 = vpop.eup %23430 }
0x585b   :  { %v23433_v16 = vpop.eup %23432  ;;  %v15605_v33 = vmul.f32 %v23431_v35, %v15589_v42 }
0x585c   :  { %v15604_v15 = vmul.f32 %v23433_v16, %v15588_v27  ;;  %v16228_v16 = vld [vmem:[#allocation2 + $0xcf0] sm:$0xff] }
0x585d   :  { %v15611_v50 = vmul.f32 %v19258_v37, %v15605_v33 }
0x585e   :  { %v15610_v38 = vmul.f32 %v19258_v37, %v15604_v15  ;;  %v16227_v37 = vld [vmem:[#allocation2 + $0xce8] sm:$0xff] }
0x585f   :  { %v24834_v7 = vadd.f32 %v19259_v19, %v15611_v50  ;;  %v22970_v50 = vpack.c.bf16 %v16312_v46, %v16311_v31 }
0x5860   :  { %v24832_v51 = vadd.f32 %v19259_v19, %v15610_v38  ;;  %v22962_v38 = vpack.c.bf16 %v16228_v16, %v16227_v37 }
0x5862   :  { %21836 = vmatprep.mubr.msk.f32.mxu0 %vm253_vm5, %v24832_v51 }
0x5863   :  { %21837 = vmatmul.mubr.msk.f32.vlgmr.msra.gmra.mrb[202].mxu0 %vm253_vm5, %v24834_v7 }
0x5864   :  { %22939 = vmatpush3.bf16.msra.mxu0 %v22936_v11  ;;  %21861 = vmatprep.mubr.msk.f32.mxu0 %vm253_vm5, %v24433_v12  ;;  %v16225_v11 = vld [vmem:[#allocation2 + $0xcd8] sm:$0xff] }
0x5865   :  { %22941 = vmatprep.subr.bf16.mxu0 %v22940_v52  ;;  %v22958_v14 = vpack.c.bf16 %v16226_v63, %v16225_v11 }
0x5868   :  { %22943 = vmatpush3.bf16.msra.mxu0 %v22940_v52  ;;  %v22974_v52 = vpack.c.bf16 %v16404_v48, %v16403_v39 }
0x5869   :  { %22948 = vmatprep.subr.bf16.mxu0 %v23532_v41 }
0x586b   :  { %21862 = vmatmul.mubr.msk.f32.vlgmr.msra.gmra.mrb[204].mxu0 %vm253_vm5, %v24436_v20 }
0x586c   :  { %21864 = vmatprep.mubr.msk.f32.mxu0 %vm253_vm5, %v24442_v43 }
0x586f   :  { %21865 = vmatmul.mubr.msk.f32.gmra.mrb[206].mxu0 %vm253_vm5, %v24444_v36 }
0x5870   :  { %21878 = vmatprep.mubr.msk.f32.mxu0 %vm23531_vm10, %v23530_v34 }
0x5871   :  { %22951 = vmatpush3.bf16.xpose.msk.msra.mxu0 %vm23631_vm7, %v22949_v28 }
0x5872   :  { %22955 = vmatprep.subr.bf16.mxu0 %v23532_v41 }
0x5936   :  { %v21838_v26 = vpop.f32.mrb[202].mxu0 }
0x5937   :  { %v15705_v25 = vadd.f32 %v21838_v26, %v19260_v29  ;;  %v15699_v53 = vpop.f32.mrb[203].mxu0  ;;  %v16406_v26 = vld [vmem:[#allocation2 + $0xd30] sm:$0xff] }
0x5938   :  { %v15700_v40 = vadd.f32 %v19260_v29, %v15699_v53  ;;  %v16405_v29 = vld [vmem:[#allocation2 + $0xd28] sm:$0xff] }
0x5939   :  { %21879 = vmatmul.mubr.msk.f32.vlgmr.msra.gmra.mrb[208].mxu0 %vm539_vm6, %v15705_v25  ;;  %v22978_v25 = vpack.c.bf16 %v16406_v26, %v16405_v29  ;;  %v16989_v29 = vld [vmem:[#allocation2 + $0xd60] sm:$0xff] }
0x593a   :  { %21872 = vmatmul.mubr.msk.f32.vlgmr.msra.gmra.mrb[190].mxu1 %vm539_vm6, %v15700_v40  ;;  %21892 = vmatprep.mubr.msk.f32.mxu0 %vm23531_vm10, %v23530_v34 }
0x593b   :  { %21885 = vmatprep.mubr.msk.f32.mxu1 %vm23531_vm10, %v23530_v34 }
0x593e   :  { %v21863_v56 = vpop.f32.mrb[204].mxu0 }
0x593f   :  { %v15883_v57 = vadd.f32 %v21863_v56, %v19268_v55  ;;  %v15877_v60 = vpop.f32.mrb[205].mxu0 }
0x5940   :  { %v15878_v23 = vadd.f32 %v19268_v55, %v15877_v60 }
0x5942   :  { %v22953_v21 = vpack.c.bf16 %v15883_v57, %v15878_v23  ;;  %v21866_v24 = vpop.f32.mrb[206].mxu0  ;;  %v19284_v57 = vld [vmem:[#allocation2 + $0xd48] ss:$0 sm:$0xff] }
0x5943   :  { %v15893_v61 = vadd.f32 %v21866_v24, %v19268_v55  ;;  %v15887_v62 = vpop.f32.mrb[207].mxu0 }
0x5944   :  { %v15888_v47 = vadd.f32 %v19268_v55, %v15887_v62  ;;  %22954 = vmatpush3.bf16.msra.mxu1 %v22953_v21 }
0x5945   :  { %22959 = vmatprep.subr.bf16.mxu1 %v22958_v14 }
0x5946   :  { %v22956_v0 = vpack.c.bf16 %v15893_v61, %v15888_v47 }
0x5948   :  { %22957 = vmatpush3.bf16.msra.mxu0 %v22956_v0 }
0x5949   :  { %22967 = vmatprep.subr.bf16.mxu0 %v22966_v58 }
0x5a0c   :  { %v16050_v1 = vpop.f32.mrb[208].mxu0 }
0x5a0d   :  { %v16055_v22 = vmul.f32 0.35355338, %v16050_v1  ;;  %v15971_v28 = vpop.f32.mrb[190].mxu1  ;;  %v21880_v13 = vpop.f32.mrb[209].mxu0 }
0x5a0e   :  { %v16054_v2 = vmul.f32 0.35355338, %v15971_v28  ;;  %v21873_v59 = vpop.f32.mrb[191].mxu1  ;;  %v19289_v13 = vld [vmem:[#allocation2 + $0xd50] ss:$0 sm:$0xff] }
0x5a0f   :  { %v16059_v44 = vsel %vm718_vm8, %v16055_v22, -inf }
0x5a10   :  { %16060 = vmax.xlane.f32.xlu0 %v16059_v44  ;;  %v16056_v42 = vsel %vm718_vm8, %v16054_v2, -inf }
0x5a11   :  { %16057 = vmax.xlane.f32.xlu1 %v16056_v42 }
0x5a9d   :  { %v16061_v27 = vpop.xlane.xlu0 %16060 }
0x5a9e   :  { %v16063_v3 = vsub.f32 %v16055_v22, %v16061_v27  ;;  %v16058_v4 = vpop.xlane.xlu1 %16057 }
0x5a9f   :  { %v16062_v18 = vsub.f32 %v16054_v2, %v16058_v4  ;;  %v19281_v2 = vld [vmem:[#allocation2 + $0xd40] ss:$0 sm:$0xff] }
0x5aa0   :  { %v16066_v5 = vmul.f32 1.442695, %v16063_v3 }
0x5aa1   :  { %v16064_v6 = vmul.f32 1.442695, %v16062_v18 }
0x5aa2   :  { %23434 = vpow2.f32 %v16066_v5 }
0x5aa3   :  { %23436 = vpow2.f32 %v16064_v6 }
0x5aac   :  { %v23435_v17 = vpop.eup %23434 }
0x5aad   :  { %v23437_v45 = vpop.eup %23436  ;;  %v16071_v10 = vsel %vm718_vm8, %v23435_v17, 0.0 }
0x5aae   :  { %16072 = vadd.xlane.f32.xlu0 %v16071_v10  ;;  %v16068_v9 = vsel %vm718_vm8, %v23437_v45, 0.0 }
0x5aaf   :  { %16069 = vadd.xlane.f32.xlu1 %v16068_v9 }
0x5b3b   :  { %v16073_v32 = vpop.xlane.xlu0 %16072 }
0x5b3c   :  { %23438 = vrcp.f32 %v16073_v32  ;;  %v16070_v30 = vpop.xlane.xlu1 %16069 }
0x5b3d   :  { %23440 = vrcp.f32 %v16070_v30 }
0x5b46   :  { %v23439_v35 = vpop.eup %23438 }
0x5b47   :  { %v23441_v33 = vpop.eup %23440  ;;  %v16077_v15 = vmul.f32 %v23439_v35, %v23435_v17 }
0x5b48   :  { %v16076_v19 = vmul.f32 %v23441_v33, %v23437_v45 }
0x5b49   :  { %21893 = vmatmul.mubr.msk.f32.vlgmr.msra.gmra.mrb[210].mxu0 %vm718_vm8, %v16077_v15 }
0x5b4a   :  { %22969 = vmatpush3.bf16.msra.mxu0 %v22966_v58  ;;  %21886 = vmatmul.mubr.msk.f32.vlgmr.msra.gmra.mrb[192].mxu1 %vm718_vm8, %v16076_v19 }
0x5b4b   :  { %22961 = vmatpush3.bf16.msra.mxu1 %v22958_v14  ;;  %21914 = vmatprep.mubr.msk.f32.mxu0 %vm253_vm5, %v24433_v12 }
0x5b4c   :  { %21903 = vmatprep.mubr.msk.f32.mxu1 %vm253_vm5, %v24832_v51  ;;  %22971 = vmatprep.subr.bf16.mxu0 %v22970_v50 }
0x5b4d   :  { %22963 = vmatprep.subr.bf16.mxu1 %v22962_v38 }
0x5b4e   :  { %22973 = vmatpush3.bf16.msra.mxu0 %v22970_v50 }
0x5b4f   :  { %22965 = vmatpush3.bf16.msra.mxu1 %v22962_v38  ;;  %22982 = vmatprep.subr.bf16.mxu0 %v23532_v41 }
0x5b50   :  { %22975 = vmatprep.subr.bf16.mxu1 %v22974_v52 }
0x5b51   :  { %21915 = vmatmul.mubr.msk.f32.vlgmr.msra.gmra.mrb[212].mxu0 %vm253_vm5, %v24436_v20 }
0x5b52   :  { %21904 = vmatmul.mubr.msk.f32.vlgmr.msra.gmra.mrb[194].mxu1 %vm253_vm5, %v24834_v7  ;;  %21917 = vmatprep.mubr.msk.f32.mxu0 %vm253_vm5, %v24442_v43 }
0x5b53   :  { %22977 = vmatpush3.bf16.msra.mxu1 %v22974_v52  ;;  %21928 = vmatprep.mubr.msk.f32.mxu1 %vm253_vm5, %v24433_v12  ;;  %v16988_v52 = vld [vmem:[#allocation2 + $0xd58] sm:$0xff] }
0x5b54   :  { %22979 = vmatprep.subr.bf16.mxu1 %v22978_v25 }
0x5b55   :  { %21918 = vmatmul.mubr.msk.f32.gmra.mrb[214].mxu0 %vm253_vm5, %v24444_v36 }
0x5b56   :  { %21938 = vmatprep.mubr.msk.f32.mxu0 %vm23531_vm10, %v23530_v34 }
0x5b57   :  { %22981 = vmatpush3.bf16.msra.mxu1 %v22978_v25 }
0x5b58   :  { %22986 = vmatprep.subr.bf16.mxu1 %v23532_v41 }
0x5b5a   :  { %21929 = vmatmul.mubr.msk.f32.vlgmr.msra.gmra.mrb[196].mxu1 %vm253_vm5, %v24436_v20 }
0x5b5b   :  { %21931 = vmatprep.mubr.msk.f32.mxu1 %vm253_vm5, %v24442_v43 }
0x5b5e   :  { %21932 = vmatmul.mubr.msk.f32.gmra.mrb[198].mxu1 %vm253_vm5, %v24444_v36 }
0x5b5f   :  { %21945 = vmatprep.mubr.msk.f32.mxu1 %vm23531_vm10, %v23530_v34 }
0x5c1c   :  { %v24892_v53 = vpop.f32.mrb[210].mxu0 }
0x5c1d   :  { %v24894_v40 = vpop.f32.mrb[192].mxu1  ;;  %v21894_v55 = vpop.f32.mrb[211].mxu0 }
0x5c1e   :  { %v21887_v56 = vpop.f32.mrb[193].mxu1  ;;  %v22996_v55 = vpack.c.bf16 %v16989_v29, %v16988_v52 }
0x5c1f   :  { %v16990_v56 = vld [vmem:[#allocation2 + $0xd68] sm:$0xff] }
0x5c24   :  { %v21916_v60 = vpop.f32.mrb[212].mxu0 }
0x5c25   :  { %v16390_v23 = vadd.f32 %v21916_v60, %v19284_v57  ;;  %v21905_v21 = vpop.f32.mrb[194].mxu1  ;;  %v16384_v24 = vpop.f32.mrb[213].mxu0 }
0x5c26   :  { %v16385_v61 = vadd.f32 %v19284_v57, %v16384_v24  ;;  %v16300_v62 = vpop.f32.mrb[195].mxu1  ;;  %v16306_v45 = vadd.f32 %v21905_v21, %v19281_v2  ;;  %v17166_v24 = vld [vmem:[#allocation2 + $0xd98] sm:$0xff] }
0x5c27   :  { %v16301_v3 = vadd.f32 %v19281_v2, %v16300_v62  ;;  %v17072_v2 = vld [vmem:[#allocation2 + $0xd78] sm:$0xff] }
0x5c28   :  { %v22983_v47 = vpack.c.bf16 %v16390_v23, %v16385_v61  ;;  %v21919_v0 = vpop.f32.mrb[214].mxu0  ;;  %v17167_v61 = vld [vmem:[#allocation2 + $0xda0] sm:$0xff] }
0x5c29   :  { %v16400_v1 = vadd.f32 %v21919_v0, %v19284_v57  ;;  %v16394_v22 = vpop.f32.mrb[215].mxu0  ;;  %v23012_v62 = vpack.c.bf16 %v17167_v61, %v17166_v24  ;;  %v17169_v0 = vld [vmem:[#allocation2 + $0xdb0] sm:$0xff] }
0x5c2a   :  { %v16395_v28 = vadd.f32 %v19284_v57, %v16394_v22  ;;  %22985 = vmatpush3.bf16.xpose.msk.msra.mxu0 %vm23631_vm7, %v22983_v47  ;;  %v16991_v57 = vld [vmem:[#allocation2 + $0xd70] sm:$0xff]  ;;  %v17168_v47 = vld [vmem:[#allocation2 + $0xda8] sm:$0xff]  ;;  %v16825_v22 = vld [vmem:[#allocation2 + $0xd38] sm:$0xff] }
0x5c2b   :  { %22990 = vmatprep.subr.bf16.mxu0 %v23532_v41  ;;  %v23000_v21 = vpack.c.bf16 %v16991_v57, %v16990_v56 }
0x5c2c   :  { %v22987_v59 = vpack.c.bf16 %v16400_v1, %v16395_v28  ;;  %v23016_v1 = vpack.c.bf16 %v17169_v0, %v17168_v47  ;;  %v16224_v28 = vld [vmem:[#allocation2 + $0xcb8] sm:$0xff] }
0x5c2d   :  { %v21930_v44 = vpop.f32.mrb[196].mxu1 }
0x5c2e   :  { %v16484_v42 = vadd.f32 %v21930_v44, %v19289_v13  ;;  %v16478_v27 = vpop.f32.mrb[197].mxu1  ;;  %22989 = vmatpush3.bf16.xpose.msk.msra.mxu1 %vm23631_vm7, %v22987_v59  ;;  %v17073_v59 = vld [vmem:[#allocation2 + $0xd80] sm:$0xff] }
0x5c2f   :  { %v16479_v4 = vadd.f32 %v19289_v13, %v16478_v27  ;;  %21962 = vmatprep.subr.mxu1 %v16825_v22 }
0x5c31   :  { %v22991_v18 = vpack.c.bf16 %v16484_v42, %v16479_v4  ;;  %v21933_v5 = vpop.f32.mrb[198].mxu1  ;;  %21939 = vmatmul.mubr.msk.f32.vlgmr.msra.gmra.mrb[216].mxu0 %vm539_vm6, %v16301_v3  ;;  %v23004_v42 = vpack.c.bf16 %v17073_v59, %v17072_v2  ;;  %v17074_v4 = vld [vmem:[#allocation2 + $0xd88] sm:$0xff]  ;;  %v17673_v2 = vld [vmem:[#allocation2 + $0xde0] sm:$0xff] }
0x5c32   :  { %v16494_v6 = vadd.f32 %v21933_v5, %v19289_v13  ;;  %v16488_v17 = vpop.f32.mrb[199].mxu1  ;;  %21952 = vmatprep.mubr.msk.f32.mxu0 %vm23531_vm10, %v23530_v34 }
0x5c33   :  { %v16489_v10 = vadd.f32 %v19289_v13, %v16488_v17  ;;  %22992 = vmatpush3.bf16.msra.mxu0 %v22991_v18  ;;  %v17075_v18 = vld [vmem:[#allocation2 + $0xd90] sm:$0xff] }
0x5c34   :  { %22993 = vmatprep.subr.bf16.mxu0 %v23532_v41  ;;  %v23008_v5 = vpack.c.bf16 %v17075_v18, %v17074_v4  ;;  %v17674_v4 = vld [vmem:[#allocation2 + $0xde8] sm:$0xff]  ;;  %v17675_v18 = vld [vmem:[#allocation2 + $0xdf0] sm:$0xff] }
0x5c35   :  { %v22994_v9 = vpack.c.bf16 %v16494_v6, %v16489_v10  ;;  %21946 = vmatmul.mubr.msk.f32.vlgmr.msra.gmra.mrb[200].mxu1 %vm539_vm6, %v16306_v45  ;;  %v19314_v45 = vld [vmem:[#allocation2 + $0xdd0] ss:$0 sm:$0xff] }
0x5c36   :  { %21963 = vmatpush3.msra.mxu1 %v16825_v22 }
0x5c37   :  { %21967 = vmatprep.subr.mxu1 %v16224_v28 }
0x5d04   :  { %v16572_v8 = vpop.f32.mrb[216].mxu0 }
0x5d05   :  { %v16655_v49 = vmul.f32 0.35355338, %v16572_v8  ;;  %v21940_v58 = vpop.f32.mrb[217].mxu0 }
0x5d07   :  { %v16657_v11 = vsel %vm718_vm8, %v16655_v49, -inf }
0x5d08   :  { %v16651_v63 = vpop.f32.mrb[200].mxu1  ;;  %16658 = vmax.xlane.f32.xlu0 %v16657_v11 }
0x5d09   :  { %v16656_v14 = vmul.f32 0.35355338, %v16651_v63  ;;  %v21947_v32 = vpop.f32.mrb[201].mxu1 }
0x5d0a   :  { %v19309_v32 = vld [vmem:[#allocation2 + $0xdc8] ss:$0 sm:$0xff] }
0x5d0b   :  { %v16660_v30 = vsel %vm718_vm8, %v16656_v14, -inf }
0x5d0c   :  { %16661 = vmax.xlane.f32.xlu1 %v16660_v30 }
0x5d95   :  { %v16659_v31 = vpop.xlane.xlu0 %16658 }
0x5d96   :  { %v16663_v46 = vsub.f32 %v16655_v49, %v16659_v31 }
0x5d98   :  { %v16665_v35 = vmul.f32 1.442695, %v16663_v46 }
0x5d99   :  { %v16662_v37 = vpop.xlane.xlu1 %16661 }
0x5d9a   :  { %23442 = vpow2.f32 %v16665_v35  ;;  %v16664_v16 = vsub.f32 %v16656_v14, %v16662_v37 }
0x5d9c   :  { %v16667_v33 = vmul.f32 1.442695, %v16664_v16 }
0x5d9e   :  { %23444 = vpow2.f32 %v16667_v33 }
0x5da4   :  { %v23443_v15 = vpop.eup %23442 }
0x5da5   :  { %v16669_v19 = vsel %vm718_vm8, %v23443_v15, 0.0 }
0x5da6   :  { %16670 = vadd.xlane.f32.xlu0 %v16669_v19 }
0x5da8   :  { %v23445_v50 = vpop.eup %23444 }
0x5da9   :  { %v16672_v38 = vsel %vm718_vm8, %v23445_v50, 0.0 }
0x5daa   :  { %16673 = vadd.xlane.f32.xlu1 %v16672_v38 }
0x5e33   :  { %v16671_v39 = vpop.xlane.xlu0 %16670 }
0x5e34   :  { %23446 = vrcp.f32 %v16671_v39 }
0x5e37   :  { %v16674_v48 = vpop.xlane.xlu1 %16673 }
0x5e38   :  { %23448 = vrcp.f32 %v16674_v48 }
0x5e3e   :  { %v23447_v26 = vpop.eup %23446 }
0x5e3f   :  { %v16677_v25 = vmul.f32 %v23447_v26, %v23443_v15 }
0x5e41   :  { %21953 = vmatmul.mubr.msk.f32.vlgmr.msra.gmra.mrb[218].mxu0 %vm718_vm8, %v16677_v25 }
0x5e42   :  { %v23449_v60 = vpop.eup %23448  ;;  %22995 = vmatpush3.bf16.msra.mxu0 %v22994_v9  ;;  %21959 = vmatprep.mubr.msk.f32.mxu0 %vm23531_vm10, %v23530_v34 }
0x5e43   :  { %v16678_v23 = vmul.f32 %v23449_v60, %v23445_v50  ;;  %22997 = vmatprep.subr.bf16.mxu0 %v22996_v55  ;;  %v19306_v50 = vld [vmem:[#allocation2 + $0xdc0] ss:$0 sm:$0xff] }
0x5e45   :  { %21960 = vmatmul.mubr.msk.f32.vlgmr.msra.gmra.mrb[220].mxu0 %vm718_vm8, %v16678_v23 }
0x5e46   :  { %22999 = vmatpush3.bf16.msra.mxu0 %v22996_v55  ;;  %21980 = vmatprep.mubr.msk.f32.mxu0 %vm253_vm5, %v24832_v51 }
0x5e47   :  { %23001 = vmatprep.subr.bf16.mxu0 %v23000_v21 }
0x5e4a   :  { %23003 = vmatpush3.bf16.msra.mxu0 %v23000_v21 }
0x5e4b   :  { %23013 = vmatprep.subr.bf16.mxu0 %v23012_v62 }
0x5e4d   :  { %21981 = vmatmul.mubr.msk.f32.vlgmr.msra.gmra.mrb[222].mxu0 %vm253_vm5, %v24834_v7 }
0x5e4e   :  { %23015 = vmatpush3.bf16.msra.mxu0 %v23012_v62  ;;  %22005 = vmatprep.mubr.msk.f32.mxu0 %vm253_vm5, %v24433_v12 }
0x5e4f   :  { %23017 = vmatprep.subr.bf16.mxu0 %v23016_v1 }
0x5e52   :  { %23019 = vmatpush3.bf16.msra.mxu0 %v23016_v1 }
0x5e53   :  { %23024 = vmatprep.subr.bf16.mxu0 %v23532_v41 }
0x5e55   :  { %22006 = vmatmul.mubr.msk.f32.vlgmr.msra.gmra.mrb[224].mxu0 %vm253_vm5, %v24436_v20 }
0x5e56   :  { %22008 = vmatprep.mubr.msk.f32.mxu0 %vm253_vm5, %v24442_v43 }
0x5e59   :  { %22009 = vmatmul.mubr.msk.f32.gmra.mrb[226].mxu0 %vm253_vm5, %v24444_v36 }
0x5e5a   :  { %22022 = vmatprep.mubr.msk.f32.mxu0 %vm23531_vm10, %v23530_v34 }
0x5f14   :  { %v16748_v13 = vpop.f32.mrb[218].mxu0 }
0x5f15   :  { %v21954_v44 = vpop.f32.mrb[219].mxu0  ;;  %21964 = vmatprep.mubr.msk.f32.mxu1 %vm539_vm6, %v16748_v13  ;;  %v17672_v13 = vld [vmem:[#allocation2 + $0xdd8] sm:$0xff] }
0x5f16   :  { %v23034_v59 = vpack.c.bf16 %v17673_v2, %v17672_v13 }
0x5f18   :  { %v16821_v27 = vpop.f32.mrb[220].mxu0 }
0x5f19   :  { %v21961_v3 = vpop.f32.mrb[221].mxu0  ;;  %21965 = vmatmul.mubr.msk.f32.vlgmr.msra.gmra.mrb[202].mxu1 %vm539_vm6, %v16821_v27 }
0x5f1a   :  { %21968 = vmatpush3.msra.mxu1 %v16224_v28  ;;  %21969 = vmatprep.mubr.msk.f32.mxu1 %vm539_vm6, %v24894_v40 }
0x5f1b   :  { %23005 = vmatprep.subr.bf16.mxu1 %v23004_v42 }
0x5f20   :  { %v21982_v6 = vpop.f32.mrb[222].mxu0 }
0x5f21   :  { %v17063_v17 = vpop.f32.mrb[223].mxu0  ;;  %21970 = vmatmul.mubr.msk.f32.vlgmr.msra.gmra.mrb[202].mxu1 %vm539_vm6, %v24892_v53  ;;  %v17069_v48 = vadd.f32 %v21982_v6, %v19306_v50 }
0x5f22   :  { %23007 = vmatpush3.bf16.msra.mxu1 %v23004_v42  ;;  %21991 = vmatprep.mubr.msk.f32.mxu1 %vm253_vm5, %v24433_v12  ;;  %v17064_v39 = vadd.f32 %v19306_v50, %v17063_v17  ;;  %v23038_v17 = vpack.c.bf16 %v17675_v18, %v17674_v4 }
0x5f23   :  { %23009 = vmatprep.subr.bf16.mxu1 %v23008_v5 }
0x5f26   :  { %23011 = vmatpush3.bf16.msra.mxu1 %v23008_v5 }
0x5f27   :  { %23020 = vmatprep.subr.bf16.mxu1 %v23532_v41 }
0x5f28   :  { %v22007_v10 = vpop.f32.mrb[224].mxu0 }
0x5f29   :  { %v17247_v40 = vadd.f32 %v22007_v10, %v19314_v45  ;;  %21992 = vmatmul.mubr.msk.f32.vlgmr.msra.gmra.mrb[204].mxu1 %vm253_vm5, %v24436_v20  ;;  %v17241_v9 = vpop.f32.mrb[225].mxu0  ;;  %v17851_v10 = vld [vmem:[#allocation2 + $0xe20] sm:$0xff] }
0x5f2a   :  { %v17242_v8 = vadd.f32 %v19314_v45, %v17241_v9  ;;  %21994 = vmatprep.mubr.msk.f32.mxu1 %vm253_vm5, %v24442_v43  ;;  %v17852_v9 = vld [vmem:[#allocation2 + $0xe28] sm:$0xff] }
0x5f2c   :  { %v23029_v53 = vpack.c.bf16 %v17247_v40, %v17242_v8  ;;  %v22010_v49 = vpop.f32.mrb[226].mxu0  ;;  %v17853_v8 = vld [vmem:[#allocation2 + $0xe30] sm:$0xff] }
0x5f2d   :  { %v17257_v58 = vadd.f32 %v22010_v49, %v19314_v45  ;;  %21995 = vmatmul.mubr.msk.f32.gmra.mrb[206].mxu1 %vm253_vm5, %v24444_v36  ;;  %v17251_v11 = vpop.f32.mrb[227].mxu0  ;;  %v17588_v49 = vld [vmem:[#allocation2 + $0xdb8] sm:$0xff] }
0x5f2e   :  { %v17252_v63 = vadd.f32 %v19314_v45, %v17251_v11  ;;  %22015 = vmatprep.mubr.msk.f32.mxu1 %vm23531_vm10, %v23530_v34  ;;  %v17850_v45 = vld [vmem:[#allocation2 + $0xe18] sm:$0xff]  ;;  %v17757_v11 = vld [vmem:[#allocation2 + $0xe00] sm:$0xff] }
0x5f2f   :  { %v23050_v40 = vpack.c.bf16 %v17851_v10, %v17850_v45 }
0x5f30   :  { %v23032_v14 = vpack.c.bf16 %v17257_v58, %v17252_v63  ;;  %v17756_v58 = vld [vmem:[#allocation2 + $0xdf8] sm:$0xff] }
0x5f31   :  { %v23042_v63 = vpack.c.bf16 %v17757_v11, %v17756_v58  ;;  %v18272_v58 = vld [vmem:[#allocation2 + $0xe38] sm:$0xff] }
0x5ffc   :  { %v21993_v30 = vpop.f32.mrb[204].mxu1 }
0x5ffd   :  { %v17153_v31 = vadd.f32 %v21993_v30, %v19309_v32  ;;  %v17147_v46 = vpop.f32.mrb[205].mxu1  ;;  %v17759_v30 = vld [vmem:[#allocation2 + $0xe10] sm:$0xff] }
0x5ffe   :  { %v17148_v35 = vadd.f32 %v19309_v32, %v17147_v46 }
0x6000   :  { %v23021_v37 = vpack.c.bf16 %v17153_v31, %v17148_v35  ;;  %v21996_v16 = vpop.f32.mrb[206].mxu1 }
0x6001   :  { %v17163_v33 = vadd.f32 %v21996_v16, %v19309_v32  ;;  %v17157_v15 = vpop.f32.mrb[207].mxu1 }
0x6002   :  { %v17158_v19 = vadd.f32 %v19309_v32, %v17157_v15  ;;  %23023 = vmatpush3.bf16.xpose.msk.msra.mxu1 %vm23631_vm7, %v23021_v37  ;;  %v17758_v32 = vld [vmem:[#allocation2 + $0xe08] sm:$0xff]  ;;  %v19337_v15 = vld [vmem:[#allocation2 + $0xe50] ss:$0 sm:$0xff] }
0x6003   :  { %23028 = vmatprep.subr.bf16.mxu1 %v23532_v41  ;;  %v23046_v46 = vpack.c.bf16 %v17759_v30, %v17758_v32  ;;  %v19352_v30 = vld [vmem:[#allocation2 + $0xe58] ss:$0 sm:$0xff] }
0x6004   :  { %v23025_v38 = vpack.c.bf16 %v17163_v33, %v17158_v19 }
0x6006   :  { %23027 = vmatpush3.bf16.xpose.msk.msra.mxu0 %vm23631_vm7, %v23025_v38 }
0x6007   :  { %23031 = vmatprep.subr.bf16.mxu0 %v23532_v41 }
0x6009   :  { %22016 = vmatmul.mubr.msk.f32.vlgmr.msra.gmra.mrb[208].mxu1 %vm539_vm6, %v17064_v39 }
0x600a   :  { %23030 = vmatpush3.bf16.msra.mxu1 %v23029_v53  ;;  %22029 = vmatprep.mubr.msk.f32.mxu1 %vm23531_vm10, %v23530_v34  ;;  %v23054_v53 = vpack.c.bf16 %v17853_v8, %v17852_v9 }
0x600b   :  { %22039 = vmatprep.subr.mxu1 %v17588_v49 }
0x600d   :  { %22023 = vmatmul.mubr.msk.f32.vlgmr.msra.gmra.mrb[228].mxu0 %vm539_vm6, %v17069_v48 }
0x600e   :  { %23033 = vmatpush3.bf16.msra.mxu0 %v23032_v14  ;;  %22036 = vmatprep.mubr.msk.f32.mxu0 %vm23531_vm10, %v23530_v34 }
0x600f   :  { %23035 = vmatprep.subr.bf16.mxu0 %v23034_v59 }
0x60dc   :  { %v17335_v52 = vpop.f32.mrb[208].mxu1 }
0x60dd   :  { %v17418_v29 = vmul.f32 0.35355338, %v17335_v52  ;;  %v22017_v26 = vpop.f32.mrb[209].mxu1 }
0x60df   :  { %v17420_v25 = vsel %vm718_vm8, %v17418_v29, -inf }
0x60e0   :  { %v17414_v55 = vpop.f32.mrb[228].mxu0  ;;  %17421 = vmax.xlane.f32.xlu0 %v17420_v25  ;;  %v19332_v25 = vld [vmem:[#allocation2 + $0xe48] ss:$0 sm:$0xff] }
0x60e1   :  { %v17419_v56 = vmul.f32 0.35355338, %v17414_v55  ;;  %v22024_v57 = vpop.f32.mrb[229].mxu0 }
0x60e3   :  { %v17423_v60 = vsel %vm718_vm8, %v17419_v56, -inf }
0x60e4   :  { %17424 = vmax.xlane.f32.xlu1 %v17423_v60 }
0x616d   :  { %v17422_v23 = vpop.xlane.xlu0 %17421 }
0x616e   :  { %v17426_v21 = vsub.f32 %v17418_v29, %v17422_v23 }
0x6170   :  { %v17428_v24 = vmul.f32 1.442695, %v17426_v21 }
0x6171   :  { %v17425_v61 = vpop.xlane.xlu1 %17424 }
0x6172   :  { %23450 = vpow2.f32 %v17428_v24  ;;  %v17427_v62 = vsub.f32 %v17419_v56, %v17425_v61  ;;  %v19329_v61 = vld [vmem:[#allocation2 + $0xe40] ss:$0 sm:$0xff] }
0x6174   :  { %v17430_v47 = vmul.f32 1.442695, %v17427_v62 }
0x6176   :  { %23452 = vpow2.f32 %v17430_v47 }
0x617c   :  { %v23451_v0 = vpop.eup %23450 }
0x617d   :  { %v17432_v1 = vsel %vm718_vm8, %v23451_v0, 0.0 }
0x617e   :  { %17433 = vadd.xlane.f32.xlu0 %v17432_v1 }
0x6180   :  { %v23453_v22 = vpop.eup %23452 }
0x6181   :  { %v17435_v28 = vsel %vm718_vm8, %v23453_v22, 0.0 }
0x6182   :  { %17436 = vadd.xlane.f32.xlu1 %v17435_v28 }
0x620b   :  { %v17434_v44 = vpop.xlane.xlu0 %17433 }
0x620c   :  { %23454 = vrcp.f32 %v17434_v44 }
0x620f   :  { %v17437_v42 = vpop.xlane.xlu1 %17436 }
0x6210   :  { %23456 = vrcp.f32 %v17437_v42 }
0x6216   :  { %v23455_v27 = vpop.eup %23454 }
0x6217   :  { %v17440_v3 = vmul.f32 %v23455_v27, %v23451_v0 }
0x6219   :  { %22030 = vmatmul.mubr.msk.f32.vlgmr.msra.gmra.mrb[210].mxu1 %vm718_vm8, %v17440_v3 }
0x621a   :  { %v23457_v5 = vpop.eup %23456  ;;  %22040 = vmatpush3.msra.mxu1 %v17588_v49 }
0x621b   :  { %v17441_v6 = vmul.f32 %v23457_v5, %v23453_v22  ;;  %23043 = vmatprep.subr.bf16.mxu1 %v23042_v63 }
0x621d   :  { %22037 = vmatmul.mubr.msk.f32.vlgmr.msra.gmra.mrb[230].mxu0 %vm718_vm8, %v17441_v6 }
0x621e   :  { %23037 = vmatpush3.bf16.msra.mxu0 %v23034_v59  ;;  %22052 = vmatprep.mubr.msk.f32.mxu0 %vm253_vm5, %v24832_v51 }
0x621f   :  { %23039 = vmatprep.subr.bf16.mxu0 %v23038_v17 }
0x6222   :  { %23041 = vmatpush3.bf16.msra.mxu0 %v23038_v17 }
0x6223   :  { %23051 = vmatprep.subr.bf16.mxu0 %v23050_v40 }
0x6225   :  { %22053 = vmatmul.mubr.msk.f32.vlgmr.msra.gmra.mrb[232].mxu0 %vm253_vm5, %v24834_v7 }
0x6226   :  { %23053 = vmatpush3.bf16.msra.mxu0 %v23050_v40  ;;  %22077 = vmatprep.mubr.msk.f32.mxu0 %vm253_vm5, %v24433_v12 }
0x6227   :  { %23055 = vmatprep.subr.bf16.mxu0 %v23054_v53 }
0x622a   :  { %23057 = vmatpush3.bf16.msra.mxu0 %v23054_v53 }
0x622b   :  { %23062 = vmatprep.subr.bf16.mxu0 %v23532_v41 }
0x622d   :  { %22078 = vmatmul.mubr.msk.f32.vlgmr.msra.gmra.mrb[234].mxu0 %vm253_vm5, %v24436_v20 }
0x622e   :  { %22080 = vmatprep.mubr.msk.f32.mxu0 %vm253_vm5, %v24442_v43 }
0x6231   :  { %22081 = vmatmul.mubr.msk.f32.gmra.mrb[236].mxu0 %vm253_vm5, %v24444_v36 }
0x6232   :  { %22094 = vmatprep.mubr.msk.f32.mxu0 %vm23531_vm10, %v23530_v34 }
0x62ec   :  { %v17511_v14 = vpop.f32.mrb[210].mxu1 }
0x62ed   :  { %v22031_v31 = vpop.f32.mrb[211].mxu1  ;;  %22041 = vmatprep.mubr.msk.f32.mxu1 %vm539_vm6, %v17511_v14 }
0x62f0   :  { %v17584_v35 = vpop.f32.mrb[230].mxu0 }
0x62f1   :  { %v22038_v37 = vpop.f32.mrb[231].mxu0  ;;  %22042 = vmatmul.mubr.msk.f32.vlgmr.msra.gmra.mrb[202].mxu1 %vm539_vm6, %v17584_v35 }
0x62f2   :  { %23045 = vmatpush3.bf16.msra.mxu1 %v23042_v63  ;;  %22063 = vmatprep.mubr.msk.f32.mxu1 %vm253_vm5, %v24433_v12 }
0x62f3   :  { %23047 = vmatprep.subr.bf16.mxu1 %v23046_v46 }
0x62f6   :  { %23049 = vmatpush3.bf16.msra.mxu1 %v23046_v46 }
0x62f7   :  { %23058 = vmatprep.subr.bf16.mxu1 %v23532_v41 }
0x62f8   :  { %v22054_v16 = vpop.f32.mrb[232].mxu0 }
0x62f9   :  { %v17747_v33 = vpop.f32.mrb[233].mxu0  ;;  %22064 = vmatmul.mubr.msk.f32.vlgmr.msra.gmra.mrb[212].mxu1 %vm253_vm5, %v24436_v20  ;;  %v17753_v0 = vadd.f32 %v22054_v16, %v19329_v61 }
0x62fa   :  { %22066 = vmatprep.mubr.msk.f32.mxu1 %vm253_vm5, %v24442_v43  ;;  %v17748_v47 = vadd.f32 %v19329_v61, %v17747_v33  ;;  %v18501_v61 = vld [vmem:[#allocation2 + $0xea8] sm:$0xff] }
0x62fd   :  { %22067 = vmatmul.mubr.msk.f32.gmra.mrb[214].mxu1 %vm253_vm5, %v24444_v36 }
0x62fe   :  { %22087 = vmatprep.mubr.msk.f32.mxu1 %vm23531_vm10, %v23530_v34 }
0x6300   :  { %v22079_v12 = vpop.f32.mrb[234].mxu0 }
0x6301   :  { %v17931_v19 = vadd.f32 %v22079_v12, %v19337_v15  ;;  %v17925_v50 = vpop.f32.mrb[235].mxu0 }
0x6302   :  { %v17926_v38 = vadd.f32 %v19337_v15, %v17925_v50 }
0x6304   :  { %v23067_v39 = vpack.c.bf16 %v17931_v19, %v17926_v38  ;;  %v22082_v48 = vpop.f32.mrb[236].mxu0 }
0x6305   :  { %v17941_v52 = vadd.f32 %v22082_v48, %v19337_v15  ;;  %v17935_v29 = vpop.f32.mrb[237].mxu0 }
0x6306   :  { %v17936_v26 = vadd.f32 %v19337_v15, %v17935_v29 }
0x6308   :  { %v23070_v20 = vpack.c.bf16 %v17941_v52, %v17936_v26 }
0x63cc   :  { %v22065_v55 = vpop.f32.mrb[212].mxu1 }
0x63cd   :  { %v17837_v43 = vadd.f32 %v22065_v55, %v19332_v25  ;;  %v17831_v56 = vpop.f32.mrb[213].mxu1  ;;  %v18407_v55 = vld [vmem:[#allocation2 + $0xe70] sm:$0xff] }
0x63ce   :  { %v17832_v57 = vadd.f32 %v19332_v25, %v17831_v56 }
0x63d0   :  { %v23059_v36 = vpack.c.bf16 %v17837_v43, %v17832_v57  ;;  %v22068_v60 = vpop.f32.mrb[214].mxu1  ;;  %v18408_v43 = vld [vmem:[#allocation2 + $0xe78] sm:$0xff]  ;;  %v18497_v57 = vld [vmem:[#allocation2 + $0xe88] sm:$0xff] }
0x63d1   :  { %v17847_v23 = vadd.f32 %v22068_v60, %v19332_v25  ;;  %v17841_v21 = vpop.f32.mrb[215].mxu1  ;;  %v23076_v56 = vpack.c.bf16 %v18408_v43, %v18407_v55  ;;  %v18499_v60 = vld [vmem:[#allocation2 + $0xe98] sm:$0xff]  ;;  %v19361_v55 = vld [vmem:[#allocation2 + $0xef0] ss:$0 sm:$0xff] }
0x63d2   :  { %v17842_v24 = vadd.f32 %v19332_v25, %v17841_v21  ;;  %23061 = vmatpush3.bf16.xpose.msk.msra.mxu1 %vm23631_vm7, %v23059_v36  ;;  %v18498_v36 = vld [vmem:[#allocation2 + $0xe90] sm:$0xff]  ;;  %v18500_v21 = vld [vmem:[#allocation2 + $0xea0] sm:$0xff] }
0x63d3   :  { %23066 = vmatprep.subr.bf16.mxu1 %v23532_v41 }
0x63d4   :  { %v23063_v62 = vpack.c.bf16 %v17847_v23, %v17842_v24  ;;  %v23080_v23 = vpack.c.bf16 %v18498_v36, %v18497_v57  ;;  %v23084_v24 = vpack.c.bf16 %v18500_v21, %v18499_v60  ;;  %v19362_v57 = vld [vmem:[#allocation2 + $0xef8] ss:$0 sm:$0xff] }
0x63d6   :  { %23065 = vmatpush3.bf16.xpose.msk.msra.mxu0 %vm23631_vm7, %v23063_v62  ;;  %v18502_v62 = vld [vmem:[#allocation2 + $0xeb0] sm:$0xff] }
0x63d9   :  { %22088 = vmatmul.mubr.msk.f32.vlgmr.msra.gmra.mrb[216].mxu1 %vm539_vm6, %v17748_v47  ;;  %v23088_v47 = vpack.c.bf16 %v18502_v62, %v18501_v61 }
0x63da   :  { %23068 = vmatpush3.bf16.msra.mxu1 %v23067_v39  ;;  %22101 = vmatprep.mubr.msk.f32.mxu1 %vm23531_vm10, %v23530_v34 }
0x63db   :  { %23069 = vmatprep.subr.bf16.mxu1 %v23532_v41 }
0x63dd   :  { %22095 = vmatmul.mubr.msk.f32.vlgmr.msra.gmra.mrb[238].mxu0 %vm539_vm6, %v17753_v0 }
0x64ac   :  { %v18019_v1 = vpop.f32.mrb[216].mxu1 }
0x64ad   :  { %v18102_v22 = vmul.f32 0.35355338, %v18019_v1  ;;  %v22089_v28 = vpop.f32.mrb[217].mxu1 }
0x64af   :  { %v18104_v13 = vsel %vm718_vm8, %v18102_v22, -inf }
0x64b0   :  { %v18098_v2 = vpop.f32.mrb[238].mxu0  ;;  %18105 = vmax.xlane.f32.xlu0 %v18104_v13 }
0x64b1   :  { %v18103_v54 = vmul.f32 0.35355338, %v18098_v2  ;;  %v22096_v59 = vpop.f32.mrb[239].mxu0 }
0x64b2   :  { %v19353_v59 = vld [vmem:[#allocation2 + $0xee0] ss:$0 sm:$0xff] }
0x64b3   :  { %v18107_v44 = vsel %vm718_vm8, %v18103_v54, -inf }
0x64b4   :  { %18108 = vmax.xlane.f32.xlu1 %v18107_v44 }
0x653d   :  { %v18106_v42 = vpop.xlane.xlu0 %18105 }
0x653e   :  { %v18110_v27 = vsub.f32 %v18102_v22, %v18106_v42 }
0x6540   :  { %v18112_v3 = vmul.f32 1.442695, %v18110_v27 }
0x6541   :  { %v18109_v4 = vpop.xlane.xlu1 %18108 }
0x6542   :  { %23458 = vpow2.f32 %v18112_v3  ;;  %v18111_v41 = vsub.f32 %v18103_v54, %v18109_v4  ;;  %v19354_v3 = vld [vmem:[#allocation2 + $0xee8] ss:$0 sm:$0xff] }
0x6544   :  { %v18114_v18 = vmul.f32 1.442695, %v18111_v41 }
0x6546   :  { %23460 = vpow2.f32 %v18114_v18 }
0x654c   :  { %v23459_v5 = vpop.eup %23458 }
0x654d   :  { %v18116_v6 = vsel %vm718_vm8, %v23459_v5, 0.0 }
0x654e   :  { %18117 = vadd.xlane.f32.xlu0 %v18116_v6  ;;  %v18503_v6 = vld [vmem:[#allocation2 + $0xeb8] sm:$0xff] }
0x6550   :  { %v23461_v17 = vpop.eup %23460 }
0x6551   :  { %v18119_v45 = vsel %vm718_vm8, %v23461_v17, 0.0 }
0x6552   :  { %18120 = vadd.xlane.f32.xlu1 %v18119_v45 }
0x65db   :  { %v18118_v10 = vpop.xlane.xlu0 %18117 }
0x65dc   :  { %23462 = vrcp.f32 %v18118_v10  ;;  %v19355_v10 = vld [vmem:[#allocation2 + $0xe80] ss:$0 sm:$0xff] }
0x65df   :  { %v18121_v40 = vpop.xlane.xlu1 %18120 }
0x65e0   :  { %23464 = vrcp.f32 %v18121_v40 }
0x65e6   :  { %v23463_v9 = vpop.eup %23462 }
0x65e7   :  { %v18124_v8 = vmul.f32 %v23463_v9, %v23459_v5 }
0x65e9   :  { %22102 = vmatmul.mubr.msk.f32.vlgmr.msra.gmra.mrb[218].mxu1 %vm718_vm8, %v18124_v8 }
0x65ea   :  { %v23465_v53 = vpop.eup %23464  ;;  %23071 = vmatpush3.bf16.msra.mxu1 %v23070_v20  ;;  %22108 = vmatprep.mubr.msk.f32.mxu1 %vm23531_vm10, %v23530_v34  ;;  %v18406_v20 = vld [vmem:[#allocation2 + $0xe68] sm:$0xff] }
0x65eb   :  { %v18125_v49 = vmul.f32 %v23465_v53, %v23461_v17  ;;  %22111 = vmatprep.subr.mxu1 %v18272_v58  ;;  %v18504_v17 = vld [vmem:[#allocation2 + $0xec0] sm:$0xff] }
0x65ec   :  { %v23092_v45 = vpack.c.bf16 %v18504_v17, %v18503_v6  ;;  %v19363_v17 = vld [vmem:[#allocation2 + $0xf00] ss:$0 sm:$0xff] }
0x65ed   :  { %22109 = vmatmul.mubr.msk.f32.vlgmr.msra.gmra.mrb[220].mxu1 %vm718_vm8, %v18125_v49 }
0x65ee   :  { %22112 = vmatpush3.msra.mxu1 %v18272_v58 }
0x65ef   :  { %23081 = vmatprep.subr.bf16.mxu1 %v23080_v23 }
0x66bc   :  { %v18195_v11 = vpop.f32.mrb[218].mxu1 }
0x66bd   :  { %v22103_v63 = vpop.f32.mrb[219].mxu1  ;;  %22113 = vmatprep.mubr.msk.f32.mxu1 %vm539_vm6, %v18195_v11  ;;  %v19358_v11 = vld [vmem:[#allocation2 + $0xec8] ss:$0 sm:$0xff] }
0x66c0   :  { %v18268_v14 = vpop.f32.mrb[220].mxu1 }
0x66c1   :  { %v22110_v32 = vpop.f32.mrb[221].mxu1  ;;  %22114 = vmatmul.mubr.msk.f32.vlgmr.msra.gmra.mrb[202].mxu1 %vm539_vm6, %v18268_v14 }
0x66c2   :  { %23083 = vmatpush3.bf16.msra.mxu1 %v23080_v23 }
0x66c3   :  { %23085 = vmatprep.subr.bf16.mxu1 %v23084_v24 }
0x66c6   :  { %23087 = vmatpush3.bf16.msra.mxu1 %v23084_v24 }
0x66c7   :  { %23089 = vmatprep.subr.bf16.mxu1 %v23088_v47 }
0x66ca   :  { %23091 = vmatpush3.bf16.msra.mxu1 %v23088_v47 }
0x66cb   :  { %23093 = vmatprep.subr.bf16.mxu1 %v23092_v45 }
0x66ce   :  { %23095 = vmatpush3.bf16.msra.mxu1 %v23092_v45 }
0x6794   :  { %v22115_v31 = vpop.f32.mrb[202].mxu1 }
0x6795   :  { %v18362_v46 = vadd.f32 %v22115_v31, %v19352_v30  ;;  %v18345_v35 = vpop.f32.mrb[203].mxu1 }
0x6796   :  { %v18361_v37 = vadd.f32 %v19352_v30, %v18345_v35 }
0x6797   :  { %v18364_v34 = vadd.f32 %v18362_v46, %v24834_v7 }
0x6798   :  { %v18363_v16 = vadd.f32 %v18361_v37, %v24832_v51  ;;  %v18405_v51 = vld [vmem:[#allocation2 + $0xe60] sm:$0xff] }
0x6799   :  { %v18370_v33 = vsel %vm253_vm5, %v18364_v34, 0.0  ;;  %v23072_v25 = vpack.c.bf16 %v18406_v20, %v18405_v51 }
0x679a   :  { %18371 = vadd.xlane.f32.xlu1 %v18370_v33  ;;  %v18367_v15 = vsel %vm253_vm5, %v18363_v16, 0.0 }
0x679b   :  { %18368 = vadd.xlane.f32.xlu0 %v18367_v15  ;;  %23073 = vmatprep.subr.bf16.mxu0 %v23072_v25 }
0x679c   :  { %23075 = vmatpush3.bf16.msra.mxu0 %v23072_v25 }
0x679d   :  { %23077 = vmatprep.subr.bf16.mxu0 %v23076_v56 }
0x67a0   :  { %23079 = vmatpush3.bf16.msra.mxu0 %v23076_v56 }
0x6827   :  { %v18372_v12 = vpop.xlane.xlu1 %18371 }
0x6828   :  { %v18374_v19 = vmul.f32 0.03125, %v18372_v12  ;;  %v18369_v50 = vpop.xlane.xlu0 %18368 }
0x6829   :  { %v18373_v38 = vmul.f32 0.03125, %v18369_v50 }
0x682a   :  { %v18376_v39 = vsub.f32 %v18364_v34, %v18374_v19 }
0x682b   :  { %v18375_v48 = vsub.f32 %v18363_v16, %v18373_v38 }
0x682c   :  { %v18378_v52 = vmul.f32 %v18376_v39, %v18376_v39 }
0x682d   :  { %v18377_v29 = vmul.f32 %v18375_v48, %v18375_v48 }
0x682e   :  { %v18382_v26 = vsel %vm253_vm5, %v18378_v52, 0.0 }
0x682f   :  { %18383 = vadd.xlane.f32.xlu1 %v18382_v26  ;;  %v18379_v7 = vsel %vm253_vm5, %v18377_v29, 0.0 }
0x6830   :  { %18380 = vadd.xlane.f32.xlu0 %v18379_v7 }
0x68bc   :  { %v18384_v0 = vpop.xlane.xlu1 %18383 }
0x68bd   :  { %v18386_v1 = vmul.f32 0.03125, %v18384_v0  ;;  %v18381_v22 = vpop.xlane.xlu0 %18380 }
0x68be   :  { %v18385_v28 = vmul.f32 0.03125, %v18381_v22 }
0x68bf   :  { %v18388_v13 = vadd.f32 1e-05, %v18386_v1 }
0x68c0   :  { %v18387_v2 = vadd.f32 1e-05, %v18385_v28 }
0x68c1   :  { %23466 = vrsqrt.f32 %v18388_v13 }
0x68c2   :  { %23468 = vrsqrt.f32 %v18387_v2 }
0x68cb   :  { %v23467_v54 = vpop.eup %23466 }
0x68cc   :  { %v23469_v44 = vpop.eup %23468  ;;  %v18392_v42 = vmul.f32 %v23467_v54, %v18376_v39 }
0x68cd   :  { %v18391_v27 = vmul.f32 %v23469_v44, %v18375_v48 }
0x68ce   :  { %v18398_v4 = vmul.f32 %v19353_v59, %v18392_v42  ;;  %v18686_v42 = vld [vmem:[#allocation2 + $0xf18] sm:$0x1] }
0x68cf   :  { %v18397_v41 = vmul.f32 %v19353_v59, %v18391_v27  ;;  %23144 = vpush %v18686_v42 }
0x68d0   :  { %v18404_v5 = vadd.f32 %v19354_v3, %v18398_v4 }
0x68d1   :  { %v18403_v18 = vadd.f32 %v19354_v3, %v18397_v41 }
0x68d3   :  { %22124 = vmatprep.mubr.msk.f32.mxu0 %vm253_vm5, %v18403_v18 }
0x68d4   :  { %22125 = vmatmul.mubr.msk.f32.vlgmr.msra.gmra.mrb[240].mxu0 %vm253_vm5, %v18404_v5 }
0x6900   :  { %s23145_s0 = spop %23144 }
0x69a7   :  { %v22126_v40 = vpop.f32.mrb[240].mxu0 }
0x69a8   :  { %v18492_v9 = vadd.f32 %v22126_v40, %v19355_v10  ;;  %v18486_v8 = vpop.f32.mrb[241].mxu0  ;;  %v19364_v40 = vld [vmem:[#allocation2 + $0xf08] ss:$0 sm:$0xff] }
0x69a9   :  { %v18487_v53 = vadd.f32 %v19355_v10, %v18486_v8 }
0x69aa   :  { %v18496_v58 = vmax.f32 %v18492_v9, 0.0 }
0x69ab   :  { %v18495_v49 = vmax.f32 %v18487_v53, 0.0  ;;  %v19365_v53 = vld [vmem:[#allocation2 + $0xf10] ss:$0 sm:$0xff] }
0x69ad   :  { %22143 = vmatprep.mubr.msk.f32.mxu1 %vm3530_vm9, %v18495_v49 }
0x69ae   :  { %22144 = vmatmul.mubr.msk.f32.vlgmr.msra.gmra.mrb[222].mxu1 %vm3530_vm9, %v18496_v58 }
0x6a81   :  { %v22145_v63 = vpop.f32.mrb[222].mxu1 }
0x6a82   :  { %v18588_v14 = vadd.f32 %v22145_v63, %v19358_v11  ;;  %v18582_v32 = vpop.f32.mrb[223].mxu1 }
0x6a83   :  { %v18583_v30 = vadd.f32 %v19358_v11, %v18582_v32 }
0x6a84   :  { %v18592_v31 = vadd.f32 %v18588_v14, %v18404_v5 }
0x6a85   :  { %v18591_v46 = vadd.f32 %v18583_v30, %v18403_v18 }
0x6a86   :  { %v18598_v35 = vsel %vm253_vm5, %v18592_v31, 0.0 }
0x6a87   :  { %18599 = vadd.xlane.f32.xlu1 %v18598_v35  ;;  %v18595_v37 = vsel %vm253_vm5, %v18591_v46, 0.0 }
0x6a88   :  { %18596 = vadd.xlane.f32.xlu0 %v18595_v37  ;;  %v18689_v37 = vstv %s23145_s0 }
0x6b14   :  { %v18600_v34 = vpop.xlane.xlu1 %18599 }
0x6b15   :  { %v18602_v16 = vmul.f32 0.03125, %v18600_v34  ;;  %v18597_v33 = vpop.xlane.xlu0 %18596 }
0x6b16   :  { %v18601_v15 = vmul.f32 0.03125, %v18597_v33 }
0x6b17   :  { %v18604_v12 = vsub.f32 %v18592_v31, %v18602_v16  ;;  %v18695_v31 = vlaneseq }
0x6b18   :  { %v18603_v19 = vsub.f32 %v18591_v46, %v18601_v15 }
0x6b19   :  { %v18606_v50 = vmul.f32 %v18604_v12, %v18604_v12  ;;  %v18696_v46 = vand.u32 127, %v18695_v31  ;;  %v18698_v35 = vshrl.u32 %v18695_v31, 7 }
0x6b1a   :  { %v18605_v38 = vmul.f32 %v18603_v19, %v18603_v19 }
0x6b1b   :  { %v18610_v39 = vsel %vm253_vm5, %v18606_v50, 0.0  ;;  %v18699_v34 = vsub.s32 %v18696_v46, %v18698_v35 }
0x6b1c   :  { %18611 = vadd.xlane.f32.xlu1 %v18610_v39  ;;  %v18607_v48 = vsel %vm253_vm5, %v18605_v38, 0.0 }
0x6b1d   :  { %18608 = vadd.xlane.f32.xlu0 %v18607_v48 }
0x6ba9   :  { %v18612_v52 = vpop.xlane.xlu1 %18611 }
0x6baa   :  { %v18614_v29 = vmul.f32 0.03125, %v18612_v52  ;;  %v18609_v26 = vpop.xlane.xlu0 %18608 }
0x6bab   :  { %v18613_v7 = vmul.f32 0.03125, %v18609_v26 }
0x6bac   :  { %v18616_v51 = vadd.f32 1e-05, %v18614_v29 }
0x6bad   :  { %v18615_v20 = vadd.f32 1e-05, %v18613_v7 }
0x6bae   :  { %23470 = vrsqrt.f32 %v18616_v51 }
0x6baf   :  { %23472 = vrsqrt.f32 %v18615_v20 }
0x6bb8   :  { %v23471_v25 = vpop.eup %23470 }
0x6bb9   :  { %v23473_v43 = vpop.eup %23472  ;;  %v18620_v56 = vmul.f32 %v23471_v25, %v18604_v12 }
0x6bba   :  { %v18619_v36 = vmul.f32 %v23473_v43, %v18603_v19 }
0x6bbb   :  { %v18626_v60 = vmul.f32 %v19361_v55, %v18620_v56 }
0x6bbc   :  { %v18625_v23 = vmul.f32 %v19361_v55, %v18619_v36 }
0x6bbd   :  { %v18632_v21 = vadd.f32 %v19362_v57, %v18626_v60 }
0x6bbe   :  { %v18631_v24 = vadd.f32 %v19362_v57, %v18625_v23 }
0x6bbf   :  { %v18638_v61 = vsel %vm253_vm5, %v18632_v21, 0.0 }
0x6bc0   :  { %18639 = vadd.xlane.f32.xlu1 %v18638_v61  ;;  %v18635_v62 = vsel %vm253_vm5, %v18631_v24, 0.0 }
0x6bc1   :  { %18636 = vadd.xlane.f32.xlu0 %v18635_v62 }
0x6c4d   :  { %v18640_v47 = vpop.xlane.xlu1 %18639 }
0x6c4e   :  { %v18642_v0 = vmul.f32 0.03125, %v18640_v47  ;;  %v18637_v1 = vpop.xlane.xlu0 %18636 }
0x6c4f   :  { %v18641_v22 = vmul.f32 0.03125, %v18637_v1 }
0x6c50   :  { %v18644_v28 = vsub.f32 %v18632_v21, %v18642_v0 }
0x6c51   :  { %v18643_v13 = vsub.f32 %v18631_v24, %v18641_v22 }
0x6c52   :  { %v18646_v2 = vmul.f32 %v18644_v28, %v18644_v28 }
0x6c53   :  { %v18645_v54 = vmul.f32 %v18643_v13, %v18643_v13 }
0x6c54   :  { %v18650_v59 = vsel %vm253_vm5, %v18646_v2, 0.0 }
0x6c55   :  { %18651 = vadd.xlane.f32.xlu1 %v18650_v59  ;;  %v18647_v44 = vsel %vm253_vm5, %v18645_v54, 0.0 }
0x6c56   :  { %18648 = vadd.xlane.f32.xlu0 %v18647_v44 }
0x6ce2   :  { %v18652_v27 = vpop.xlane.xlu1 %18651 }
0x6ce3   :  { %v18654_v3 = vmul.f32 0.03125, %v18652_v27  ;;  %v18649_v4 = vpop.xlane.xlu0 %18648 }
0x6ce4   :  { %v18653_v41 = vmul.f32 0.03125, %v18649_v4 }
0x6ce5   :  { %v18656_v18 = vadd.f32 1e-05, %v18654_v3 }
0x6ce6   :  { %v18655_v5 = vadd.f32 1e-05, %v18653_v41 }
0x6ce7   :  { %23474 = vrsqrt.f32 %v18656_v18 }
0x6ce8   :  { %23476 = vrsqrt.f32 %v18655_v5 }
0x6cf1   :  { %v23475_v6 = vpop.eup %23474 }
0x6cf2   :  { %v23477_v45 = vpop.eup %23476  ;;  %v18660_v10 = vmul.f32 %v23475_v6, %v18644_v28 }
0x6cf3   :  { %v18659_v9 = vmul.f32 %v23477_v45, %v18643_v13 }
0x6cf4   :  { %v18666_v8 = vmul.f32 %v19363_v17, %v18660_v10 }
0x6cf5   :  { %v18665_v49 = vmul.f32 %v19363_v17, %v18659_v9 }
0x6cf6   :  { %v18672_v58 = vadd.f32 %v19364_v40, %v18666_v8 }
0x6cf7   :  { %v18671_v11 = vadd.f32 %v19364_v40, %v18665_v49 }
0x6cf8   :  { %v18679_v63 = vmul.f32 %v19365_v53, %v18672_v58 }
0x6cf9   :  { %v18678_v14 = vmul.f32 %v19365_v53, %v18671_v11 }
0x6cfa   :  { %v18683_v32 = vsel %vm253_vm5, %v18679_v63, 0.0 }
0x6cfb   :  { %18684 = vadd.xlane.f32.xlu1 %v18683_v32  ;;  %v18680_v30 = vsel %vm253_vm5, %v18678_v14, 0.0 }
0x6cfc   :  { %18681 = vadd.xlane.f32.xlu0 %v18680_v30 }
0x6d88   :  { %v18685_v16 = vpop.xlane.xlu1 %18684 }
0x6d89   :  { %v18692_v33 = vadd.f32 %v18689_v37, %v18685_v16  ;;  %v18682_v15 = vpop.xlane.xlu0 %18681 }
0x6d8a   :  { %v18691_v12 = vadd.f32 %v18689_v37, %v18682_v15 }
0x6d8b   :  { %v18704_v19 = vrot.slane %v18692_v33, %v18699_v34 }
0x6d8c   :  { %v18700_v50 = vrot.slane %v18691_v12, %v18699_v34 }
0x6d8e   :  { %v18706_v38 = vsel %vm18705_vm11, %v18704_v19, %v18700_v50 }
0x6d8f   :  { %18709 = vst.msk [vmem:[#allocation5] sm:$0x3] %vm18708_vm12, %v18706_v38 }
0x6d90   :  { %23511 = shalt.err (!%p23508_p12)
}
0x6d91   :  { %s23512_s14 = scalar_lea.hbm %s25047_s3, 32 }
0x6d92   :  { %p23513_p13 = scmp.ne.s32.totalorder %s25047_s3, %s23512_s14  ;;  %p23516_p0 = scmp.lt.u32.totalorder %s23512_s14, %s25047_s3 }
0x6d94   :  { %p23518_p1 = pnand %p23516_p0, %p23513_p13 }
0x6d96   :  { %23521 = shalt.err (!%p23518_p1)
}
0x6d97   :  { %18719 = dma.vmem_to_hbm [thread:$0]  %s18717_s10, 32, %s25047_s3, [#allocation4]  }
0x6d98   :  { %23524 = dma.done.wait [#allocation4], 32  }
0x6d99   :  { %23525 = vsyncadd [#allocation4], 4294967264 }
0x6d9a   :  { %18723 = vsyncpa [#allocation3], 1 }
0x6d9b   :  { %18724 = vsyncpa [#allocation4], 1 }

</bundles_post_ra>
